<compile_context>
chip_gen: v7x
topology: tpu7x:2x2x1
jax: 0.10.0
libtpu: 0.0.40
codegen_flags: <defaults>
</compile_context>

<pallas_src>
import math

import numpy as np

import jax
import jax.numpy as jnp
from jax.experimental import pallas as pl
from jax.experimental.pallas import tpu as pltpu

_HIGHEST = jax.lax.Precision.HIGHEST


# ----------------------------------------------------------------------------------
# 1-D interpolation matrices (built at trace time with numpy; fully static)
# ----------------------------------------------------------------------------------
def _nearest_matrix(in_size, out_size, scale_factor):
    # PyTorch 'nearest' with an explicit scale_factor: src = min(floor(dst / sf), in-1)
    inv = 1.0 / float(scale_factor)
    dst = np.arange(out_size)
    src = np.minimum(np.floor(dst * inv).astype(np.int64), in_size - 1)
    m = np.zeros((out_size, in_size), np.float32)
    m[dst, src] = 1.0
    return m


def _bilinear_matrix(in_size, out_size, scale_factor):
    # PyTorch 'bilinear', align_corners=False: src = (dst + 0.5)/sf - 0.5 (clamped >= 0)
    inv = 1.0 / float(scale_factor)
    dst = np.arange(out_size, dtype=np.float64)
    src = np.maximum((dst + 0.5) * inv - 0.5, 0.0)
    i0 = np.minimum(np.floor(src).astype(np.int64), in_size - 1)
    i1 = np.minimum(i0 + 1, in_size - 1)
    w1 = src - i0
    w0 = 1.0 - w1
    m = np.zeros((out_size, in_size), np.float64)
    np.add.at(m, (np.arange(out_size), i0), w0)
    np.add.at(m, (np.arange(out_size), i1), w1)
    return m.astype(np.float32)


# ----------------------------------------------------------------------------------
# VMEM budgeting (per-generation)
# ----------------------------------------------------------------------------------
def _vmem_capacity_bytes():
    try:
        cap = getattr(pltpu.get_tpu_info(), "vmem_capacity_bytes", None)
        if cap:
            return int(cap)
    except Exception:
        pass
    return 64 * 1024 * 1024  # conservative floor (v7x per-TC VMEM)


def _vmem_plan():
    cap = _vmem_capacity_bytes()
    # v7x (64 MiB): limit 48 MiB; v5e/v6e (128 MiB): limit 96 MiB. Blocks use ~half of it,
    # leaving headroom for compiler temporaries and double-buffering slack.
    vmem_limit = int(min(max(cap * 3 // 4, 32 << 20), 100 << 20))
    block_budget = vmem_limit // 2
    return vmem_limit, block_budget


# ----------------------------------------------------------------------------------
# Kernels
# ----------------------------------------------------------------------------------
def _interp2d_kron_kernel(x_ref, kt_ref, o_ref):
    # x_ref: (pb, H*W) in the input dtype; kt_ref: (H*W, Ho*Wo) f32; o_ref: (pb, Ho*Wo).
    xf = x_ref[...].astype(jnp.float32)
    acc = jnp.dot(xf, kt_ref[...], precision=_HIGHEST,
                  preferred_element_type=jnp.float32)
    o_ref[...] = acc.astype(o_ref.dtype)


def _make_sep_kernel(width_first):
    # x_ref: (pb, H, W); awt_ref: (W, Wo) f32; ah_ref: (tho, H) f32; o_ref: (pb, tho, Wo)
    def kernel(x_ref, awt_ref, ah_ref, o_ref):
        awt = awt_ref[...]
        ah = ah_ref[...]
        for p in range(x_ref.shape[0]):  # small static unroll; planes are large on this path
            xp = x_ref[p].astype(jnp.float32)
            if width_first:
                t = jnp.dot(xp, awt, precision=_HIGHEST, preferred_element_type=jnp.float32)
                r = jnp.dot(ah, t, precision=_HIGHEST, preferred_element_type=jnp.float32)
            else:
                t = jnp.dot(ah, xp, precision=_HIGHEST, preferred_element_type=jnp.float32)
                r = jnp.dot(t, awt, precision=_HIGHEST, preferred_element_type=jnp.float32)
            o_ref[p] = r.astype(o_ref.dtype)

    return kernel


# ----------------------------------------------------------------------------------
# Wrapper
# ----------------------------------------------------------------------------------
def interpolate2d(x_nchw, scale_factor, mode="nearest"):
    """Pallas equivalent of F.interpolate(x, scale_factor=scale_factor, mode=mode)."""
    N, C, H, W = x_nchw.shape
    if isinstance(scale_factor, (tuple, list)):
        sfh, sfw = float(scale_factor[0]), float(scale_factor[1])
    else:
        sfh = sfw = float(scale_factor)
    Ho = int(math.floor(H * sfh))
    Wo = int(math.floor(W * sfw))

    if mode == "nearest":
        ah = _nearest_matrix(H, Ho, sfh)
        aw = _nearest_matrix(W, Wo, sfw)
    elif mode == "bilinear":
        ah = _bilinear_matrix(H, Ho, sfh)
        aw = _bilinear_matrix(W, Wo, sfw)
    else:
        raise NotImplementedError(f"Interpolate2D: mode '{mode}' not implemented")

    in_dtype = x_nchw.dtype
    itemsize = jnp.dtype(in_dtype).itemsize
    sub = max(8, 32 // itemsize)  # sublane tile of the in/out dtype (f32:8, bf16:16, int8:32)

    P = N * C
    HW, HoWo = H * W, Ho * Wo
    vmem_limit, block_budget = _vmem_plan()

    kron_bytes = 4 * HW * HoWo
    use_kron = kron_bytes <= (4 << 20)

    if use_kron:
        # --- Path 1: one big matmul over flattened planes (lane-dense output) ------------
        x2 = x_nchw.reshape(P, HW)                    # contiguous collapse -> free reshape
        kt = jnp.asarray(np.kron(ah, aw).T.copy())    # (H*W, Ho*Wo) f32, resident in VMEM

        row_bytes = (HW + HoWo) * (2 * itemsize + 4)  # 2x-buffered DMA + f32 compute copies
        pb = max(1, (block_budget - 2 * kron_bytes) // row_bytes)
        pb = min(int(pb), P)
        if pb < P:
            pb = min(P, max(sub, (pb // sub) * sub))
        if P >= 8 * sub:                              # >=8 grid steps: megacore + pipelining
            pb = min(pb, max(sub, ((P // 8) // sub) * sub))

        out2 = pl.pallas_call(
            _interp2d_kron_kernel,
            out_shape=jax.ShapeDtypeStruct((P, HoWo), in_dtype),
            grid=(pl.cdiv(P, pb),),
            in_specs=[
                pl.BlockSpec((pb, HW), lambda i: (i, 0)),
                pl.BlockSpec((HW, HoWo), lambda i: (0, 0)),
            ],
            out_specs=pl.BlockSpec((pb, HoWo), lambda i: (i, 0)),
            compiler_params=pltpu.CompilerParams(
                dimension_semantics=("parallel",),
                vmem_limit_bytes=vmem_limit,
            ),
        )(x2, kt)
        return out2.reshape(N, C, Ho, Wo)

    # --- Path 2: separable two-matmul kernel for large planes, with Ho tiling -----------
    x3 = x_nchw.reshape(P, H, W)
    awt_j = jnp.asarray(aw.T.copy())   # (W, Wo) f32
    ah_j = jnp.asarray(ah)             # (Ho, H) f32

    def w_bytes(tho):
        return 2 * 4 * (W * Wo + tho * H)            # weight blocks, double-buffered

    def plane_bytes(tho):
        dma = 2 * (H * W + tho * Wo) * itemsize      # x / out blocks, double-buffered
        tmp = 4 * (H * W + max(H * Wo, tho * W) + tho * Wo)  # f32 temporaries
        return dma + tmp

    tho = Ho
    while tho > sub and w_bytes(tho) + plane_bytes(tho) > block_budget:
        tho = max(sub, ((tho // 2) // sub) * sub)

    pb = max(1, (block_budget - w_bytes(tho)) // plane_bytes(tho))
    pb = int(min(pb, P, 8))  # static unroll; per-plane matmuls are already MXU-sized here

    n_ho = pl.cdiv(Ho, tho)
    # Height-first when Ho is tiled (avoids recomputing the width pass per tile); otherwise
    # pick the order with fewer FLOPs / smaller intermediate.
    width_first = (n_ho == 1) and (H * Wo * (W + Ho) <= Ho * W * (H + Wo))

    out = pl.pallas_call(
        _make_sep_kernel(width_first),
        out_shape=jax.ShapeDtypeStruct((P, Ho, Wo), in_dtype),
        grid=(pl.cdiv(P, pb), n_ho),
        in_specs=[
            pl.BlockSpec((pb, H, W), lambda i, j: (i, 0, 0)),
            pl.BlockSpec((W, Wo), lambda i, j: (0, 0)),
            pl.BlockSpec((tho, H), lambda i, j: (j, 0)),
        ],
        out_specs=pl.BlockSpec((pb, tho, Wo), lambda i, j: (i, j, 0)),
        compiler_params=pltpu.CompilerParams(
            dimension_semantics=("parallel", "arbitrary"),
            vmem_limit_bytes=vmem_limit,
        ),
    )(x3, awt_j, ah_j)
    return out.reshape(N, C, Ho, Wo)


class Interpolate2D:
    """Mirror of the PyTorch module: Interpolate2D(scale_factor, mode='nearest')."""

    def __init__(self, scale_factor, mode="nearest"):
        self.sf = scale_factor
        self.mode = mode

    def __call__(self, x):
        return interpolate2d(x, self.sf, self.mode)


if __name__ == "__main__":
    key = jax.random.PRNGKey(0)
    x = jax.random.normal(key, (2, 4, 16, 16), jnp.float32)

    # Default mode ('nearest'), scale_factor=2.
    interp_nn = Interpolate2D(scale_factor=2)
    y_nn = jax.jit(interp_nn)(x)
    jax.block_until_ready(y_nn)
    assert y_nn.shape == (2, 4, 32, 32)

    # Gather-based reference: with precision=HIGHEST this is an (f32-)exact copy; the
    # tolerance is kept loose only to stay robust across matmul-precision defaults.
    idx = np.minimum(np.arange(32) // 2, 15)
    ref_nn = np.asarray(x)[:, :, idx][:, :, :, idx]
    assert np.allclose(np.asarray(y_nn), ref_nn, rtol=1e-2, atol=1e-4)

    # Bilinear (align_corners=False), fractional scale factor, same Kronecker kernel path.
    interp_bl = Interpolate2D(scale_factor=1.5, mode="bilinear")
    y_bl = jax.jit(interp_bl)(x)
    jax.block_until_ready(y_bl)
    assert y_bl.shape == (2, 4, 24, 24)

    ah64 = _bilinear_matrix(16, 24, 1.5).astype(np.float64)
    aw64 = _bilinear_matrix(16, 24, 1.5).astype(np.float64)
    ref_bl = np.einsum("oh,nchw,pw->ncop", ah64, np.asarray(x, np.float64), aw64)
    assert np.allclose(np.asarray(y_bl), ref_bl, rtol=2e-2, atol=2e-2)

    print("KERNEL_OK")
</pallas_src>

<mosaic_0001>
module attributes {stable_mosaic.version = 11 : i64} {
  func.func @_interp2d_kron_kernel(%arg0: i32, %arg1: memref<8x256xf32, #tpu.memory_space<vmem>>, %arg2: memref<256x1024xf32, #tpu.memory_space<vmem>>, %arg3: memref<8x1024xf32, #tpu.memory_space<vmem>>) attributes {dimension_semantics = [#tpu.dimension_semantics<parallel>], iteration_bounds = array<i64: 1>, scalar_prefetch = 0 : i64, scratch_operands = 0 : i64, tpu.core_type = #tpu.core_type<tc>, window_params = [{transform_indices = @transform_0, window_bounds = array<i64: 8, 256>}, {pipeline_mode = #tpu.pipeline_mode<synchronous>, transform_indices = @transform_1, window_bounds = array<i64: 256, 1024>}, {transform_indices = @transform_2, window_bounds = array<i64: 8, 1024>}]} {
    %c0 = arith.constant 0 : index
    %c0_0 = arith.constant 0 : index
    %0 = vector.load %arg1[%c0, %c0_0] : memref<8x256xf32, #tpu.memory_space<vmem>>, vector<8x256xf32>
    %c0_1 = arith.constant 0 : index
    %c0_2 = arith.constant 0 : index
    %1 = vector.load %arg2[%c0_1, %c0_2] : memref<256x1024xf32, #tpu.memory_space<vmem>>, vector<256x1024xf32>
    %cst = arith.constant dense<0.000000e+00> : vector<8x1024xf32>
    %2 = tpu.matmul %0, %1, %cst {dimension_numbers = #tpu.dot_dimension_numbers<[1], [0], [0], [1], [0, 0, 1, 1], [], []>, precision = #tpu.contract_precision<fp32>} : vector<8x256xf32>, vector<256x1024xf32>, vector<8x1024xf32> -> vector<8x1024xf32>
    %c0_3 = arith.constant 0 : index
    %c0_4 = arith.constant 0 : index
    %3 = vector.load %arg3[%c0_3, %c0_4] : memref<8x1024xf32, #tpu.memory_space<vmem>>, vector<8x1024xf32>
    tpu.vector_store %arg3[%c0_3, %c0_4], %2 {strides = array<i32>} : memref<8x1024xf32, #tpu.memory_space<vmem>>, vector<8x1024xf32>,
    return
  }
  func.func @transform_0(%arg0: i32) -> (i32, i32) {
    %c0_i32 = arith.constant 0 : i32
    %c0_i32_0 = arith.constant 0 : i32
    return %arg0, %c0_i32 : i32, i32
  }
  func.func @transform_1(%arg0: i32) -> (i32, i32) {
    %c0_i32 = arith.constant 0 : i32
    %c0_i32_0 = arith.constant 0 : i32
    %c0_i32_1 = arith.constant 0 : i32
    return %c0_i32, %c0_i32_0 : i32, i32
  }
  func.func @transform_2(%arg0: i32) -> (i32, i32) {
    %c0_i32 = arith.constant 0 : i32
    %c0_i32_0 = arith.constant 0 : i32
    return %arg0, %c0_i32 : i32, i32
  }
}

</mosaic_0001>

<bundles_post_ra>
// kernel: _unnamed_function_.1
= control target key start
LH: loop header
LB: loop body
LE: loop exit
PB: predicated region body
PF: predicated region fallthrough
CT: control target
= control target key end

     0   :  { %7 = vsyncpa [#allocation3], 0  ;;  %s7035_s9 = smov [#allocation2]   ;;  %s10602_s0 = inlined_call_operand.vmem [shape: f32[8,256], index: 0, kind: input, shape index: {}]   ;;  %s10603_s1 = inlined_call_operand.hbm [shape: f32[256,1024], index: 1, kind: input, shape index: {}]   ;;  %s10604_s2 = inlined_call_operand.vmem [shape: f32[8,1024], index: 2, kind: output, shape index: {}]  }
   0x1   :  { %s15_s10 = sshll.u32 %s7035_s9, 4  ;;  %s7011_s13 = scalar_lea.hbm %s10603_s1, 32768  ;;  %s16_s10 = int_to_ptr.vmem [resolvable:$true] %s15_s10 }
   0x2   :  { %p7012_p0 = scmp.ne.s32.totalorder %s10603_s1, %s7011_s13  ;;  %p7015_p1 = scmp.lt.u32.totalorder %s7011_s13, %s10603_s1 }
   0x4   :  { %p7017_p2 = pnand %p7015_p1, %p7012_p0 }
   0x6   :  { %7020 = shalt.err (!%p7017_p2)
}
   0x7   :  { %s7021_s18 = scalar_lea.vmem %s16_s10, 32768  ;;  %p7026_p4 = scmp.lt.s32.totalorder %s16_s10, %s16_s10 }
   0x8   :  { %p7022_p3 = scmp.ne.s32.totalorder %s16_s10, %s7021_s18  ;;  %p7027_p5 = scmp.lt.s32.totalorder %s7021_s18, %s7021_s18 }
   0xa   :  { %p7028_p6 = por %p7027_p5, %p7026_p4 }
   0xc   :  { %p7029_p7 = pnand %p7028_p6, %p7022_p3 }
   0xe   :  { %7032 = shalt.err (!%p7029_p7)
}
   0xf   :  { %s7036_s19 = smov 1024   ;;  %s7037_s20 = smov 64  }
  0x10   :  { %21 = dma.hbm_to_vmem [thread:$0]  %s10603_s1, 32768, %s16_s10, [#allocation3], %s7036_s19, %s7036_s19, %s7037_s20  }
  0x11   :  { %7033 = dma.done.wait [#allocation3], 32768  }
  0x12   :  { %7034 = vsyncadd [#allocation3], 4294934528  ;;  %v28_v0 = vld [vmem:[#allocation2 + $0x8] sm:$0xff]  ;;  %v30_v2 = vld [vmem:[#allocation2 + $0x18] sm:$0xff] }
  0x13   :  { %v36_v1 = vld [vmem:[#allocation2 + $0x48] sm:$0xff]  ;;  %v283_v3 = vand.u32 4294901760, %v28_v0  ;;  %v38_v5 = vld [vmem:[#allocation2 + $0x58] sm:$0xff]  ;;  %v1567_v6 = vand.u32 4294901760, %v30_v2  ;;  %v27_v7 = vld [vmem:[#allocation2] sm:$0xff] }
  0x14   :  { %v287_v4 = vand.u32 4294901760, %v36_v1  ;;  %v35_v8 = vld [vmem:[#allocation2 + $0x40] sm:$0xff]  ;;  %v1571_v9 = vand.u32 4294901760, %v38_v5  ;;  %v285_v10 = vand.u32 4294901760, %v27_v7  ;;  %v29_v12 = vld [vmem:[#allocation2 + $0x10] sm:$0xff]  ;;  %v44_v14 = vld [vmem:[#allocation2 + $0x88] sm:$0xff] }
  0x15   :  { %v289_v11 = vand.u32 4294901760, %v35_v8  ;;  %v37_v13 = vld [vmem:[#allocation2 + $0x50] sm:$0xff]  ;;  %v7067_v16 = vsub.f32 %v28_v0, %v283_v3  ;;  %v7071_v18 = vsub.f32 %v30_v2, %v1567_v6  ;;  %v52_v19 = vld [vmem:[#allocation2 + $0xc8] sm:$0xff]  ;;  %v46_v20 = vld [vmem:[#allocation2 + $0x98] sm:$0xff]  ;;  %v1569_v28 = vand.u32 4294901760, %v29_v12 }
  0x16   :  { %v7065_v15 = vpack.c.bf16 %v287_v4, %v283_v3  ;;  %v7069_v17 = vsub.f32 %v36_v1, %v287_v4  ;;  %v54_v21 = vld [vmem:[#allocation2 + $0xd8] sm:$0xff]  ;;  %v7073_v22 = vpack.c.bf16 %v1571_v9, %v1567_v6  ;;  %v7075_v23 = vsub.f32 %v38_v5, %v1571_v9  ;;  %v43_v26 = vld [vmem:[#allocation2 + $0x80] sm:$0xff]  ;;  %v45_v36 = vld [vmem:[#allocation2 + $0x90] sm:$0xff] }
  0x17   :  { %11484 = vst [vmem:[#allocation6_spill] sm:$0xff] %v7067_v16  ;;  %11486 = vst [vmem:[#allocation8_spill] sm:$0xff] %v7071_v18  ;;  %v7077_v24 = vpack.c.bf16 %v289_v11, %v285_v10  ;;  %v7079_v25 = vsub.f32 %v27_v7, %v285_v10  ;;  %v7082_v27 = vsub.f32 %v35_v8, %v289_v11  ;;  %v1573_v29 = vand.u32 4294901760, %v37_v13  ;;  %v51_v31 = vld [vmem:[#allocation2 + $0xc0] sm:$0xff]  ;;  %v53_v37 = vld [vmem:[#allocation2 + $0xd0] sm:$0xff] }
  0x18   :  { %11483 = vst [vmem:[#allocation5_spill] sm:$0xff] %v7065_v15  ;;  %11485 = vst [vmem:[#allocation7_spill] sm:$0xff] %v7069_v17  ;;  %5433 = vmatprep.subr.bf16.mxu0 %v7065_v15  ;;  %v291_v30 = vand.u32 4294901760, %v44_v14  ;;  %5817 = vmatprep.subr.bf16.mxu1 %v7073_v22  ;;  %v295_v32 = vand.u32 4294901760, %v52_v19  ;;  %v1575_v33 = vand.u32 4294901760, %v46_v20  ;;  %v1579_v34 = vand.u32 4294901760, %v54_v21 }
  0x19   :  { %11487 = vst [vmem:[#allocation9_spill] sm:$0xff] %v7073_v22  ;;  %11488 = vst [vmem:[#allocation10_spill] sm:$0xff] %v7075_v23  ;;  %5435 = vmatpush1.bf16.msra.mxu0 %v7077_v24  ;;  %v293_v35 = vand.u32 4294901760, %v43_v26  ;;  %v7086_v38 = vpack.c.bf16 %v1573_v29, %v1569_v28  ;;  %v7088_v39 = vsub.f32 %v29_v12, %v1569_v28  ;;  %v60_v42 = vld [vmem:[#allocation2 + $0x108] sm:$0xff]  ;;  %v62_v44 = vld [vmem:[#allocation2 + $0x118] sm:$0xff]  ;;  %v297_v51 = vand.u32 4294901760, %v51_v31 }
  0x1a   :  { %11489 = vst [vmem:[#allocation11_spill] sm:$0xff] %v7077_v24  ;;  %11490 = vst [vmem:[#allocation12_spill] sm:$0xff] %v7079_v25  ;;  %v7090_v40 = vsub.f32 %v37_v13, %v1573_v29  ;;  %v7092_v41 = vsub.f32 %v44_v14, %v291_v30  ;;  %v68_v43 = vld [vmem:[#allocation2 + $0x148] sm:$0xff]  ;;  %v7094_v45 = vpack.c.bf16 %v295_v32, %v291_v30  ;;  %v70_v49 = vld [vmem:[#allocation2 + $0x158] sm:$0xff]  ;;  %v1577_v53 = vand.u32 4294901760, %v45_v36 }
  0x1b   :  { %11491 = vst [vmem:[#allocation13_spill] sm:$0xff] %v7082_v27  ;;  %11492 = vst [vmem:[#allocation14_spill] sm:$0xff] %v7086_v38  ;;  %v7096_v46 = vsub.f32 %v52_v19, %v295_v32  ;;  %v7098_v47 = vpack.c.bf16 %v1579_v34, %v1575_v33  ;;  %v7100_v48 = vsub.f32 %v46_v20, %v1575_v33  ;;  %5819 = vmatpush1.bf16.msra.mxu1 %v7086_v38  ;;  %v59_v58 = vld [vmem:[#allocation2 + $0x100] sm:$0xff]  ;;  %v61_v0 = vld [vmem:[#allocation2 + $0x110] sm:$0xff] }
  0x1c   :  { %11493 = vst [vmem:[#allocation15_spill] sm:$0xff] %v7088_v39  ;;  %11494 = vst [vmem:[#allocation16_spill] sm:$0xff] %v7090_v40  ;;  %v7103_v50 = vsub.f32 %v54_v21, %v1579_v34  ;;  %v7105_v52 = vsub.f32 %v43_v26, %v293_v35  ;;  %5437 = vmatprep.subr.bf16.mxu0 %v7094_v45  ;;  %v1581_v54 = vand.u32 4294901760, %v53_v37  ;;  %v299_v55 = vand.u32 4294901760, %v60_v42  ;;  %v67_v59 = vld [vmem:[#allocation2 + $0x140] sm:$0xff]  ;;  %v69_v1 = vld [vmem:[#allocation2 + $0x150] sm:$0xff] }
  0x1d   :  { %11495 = vst [vmem:[#allocation17_spill] sm:$0xff] %v7092_v41  ;;  %11496 = vst [vmem:[#allocation18_spill] sm:$0xff] %v7094_v45  ;;  %5821 = vmatprep.subr.bf16.mxu1 %v7098_v47  ;;  %v303_v56 = vand.u32 4294901760, %v68_v43  ;;  %v1583_v57 = vand.u32 4294901760, %v62_v44  ;;  %v7109_v60 = vpack.c.bf16 %v297_v51, %v293_v35  ;;  %v7111_v61 = vsub.f32 %v51_v31, %v297_v51  ;;  %v76_v2 = vld [vmem:[#allocation2 + $0x188] sm:$0xff]  ;;  %v78_v8 = vld [vmem:[#allocation2 + $0x198] sm:$0xff] }
  0x1e   :  { %11497 = vst [vmem:[#allocation19_spill] sm:$0xff] %v7096_v46  ;;  %11498 = vst [vmem:[#allocation20_spill] sm:$0xff] %v7098_v47  ;;  %v7113_v62 = vsub.f32 %v45_v36, %v1577_v53  ;;  %v1587_v63 = vand.u32 4294901760, %v70_v49  ;;  %v7115_v3 = vpack.c.bf16 %v1581_v54, %v1577_v53  ;;  %v7117_v4 = vsub.f32 %v53_v37, %v1581_v54  ;;  %v84_v7 = vld [vmem:[#allocation2 + $0x1c8] sm:$0xff]  ;;  %v86_v9 = vld [vmem:[#allocation2 + $0x1d8] sm:$0xff] }
  0x1f   :  { %11499 = vst [vmem:[#allocation21_spill] sm:$0xff] %v7100_v48  ;;  %11500 = vst [vmem:[#allocation22_spill] sm:$0xff] %v7103_v50  ;;  %v7119_v5 = vpack.c.bf16 %v303_v56, %v299_v55  ;;  %v7121_v6 = vsub.f32 %v60_v42, %v299_v55  ;;  %5439 = vmatpush1.bf16.msra.mxu0 %v7109_v60  ;;  %v7124_v10 = vsub.f32 %v68_v43, %v303_v56  ;;  %v75_v31 = vld [vmem:[#allocation2 + $0x180] sm:$0xff]  ;;  %v77_v37 = vld [vmem:[#allocation2 + $0x190] sm:$0xff] }
  0x20   :  { %11501 = vst [vmem:[#allocation23_spill] sm:$0xff] %v7105_v52  ;;  %11502 = vst [vmem:[#allocation24_spill] sm:$0xff] %v7109_v60  ;;  %v7126_v11 = vpack.c.bf16 %v1587_v63, %v1583_v57  ;;  %v7128_v12 = vsub.f32 %v62_v44, %v1583_v57  ;;  %v7130_v13 = vsub.f32 %v70_v49, %v1587_v63  ;;  %5823 = vmatpush1.bf16.msra.mxu1 %v7115_v3  ;;  %v83_v36 = vld [vmem:[#allocation2 + $0x1c0] sm:$0xff]  ;;  %v85_v42 = vld [vmem:[#allocation2 + $0x1d0] sm:$0xff] }
  0x21   :  { %11503 = vst [vmem:[#allocation25_spill] sm:$0xff] %v7111_v61  ;;  %11504 = vst [vmem:[#allocation26_spill] sm:$0xff] %v7113_v62  ;;  %5441 = vmatprep.subr.bf16.mxu0 %v7119_v5  ;;  %v301_v14 = vand.u32 4294901760, %v59_v58  ;;  %v305_v19 = vand.u32 4294901760, %v67_v59  ;;  %v1585_v20 = vand.u32 4294901760, %v61_v0  ;;  %v1589_v21 = vand.u32 4294901760, %v69_v1 }
  0x22   :  { %11505 = vst [vmem:[#allocation27_spill] sm:$0xff] %v7115_v3  ;;  %11506 = vst [vmem:[#allocation28_spill] sm:$0xff] %v7117_v4  ;;  %5825 = vmatprep.subr.bf16.mxu1 %v7126_v11  ;;  %v307_v26 = vand.u32 4294901760, %v76_v2  ;;  %v311_v28 = vand.u32 4294901760, %v84_v7  ;;  %v1591_v29 = vand.u32 4294901760, %v78_v8  ;;  %v1595_v30 = vand.u32 4294901760, %v86_v9 }
  0x23   :  { %11507 = vst [vmem:[#allocation29_spill] sm:$0xff] %v7119_v5  ;;  %11508 = vst [vmem:[#allocation30_spill] sm:$0xff] %v7121_v6  ;;  %v7135_v32 = vpack.c.bf16 %v305_v19, %v301_v14  ;;  %v7137_v33 = vsub.f32 %v59_v58, %v301_v14  ;;  %v7139_v34 = vsub.f32 %v67_v59, %v305_v19  ;;  %v92_v53 = vld [vmem:[#allocation2 + $0x208] sm:$0xff]  ;;  %v94_v55 = vld [vmem:[#allocation2 + $0x218] sm:$0xff]  ;;  %v309_v59 = vand.u32 4294901760, %v75_v31 }
  0x24   :  { %11509 = vst [vmem:[#allocation31_spill] sm:$0xff] %v7124_v10  ;;  %11510 = vst [vmem:[#allocation32_spill] sm:$0xff] %v7126_v11  ;;  %v7141_v35 = vpack.c.bf16 %v1589_v21, %v1585_v20  ;;  %v7143_v43 = vsub.f32 %v61_v0, %v1585_v20  ;;  %v7145_v44 = vsub.f32 %v69_v1, %v1589_v21  ;;  %v100_v54 = vld [vmem:[#allocation2 + $0x248] sm:$0xff]  ;;  %v313_v0 = vand.u32 4294901760, %v83_v36  ;;  %v102_v14 = vld [vmem:[#allocation2 + $0x258] sm:$0xff] }
  0x25   :  { %11511 = vst [vmem:[#allocation33_spill] sm:$0xff] %v7128_v12  ;;  %11512 = vst [vmem:[#allocation34_spill] sm:$0xff] %v7130_v13  ;;  %v7147_v49 = vpack.c.bf16 %v311_v28, %v307_v26  ;;  %v7149_v51 = vsub.f32 %v76_v2, %v307_v26  ;;  %5443 = vmatpush1.bf16.msra.mxu0 %v7135_v32  ;;  %v7153_v56 = vsub.f32 %v84_v7, %v311_v28  ;;  %v91_v26 = vld [vmem:[#allocation2 + $0x200] sm:$0xff]  ;;  %v116_v11 = vld [vmem:[#allocation2 + $0x2c8] sm:$0xff] }
  0x26   :  { %11513 = vst [vmem:[#allocation35_spill] sm:$0xff] %v7135_v32  ;;  %11514 = vst [vmem:[#allocation36_spill] sm:$0xff] %v7137_v33  ;;  %5827 = vmatpush1.bf16.msra.mxu1 %v7141_v35  ;;  %v7155_v57 = vpack.c.bf16 %v1595_v30, %v1591_v29  ;;  %v7157_v58 = vsub.f32 %v78_v8, %v1591_v29  ;;  %v7160_v63 = vsub.f32 %v86_v9, %v1595_v30  ;;  %v99_v28 = vld [vmem:[#allocation2 + $0x240] sm:$0xff]  ;;  %v93_v8 = vld [vmem:[#allocation2 + $0x210] sm:$0xff] }
  0x27   :  { %11515 = vst [vmem:[#allocation37_spill] sm:$0xff] %v7139_v34  ;;  %11516 = vst [vmem:[#allocation38_spill] sm:$0xff] %v7141_v35  ;;  %5445 = vmatprep.subr.bf16.mxu0 %v7147_v49  ;;  %v1593_v1 = vand.u32 4294901760, %v77_v37  ;;  %v1597_v2 = vand.u32 4294901760, %v85_v42  ;;  %v7163_v19 = vsub.f32 %v75_v31, %v309_v59  ;;  %v315_v20 = vand.u32 4294901760, %v92_v53  ;;  %v108_v32 = vld [vmem:[#allocation2 + $0x288] sm:$0xff] }
  0x28   :  { %11517 = vst [vmem:[#allocation39_spill] sm:$0xff] %v7143_v43  ;;  %11518 = vst [vmem:[#allocation40_spill] sm:$0xff] %v7145_v44  ;;  %5829 = vmatprep.subr.bf16.mxu1 %v7155_v57  ;;  %v319_v7 = vand.u32 4294901760, %v100_v54  ;;  %v1599_v21 = vand.u32 4294901760, %v94_v55  ;;  %v7165_v29 = vpack.c.bf16 %v313_v0, %v309_v59  ;;  %v7167_v35 = vsub.f32 %v83_v36, %v313_v0  ;;  %v110_v47 = vld [vmem:[#allocation2 + $0x298] sm:$0xff]  ;;  %v109_v38 = vld [vmem:[#allocation2 + $0x290] sm:$0xff] }
  0x29   :  { %11519 = vst [vmem:[#allocation41_spill] sm:$0xff] %v7147_v49  ;;  %11520 = vst [vmem:[#allocation42_spill] sm:$0xff] %v7149_v51  ;;  %v7169_v9 = vpack.c.bf16 %v1597_v2, %v1593_v1  ;;  %v7171_v30 = vsub.f32 %v77_v37, %v1593_v1  ;;  %v101_v49 = vld [vmem:[#allocation2 + $0x250] sm:$0xff]  ;;  %v7177_v3 = vsub.f32 %v92_v53, %v315_v20  ;;  %v1603_v36 = vand.u32 4294901760, %v102_v14  ;;  %v118_v53 = vld [vmem:[#allocation2 + $0x2d8] sm:$0xff] }
  0x2a   :  { %11521 = vst [vmem:[#allocation43_spill] sm:$0xff] %v7153_v56  ;;  %11522 = vst [vmem:[#allocation44_spill] sm:$0xff] %v7155_v57  ;;  %v7173_v57 = vsub.f32 %v85_v42, %v1597_v2  ;;  %v7175_v31 = vpack.c.bf16 %v319_v7, %v315_v20  ;;  %v7179_v5 = vsub.f32 %v100_v54, %v319_v7  ;;  %5447 = vmatpush1.bf16.msra.mxu0 %v7165_v29  ;;  %v117_v15 = vld [vmem:[#allocation2 + $0x2d0] sm:$0xff] }
  0x2b   :  { %11523 = vst [vmem:[#allocation45_spill] sm:$0xff] %v7157_v58  ;;  %11524 = vst [vmem:[#allocation46_spill] sm:$0xff] %v7160_v63  ;;  %5831 = vmatpush1.bf16.msra.mxu1 %v7169_v9  ;;  %v7183_v59 = vsub.f32 %v94_v55, %v1599_v21  ;;  %v317_v37 = vand.u32 4294901760, %v91_v26  ;;  %v321_v0 = vand.u32 4294901760, %v99_v28  ;;  %v1601_v1 = vand.u32 4294901760, %v93_v8  ;;  %v107_v55 = vld [vmem:[#allocation2 + $0x280] sm:$0xff] }
  0x2c   :  { %11525 = vst [vmem:[#allocation47_spill] sm:$0xff] %v7163_v19  ;;  %11526 = vst [vmem:[#allocation48_spill] sm:$0xff] %v7165_v29  ;;  %5449 = vmatprep.subr.bf16.mxu0 %v7175_v31  ;;  %v1605_v42 = vand.u32 4294901760, %v101_v49  ;;  %v323_v2 = vand.u32 4294901760, %v108_v32  ;;  %v327_v60 = vand.u32 4294901760, %v116_v11  ;;  %v7186_v20 = vpack.c.bf16 %v1603_v36, %v1599_v21  ;;  %v115_v29 = vld [vmem:[#allocation2 + $0x2c0] sm:$0xff] }
  0x2d   :  { %11527 = vst [vmem:[#allocation49_spill] sm:$0xff] %v7167_v35  ;;  %11528 = vst [vmem:[#allocation50_spill] sm:$0xff] %v7169_v9  ;;  %v7188_v54 = vsub.f32 %v102_v14, %v1603_v36  ;;  %v7190_v7 = vpack.c.bf16 %v321_v0, %v317_v37  ;;  %v7192_v9 = vsub.f32 %v91_v26, %v317_v37  ;;  %v124_v21 = vld [vmem:[#allocation2 + $0x308] sm:$0xff]  ;;  %v325_v37 = vand.u32 4294901760, %v107_v55 }
  0x2e   :  { %11529 = vst [vmem:[#allocation51_spill] sm:$0xff] %v7171_v30  ;;  %11530 = vst [vmem:[#allocation52_spill] sm:$0xff] %v7173_v57  ;;  %v7194_v45 = vsub.f32 %v99_v28, %v321_v0  ;;  %v7198_v24 = vsub.f32 %v93_v8, %v1601_v1  ;;  %v7200_v22 = vsub.f32 %v101_v49, %v1605_v42  ;;  %5833 = vmatprep.subr.bf16.mxu1 %v7186_v20 }
  0x2f   :  { %11531 = vst [vmem:[#allocation53_spill] sm:$0xff] %v7175_v31  ;;  %11532 = vst [vmem:[#allocation54_spill] sm:$0xff] %v7177_v3  ;;  %v7196_v31 = vpack.c.bf16 %v1605_v42, %v1601_v1  ;;  %5451 = vmatpush1.bf16.msra.mxu0 %v7190_v7  ;;  %v7204_v14 = vpack.c.bf16 %v327_v60, %v323_v2  ;;  %v7206_v26 = vsub.f32 %v108_v32, %v323_v2 }
  0x30   :  { %11533 = vst [vmem:[#allocation55_spill] sm:$0xff] %v7179_v5  ;;  %11534 = vst [vmem:[#allocation56_spill] sm:$0xff] %v7183_v59  ;;  %v132_v59 = vld [vmem:[#allocation2 + $0x348] sm:$0xff]  ;;  %v7208_v36 = vsub.f32 %v116_v11, %v327_v60  ;;  %v1607_v28 = vand.u32 4294901760, %v110_v47  ;;  %v1611_v8 = vand.u32 4294901760, %v118_v53  ;;  %v329_v49 = vand.u32 4294901760, %v115_v29 }
  0x31   :  { %11535 = vst [vmem:[#allocation57_spill] sm:$0xff] %v7186_v20  ;;  %11536 = vst [vmem:[#allocation58_spill] sm:$0xff] %v7188_v54  ;;  %5835 = vmatpush1.bf16.msra.mxu1 %v7196_v31  ;;  %v1609_v0 = vand.u32 4294901760, %v109_v38  ;;  %5453 = vmatprep.subr.bf16.mxu0 %v7204_v14  ;;  %v1613_v42 = vand.u32 4294901760, %v117_v15  ;;  %v331_v20 = vand.u32 4294901760, %v124_v21  ;;  %v7220_v2 = vsub.f32 %v107_v55, %v325_v37  ;;  %v148_v54 = vld [vmem:[#allocation2 + $0x3c8] sm:$0xff] }
  0x32   :  { %11537 = vst [vmem:[#allocation59_spill] sm:$0xff] %v7190_v7  ;;  %11538 = vst [vmem:[#allocation60_spill] sm:$0xff] %v7192_v9  ;;  %v7212_v1 = vsub.f32 %v110_v47, %v1607_v28  ;;  %v335_v7 = vand.u32 4294901760, %v132_v59  ;;  %v7214_v32 = vpack.c.bf16 %v1611_v8, %v1607_v28  ;;  %v7216_v60 = vsub.f32 %v118_v53, %v1611_v8  ;;  %v133_v9 = vld [vmem:[#allocation2 + $0x350] sm:$0xff]  ;;  %v140_v28 = vld [vmem:[#allocation2 + $0x388] sm:$0xff] }
  0x33   :  { %11539 = vst [vmem:[#allocation61_spill] sm:$0xff] %v7194_v45  ;;  %11540 = vst [vmem:[#allocation62_spill] sm:$0xff] %v7196_v31  ;;  %v7218_v11 = vpack.c.bf16 %v329_v49, %v325_v37  ;;  %v123_v31 = vld [vmem:[#allocation2 + $0x300] sm:$0xff]  ;;  %v7222_v45 = vsub.f32 %v115_v29, %v329_v49  ;;  %v7224_v47 = vpack.c.bf16 %v1613_v42, %v1609_v0 }
  0x34   :  { %11541 = vst [vmem:[#allocation63_spill] sm:$0xff] %v7198_v24  ;;  %11542 = vst [vmem:[#allocation64_spill] sm:$0xff] %v7200_v22  ;;  %v126_v22 = vld [vmem:[#allocation2 + $0x318] sm:$0xff]  ;;  %5837 = vmatprep.subr.bf16.mxu1 %v7214_v32  ;;  %v7232_v53 = vpack.c.bf16 %v335_v7, %v331_v20  ;;  %v7234_v55 = vsub.f32 %v124_v21, %v331_v20  ;;  %v7236_v8 = vsub.f32 %v132_v59, %v335_v7 }
  0x35   :  { %11543 = vst [vmem:[#allocation65_spill] sm:$0xff] %v7204_v14  ;;  %11544 = vst [vmem:[#allocation66_spill] sm:$0xff] %v7206_v26  ;;  %v134_v24 = vld [vmem:[#allocation2 + $0x358] sm:$0xff]  ;;  %v125_v26 = vld [vmem:[#allocation2 + $0x310] sm:$0xff]  ;;  %v7226_v14 = vsub.f32 %v109_v38, %v1609_v0  ;;  %5455 = vmatpush1.bf16.msra.mxu0 %v7218_v11  ;;  %v1615_v29 = vand.u32 4294901760, %v126_v22  ;;  %5839 = vmatpush1.bf16.msra.mxu1 %v7224_v47  ;;  %v333_v37 = vand.u32 4294901760, %v123_v31 }
  0x36   :  { %11545 = vst [vmem:[#allocation67_spill] sm:$0xff] %v7208_v36  ;;  %11546 = vst [vmem:[#allocation68_spill] sm:$0xff] %v7212_v1  ;;  %v131_v36 = vld [vmem:[#allocation2 + $0x340] sm:$0xff]  ;;  %v7228_v1 = vsub.f32 %v117_v15, %v1613_v42  ;;  %v1619_v38 = vand.u32 4294901760, %v134_v24  ;;  %v1617_v49 = vand.u32 4294901760, %v125_v26  ;;  %5457 = vmatprep.subr.bf16.mxu0 %v7232_v53  ;;  %v1621_v42 = vand.u32 4294901760, %v133_v9 }
  0x37   :  { %11547 = vst [vmem:[#allocation69_spill] sm:$0xff] %v7214_v32  ;;  %11548 = vst [vmem:[#allocation70_spill] sm:$0xff] %v7216_v60  ;;  %v337_v15 = vand.u32 4294901760, %v131_v36  ;;  %v7240_v0 = vsub.f32 %v126_v22, %v1615_v29  ;;  %v339_v32 = vand.u32 4294901760, %v140_v28  ;;  %v7248_v21 = vsub.f32 %v123_v31, %v333_v37  ;;  %v164_v60 = vld [vmem:[#allocation2 + $0x448] sm:$0xff] }
  0x38   :  { %11549 = vst [vmem:[#allocation71_spill] sm:$0xff] %v7218_v11  ;;  %11550 = vst [vmem:[#allocation72_spill] sm:$0xff] %v7220_v2  ;;  %v343_v11 = vand.u32 4294901760, %v148_v54  ;;  %v7242_v20 = vpack.c.bf16 %v1619_v38, %v1615_v29  ;;  %v7244_v59 = vsub.f32 %v134_v24, %v1619_v38  ;;  %v7252_v22 = vpack.c.bf16 %v1621_v42, %v1617_v49  ;;  %v149_v2 = vld [vmem:[#allocation2 + $0x3d0] sm:$0xff]  ;;  %v156_v29 = vld [vmem:[#allocation2 + $0x408] sm:$0xff] }
  0x39   :  { %11551 = vst [vmem:[#allocation73_spill] sm:$0xff] %v7222_v45  ;;  %11552 = vst [vmem:[#allocation74_spill] sm:$0xff] %v7224_v47  ;;  %v7246_v7 = vpack.c.bf16 %v337_v15, %v333_v37  ;;  %v139_v47 = vld [vmem:[#allocation2 + $0x380] sm:$0xff]  ;;  %v7250_v45 = vsub.f32 %v131_v36, %v337_v15  ;;  %v7262_v31 = vsub.f32 %v140_v28, %v339_v32 }
  0x3a   :  { %11553 = vst [vmem:[#allocation75_spill] sm:$0xff] %v7226_v14  ;;  %11554 = vst [vmem:[#allocation76_spill] sm:$0xff] %v7228_v1  ;;  %v142_v1 = vld [vmem:[#allocation2 + $0x398] sm:$0xff]  ;;  %5841 = vmatprep.subr.bf16.mxu1 %v7242_v20  ;;  %v7260_v24 = vpack.c.bf16 %v343_v11, %v339_v32  ;;  %v7264_v38 = vsub.f32 %v148_v54, %v343_v11  ;;  %v341_v37 = vand.u32 4294901760, %v139_v47 }
  0x3b   :  { %11555 = vst [vmem:[#allocation77_spill] sm:$0xff] %v7232_v53  ;;  %11556 = vst [vmem:[#allocation78_spill] sm:$0xff] %v7234_v55  ;;  %v150_v14 = vld [vmem:[#allocation2 + $0x3d8] sm:$0xff]  ;;  %v141_v55 = vld [vmem:[#allocation2 + $0x390] sm:$0xff]  ;;  %v7254_v53 = vsub.f32 %v125_v26, %v1617_v49  ;;  %5459 = vmatpush1.bf16.msra.mxu0 %v7246_v7  ;;  %v1623_v36 = vand.u32 4294901760, %v142_v1  ;;  %5843 = vmatpush1.bf16.msra.mxu1 %v7252_v22 }
  0x3c   :  { %11557 = vst [vmem:[#allocation79_spill] sm:$0xff] %v7236_v8  ;;  %11558 = vst [vmem:[#allocation80_spill] sm:$0xff] %v7240_v0  ;;  %v147_v8 = vld [vmem:[#allocation2 + $0x3c0] sm:$0xff]  ;;  %v7256_v0 = vsub.f32 %v133_v9, %v1621_v42  ;;  %v1627_v26 = vand.u32 4294901760, %v150_v14  ;;  %v1625_v15 = vand.u32 4294901760, %v141_v55  ;;  %5461 = vmatprep.subr.bf16.mxu0 %v7260_v24  ;;  %v1629_v42 = vand.u32 4294901760, %v149_v2 }
  0x3d   :  { %11559 = vst [vmem:[#allocation81_spill] sm:$0xff] %v7242_v20  ;;  %11560 = vst [vmem:[#allocation82_spill] sm:$0xff] %v7244_v59  ;;  %v345_v9 = vand.u32 4294901760, %v147_v8  ;;  %v7268_v49 = vsub.f32 %v142_v1, %v1623_v36  ;;  %v347_v20 = vand.u32 4294901760, %v156_v29  ;;  %v7276_v28 = vsub.f32 %v139_v47, %v341_v37  ;;  %v180_v59 = vld [vmem:[#allocation2 + $0x4c8] sm:$0xff] }
  0x3e   :  { %11561 = vst [vmem:[#allocation83_spill] sm:$0xff] %v7246_v7  ;;  %11562 = vst [vmem:[#allocation84_spill] sm:$0xff] %v7248_v21  ;;  %v351_v7 = vand.u32 4294901760, %v164_v60  ;;  %v7270_v32 = vpack.c.bf16 %v1627_v26, %v1623_v36  ;;  %v7272_v54 = vsub.f32 %v150_v14, %v1627_v26  ;;  %v7280_v1 = vpack.c.bf16 %v1629_v42, %v1625_v15  ;;  %v165_v21 = vld [vmem:[#allocation2 + $0x450] sm:$0xff]  ;;  %v172_v36 = vld [vmem:[#allocation2 + $0x488] sm:$0xff] }
  0x3f   :  { %11563 = vst [vmem:[#allocation85_spill] sm:$0xff] %v7250_v45  ;;  %11564 = vst [vmem:[#allocation86_spill] sm:$0xff] %v7252_v22  ;;  %v7274_v11 = vpack.c.bf16 %v345_v9, %v341_v37  ;;  %v155_v22 = vld [vmem:[#allocation2 + $0x400] sm:$0xff]  ;;  %v7278_v45 = vsub.f32 %v147_v8, %v345_v9  ;;  %v7290_v47 = vsub.f32 %v156_v29, %v347_v20 }
  0x40   :  { %11565 = vst [vmem:[#allocation87_spill] sm:$0xff] %v7254_v53  ;;  %11566 = vst [vmem:[#allocation88_spill] sm:$0xff] %v7256_v0  ;;  %v158_v0 = vld [vmem:[#allocation2 + $0x418] sm:$0xff]  ;;  %5845 = vmatprep.subr.bf16.mxu1 %v7270_v32  ;;  %v7288_v14 = vpack.c.bf16 %v351_v7, %v347_v20  ;;  %v7292_v26 = vsub.f32 %v164_v60, %v351_v7  ;;  %v349_v37 = vand.u32 4294901760, %v155_v22 }
  0x41   :  { %11567 = vst [vmem:[#allocation89_spill] sm:$0xff] %v7260_v24  ;;  %11568 = vst [vmem:[#allocation90_spill] sm:$0xff] %v7262_v31  ;;  %v166_v53 = vld [vmem:[#allocation2 + $0x458] sm:$0xff]  ;;  %v157_v31 = vld [vmem:[#allocation2 + $0x410] sm:$0xff]  ;;  %v7282_v24 = vsub.f32 %v141_v55, %v1625_v15  ;;  %5463 = vmatpush1.bf16.msra.mxu0 %v7274_v11  ;;  %v1631_v8 = vand.u32 4294901760, %v158_v0  ;;  %5847 = vmatpush1.bf16.msra.mxu1 %v7280_v1 }
  0x42   :  { %11569 = vst [vmem:[#allocation91_spill] sm:$0xff] %v7264_v38  ;;  %11570 = vst [vmem:[#allocation92_spill] sm:$0xff] %v7268_v49  ;;  %v163_v38 = vld [vmem:[#allocation2 + $0x440] sm:$0xff]  ;;  %v7284_v49 = vsub.f32 %v149_v2, %v1629_v42  ;;  %v1635_v55 = vand.u32 4294901760, %v166_v53  ;;  %v1633_v9 = vand.u32 4294901760, %v157_v31  ;;  %5465 = vmatprep.subr.bf16.mxu0 %v7288_v14  ;;  %v1637_v42 = vand.u32 4294901760, %v165_v21 }
  0x43   :  { %11571 = vst [vmem:[#allocation93_spill] sm:$0xff] %v7270_v32  ;;  %11572 = vst [vmem:[#allocation94_spill] sm:$0xff] %v7272_v54  ;;  %v353_v2 = vand.u32 4294901760, %v163_v38  ;;  %v7296_v15 = vsub.f32 %v158_v0, %v1631_v8  ;;  %v355_v32 = vand.u32 4294901760, %v172_v36  ;;  %v7304_v29 = vsub.f32 %v155_v22, %v349_v37  ;;  %v196_v54 = vld [vmem:[#allocation2 + $0x548] sm:$0xff] }
  0x44   :  { %11573 = vst [vmem:[#allocation95_spill] sm:$0xff] %v7274_v11  ;;  %11574 = vst [vmem:[#allocation96_spill] sm:$0xff] %v7276_v28  ;;  %v359_v11 = vand.u32 4294901760, %v180_v59  ;;  %v7298_v20 = vpack.c.bf16 %v1635_v55, %v1631_v8  ;;  %v7300_v60 = vsub.f32 %v166_v53, %v1635_v55  ;;  %v7308_v0 = vpack.c.bf16 %v1637_v42, %v1633_v9  ;;  %v181_v28 = vld [vmem:[#allocation2 + $0x4d0] sm:$0xff]  ;;  %v188_v8 = vld [vmem:[#allocation2 + $0x508] sm:$0xff] }
  0x45   :  { %11575 = vst [vmem:[#allocation97_spill] sm:$0xff] %v7278_v45  ;;  %11576 = vst [vmem:[#allocation98_spill] sm:$0xff] %v7280_v1  ;;  %v7302_v7 = vpack.c.bf16 %v353_v2, %v349_v37  ;;  %v171_v1 = vld [vmem:[#allocation2 + $0x480] sm:$0xff]  ;;  %v7306_v45 = vsub.f32 %v163_v38, %v353_v2  ;;  %v7318_v22 = vsub.f32 %v172_v36, %v355_v32 }
  0x46   :  { %11577 = vst [vmem:[#allocation99_spill] sm:$0xff] %v7282_v24  ;;  %11578 = vst [vmem:[#allocation100_spill] sm:$0xff] %v7284_v49  ;;  %v174_v49 = vld [vmem:[#allocation2 + $0x498] sm:$0xff]  ;;  %5849 = vmatprep.subr.bf16.mxu1 %v7298_v20  ;;  %v7316_v53 = vpack.c.bf16 %v359_v11, %v355_v32  ;;  %v7320_v55 = vsub.f32 %v180_v59, %v359_v11  ;;  %v357_v37 = vand.u32 4294901760, %v171_v1 }
  0x47   :  { %11579 = vst [vmem:[#allocation101_spill] sm:$0xff] %v7288_v14  ;;  %11580 = vst [vmem:[#allocation102_spill] sm:$0xff] %v7290_v47  ;;  %v182_v24 = vld [vmem:[#allocation2 + $0x4d8] sm:$0xff]  ;;  %v173_v47 = vld [vmem:[#allocation2 + $0x490] sm:$0xff]  ;;  %v7310_v14 = vsub.f32 %v157_v31, %v1633_v9  ;;  %5467 = vmatpush1.bf16.msra.mxu0 %v7302_v7  ;;  %v1639_v38 = vand.u32 4294901760, %v174_v49  ;;  %5851 = vmatpush1.bf16.msra.mxu1 %v7308_v0 }
  0x48   :  { %11581 = vst [vmem:[#allocation103_spill] sm:$0xff] %v7292_v26  ;;  %11582 = vst [vmem:[#allocation104_spill] sm:$0xff] %v7296_v15  ;;  %v179_v26 = vld [vmem:[#allocation2 + $0x4c0] sm:$0xff]  ;;  %v7312_v15 = vsub.f32 %v165_v21, %v1637_v42  ;;  %v1643_v31 = vand.u32 4294901760, %v182_v24  ;;  %v1641_v2 = vand.u32 4294901760, %v173_v47  ;;  %5469 = vmatprep.subr.bf16.mxu0 %v7316_v53  ;;  %v1645_v42 = vand.u32 4294901760, %v181_v28 }
  0x49   :  { %11583 = vst [vmem:[#allocation105_spill] sm:$0xff] %v7298_v20  ;;  %11584 = vst [vmem:[#allocation106_spill] sm:$0xff] %v7300_v60  ;;  %v361_v21 = vand.u32 4294901760, %v179_v26  ;;  %v7324_v9 = vsub.f32 %v174_v49, %v1639_v38  ;;  %v363_v20 = vand.u32 4294901760, %v188_v8  ;;  %v7332_v36 = vsub.f32 %v171_v1, %v357_v37  ;;  %v212_v60 = vld [vmem:[#allocation2 + $0x5c8] sm:$0xff] }
  0x4a   :  { %11585 = vst [vmem:[#allocation107_spill] sm:$0xff] %v7302_v7  ;;  %11586 = vst [vmem:[#allocation108_spill] sm:$0xff] %v7304_v29  ;;  %v367_v7 = vand.u32 4294901760, %v196_v54  ;;  %v7326_v32 = vpack.c.bf16 %v1643_v31, %v1639_v38  ;;  %v7328_v59 = vsub.f32 %v182_v24, %v1643_v31  ;;  %v7336_v49 = vpack.c.bf16 %v1645_v42, %v1641_v2  ;;  %v197_v29 = vld [vmem:[#allocation2 + $0x550] sm:$0xff]  ;;  %v204_v38 = vld [vmem:[#allocation2 + $0x588] sm:$0xff] }
  0x4b   :  { %11587 = vst [vmem:[#allocation109_spill] sm:$0xff] %v7306_v45  ;;  %11588 = vst [vmem:[#allocation110_spill] sm:$0xff] %v7308_v0  ;;  %v7330_v11 = vpack.c.bf16 %v361_v21, %v357_v37  ;;  %v187_v0 = vld [vmem:[#allocation2 + $0x500] sm:$0xff]  ;;  %v7334_v45 = vsub.f32 %v179_v26, %v361_v21  ;;  %v7346_v1 = vsub.f32 %v188_v8, %v363_v20 }
  0x4c   :  { %11589 = vst [vmem:[#allocation111_spill] sm:$0xff] %v7310_v14  ;;  %11590 = vst [vmem:[#allocation112_spill] sm:$0xff] %v7312_v15  ;;  %v190_v15 = vld [vmem:[#allocation2 + $0x518] sm:$0xff]  ;;  %5853 = vmatprep.subr.bf16.mxu1 %v7326_v32  ;;  %v7344_v24 = vpack.c.bf16 %v367_v7, %v363_v20  ;;  %v7348_v31 = vsub.f32 %v196_v54, %v367_v7  ;;  %v365_v37 = vand.u32 4294901760, %v187_v0 }
  0x4d   :  { %11591 = vst [vmem:[#allocation113_spill] sm:$0xff] %v7316_v53  ;;  %11592 = vst [vmem:[#allocation114_spill] sm:$0xff] %v7318_v22  ;;  %v198_v14 = vld [vmem:[#allocation2 + $0x558] sm:$0xff]  ;;  %v189_v22 = vld [vmem:[#allocation2 + $0x510] sm:$0xff]  ;;  %v7338_v53 = vsub.f32 %v173_v47, %v1641_v2  ;;  %5471 = vmatpush1.bf16.msra.mxu0 %v7330_v11  ;;  %v1647_v26 = vand.u32 4294901760, %v190_v15  ;;  %5855 = vmatpush1.bf16.msra.mxu1 %v7336_v49 }
  0x4e   :  { %11593 = vst [vmem:[#allocation115_spill] sm:$0xff] %v7320_v55  ;;  %11594 = vst [vmem:[#allocation116_spill] sm:$0xff] %v7324_v9  ;;  %v195_v55 = vld [vmem:[#allocation2 + $0x540] sm:$0xff]  ;;  %v7340_v9 = vsub.f32 %v181_v28, %v1645_v42  ;;  %v1651_v47 = vand.u32 4294901760, %v198_v14  ;;  %v1649_v21 = vand.u32 4294901760, %v189_v22  ;;  %5473 = vmatprep.subr.bf16.mxu0 %v7344_v24  ;;  %v1653_v42 = vand.u32 4294901760, %v197_v29 }
  0x4f   :  { %11595 = vst [vmem:[#allocation117_spill] sm:$0xff] %v7326_v32  ;;  %11596 = vst [vmem:[#allocation118_spill] sm:$0xff] %v7328_v59  ;;  %v369_v28 = vand.u32 4294901760, %v195_v55  ;;  %v7352_v2 = vsub.f32 %v190_v15, %v1647_v26  ;;  %v371_v32 = vand.u32 4294901760, %v204_v38  ;;  %v7360_v8 = vsub.f32 %v187_v0, %v365_v37  ;;  %v228_v59 = vld [vmem:[#allocation2 + $0x648] sm:$0xff] }
  0x50   :  { %11597 = vst [vmem:[#allocation119_spill] sm:$0xff] %v7330_v11  ;;  %11598 = vst [vmem:[#allocation120_spill] sm:$0xff] %v7332_v36  ;;  %v375_v11 = vand.u32 4294901760, %v212_v60  ;;  %v7354_v20 = vpack.c.bf16 %v1651_v47, %v1647_v26  ;;  %v7356_v54 = vsub.f32 %v198_v14, %v1651_v47  ;;  %v7364_v15 = vpack.c.bf16 %v1653_v42, %v1649_v21  ;;  %v213_v36 = vld [vmem:[#allocation2 + $0x5d0] sm:$0xff]  ;;  %v220_v26 = vld [vmem:[#allocation2 + $0x608] sm:$0xff] }
  0x51   :  { %11599 = vst [vmem:[#allocation121_spill] sm:$0xff] %v7334_v45  ;;  %11600 = vst [vmem:[#allocation122_spill] sm:$0xff] %v7336_v49  ;;  %v7358_v7 = vpack.c.bf16 %v369_v28, %v365_v37  ;;  %v203_v49 = vld [vmem:[#allocation2 + $0x580] sm:$0xff]  ;;  %v7362_v45 = vsub.f32 %v195_v55, %v369_v28  ;;  %v7374_v0 = vsub.f32 %v204_v38, %v371_v32 }
  0x52   :  { %11601 = vst [vmem:[#allocation123_spill] sm:$0xff] %v7338_v53  ;;  %11602 = vst [vmem:[#allocation124_spill] sm:$0xff] %v7340_v9  ;;  %v206_v9 = vld [vmem:[#allocation2 + $0x598] sm:$0xff]  ;;  %5857 = vmatprep.subr.bf16.mxu1 %v7354_v20  ;;  %v7372_v14 = vpack.c.bf16 %v375_v11, %v371_v32  ;;  %v7376_v47 = vsub.f32 %v212_v60, %v375_v11  ;;  %v373_v37 = vand.u32 4294901760, %v203_v49 }
  0x53   :  { %11603 = vst [vmem:[#allocation125_spill] sm:$0xff] %v7344_v24  ;;  %11604 = vst [vmem:[#allocation126_spill] sm:$0xff] %v7346_v1  ;;  %v214_v53 = vld [vmem:[#allocation2 + $0x5d8] sm:$0xff]  ;;  %v205_v1 = vld [vmem:[#allocation2 + $0x590] sm:$0xff]  ;;  %v7366_v24 = vsub.f32 %v189_v22, %v1649_v21  ;;  %5475 = vmatpush1.bf16.msra.mxu0 %v7358_v7  ;;  %v1655_v55 = vand.u32 4294901760, %v206_v9  ;;  %5859 = vmatpush1.bf16.msra.mxu1 %v7364_v15 }
  0x54   :  { %11605 = vst [vmem:[#allocation127_spill] sm:$0xff] %v7348_v31  ;;  %11606 = vst [vmem:[#allocation128_spill] sm:$0xff] %v7352_v2  ;;  %v211_v31 = vld [vmem:[#allocation2 + $0x5c0] sm:$0xff]  ;;  %v7368_v2 = vsub.f32 %v197_v29, %v1653_v42  ;;  %v1659_v22 = vand.u32 4294901760, %v214_v53  ;;  %v1657_v28 = vand.u32 4294901760, %v205_v1  ;;  %5477 = vmatprep.subr.bf16.mxu0 %v7372_v14  ;;  %v1661_v42 = vand.u32 4294901760, %v213_v36 }
  0x55   :  { %11607 = vst [vmem:[#allocation129_spill] sm:$0xff] %v7354_v20  ;;  %11608 = vst [vmem:[#allocation130_spill] sm:$0xff] %v7356_v54  ;;  %v377_v29 = vand.u32 4294901760, %v211_v31  ;;  %v7380_v21 = vsub.f32 %v206_v9, %v1655_v55  ;;  %v379_v20 = vand.u32 4294901760, %v220_v26  ;;  %v7388_v38 = vsub.f32 %v203_v49, %v373_v37  ;;  %v244_v54 = vld [vmem:[#allocation2 + $0x6c8] sm:$0xff] }
  0x56   :  { %11609 = vst [vmem:[#allocation131_spill] sm:$0xff] %v7358_v7  ;;  %11610 = vst [vmem:[#allocation132_spill] sm:$0xff] %v7360_v8  ;;  %v383_v7 = vand.u32 4294901760, %v228_v59  ;;  %v7382_v32 = vpack.c.bf16 %v1659_v22, %v1655_v55  ;;  %v7384_v60 = vsub.f32 %v214_v53, %v1659_v22  ;;  %v7392_v9 = vpack.c.bf16 %v1661_v42, %v1657_v28  ;;  %v229_v8 = vld [vmem:[#allocation2 + $0x650] sm:$0xff]  ;;  %v236_v55 = vld [vmem:[#allocation2 + $0x688] sm:$0xff] }
  0x57   :  { %11611 = vst [vmem:[#allocation133_spill] sm:$0xff] %v7362_v45  ;;  %11612 = vst [vmem:[#allocation134_spill] sm:$0xff] %v7364_v15  ;;  %v7386_v11 = vpack.c.bf16 %v377_v29, %v373_v37  ;;  %v219_v15 = vld [vmem:[#allocation2 + $0x600] sm:$0xff]  ;;  %v7390_v45 = vsub.f32 %v211_v31, %v377_v29  ;;  %v7402_v49 = vsub.f32 %v220_v26, %v379_v20 }
  0x58   :  { %11613 = vst [vmem:[#allocation135_spill] sm:$0xff] %v7366_v24  ;;  %11614 = vst [vmem:[#allocation136_spill] sm:$0xff] %v7368_v2  ;;  %v222_v2 = vld [vmem:[#allocation2 + $0x618] sm:$0xff]  ;;  %5861 = vmatprep.subr.bf16.mxu1 %v7382_v32  ;;  %v7400_v53 = vpack.c.bf16 %v383_v7, %v379_v20  ;;  %v7404_v22 = vsub.f32 %v228_v59, %v383_v7  ;;  %v381_v37 = vand.u32 4294901760, %v219_v15 }
  0x59   :  { %11615 = vst [vmem:[#allocation137_spill] sm:$0xff] %v7372_v14  ;;  %11616 = vst [vmem:[#allocation138_spill] sm:$0xff] %v7374_v0  ;;  %v230_v24 = vld [vmem:[#allocation2 + $0x658] sm:$0xff]  ;;  %v221_v0 = vld [vmem:[#allocation2 + $0x610] sm:$0xff]  ;;  %v7394_v14 = vsub.f32 %v205_v1, %v1657_v28  ;;  %5479 = vmatpush1.bf16.msra.mxu0 %v7386_v11  ;;  %v1663_v31 = vand.u32 4294901760, %v222_v2  ;;  %5863 = vmatpush1.bf16.msra.mxu1 %v7392_v9 }
  0x5a   :  { %11617 = vst [vmem:[#allocation139_spill] sm:$0xff] %v7376_v47  ;;  %11618 = vst [vmem:[#allocation140_spill] sm:$0xff] %v7380_v21  ;;  %v227_v47 = vld [vmem:[#allocation2 + $0x640] sm:$0xff]  ;;  %v7396_v21 = vsub.f32 %v213_v36, %v1661_v42  ;;  %v1667_v1 = vand.u32 4294901760, %v230_v24  ;;  %v1665_v29 = vand.u32 4294901760, %v221_v0  ;;  %5481 = vmatprep.subr.bf16.mxu0 %v7400_v53  ;;  %v1669_v42 = vand.u32 4294901760, %v229_v8 }
  0x5b   :  { %11619 = vst [vmem:[#allocation141_spill] sm:$0xff] %v7382_v32  ;;  %11620 = vst [vmem:[#allocation142_spill] sm:$0xff] %v7384_v60  ;;  %v385_v36 = vand.u32 4294901760, %v227_v47  ;;  %v7408_v28 = vsub.f32 %v222_v2, %v1663_v31  ;;  %v387_v32 = vand.u32 4294901760, %v236_v55  ;;  %v7416_v26 = vsub.f32 %v219_v15, %v381_v37  ;;  %v260_v60 = vld [vmem:[#allocation2 + $0x748] sm:$0xff] }
  0x5c   :  { %11621 = vst [vmem:[#allocation143_spill] sm:$0xff] %v7386_v11  ;;  %11622 = vst [vmem:[#allocation144_spill] sm:$0xff] %v7388_v38  ;;  %v391_v11 = vand.u32 4294901760, %v244_v54  ;;  %v7410_v20 = vpack.c.bf16 %v1667_v1, %v1663_v31  ;;  %v7412_v59 = vsub.f32 %v230_v24, %v1667_v1  ;;  %v7420_v2 = vpack.c.bf16 %v1669_v42, %v1665_v29  ;;  %v245_v38 = vld [vmem:[#allocation2 + $0x6d0] sm:$0xff]  ;;  %v252_v31 = vld [vmem:[#allocation2 + $0x708] sm:$0xff] }
  0x5d   :  { %11623 = vst [vmem:[#allocation145_spill] sm:$0xff] %v7390_v45  ;;  %11624 = vst [vmem:[#allocation146_spill] sm:$0xff] %v7392_v9  ;;  %v7414_v7 = vpack.c.bf16 %v385_v36, %v381_v37  ;;  %v235_v9 = vld [vmem:[#allocation2 + $0x680] sm:$0xff]  ;;  %v7418_v45 = vsub.f32 %v227_v47, %v385_v36  ;;  %v7430_v15 = vsub.f32 %v236_v55, %v387_v32 }
  0x5e   :  { %11625 = vst [vmem:[#allocation147_spill] sm:$0xff] %v7394_v14  ;;  %11626 = vst [vmem:[#allocation148_spill] sm:$0xff] %v7396_v21  ;;  %v238_v21 = vld [vmem:[#allocation2 + $0x698] sm:$0xff]  ;;  %5865 = vmatprep.subr.bf16.mxu1 %v7410_v20  ;;  %v7428_v24 = vpack.c.bf16 %v391_v11, %v387_v32  ;;  %v7432_v1 = vsub.f32 %v244_v54, %v391_v11  ;;  %v389_v37 = vand.u32 4294901760, %v235_v9 }
  0x5f   :  { %11627 = vst [vmem:[#allocation149_spill] sm:$0xff] %v7400_v53  ;;  %11628 = vst [vmem:[#allocation150_spill] sm:$0xff] %v7402_v49  ;;  %v246_v14 = vld [vmem:[#allocation2 + $0x6d8] sm:$0xff]  ;;  %v237_v49 = vld [vmem:[#allocation2 + $0x690] sm:$0xff]  ;;  %v7422_v53 = vsub.f32 %v221_v0, %v1665_v29  ;;  %5483 = vmatpush1.bf16.msra.mxu0 %v7414_v7  ;;  %v1671_v47 = vand.u32 4294901760, %v238_v21  ;;  %5867 = vmatpush1.bf16.msra.mxu1 %v7420_v2 }
  0x60   :  { %11629 = vst [vmem:[#allocation151_spill] sm:$0xff] %v7404_v22  ;;  %11630 = vst [vmem:[#allocation152_spill] sm:$0xff] %v7408_v28  ;;  %v243_v22 = vld [vmem:[#allocation2 + $0x6c0] sm:$0xff]  ;;  %v7424_v28 = vsub.f32 %v229_v8, %v1669_v42  ;;  %v1675_v0 = vand.u32 4294901760, %v246_v14  ;;  %v1673_v36 = vand.u32 4294901760, %v237_v49  ;;  %5485 = vmatprep.subr.bf16.mxu0 %v7428_v24  ;;  %v1677_v42 = vand.u32 4294901760, %v245_v38 }
  0x61   :  { %11631 = vst [vmem:[#allocation153_spill] sm:$0xff] %v7410_v20  ;;  %11632 = vst [vmem:[#allocation154_spill] sm:$0xff] %v7412_v59  ;;  %v393_v8 = vand.u32 4294901760, %v243_v22  ;;  %v7436_v29 = vsub.f32 %v238_v21, %v1671_v47  ;;  %v395_v20 = vand.u32 4294901760, %v252_v31  ;;  %v7444_v55 = vsub.f32 %v235_v9, %v389_v37  ;;  %v276_v59 = vld [vmem:[#allocation2 + $0x7c8] sm:$0xff] }
  0x62   :  { %11633 = vst [vmem:[#allocation155_spill] sm:$0xff] %v7414_v7  ;;  %11634 = vst [vmem:[#allocation156_spill] sm:$0xff] %v7416_v26  ;;  %v399_v7 = vand.u32 4294901760, %v260_v60  ;;  %v7438_v32 = vpack.c.bf16 %v1675_v0, %v1671_v47  ;;  %v7440_v54 = vsub.f32 %v246_v14, %v1675_v0  ;;  %v7448_v21 = vpack.c.bf16 %v1677_v42, %v1673_v36  ;;  %v261_v26 = vld [vmem:[#allocation2 + $0x750] sm:$0xff]  ;;  %v268_v47 = vld [vmem:[#allocation2 + $0x788] sm:$0xff] }
  0x63   :  { %11635 = vst [vmem:[#allocation157_spill] sm:$0xff] %v7418_v45  ;;  %11636 = vst [vmem:[#allocation158_spill] sm:$0xff] %v7420_v2  ;;  %v7442_v11 = vpack.c.bf16 %v393_v8, %v389_v37  ;;  %v251_v2 = vld [vmem:[#allocation2 + $0x700] sm:$0xff]  ;;  %v7446_v45 = vsub.f32 %v243_v22, %v393_v8  ;;  %v7458_v9 = vsub.f32 %v252_v31, %v395_v20 }
  0x64   :  { %11637 = vst [vmem:[#allocation159_spill] sm:$0xff] %v7422_v53  ;;  %11638 = vst [vmem:[#allocation160_spill] sm:$0xff] %v7424_v28  ;;  %v254_v28 = vld [vmem:[#allocation2 + $0x718] sm:$0xff]  ;;  %5869 = vmatprep.subr.bf16.mxu1 %v7438_v32  ;;  %v7456_v14 = vpack.c.bf16 %v399_v7, %v395_v20  ;;  %v7460_v0 = vsub.f32 %v260_v60, %v399_v7  ;;  %v397_v37 = vand.u32 4294901760, %v251_v2 }
  0x65   :  { %11639 = vst [vmem:[#allocation161_spill] sm:$0xff] %v7428_v24  ;;  %11640 = vst [vmem:[#allocation162_spill] sm:$0xff] %v7430_v15  ;;  %v262_v53 = vld [vmem:[#allocation2 + $0x758] sm:$0xff]  ;;  %v253_v15 = vld [vmem:[#allocation2 + $0x710] sm:$0xff]  ;;  %v7450_v24 = vsub.f32 %v237_v49, %v1673_v36  ;;  %5487 = vmatpush1.bf16.msra.mxu0 %v7442_v11  ;;  %v1679_v22 = vand.u32 4294901760, %v254_v28  ;;  %5871 = vmatpush1.bf16.msra.mxu1 %v7448_v21 }
  0x66   :  { %11641 = vst [vmem:[#allocation163_spill] sm:$0xff] %v7432_v1  ;;  %11642 = vst [vmem:[#allocation164_spill] sm:$0xff] %v7436_v29  ;;  %v259_v1 = vld [vmem:[#allocation2 + $0x740] sm:$0xff]  ;;  %v7452_v29 = vsub.f32 %v245_v38, %v1677_v42  ;;  %v1683_v49 = vand.u32 4294901760, %v262_v53  ;;  %v1681_v8 = vand.u32 4294901760, %v253_v15  ;;  %5489 = vmatprep.subr.bf16.mxu0 %v7456_v14  ;;  %v1685_v42 = vand.u32 4294901760, %v261_v26 }
  0x67   :  { %11643 = vst [vmem:[#allocation165_spill] sm:$0xff] %v7438_v32  ;;  %11644 = vst [vmem:[#allocation166_spill] sm:$0xff] %v7440_v54  ;;  %v401_v38 = vand.u32 4294901760, %v259_v1  ;;  %v7464_v36 = vsub.f32 %v254_v28, %v1679_v22  ;;  %v403_v32 = vand.u32 4294901760, %v268_v47  ;;  %v7472_v31 = vsub.f32 %v251_v2, %v397_v37 }
  0x68   :  { %11645 = vst [vmem:[#allocation167_spill] sm:$0xff] %v7442_v11  ;;  %11646 = vst [vmem:[#allocation168_spill] sm:$0xff] %v7444_v55  ;;  %v407_v11 = vand.u32 4294901760, %v276_v59  ;;  %v7466_v20 = vpack.c.bf16 %v1683_v49, %v1679_v22  ;;  %v7468_v60 = vsub.f32 %v262_v53, %v1683_v49  ;;  %v7476_v28 = vpack.c.bf16 %v1685_v42, %v1681_v8  ;;  %v277_v55 = vld [vmem:[#allocation2 + $0x7d0] sm:$0xff]  ;;  %v26_v53 = vld [vmem:[%s10602_s0 + $0x8] sm:$0xff] }
  0x69   :  { %11647 = vst [vmem:[#allocation169_spill] sm:$0xff] %v7446_v45  ;;  %11648 = vst [vmem:[#allocation170_spill] sm:$0xff] %v7448_v21  ;;  %v7470_v7 = vpack.c.bf16 %v401_v38, %v397_v37  ;;  %v267_v21 = vld [vmem:[#allocation2 + $0x780] sm:$0xff]  ;;  %v7474_v45 = vsub.f32 %v259_v1, %v401_v38  ;;  %v7489_v22 = vsub.f32 %v268_v47, %v403_v32 }
  0x6a   :  { %11649 = vst [vmem:[#allocation171_spill] sm:$0xff] %v7450_v24  ;;  %11650 = vst [vmem:[#allocation172_spill] sm:$0xff] %v7452_v29  ;;  %v270_v29 = vld [vmem:[#allocation2 + $0x798] sm:$0xff]  ;;  %5873 = vmatprep.subr.bf16.mxu1 %v7466_v20  ;;  %v7487_v2 = vpack.c.bf16 %v407_v11, %v403_v32  ;;  %v7491_v1 = vsub.f32 %v276_v59, %v407_v11 }
  0x6b   :  { %11651 = vst [vmem:[#allocation173_spill] sm:$0xff] %v7456_v14  ;;  %11652 = vst [vmem:[#allocation174_spill] sm:$0xff] %v7458_v9  ;;  %v278_v24 = vld [vmem:[#allocation2 + $0x7d8] sm:$0xff]  ;;  %v269_v9 = vld [vmem:[#allocation2 + $0x790] sm:$0xff]  ;;  %v7478_v14 = vsub.f32 %v253_v15, %v1681_v8  ;;  %5491 = vmatpush1.bf16.msra.mxu0 %v7470_v7  ;;  %v1687_v49 = vand.u32 4294901760, %v270_v29  ;;  %5875 = vmatpush1.bf16.msra.mxu1 %v7476_v28  ;;  %v405_v15 = vand.u32 4294901760, %v267_v21 }
  0x6c   :  { %11653 = vst [vmem:[#allocation175_spill] sm:$0xff] %v7460_v0  ;;  %11654 = vst [vmem:[#allocation176_spill] sm:$0xff] %v7464_v36  ;;  %v275_v0 = vld [vmem:[#allocation2 + $0x7c0] sm:$0xff]  ;;  %v7480_v36 = vsub.f32 %v261_v26, %v1685_v42  ;;  %v1691_v26 = vand.u32 4294901760, %v278_v24  ;;  %v1689_v38 = vand.u32 4294901760, %v269_v9  ;;  %5493 = vmatprep.subr.bf16.mxu0 %v7487_v2  ;;  %v1693_v42 = vand.u32 4294901760, %v277_v55 }
  0x6d   :  { %11655 = vst [vmem:[#allocation177_spill] sm:$0xff] %v7466_v20  ;;  %11656 = vst [vmem:[#allocation178_spill] sm:$0xff] %v7468_v60  ;;  %v409_v37 = vand.u32 4294901760, %v275_v0  ;;  %v7495_v8 = vsub.f32 %v270_v29, %v1687_v49  ;;  %v7497_v20 = vand.u32 4294901760, %v26_v53  ;;  %v7506_v47 = vsub.f32 %v267_v21, %v405_v15 }
  0x6e   :  { %11657 = vst [vmem:[#allocation179_spill] sm:$0xff] %v7470_v7  ;;  %11658 = vst [vmem:[#allocation180_spill] sm:$0xff] %v7472_v31  ;;  %v10809_v7 = vand.u32 4294901760, %v7067_v16  ;;  %v7500_v32 = vpack.c.bf16 %v1691_v26, %v1687_v49  ;;  %v7502_v59 = vsub.f32 %v278_v24, %v1691_v26  ;;  %v7513_v29 = vpack.c.bf16 %v1693_v42, %v1689_v38 }
  0x6f   :  { %11659 = vst [vmem:[#allocation181_spill] sm:$0xff] %v7474_v45  ;;  %11660 = vst [vmem:[#allocation182_spill] sm:$0xff] %v7476_v28  ;;  %v7504_v11 = vpack.c.bf16 %v409_v37, %v405_v15  ;;  %v25_v28 = vld [vmem:[%s10602_s0] sm:$0xff]  ;;  %v7522_v24 = vsub.f32 %v26_v53, %v7497_v20  ;;  %v10817_v49 = vand.u32 4294901760, %v7071_v18  ;;  %v11680_v15 = vand.u32 4294901760, %v7079_v25 }
  0x70   :  { %11661 = vst [vmem:[#allocation183_spill] sm:$0xff] %v7478_v14  ;;  %11662 = vst [vmem:[#allocation184_spill] sm:$0xff] %v7480_v36  ;;  %5877 = vmatprep.subr.bf16.mxu1 %v7500_v32  ;;  %v431_v21 = vsub.f32 %v7067_v16, %v10809_v7 }
  0x71   :  { %11663 = vst [vmem:[#allocation185_spill] sm:$0xff] %v7487_v2  ;;  %11664 = vst [vmem:[#allocation186_spill] sm:$0xff] %v7489_v22  ;;  %v7511_v2 = vsub.f32 %v275_v0, %v409_v37  ;;  %5495 = vmatpush1.bf16.msra.mxu0 %v7504_v11  ;;  %v10814_v0 = vand.u32 4294901760, %v7069_v17  ;;  %5879 = vmatpush1.bf16.msra.mxu1 %v7513_v29  ;;  %v7536_v53 = vand.u32 4294901760, %v7522_v24 }
  0x72   :  { %11665 = vst [vmem:[#allocation187_spill] sm:$0xff] %v7491_v1  ;;  %11666 = vst [vmem:[#allocation188_spill] sm:$0xff] %v7495_v8  ;;  %v7515_v8 = vsub.f32 %v269_v9, %v1689_v38  ;;  %v7517_v1 = vsub.f32 %v277_v55, %v1693_v42  ;;  %v10822_v55 = vand.u32 4294901760, %v7075_v23  ;;  %v7531_v9 = vand.u32 4294901760, %v25_v28 }
  0x73   :  { %11667 = vst [vmem:[#allocation189_spill] sm:$0xff] %v7497_v20  ;;  %11668 = vst [vmem:[#allocation190_spill] sm:$0xff] %v7500_v32  ;;  %v432_v37 = vand.u32 4294901760, %v431_v21  ;;  %v443_v38 = vsub.f32 %v7069_v17, %v10814_v0  ;;  %v1715_v42 = vsub.f32 %v7071_v18, %v10817_v49  ;;  %v11681_v21 = vand.u32 4294901760, %v7082_v27 }
  0x74   :  { %11669 = vst [vmem:[#allocation191_spill] sm:$0xff] %v7502_v59  ;;  %11670 = vst [vmem:[#allocation192_spill] sm:$0xff] %v7504_v11  ;;  %v1727_v7 = vsub.f32 %v7075_v23, %v10822_v55  ;;  %v7548_v26 = vsub.f32 %v25_v28, %v7531_v9  ;;  %v414_v0 = vsub.f32 %v7522_v24, %v7536_v53  ;;  %v10832_v18 = vand.u32 4294901760, %v7088_v39 }
  0x75   :  { %11671 = vst [vmem:[#allocation193_spill] sm:$0xff] %v7506_v47  ;;  %11672 = vst [vmem:[#allocation194_spill] sm:$0xff] %v7511_v2  ;;  %v449_v11 = vsub.f32 %v7082_v27, %v11681_v21  ;;  %v444_v32 = vand.u32 4294901760, %v443_v38  ;;  %v1716_v49 = vand.u32 4294901760, %v1715_v42  ;;  %v10831_v27 = vand.u32 4294901760, %v7090_v40 }
  0x76   :  { %11673 = vst [vmem:[#allocation195_spill] sm:$0xff] %v7513_v29  ;;  %11674 = vst [vmem:[#allocation196_spill] sm:$0xff] %v7515_v8  ;;  %v437_v29 = vsub.f32 %v7079_v25, %v11680_v15  ;;  %v1728_v17 = vand.u32 4294901760, %v1727_v7  ;;  %v7560_v55 = vand.u32 4294901760, %v7548_v26  ;;  %v7562_v23 = vand.u32 4294901760, %v414_v0 }
  0x77   :  { %11675 = vst [vmem:[#allocation197_spill] sm:$0xff] %v7517_v1  ;;  %11676 = vst [vmem:[#allocation198_spill] sm:$0xff] %v7522_v24  ;;  %v5496_v15 = vpack.c.bf16 %v444_v32, %v432_v37  ;;  %v1721_v21 = vsub.f32 %v7088_v39, %v10832_v18  ;;  %v10835_v7 = vand.u32 4294901760, %v7092_v41  ;;  %v1733_v32 = vsub.f32 %v7090_v40, %v10831_v27 }
  0x78   :  { %11677 = vst [vmem:[#allocation199_spill] sm:$0xff] %v7531_v9  ;;  %11678 = vst [vmem:[#allocation200_spill] sm:$0xff] %v7536_v53  ;;  %v438_v28 = vand.u32 4294901760, %v437_v29  ;;  %v450_v9 = vand.u32 4294901760, %v449_v11  ;;  %v5880_v53 = vpack.c.bf16 %v1728_v17, %v1716_v49  ;;  %v420_v38 = vsub.f32 %v7548_v26, %v7560_v55  ;;  %416 = vmatprep.mubr.f32.mxu0 %v7562_v23 }
  0x79   :  { %11679 = vst [vmem:[#allocation201_spill] sm:$0xff] %v7548_v26  ;;  %11682 = vst [vmem:[#allocation202_spill] sm:$0xff] %v7560_v55  ;;  %5497 = vmatprep.subr.bf16.mxu0 %v5496_v15  ;;  %v1722_v11 = vand.u32 4294901760, %v1721_v21  ;;  %v10833_v29 = vand.u32 4294901760, %v7096_v46  ;;  %v10834_v0 = vand.u32 4294901760, %v7100_v48  ;;  %1700 = vmatprep.mubr.f32.mxu1 %v7562_v23  ;;  %v455_v49 = vsub.f32 %v7092_v41, %v10835_v7 }
  0x7a   :  { %11683 = vst [vmem:[#allocation203_spill] sm:$0xff] %v7562_v23  ;;  %v5498_v42 = vpack.c.bf16 %v450_v9, %v438_v28  ;;  %5881 = vmatprep.subr.bf16.mxu1 %v5880_v53  ;;  %v7578_v17 = vand.u32 4294901760, %v420_v38  ;;  %v10840_v9 = vand.u32 4294901760, %v7103_v50  ;;  %v10841_v37 = vand.u32 4294901760, %v7105_v52 }
  0x7b   :  { %v1734_v28 = vand.u32 4294901760, %v1733_v32  ;;  %v467_v15 = vsub.f32 %v7096_v46, %v10833_v29  ;;  %v1739_v21 = vsub.f32 %v7100_v48, %v10834_v0  ;;  %v10842_v53 = vand.u32 4294901760, %v7111_v61 }
  0x7c   :  { %11684 = vst [vmem:[#allocation204_spill] sm:$0xff] %v7578_v17  ;;  %422 = vmatmul.mubr.f32.vlgmr.msra.gmra.mrb[0].mxu0 %v7578_v17  ;;  %1706 = vmatmul.mubr.f32.vlgmr.msra.gmra.mrb[0].mxu1 %v7578_v17  ;;  %v456_v38 = vand.u32 4294901760, %v455_v49  ;;  %v1751_v27 = vsub.f32 %v7103_v50, %v10840_v9  ;;  %v461_v32 = vsub.f32 %v7105_v52, %v10841_v37  ;;  %v10843_v18 = vand.u32 4294901760, %v7113_v62 }
  0x7d   :  { %5499 = vmatpush1.bf16.msra.mxu0 %v5498_v42  ;;  %v5882_v29 = vpack.c.bf16 %v1734_v28, %v1722_v11  ;;  %v468_v0 = vand.u32 4294901760, %v467_v15  ;;  %v1740_v7 = vand.u32 4294901760, %v1739_v21  ;;  %v473_v23 = vsub.f32 %v7111_v61, %v10842_v53  ;;  %813 = vmatprep.mubr.f32.mxu0 %v7497_v20 }
  0x7e   :  { %v1752_v49 = vand.u32 4294901760, %v1751_v27  ;;  %v462_v17 = vand.u32 4294901760, %v461_v32  ;;  %v1745_v9 = vsub.f32 %v7113_v62, %v10843_v18  ;;  %v10844_v37 = vand.u32 4294901760, %v7117_v4  ;;  %2097 = vmatprep.mubr.f32.mxu1 %v7497_v20 }
  0x7f   :  { %5883 = vmatpush1.bf16.msra.mxu1 %v5882_v29  ;;  %v5500_v42 = vpack.c.bf16 %v468_v0, %v456_v38  ;;  %v474_v11 = vand.u32 4294901760, %v473_v23  ;;  %v10847_v28 = vand.u32 4294901760, %v7121_v6  ;;  %v10845_v15 = vand.u32 4294901760, %v7124_v10 }
  0x80   :  { %v5884_v21 = vpack.c.bf16 %v1752_v49, %v1740_v7  ;;  %v1746_v53 = vand.u32 4294901760, %v1745_v9  ;;  %v1757_v27 = vsub.f32 %v7117_v4, %v10844_v37  ;;  %v10846_v32 = vand.u32 4294901760, %v7128_v12 }
  0x81   :  { %5501 = vmatprep.subr.bf16.mxu0 %v5500_v42  ;;  %v5502_v18 = vpack.c.bf16 %v474_v11, %v462_v17  ;;  %v479_v29 = vsub.f32 %v7121_v6, %v10847_v28  ;;  %v491_v23 = vsub.f32 %v7124_v10, %v10845_v15  ;;  %v10848_v0 = vand.u32 4294901760, %v7130_v13 }
  0x82   :  { %5885 = vmatprep.subr.bf16.mxu1 %v5884_v21  ;;  %v1758_v7 = vand.u32 4294901760, %v1757_v27  ;;  %v1763_v9 = vsub.f32 %v7128_v12, %v10846_v32  ;;  %v10849_v38 = vand.u32 4294901760, %v7137_v33  ;;  %v10859_v17 = vand.u32 4294901760, %v7139_v34 }
  0x83   :  { %5503 = vmatpush1.bf16.msra.mxu0 %v5502_v18  ;;  %v480_v49 = vand.u32 4294901760, %v479_v29  ;;  %v492_v42 = vand.u32 4294901760, %v491_v23  ;;  %v1775_v11 = vsub.f32 %v7130_v13, %v10848_v0  ;;  %v10853_v37 = vand.u32 4294901760, %v7143_v43 }
  0x84   :  { %v5886_v15 = vpack.c.bf16 %v1758_v7, %v1746_v53  ;;  %v1764_v21 = vand.u32 4294901760, %v1763_v9  ;;  %v485_v27 = vsub.f32 %v7137_v33, %v10849_v38  ;;  %v497_v32 = vsub.f32 %v7139_v34, %v10859_v17 }
  0x85   :  { %v5504_v28 = vpack.c.bf16 %v492_v42, %v480_v49  ;;  %v1776_v18 = vand.u32 4294901760, %v1775_v11  ;;  %v1769_v29 = vsub.f32 %v7143_v43, %v10853_v37  ;;  %v10852_v23 = vand.u32 4294901760, %v7145_v44 }
  0x86   :  { %5887 = vmatpush1.bf16.msra.mxu1 %v5886_v15  ;;  %v486_v0 = vand.u32 4294901760, %v485_v27  ;;  %v498_v53 = vand.u32 4294901760, %v497_v32  ;;  %v10856_v7 = vand.u32 4294901760, %v7149_v51  ;;  %v10854_v9 = vand.u32 4294901760, %v7153_v56 }
  0x87   :  { %5505 = vmatprep.subr.bf16.mxu0 %v5504_v28  ;;  %v5888_v38 = vpack.c.bf16 %v1776_v18, %v1764_v21  ;;  %v1770_v20 = vand.u32 4294901760, %v1769_v29  ;;  %v1781_v49 = vsub.f32 %v7145_v44, %v10852_v23  ;;  %v10855_v42 = vand.u32 4294901760, %v7157_v58 }
  0x88   :  { %v5506_v11 = vpack.c.bf16 %v498_v53, %v486_v0  ;;  %v503_v15 = vsub.f32 %v7149_v51, %v10856_v7  ;;  %v515_v32 = vsub.f32 %v7153_v56, %v10854_v9  ;;  %v10857_v27 = vand.u32 4294901760, %v7160_v63 }
  0x89   :  { %5889 = vmatprep.subr.bf16.mxu1 %v5888_v38  ;;  %v1782_v28 = vand.u32 4294901760, %v1781_v49  ;;  %v1787_v21 = vsub.f32 %v7157_v58, %v10855_v42  ;;  %v10858_v18 = vand.u32 4294901760, %v7163_v19  ;;  %v10860_v0 = vand.u32 4294901760, %v7167_v35 }
  0x8a   :  { %5507 = vmatpush1.bf16.msra.mxu0 %v5506_v11  ;;  %v504_v29 = vand.u32 4294901760, %v503_v15  ;;  %v516_v53 = vand.u32 4294901760, %v515_v32  ;;  %v1799_v23 = vsub.f32 %v7160_v63, %v10857_v27  ;;  %v10861_v37 = vand.u32 4294901760, %v7171_v30 }
  0x8b   :  { %v5890_v9 = vpack.c.bf16 %v1782_v28, %v1770_v20  ;;  %v1788_v38 = vand.u32 4294901760, %v1787_v21  ;;  %v509_v49 = vsub.f32 %v7163_v19, %v10858_v18  ;;  %v521_v42 = vsub.f32 %v7167_v35, %v10860_v0 }
  0x8c   :  { %v5508_v7 = vpack.c.bf16 %v516_v53, %v504_v29  ;;  %v1800_v11 = vand.u32 4294901760, %v1799_v23  ;;  %v1793_v15 = vsub.f32 %v7171_v30, %v10861_v37  ;;  %v10862_v32 = vand.u32 4294901760, %v7173_v57  ;;  %v11685_v29 = vld [vmem:[#allocation56_spill] sm:$0xff]  ;;  %v11692_v30 = vld [vmem:[#allocation67_spill] sm:$0xff] }
  0x8d   :  { %5891 = vmatpush1.bf16.msra.mxu1 %v5890_v9  ;;  %v510_v27 = vand.u32 4294901760, %v509_v49  ;;  %v522_v20 = vand.u32 4294901760, %v521_v42  ;;  %v10865_v28 = vand.u32 4294901760, %v7177_v3  ;;  %v10866_v21 = vand.u32 4294901760, %v7179_v5  ;;  %v11686_v49 = vld [vmem:[#allocation58_spill] sm:$0xff] }
  0x8e   :  { %5509 = vmatprep.subr.bf16.mxu0 %v5508_v7  ;;  %v5892_v18 = vpack.c.bf16 %v1800_v11, %v1788_v38  ;;  %v1794_v17 = vand.u32 4294901760, %v1793_v15  ;;  %v1805_v23 = vsub.f32 %v7173_v57, %v10862_v32  ;;  %v10871_v53 = vand.u32 4294901760, %v11685_v29  ;;  %v11687_v11 = vld [vmem:[#allocation60_spill] sm:$0xff]  ;;  %v11688_v32 = vld [vmem:[#allocation61_spill] sm:$0xff] }
  0x8f   :  { %v5510_v0 = vpack.c.bf16 %v522_v20, %v510_v27  ;;  %v527_v9 = vsub.f32 %v7177_v3, %v10865_v28  ;;  %v539_v42 = vsub.f32 %v7179_v5, %v10866_v21  ;;  %v10873_v37 = vand.u32 4294901760, %v11686_v49  ;;  %v11689_v21 = vld [vmem:[#allocation63_spill] sm:$0xff] }
  0x90   :  { %5893 = vmatprep.subr.bf16.mxu1 %v5892_v18  ;;  %v1806_v7 = vand.u32 4294901760, %v1805_v23  ;;  %v1811_v38 = vsub.f32 %v11685_v29, %v10871_v53  ;;  %v10879_v15 = vand.u32 4294901760, %v11687_v11  ;;  %v10881_v27 = vand.u32 4294901760, %v11688_v32 }
  0x91   :  { %5511 = vmatpush1.bf16.msra.mxu0 %v5510_v0  ;;  %v528_v20 = vand.u32 4294901760, %v527_v9  ;;  %v540_v55 = vand.u32 4294901760, %v539_v42  ;;  %v1823_v28 = vsub.f32 %v11686_v49, %v10873_v37  ;;  %v10882_v26 = vand.u32 4294901760, %v11689_v21  ;;  %v11690_v42 = vld [vmem:[#allocation64_spill] sm:$0xff] }
  0x92   :  { %v5894_v57 = vpack.c.bf16 %v1806_v7, %v1794_v17  ;;  %v1812_v18 = vand.u32 4294901760, %v1811_v38  ;;  %v533_v23 = vsub.f32 %v11687_v11, %v10879_v15  ;;  %v545_v53 = vsub.f32 %v11688_v32, %v10881_v27  ;;  %v11691_v7 = vld [vmem:[#allocation66_spill] sm:$0xff] }
  0x93   :  { %v5512_v29 = vpack.c.bf16 %v540_v55, %v528_v20  ;;  %v1824_v0 = vand.u32 4294901760, %v1823_v28  ;;  %v1817_v9 = vsub.f32 %v11689_v21, %v10882_v26  ;;  %v10883_v37 = vand.u32 4294901760, %v11690_v42  ;;  %v11693_v28 = vld [vmem:[#allocation68_spill] sm:$0xff] }
  0x94   :  { %5895 = vmatpush1.bf16.msra.mxu1 %v5894_v57  ;;  %v534_v49 = vand.u32 4294901760, %v533_v23  ;;  %v546_v17 = vand.u32 4294901760, %v545_v53  ;;  %v10885_v38 = vand.u32 4294901760, %v11691_v7  ;;  %v10886_v24 = vand.u32 4294901760, %v11692_v30  ;;  %v11694_v23 = vld [vmem:[#allocation70_spill] sm:$0xff] }
  0x95   :  { %5513 = vmatprep.subr.bf16.mxu0 %v5512_v29  ;;  %v5896_v15 = vpack.c.bf16 %v1824_v0, %v1812_v18  ;;  %v1818_v11 = vand.u32 4294901760, %v1817_v9  ;;  %v1829_v55 = vsub.f32 %v11690_v42, %v10883_v37  ;;  %v10889_v20 = vand.u32 4294901760, %v11693_v28  ;;  %v11695_v0 = vld [vmem:[#allocation72_spill] sm:$0xff]  ;;  %v11696_v37 = vld [vmem:[#allocation73_spill] sm:$0xff] }
  0x96   :  { %v5514_v27 = vpack.c.bf16 %v546_v17, %v534_v49  ;;  %v551_v57 = vsub.f32 %v11691_v7, %v10885_v38  ;;  %v563_v53 = vsub.f32 %v11692_v30, %v10886_v24  ;;  %v10891_v26 = vand.u32 4294901760, %v11694_v23  ;;  %v11697_v24 = vld [vmem:[#allocation75_spill] sm:$0xff] }
  0x97   :  { %5897 = vmatprep.subr.bf16.mxu1 %v5896_v15  ;;  %v1830_v29 = vand.u32 4294901760, %v1829_v55  ;;  %v1835_v18 = vsub.f32 %v11693_v28, %v10889_v20  ;;  %v10895_v9 = vand.u32 4294901760, %v11695_v0  ;;  %v10897_v49 = vand.u32 4294901760, %v11696_v37  ;;  %v11700_v7 = vld [vmem:[#allocation79_spill] sm:$0xff] }
  0x98   :  { %5515 = vmatpush1.bf16.msra.mxu0 %v5514_v27  ;;  %v552_v17 = vand.u32 4294901760, %v551_v57  ;;  %v564_v42 = vand.u32 4294901760, %v563_v53  ;;  %v1847_v38 = vsub.f32 %v11694_v23, %v10891_v26  ;;  %v10898_v21 = vand.u32 4294901760, %v11697_v24  ;;  %v11698_v53 = vld [vmem:[#allocation76_spill] sm:$0xff] }
  0x99   :  { %v5898_v30 = vpack.c.bf16 %v1830_v29, %v1818_v11  ;;  %v1836_v15 = vand.u32 4294901760, %v1835_v18  ;;  %v557_v55 = vsub.f32 %v11695_v0, %v10895_v9  ;;  %v569_v20 = vsub.f32 %v11696_v37, %v10897_v49  ;;  %v11699_v29 = vld [vmem:[#allocation78_spill] sm:$0xff] }
  0x9a   :  { %v5516_v28 = vpack.c.bf16 %v564_v42, %v552_v17  ;;  %v1848_v27 = vand.u32 4294901760, %v1847_v38  ;;  %v1841_v57 = vsub.f32 %v11697_v24, %v10898_v21  ;;  %v10899_v26 = vand.u32 4294901760, %v11698_v53  ;;  %v11701_v38 = vld [vmem:[#allocation80_spill] sm:$0xff] }
  0x9b   :  { %5899 = vmatpush1.bf16.msra.mxu1 %v5898_v30  ;;  %v558_v23 = vand.u32 4294901760, %v557_v55  ;;  %v570_v11 = vand.u32 4294901760, %v569_v20  ;;  %v10901_v18 = vand.u32 4294901760, %v11699_v29  ;;  %v10902_v32 = vand.u32 4294901760, %v11700_v7  ;;  %v11702_v55 = vld [vmem:[#allocation82_spill] sm:$0xff] }
  0x9c   :  { %5517 = vmatprep.subr.bf16.mxu0 %v5516_v28  ;;  %v5900_v9 = vpack.c.bf16 %v1848_v27, %v1836_v15  ;;  %v1842_v0 = vand.u32 4294901760, %v1841_v57  ;;  %v1853_v42 = vsub.f32 %v11698_v53, %v10899_v26  ;;  %v10905_v17 = vand.u32 4294901760, %v11701_v38  ;;  %v11703_v27 = vld [vmem:[#allocation84_spill] sm:$0xff]  ;;  %v11704_v26 = vld [vmem:[#allocation85_spill] sm:$0xff] }
  0x9d   :  { %v5518_v49 = vpack.c.bf16 %v570_v11, %v558_v23  ;;  %v575_v30 = vsub.f32 %v11699_v29, %v10901_v18  ;;  %v587_v20 = vsub.f32 %v11700_v7, %v10902_v32  ;;  %v10907_v21 = vand.u32 4294901760, %v11702_v55  ;;  %v11705_v32 = vld [vmem:[#allocation87_spill] sm:$0xff] }
  0x9e   :  { %5901 = vmatprep.subr.bf16.mxu1 %v5900_v9  ;;  %v1854_v28 = vand.u32 4294901760, %v1853_v42  ;;  %v1859_v15 = vsub.f32 %v11701_v38, %v10905_v17  ;;  %v10911_v57 = vand.u32 4294901760, %v11703_v27  ;;  %v10913_v23 = vand.u32 4294901760, %v11704_v26  ;;  %v11708_v29 = vld [vmem:[#allocation91_spill] sm:$0xff] }
  0x9f   :  { %5519 = vmatpush1.bf16.msra.mxu0 %v5518_v49  ;;  %v576_v11 = vand.u32 4294901760, %v575_v30  ;;  %v588_v53 = vand.u32 4294901760, %v587_v20  ;;  %v1871_v18 = vsub.f32 %v11702_v55, %v10907_v21  ;;  %v10914_v24 = vand.u32 4294901760, %v11705_v32  ;;  %v11706_v20 = vld [vmem:[#allocation88_spill] sm:$0xff] }
  0xa0   :  { %v5902_v7 = vpack.c.bf16 %v1854_v28, %v1842_v0  ;;  %v1860_v9 = vand.u32 4294901760, %v1859_v15  ;;  %v581_v42 = vsub.f32 %v11703_v27, %v10911_v57  ;;  %v593_v17 = vsub.f32 %v11704_v26, %v10913_v23  ;;  %v11707_v28 = vld [vmem:[#allocation90_spill] sm:$0xff] }
  0xa1   :  { %v5520_v38 = vpack.c.bf16 %v588_v53, %v576_v11  ;;  %v1872_v49 = vand.u32 4294901760, %v1871_v18  ;;  %v1865_v30 = vsub.f32 %v11705_v32, %v10914_v24  ;;  %v10915_v21 = vand.u32 4294901760, %v11706_v20  ;;  %v11709_v18 = vld [vmem:[#allocation92_spill] sm:$0xff] }
  0xa2   :  { %5903 = vmatpush1.bf16.msra.mxu1 %v5902_v7  ;;  %v582_v55 = vand.u32 4294901760, %v581_v42  ;;  %v594_v0 = vand.u32 4294901760, %v593_v17  ;;  %v10917_v15 = vand.u32 4294901760, %v11707_v28  ;;  %v10918_v37 = vand.u32 4294901760, %v11708_v29  ;;  %v11710_v42 = vld [vmem:[#allocation94_spill] sm:$0xff] }
  0xa3   :  { %5521 = vmatprep.subr.bf16.mxu0 %v5520_v38  ;;  %v5904_v57 = vpack.c.bf16 %v1872_v49, %v1860_v9  ;;  %v1866_v27 = vand.u32 4294901760, %v1865_v30  ;;  %v1877_v53 = vsub.f32 %v11706_v20, %v10915_v21  ;;  %v10921_v11 = vand.u32 4294901760, %v11709_v18  ;;  %v11711_v49 = vld [vmem:[#allocation96_spill] sm:$0xff]  ;;  %v11712_v21 = vld [vmem:[#allocation97_spill] sm:$0xff] }
  0xa4   :  { %v5522_v23 = vpack.c.bf16 %v594_v0, %v582_v55  ;;  %v599_v7 = vsub.f32 %v11707_v28, %v10917_v15  ;;  %v611_v17 = vsub.f32 %v11708_v29, %v10918_v37  ;;  %v10923_v24 = vand.u32 4294901760, %v11710_v42  ;;  %v11713_v37 = vld [vmem:[#allocation99_spill] sm:$0xff] }
  0xa5   :  { %5905 = vmatprep.subr.bf16.mxu1 %v5904_v57  ;;  %v1878_v38 = vand.u32 4294901760, %v1877_v53  ;;  %v1883_v9 = vsub.f32 %v11709_v18, %v10921_v11  ;;  %v10927_v30 = vand.u32 4294901760, %v11711_v49  ;;  %v10929_v55 = vand.u32 4294901760, %v11712_v21  ;;  %v11716_v28 = vld [vmem:[#allocation103_spill] sm:$0xff] }
  0xa6   :  { %5523 = vmatpush1.bf16.msra.mxu0 %v5522_v23  ;;  %v600_v0 = vand.u32 4294901760, %v599_v7  ;;  %v612_v20 = vand.u32 4294901760, %v611_v17  ;;  %v1895_v15 = vsub.f32 %v11710_v42, %v10923_v24  ;;  %v10930_v32 = vand.u32 4294901760, %v11713_v37  ;;  %v11714_v17 = vld [vmem:[#allocation100_spill] sm:$0xff] }
  0xa7   :  { %v5906_v29 = vpack.c.bf16 %v1878_v38, %v1866_v27  ;;  %v1884_v57 = vand.u32 4294901760, %v1883_v9  ;;  %v605_v53 = vsub.f32 %v11711_v49, %v10927_v30  ;;  %v617_v11 = vsub.f32 %v11712_v21, %v10929_v55  ;;  %v11715_v38 = vld [vmem:[#allocation102_spill] sm:$0xff] }
  0xa8   :  { %v5524_v18 = vpack.c.bf16 %v612_v20, %v600_v0  ;;  %v1896_v23 = vand.u32 4294901760, %v1895_v15  ;;  %v1889_v7 = vsub.f32 %v11713_v37, %v10930_v32  ;;  %v10931_v24 = vand.u32 4294901760, %v11714_v17  ;;  %v11717_v15 = vld [vmem:[#allocation104_spill] sm:$0xff] }
  0xa9   :  { %5907 = vmatpush1.bf16.msra.mxu1 %v5906_v29  ;;  %v606_v42 = vand.u32 4294901760, %v605_v53  ;;  %v618_v27 = vand.u32 4294901760, %v617_v11  ;;  %v10933_v9 = vand.u32 4294901760, %v11715_v38  ;;  %v10934_v26 = vand.u32 4294901760, %v11716_v28  ;;  %v11718_v53 = vld [vmem:[#allocation106_spill] sm:$0xff] }
  0xaa   :  { %5525 = vmatprep.subr.bf16.mxu0 %v5524_v18  ;;  %v5908_v30 = vpack.c.bf16 %v1896_v23, %v1884_v57  ;;  %v1890_v49 = vand.u32 4294901760, %v1889_v7  ;;  %v1901_v20 = vsub.f32 %v11714_v17, %v10931_v24  ;;  %v10937_v0 = vand.u32 4294901760, %v11717_v15  ;;  %v11719_v23 = vld [vmem:[#allocation108_spill] sm:$0xff]  ;;  %v11720_v24 = vld [vmem:[#allocation109_spill] sm:$0xff] }
  0xab   :  { %v5526_v55 = vpack.c.bf16 %v618_v27, %v606_v42  ;;  %v623_v29 = vsub.f32 %v11715_v38, %v10933_v9  ;;  %v635_v11 = vsub.f32 %v11716_v28, %v10934_v26  ;;  %v10939_v32 = vand.u32 4294901760, %v11718_v53  ;;  %v11721_v26 = vld [vmem:[#allocation111_spill] sm:$0xff] }
  0xac   :  { %5909 = vmatprep.subr.bf16.mxu1 %v5908_v30  ;;  %v1902_v18 = vand.u32 4294901760, %v1901_v20  ;;  %v1907_v57 = vsub.f32 %v11717_v15, %v10937_v0  ;;  %v10943_v7 = vand.u32 4294901760, %v11719_v23  ;;  %v10945_v42 = vand.u32 4294901760, %v11720_v24  ;;  %v11724_v38 = vld [vmem:[#allocation115_spill] sm:$0xff] }
  0xad   :  { %5527 = vmatpush1.bf16.msra.mxu0 %v5526_v55  ;;  %v624_v27 = vand.u32 4294901760, %v623_v29  ;;  %v636_v17 = vand.u32 4294901760, %v635_v11  ;;  %v1919_v9 = vsub.f32 %v11718_v53, %v10939_v32  ;;  %v10946_v37 = vand.u32 4294901760, %v11721_v26  ;;  %v11722_v11 = vld [vmem:[#allocation112_spill] sm:$0xff] }
  0xae   :  { %v5910_v28 = vpack.c.bf16 %v1902_v18, %v1890_v49  ;;  %v1908_v30 = vand.u32 4294901760, %v1907_v57  ;;  %v629_v20 = vsub.f32 %v11719_v23, %v10943_v7  ;;  %v641_v0 = vsub.f32 %v11720_v24, %v10945_v42  ;;  %v11723_v18 = vld [vmem:[#allocation114_spill] sm:$0xff] }
  0xaf   :  { %v5528_v15 = vpack.c.bf16 %v636_v17, %v624_v27  ;;  %v1920_v55 = vand.u32 4294901760, %v1919_v9  ;;  %v1913_v29 = vsub.f32 %v11721_v26, %v10946_v37  ;;  %v10947_v32 = vand.u32 4294901760, %v11722_v11  ;;  %v11725_v9 = vld [vmem:[#allocation116_spill] sm:$0xff]  ;;  %v11732_v26 = vld [vmem:[#allocation127_spill] sm:$0xff] }
  0xb0   :  { %5911 = vmatpush1.bf16.msra.mxu1 %v5910_v28  ;;  %v630_v53 = vand.u32 4294901760, %v629_v20  ;;  %v642_v49 = vand.u32 4294901760, %v641_v0  ;;  %v10949_v57 = vand.u32 4294901760, %v11723_v18  ;;  %v10950_v21 = vand.u32 4294901760, %v11724_v38  ;;  %v11726_v20 = vld [vmem:[#allocation118_spill] sm:$0xff] }
  0xb1   :  { %5529 = vmatprep.subr.bf16.mxu0 %v5528_v15  ;;  %v5912_v7 = vpack.c.bf16 %v1920_v55, %v1908_v30  ;;  %v1914_v23 = vand.u32 4294901760, %v1913_v29  ;;  %v1925_v17 = vsub.f32 %v11722_v11, %v10947_v32  ;;  %v10953_v27 = vand.u32 4294901760, %v11725_v9  ;;  %v11727_v55 = vld [vmem:[#allocation120_spill] sm:$0xff]  ;;  %v11728_v32 = vld [vmem:[#allocation121_spill] sm:$0xff] }
  0xb2   :  { %v5530_v42 = vpack.c.bf16 %v642_v49, %v630_v53  ;;  %v647_v28 = vsub.f32 %v11723_v18, %v10949_v57  ;;  %v659_v0 = vsub.f32 %v11724_v38, %v10950_v21  ;;  %v10955_v37 = vand.u32 4294901760, %v11726_v20  ;;  %v11729_v21 = vld [vmem:[#allocation123_spill] sm:$0xff] }
  0xb3   :  { %5913 = vmatprep.subr.bf16.mxu1 %v5912_v7  ;;  %v1926_v15 = vand.u32 4294901760, %v1925_v17  ;;  %v1931_v30 = vsub.f32 %v11725_v9, %v10953_v27  ;;  %v10959_v29 = vand.u32 4294901760, %v11727_v55  ;;  %v10961_v53 = vand.u32 4294901760, %v11728_v32 }
  0xb4   :  { %5531 = vmatpush1.bf16.msra.mxu0 %v5530_v42  ;;  %v648_v49 = vand.u32 4294901760, %v647_v28  ;;  %v660_v11 = vand.u32 4294901760, %v659_v0  ;;  %v1943_v57 = vsub.f32 %v11726_v20, %v10955_v37  ;;  %v10962_v38 = vand.u32 4294901760, %v11729_v21  ;;  %v11730_v0 = vld [vmem:[#allocation124_spill] sm:$0xff] }
  0xb5   :  { %v5914_v18 = vpack.c.bf16 %v1926_v15, %v1914_v23  ;;  %v1932_v7 = vand.u32 4294901760, %v1931_v30  ;;  %v653_v17 = vsub.f32 %v11727_v55, %v10959_v29  ;;  %v665_v27 = vsub.f32 %v11728_v32, %v10961_v53  ;;  %v11731_v15 = vld [vmem:[#allocation126_spill] sm:$0xff] }
  0xb6   :  { %v5532_v9 = vpack.c.bf16 %v660_v11, %v648_v49  ;;  %v1944_v42 = vand.u32 4294901760, %v1943_v57  ;;  %v1937_v28 = vsub.f32 %v11729_v21, %v10962_v38  ;;  %v10963_v37 = vand.u32 4294901760, %v11730_v0  ;;  %v11733_v57 = vld [vmem:[#allocation128_spill] sm:$0xff]  ;;  %v11740_v21 = vld [vmem:[#allocation139_spill] sm:$0xff] }
  0xb7   :  { %5915 = vmatpush1.bf16.msra.mxu1 %v5914_v18  ;;  %v654_v20 = vand.u32 4294901760, %v653_v17  ;;  %v666_v23 = vand.u32 4294901760, %v665_v27  ;;  %v10965_v30 = vand.u32 4294901760, %v11731_v15  ;;  %v10966_v24 = vand.u32 4294901760, %v11732_v26  ;;  %v11734_v17 = vld [vmem:[#allocation130_spill] sm:$0xff] }
  0xb8   :  { %5533 = vmatprep.subr.bf16.mxu0 %v5532_v9  ;;  %v5916_v29 = vpack.c.bf16 %v1944_v42, %v1932_v7  ;;  %v1938_v55 = vand.u32 4294901760, %v1937_v28  ;;  %v1949_v11 = vsub.f32 %v11730_v0, %v10963_v37  ;;  %v10969_v49 = vand.u32 4294901760, %v11733_v57  ;;  %v11735_v42 = vld [vmem:[#allocation132_spill] sm:$0xff]  ;;  %v11736_v37 = vld [vmem:[#allocation133_spill] sm:$0xff] }
  0xb9   :  { %v5534_v53 = vpack.c.bf16 %v666_v23, %v654_v20  ;;  %v671_v18 = vsub.f32 %v11731_v15, %v10965_v30  ;;  %v683_v27 = vsub.f32 %v11732_v26, %v10966_v24  ;;  %v10971_v38 = vand.u32 4294901760, %v11734_v17  ;;  %v11737_v24 = vld [vmem:[#allocation135_spill] sm:$0xff] }
  0xba   :  { %5917 = vmatprep.subr.bf16.mxu1 %v5916_v29  ;;  %v1950_v9 = vand.u32 4294901760, %v1949_v11  ;;  %v1955_v7 = vsub.f32 %v11733_v57, %v10969_v49  ;;  %v10975_v28 = vand.u32 4294901760, %v11735_v42  ;;  %v10977_v20 = vand.u32 4294901760, %v11736_v37 }
  0xbb   :  { %5535 = vmatpush1.bf16.msra.mxu0 %v5534_v53  ;;  %v672_v23 = vand.u32 4294901760, %v671_v18  ;;  %v684_v0 = vand.u32 4294901760, %v683_v27  ;;  %v1967_v30 = vsub.f32 %v11734_v17, %v10971_v38  ;;  %v10978_v26 = vand.u32 4294901760, %v11737_v24  ;;  %v11738_v27 = vld [vmem:[#allocation136_spill] sm:$0xff] }
  0xbc   :  { %v5918_v15 = vpack.c.bf16 %v1950_v9, %v1938_v55  ;;  %v1956_v29 = vand.u32 4294901760, %v1955_v7  ;;  %v677_v11 = vsub.f32 %v11735_v42, %v10975_v28  ;;  %v689_v49 = vsub.f32 %v11736_v37, %v10977_v20  ;;  %v11739_v9 = vld [vmem:[#allocation138_spill] sm:$0xff] }
  0xbd   :  { %v5536_v57 = vpack.c.bf16 %v684_v0, %v672_v23  ;;  %v1968_v53 = vand.u32 4294901760, %v1967_v30  ;;  %v1961_v18 = vsub.f32 %v11737_v24, %v10978_v26  ;;  %v10979_v38 = vand.u32 4294901760, %v11738_v27  ;;  %v11741_v30 = vld [vmem:[#allocation140_spill] sm:$0xff]  ;;  %v11748_v24 = vld [vmem:[#allocation151_spill] sm:$0xff] }
  0xbe   :  { %5919 = vmatpush1.bf16.msra.mxu1 %v5918_v15  ;;  %v678_v17 = vand.u32 4294901760, %v677_v11  ;;  %v690_v55 = vand.u32 4294901760, %v689_v49  ;;  %v10981_v7 = vand.u32 4294901760, %v11739_v9  ;;  %v10982_v32 = vand.u32 4294901760, %v11740_v21  ;;  %v11742_v11 = vld [vmem:[#allocation142_spill] sm:$0xff] }
  0xbf   :  { %5537 = vmatprep.subr.bf16.mxu0 %v5536_v57  ;;  %v5920_v28 = vpack.c.bf16 %v1968_v53, %v1956_v29  ;;  %v1962_v42 = vand.u32 4294901760, %v1961_v18  ;;  %v1973_v0 = vsub.f32 %v11738_v27, %v10979_v38  ;;  %v10985_v23 = vand.u32 4294901760, %v11741_v30  ;;  %v11743_v53 = vld [vmem:[#allocation144_spill] sm:$0xff]  ;;  %v11744_v38 = vld [vmem:[#allocation145_spill] sm:$0xff] }
  0xc0   :  { %v5538_v20 = vpack.c.bf16 %v690_v55, %v678_v17  ;;  %v695_v15 = vsub.f32 %v11739_v9, %v10981_v7  ;;  %v707_v49 = vsub.f32 %v11740_v21, %v10982_v32  ;;  %v10987_v26 = vand.u32 4294901760, %v11742_v11  ;;  %v11745_v32 = vld [vmem:[#allocation147_spill] sm:$0xff] }
  0xc1   :  { %5921 = vmatprep.subr.bf16.mxu1 %v5920_v28  ;;  %v1974_v57 = vand.u32 4294901760, %v1973_v0  ;;  %v1979_v29 = vsub.f32 %v11741_v30, %v10985_v23  ;;  %v10991_v18 = vand.u32 4294901760, %v11743_v53  ;;  %v10993_v17 = vand.u32 4294901760, %v11744_v38 }
  0xc2   :  { %5539 = vmatpush1.bf16.msra.mxu0 %v5538_v20  ;;  %v696_v55 = vand.u32 4294901760, %v695_v15  ;;  %v708_v27 = vand.u32 4294901760, %v707_v49  ;;  %v1991_v7 = vsub.f32 %v11742_v11, %v10987_v26  ;;  %v10994_v21 = vand.u32 4294901760, %v11745_v32  ;;  %v11746_v49 = vld [vmem:[#allocation148_spill] sm:$0xff] }
  0xc3   :  { %v5922_v9 = vpack.c.bf16 %v1974_v57, %v1962_v42  ;;  %v1980_v28 = vand.u32 4294901760, %v1979_v29  ;;  %v701_v0 = vsub.f32 %v11743_v53, %v10991_v18  ;;  %v713_v23 = vsub.f32 %v11744_v38, %v10993_v17  ;;  %v11747_v57 = vld [vmem:[#allocation150_spill] sm:$0xff] }
  0xc4   :  { %v5540_v30 = vpack.c.bf16 %v708_v27, %v696_v55  ;;  %v1992_v20 = vand.u32 4294901760, %v1991_v7  ;;  %v1985_v15 = vsub.f32 %v11745_v32, %v10994_v21  ;;  %v10995_v26 = vand.u32 4294901760, %v11746_v49  ;;  %v11749_v7 = vld [vmem:[#allocation152_spill] sm:$0xff]  ;;  %v11756_v32 = vld [vmem:[#allocation163_spill] sm:$0xff] }
  0xc5   :  { %5923 = vmatpush1.bf16.msra.mxu1 %v5922_v9  ;;  %v702_v11 = vand.u32 4294901760, %v701_v0  ;;  %v714_v42 = vand.u32 4294901760, %v713_v23  ;;  %v10997_v29 = vand.u32 4294901760, %v11747_v57  ;;  %v10998_v37 = vand.u32 4294901760, %v11748_v24  ;;  %v11750_v0 = vld [vmem:[#allocation154_spill] sm:$0xff] }
  0xc6   :  { %5541 = vmatprep.subr.bf16.mxu0 %v5540_v30  ;;  %v5924_v18 = vpack.c.bf16 %v1992_v20, %v1980_v28  ;;  %v1986_v53 = vand.u32 4294901760, %v1985_v15  ;;  %v1997_v27 = vsub.f32 %v11746_v49, %v10995_v26  ;;  %v11001_v55 = vand.u32 4294901760, %v11749_v7  ;;  %v11751_v20 = vld [vmem:[#allocation156_spill] sm:$0xff]  ;;  %v11752_v26 = vld [vmem:[#allocation157_spill] sm:$0xff] }
  0xc7   :  { %v5542_v17 = vpack.c.bf16 %v714_v42, %v702_v11  ;;  %v719_v9 = vsub.f32 %v11747_v57, %v10997_v29  ;;  %v731_v23 = vsub.f32 %v11748_v24, %v10998_v37  ;;  %v11003_v21 = vand.u32 4294901760, %v11750_v0  ;;  %v11753_v37 = vld [vmem:[#allocation159_spill] sm:$0xff] }
  0xc8   :  { %5925 = vmatprep.subr.bf16.mxu1 %v5924_v18  ;;  %v1998_v30 = vand.u32 4294901760, %v1997_v27  ;;  %v2003_v28 = vsub.f32 %v11749_v7, %v11001_v55  ;;  %v11007_v15 = vand.u32 4294901760, %v11751_v20  ;;  %v11009_v11 = vand.u32 4294901760, %v11752_v26 }
  0xc9   :  { %5543 = vmatpush1.bf16.msra.mxu0 %v5542_v17  ;;  %v720_v42 = vand.u32 4294901760, %v719_v9  ;;  %v732_v49 = vand.u32 4294901760, %v731_v23  ;;  %v2015_v29 = vsub.f32 %v11750_v0, %v11003_v21  ;;  %v11011_v24 = vand.u32 4294901760, %v11753_v37  ;;  %v11754_v23 = vld [vmem:[#allocation160_spill] sm:$0xff] }
  0xca   :  { %v5926_v57 = vpack.c.bf16 %v1998_v30, %v1986_v53  ;;  %v2004_v18 = vand.u32 4294901760, %v2003_v28  ;;  %v725_v27 = vsub.f32 %v11751_v20, %v11007_v15  ;;  %v737_v55 = vsub.f32 %v11752_v26, %v11009_v11  ;;  %v11755_v30 = vld [vmem:[#allocation162_spill] sm:$0xff] }
  0xcb   :  { %v5544_v7 = vpack.c.bf16 %v732_v49, %v720_v42  ;;  %v2016_v17 = vand.u32 4294901760, %v2015_v29  ;;  %v2009_v9 = vsub.f32 %v11753_v37, %v11011_v24  ;;  %v11010_v21 = vand.u32 4294901760, %v11754_v23  ;;  %v11757_v29 = vld [vmem:[#allocation164_spill] sm:$0xff] }
  0xcc   :  { %5927 = vmatpush1.bf16.msra.mxu1 %v5926_v57  ;;  %v726_v0 = vand.u32 4294901760, %v725_v27  ;;  %v738_v53 = vand.u32 4294901760, %v737_v55  ;;  %v11012_v28 = vand.u32 4294901760, %v11755_v30  ;;  %v11013_v38 = vand.u32 4294901760, %v11756_v32 }
  0xcd   :  { %5545 = vmatprep.subr.bf16.mxu0 %v5544_v7  ;;  %v5928_v15 = vpack.c.bf16 %v2016_v17, %v2004_v18  ;;  %v2010_v20 = vand.u32 4294901760, %v2009_v9  ;;  %v2021_v49 = vsub.f32 %v11754_v23, %v11010_v21  ;;  %v11016_v42 = vand.u32 4294901760, %v11757_v29  ;;  %v11758_v17 = vld [vmem:[#allocation168_spill] sm:$0xff]  ;;  %v11759_v21 = vld [vmem:[#allocation169_spill] sm:$0xff]  ;;  %v11763_v23 = vld [vmem:[#allocation175_spill] sm:$0xff] }
  0xce   :  { %v5546_v11 = vpack.c.bf16 %v738_v53, %v726_v0  ;;  %v743_v57 = vsub.f32 %v11755_v30, %v11012_v28  ;;  %v755_v55 = vsub.f32 %v11756_v32, %v11013_v38  ;;  %v11018_v27 = vand.u32 4294901760, %v7440_v54  ;;  %v11760_v38 = vld [vmem:[#allocation171_spill] sm:$0xff] }
  0xcf   :  { %5929 = vmatprep.subr.bf16.mxu1 %v5928_v15  ;;  %v2022_v7 = vand.u32 4294901760, %v2021_v49  ;;  %v2027_v18 = vsub.f32 %v11757_v29, %v11016_v42  ;;  %v11023_v9 = vand.u32 4294901760, %v11758_v17  ;;  %v11025_v0 = vand.u32 4294901760, %v11759_v21 }
  0xd0   :  { %5547 = vmatpush1.bf16.msra.mxu0 %v5546_v11  ;;  %v744_v53 = vand.u32 4294901760, %v743_v57  ;;  %v756_v24 = vand.u32 4294901760, %v755_v55  ;;  %v2039_v28 = vsub.f32 %v7440_v54, %v11018_v27  ;;  %v11030_v32 = vand.u32 4294901760, %v11760_v38  ;;  %v11761_v55 = vld [vmem:[#allocation172_spill] sm:$0xff] }
  0xd1   :  { %v5930_v30 = vpack.c.bf16 %v2022_v7, %v2010_v20  ;;  %v2028_v15 = vand.u32 4294901760, %v2027_v18  ;;  %v749_v49 = vsub.f32 %v11758_v17, %v11023_v9  ;;  %v761_v42 = vsub.f32 %v11759_v21, %v11025_v0  ;;  %v11762_v7 = vld [vmem:[#allocation174_spill] sm:$0xff] }
  0xd2   :  { %v5548_v29 = vpack.c.bf16 %v756_v24, %v744_v53  ;;  %v2040_v11 = vand.u32 4294901760, %v2039_v28  ;;  %v2033_v57 = vsub.f32 %v11760_v38, %v11030_v32  ;;  %v11028_v27 = vand.u32 4294901760, %v11761_v55  ;;  %v11764_v28 = vld [vmem:[#allocation176_spill] sm:$0xff] }
  0xd3   :  { %5931 = vmatpush1.bf16.msra.mxu1 %v5930_v30  ;;  %v750_v54 = vand.u32 4294901760, %v749_v49  ;;  %v762_v20 = vand.u32 4294901760, %v761_v42  ;;  %v11026_v18 = vand.u32 4294901760, %v11762_v7  ;;  %v11027_v37 = vand.u32 4294901760, %v11763_v23 }
  0xd4   :  { %5549 = vmatprep.subr.bf16.mxu0 %v5548_v29  ;;  %v5932_v9 = vpack.c.bf16 %v2040_v11, %v2028_v15  ;;  %v2034_v17 = vand.u32 4294901760, %v2033_v57  ;;  %v2045_v24 = vsub.f32 %v11761_v55, %v11028_v27  ;;  %v11029_v53 = vand.u32 4294901760, %v11764_v28 }
  0xd5   :  { %v5550_v0 = vpack.c.bf16 %v762_v20, %v750_v54  ;;  %v767_v30 = vsub.f32 %v11762_v7, %v11026_v18  ;;  %v779_v42 = vsub.f32 %v11763_v23, %v11027_v37  ;;  %v11031_v49 = vand.u32 4294901760, %v7468_v60 }
  0xd6   :  { %5933 = vmatprep.subr.bf16.mxu1 %v5932_v9  ;;  %v2046_v29 = vand.u32 4294901760, %v2045_v24  ;;  %v2051_v15 = vsub.f32 %v11764_v28, %v11029_v53  ;;  %v11034_v11 = vand.u32 4294901760, %v7472_v31  ;;  %v11037_v54 = vand.u32 4294901760, %v7474_v45 }
  0xd7   :  { %5551 = vmatpush1.bf16.msra.mxu0 %v5550_v0  ;;  %v768_v57 = vand.u32 4294901760, %v767_v30  ;;  %v780_v20 = vand.u32 4294901760, %v779_v42  ;;  %v2063_v18 = vsub.f32 %v7468_v60, %v11031_v49  ;;  %v11042_v37 = vand.u32 4294901760, %v7478_v14 }
  0xd8   :  { %v5934_v27 = vpack.c.bf16 %v2046_v29, %v2034_v17  ;;  %v2052_v9 = vand.u32 4294901760, %v2051_v15  ;;  %v773_v24 = vsub.f32 %v7472_v31, %v11034_v11  ;;  %v785_v53 = vsub.f32 %v7474_v45, %v11037_v54  ;;  %v11765_v15 = vld [vmem:[#allocation187_spill] sm:$0xff] }
  0xd9   :  { %v5552_v32 = vpack.c.bf16 %v780_v20, %v768_v57  ;;  %v2064_v0 = vand.u32 4294901760, %v2063_v18  ;;  %v2057_v30 = vsub.f32 %v7478_v14, %v11042_v37  ;;  %v11040_v42 = vand.u32 4294901760, %v7480_v36  ;;  %v11766_v57 = vld [vmem:[#allocation188_spill] sm:$0xff]  ;;  %v11820_v14 = vld [vmem:[#allocation58_spill] sm:$0xff] }
  0xda   :  { %5935 = vmatpush1.bf16.msra.mxu1 %v5934_v27  ;;  %v774_v49 = vand.u32 4294901760, %v773_v24  ;;  %v786_v17 = vand.u32 4294901760, %v785_v53  ;;  %v11038_v29 = vand.u32 4294901760, %v7489_v22  ;;  %v11039_v60 = vand.u32 4294901760, %v11765_v15 }
  0xdb   :  { %5553 = vmatprep.subr.bf16.mxu0 %v5552_v32  ;;  %v5936_v11 = vpack.c.bf16 %v2064_v0, %v2052_v9  ;;  %v2058_v31 = vand.u32 4294901760, %v2057_v30  ;;  %v2069_v18 = vsub.f32 %v7480_v36, %v11040_v42  ;;  %v11041_v20 = vand.u32 4294901760, %v11766_v57  ;;  %v11821_v36 = vld [vmem:[#allocation60_spill] sm:$0xff] }
  0xdc   :  { %v5554_v54 = vpack.c.bf16 %v786_v17, %v774_v49  ;;  %v791_v27 = vsub.f32 %v7489_v22, %v11038_v29  ;;  %v803_v53 = vsub.f32 %v11765_v15, %v11039_v60  ;;  %v11043_v24 = vand.u32 4294901760, %v7502_v59  ;;  %v11822_v22 = vld [vmem:[#allocation61_spill] sm:$0xff] }
  0xdd   :  { %5937 = vmatprep.subr.bf16.mxu1 %v5936_v11  ;;  %v2070_v32 = vand.u32 4294901760, %v2069_v18  ;;  %v2075_v9 = vsub.f32 %v11766_v57, %v11041_v20  ;;  %v11044_v0 = vand.u32 4294901760, %v7506_v47  ;;  %v11045_v49 = vand.u32 4294901760, %v7511_v2  ;;  %v11823_v57 = vld [vmem:[#allocation66_spill] sm:$0xff] }
  0xde   :  { %5555 = vmatpush1.bf16.msra.mxu0 %v5554_v54  ;;  %v792_v30 = vand.u32 4294901760, %v791_v27  ;;  %v804_v17 = vand.u32 4294901760, %v803_v53  ;;  %v2087_v29 = vsub.f32 %v7502_v59, %v11043_v24  ;;  %v11046_v60 = vand.u32 4294901760, %v7515_v8 }
  0xdf   :  { %v5938_v42 = vpack.c.bf16 %v2070_v32, %v2058_v31  ;;  %v2076_v11 = vand.u32 4294901760, %v2075_v9  ;;  %v797_v18 = vsub.f32 %v7506_v47, %v11044_v0  ;;  %v809_v20 = vsub.f32 %v7511_v2, %v11045_v49  ;;  %v11767_v49 = vld [vmem:[#allocation7_spill] sm:$0xff] }
  0xe0   :  { %v5556_v37 = vpack.c.bf16 %v804_v17, %v792_v30  ;;  %v2088_v54 = vand.u32 4294901760, %v2087_v29  ;;  %v2081_v27 = vsub.f32 %v7515_v8, %v11046_v60  ;;  %v11051_v53 = vand.u32 4294901760, %v7517_v1  ;;  %v11768_v60 = vld [vmem:[#allocation8_spill] sm:$0xff]  ;;  %v11769_v8 = vld [vmem:[#allocation10_spill] sm:$0xff] }
  0xe1   :  { %5939 = vmatpush1.bf16.msra.mxu1 %v5938_v42  ;;  %v798_v24 = vand.u32 4294901760, %v797_v18  ;;  %v810_v31 = vand.u32 4294901760, %v809_v20  ;;  %v5560_v30 = vpack.c.bf16 %v11767_v49, %v7067_v16  ;;  %v5944_v2 = vpack.c.bf16 %v11769_v8, %v11768_v60  ;;  %v11770_v42 = vld [vmem:[#allocation13_spill] sm:$0xff]  ;;  %v11771_v18 = vld [vmem:[#allocation199_spill] sm:$0xff]  ;;  %v11802_v60 = vld [vmem:[#allocation198_spill] sm:$0xff] }
  0xe2   :  { %5557 = vmatprep.subr.bf16.mxu0 %v5556_v37  ;;  %v5940_v32 = vpack.c.bf16 %v2088_v54, %v2076_v11  ;;  %v2082_v9 = vand.u32 4294901760, %v2081_v27  ;;  %v2093_v0 = vsub.f32 %v7517_v1, %v11051_v53  ;;  %v5562_v20 = vpack.c.bf16 %v11770_v42, %v7079_v25  ;;  %v11800_v25 = vld [vmem:[#allocation150_spill] sm:$0xff]  ;;  %v11805_v16 = vld [vmem:[#allocation156_spill] sm:$0xff]  ;;  %v11824_v49 = vld [vmem:[#allocation67_spill] sm:$0xff] }
  0xe3   :  { %v5558_v29 = vpack.c.bf16 %v810_v31, %v798_v24  ;;  %v5564_v11 = vpack.c.bf16 %v7096_v46, %v7092_v41  ;;  %v5946_v24 = vpack.c.bf16 %v7090_v40, %v7088_v39  ;;  %v5566_v54 = vpack.c.bf16 %v7111_v61, %v7105_v52  ;;  %v11797_v46 = vld [vmem:[#allocation145_spill] sm:$0xff]  ;;  %v11803_v61 = vld [vmem:[#allocation152_spill] sm:$0xff]  ;;  %v11808_v40 = vld [vmem:[#allocation162_spill] sm:$0xff] }
  0xe4   :  { %5941 = vmatprep.subr.bf16.mxu1 %v5940_v32  ;;  %v2094_v17 = vand.u32 4294901760, %v2093_v0  ;;  %v5948_v0 = vpack.c.bf16 %v7103_v50, %v7100_v48  ;;  %v5950_v27 = vpack.c.bf16 %v7117_v4, %v7113_v62  ;;  %v5568_v31 = vpack.c.bf16 %v7124_v10, %v7121_v6  ;;  %v11785_v4 = vld [vmem:[#allocation127_spill] sm:$0xff]  ;;  %v11786_v62 = vld [vmem:[#allocation128_spill] sm:$0xff]  ;;  %v11811_v53 = vld [vmem:[#allocation166_spill] sm:$0xff] }
  0xe5   :  { %5559 = vmatpush1.bf16.msra.mxu0 %v5558_v29  ;;  %v5952_v32 = vpack.c.bf16 %v7130_v13, %v7128_v12  ;;  %v5956_v29 = vpack.c.bf16 %v7160_v63, %v7157_v58  ;;  %v11780_v63 = vld [vmem:[#allocation120_spill] sm:$0xff]  ;;  %v11782_v58 = vld [vmem:[#allocation123_spill] sm:$0xff]  ;;  %v11789_v13 = vld [vmem:[#allocation133_spill] sm:$0xff]  ;;  %v5580_v47 = vpack.c.bf16 %v11824_v49, %v11823_v57 }
  0xe6   :  { %v5942_v37 = vpack.c.bf16 %v2094_v17, %v2082_v9  ;;  %5561 = vmatprep.subr.bf16.mxu0 %v5560_v30  ;;  %v5954_v9 = vpack.c.bf16 %v7145_v44, %v7143_v43  ;;  %v5572_v30 = vpack.c.bf16 %v7153_v56, %v7149_v51  ;;  %v5574_v17 = vpack.c.bf16 %v7167_v35, %v7163_v19  ;;  %v11775_v44 = vld [vmem:[#allocation112_spill] sm:$0xff]  ;;  %v11779_v51 = vld [vmem:[#allocation118_spill] sm:$0xff]  ;;  %v11781_v35 = vld [vmem:[#allocation121_spill] sm:$0xff] }
  0xe7   :  { %v11778_v56 = vld [vmem:[#allocation116_spill] sm:$0xff]  ;;  %v11787_v43 = vld [vmem:[#allocation130_spill] sm:$0xff]  ;;  %v11793_v50 = vld [vmem:[#allocation139_spill] sm:$0xff] }
  0xe8   :  { %5943 = vmatpush1.bf16.msra.mxu1 %v5942_v37  ;;  %815 = vmatmul.mubr.f32.vlgmr.msra.gmra.mrb[0].mxu0 %v11771_v18  ;;  %v11772_v37 = vld [vmem:[#allocation108_spill] sm:$0xff]  ;;  %v11801_v10 = vld [vmem:[#allocation151_spill] sm:$0xff]  ;;  %v11813_v19 = vld [vmem:[#allocation178_spill] sm:$0xff] }
  0xe9   :  { %5945 = vmatprep.subr.bf16.mxu1 %v5944_v2  ;;  %5563 = vmatpush1.bf16.msra.mxu0 %v5562_v20  ;;  %v5570_v2 = vpack.c.bf16 %v7139_v34, %v7137_v33  ;;  %v5576_v20 = vpack.c.bf16 %v7179_v5, %v7177_v3  ;;  %v11774_v34 = vld [vmem:[#allocation111_spill] sm:$0xff]  ;;  %v11783_v5 = vld [vmem:[#allocation124_spill] sm:$0xff]  ;;  %v11784_v3 = vld [vmem:[#allocation126_spill] sm:$0xff] }
  0xea   :  { %5565 = vmatprep.subr.bf16.mxu0 %v5564_v11  ;;  %v11773_v11 = vld [vmem:[#allocation109_spill] sm:$0xff]  ;;  %v11777_v33 = vld [vmem:[#allocation115_spill] sm:$0xff]  ;;  %v11788_v6 = vld [vmem:[#allocation132_spill] sm:$0xff]  ;;  %1015 = vmatprep.mubr.f32.mxu0 %v11802_v60 }
  0xeb   :  { %2099 = vmatmul.mubr.f32.vlgmr.msra.gmra.mrb[0].mxu1 %v11771_v18  ;;  %v11776_v18 = vld [vmem:[#allocation114_spill] sm:$0xff]  ;;  %v11791_v12 = vld [vmem:[#allocation136_spill] sm:$0xff]  ;;  %v11809_v41 = vld [vmem:[#allocation163_spill] sm:$0xff] }
  0xec   :  { %5947 = vmatpush1.bf16.msra.mxu1 %v5946_v24  ;;  %v11810_v42 = vld [vmem:[#allocation164_spill] sm:$0xff]  ;;  %2299 = vmatprep.mubr.f32.mxu1 %v11802_v60  ;;  %v11817_v52 = vld [vmem:[#allocation51_spill] sm:$0xff] }
  0xed   :  { %5949 = vmatprep.subr.bf16.mxu1 %v5948_v0  ;;  %5567 = vmatpush1.bf16.msra.mxu0 %v5566_v54  ;;  %v11792_v54 = vld [vmem:[#allocation138_spill] sm:$0xff]  ;;  %v11825_v48 = vld [vmem:[#allocation63_spill] sm:$0xff]  ;;  %v11826_v24 = vld [vmem:[#allocation64_spill] sm:$0xff] }
  0xee   :  { %5569 = vmatprep.subr.bf16.mxu0 %v5568_v31  ;;  %v11804_v0 = vld [vmem:[#allocation154_spill] sm:$0xff]  ;;  %v11812_v31 = vld [vmem:[#allocation168_spill] sm:$0xff]  ;;  %v5962_v60 = vpack.c.bf16 %v11826_v24, %v11825_v48  ;;  %v11838_v48 = vld [vmem:[#allocation85_spill] sm:$0xff] }
  0xef   :  { %v11836_v24 = vld [vmem:[#allocation82_spill] sm:$0xff] }
  0xf0   :  { %5951 = vmatpush1.bf16.msra.mxu1 %v5950_v27  ;;  %v5578_v27 = vpack.c.bf16 %v11822_v22, %v11821_v36  ;;  %v11834_v36 = vld [vmem:[#allocation76_spill] sm:$0xff] }
  0xf1   :  { %5953 = vmatprep.subr.bf16.mxu1 %v5952_v32  ;;  %5571 = vmatpush1.bf16.msra.mxu0 %v5570_v2  ;;  %v11818_v32 = vld [vmem:[#allocation52_spill] sm:$0xff] }
  0xf2   :  { %5573 = vmatprep.subr.bf16.mxu0 %v5572_v30  ;;  %v11815_v30 = vld [vmem:[#allocation194_spill] sm:$0xff]  ;;  %v5958_v39 = vpack.c.bf16 %v11818_v32, %v11817_v52  ;;  %v11819_v2 = vld [vmem:[#allocation56_spill] sm:$0xff]  ;;  %v11830_v52 = vld [vmem:[#allocation73_spill] sm:$0xff] }
  0xf3   :  { %v5960_v8 = vpack.c.bf16 %v11820_v14, %v11819_v2  ;;  %v11828_v32 = vld [vmem:[#allocation70_spill] sm:$0xff]  ;;  %v11832_v2 = vld [vmem:[#allocation79_spill] sm:$0xff] }
  0xf4   :  { %5955 = vmatpush1.bf16.msra.mxu1 %v5954_v9  ;;  %v11827_v9 = vld [vmem:[#allocation68_spill] sm:$0xff]  ;;  %v11831_v14 = vld [vmem:[#allocation78_spill] sm:$0xff] }
  0xf5   :  { %5957 = vmatprep.subr.bf16.mxu1 %v5956_v29  ;;  %5575 = vmatpush1.bf16.msra.mxu0 %v5574_v17  ;;  %v5964_v29 = vpack.c.bf16 %v11828_v32, %v11827_v9  ;;  %v11829_v17 = vld [vmem:[#allocation72_spill] sm:$0xff]  ;;  %v5584_v22 = vpack.c.bf16 %v11832_v2, %v11831_v14  ;;  %v11839_v32 = vld [vmem:[#allocation90_spill] sm:$0xff]  ;;  %v11840_v9 = vld [vmem:[#allocation91_spill] sm:$0xff] }
  0xf6   :  { %5577 = vmatprep.subr.bf16.mxu0 %v5576_v20  ;;  %v5582_v1 = vpack.c.bf16 %v11830_v52, %v11829_v17  ;;  %v11833_v20 = vld [vmem:[#allocation75_spill] sm:$0xff]  ;;  %v5588_v52 = vpack.c.bf16 %v11840_v9, %v11839_v32  ;;  %v11842_v17 = vld [vmem:[#allocation88_spill] sm:$0xff] }
  0xf7   :  { %v5966_v49 = vpack.c.bf16 %v11834_v36, %v11833_v20  ;;  %v11844_v36 = vld [vmem:[#allocation94_spill] sm:$0xff]  ;;  %v11846_v20 = vld [vmem:[#allocation97_spill] sm:$0xff] }
  0xf8   :  { %5959 = vmatpush1.bf16.msra.mxu1 %v5958_v39  ;;  %v11835_v39 = vld [vmem:[#allocation80_spill] sm:$0xff] }
  0xf9   :  { %5961 = vmatprep.subr.bf16.mxu1 %v5960_v8  ;;  %5579 = vmatpush1.bf16.msra.mxu0 %v5578_v27  ;;  %v5968_v8 = vpack.c.bf16 %v11836_v24, %v11835_v39  ;;  %v11837_v27 = vld [vmem:[#allocation84_spill] sm:$0xff]  ;;  %v11847_v24 = vld [vmem:[#allocation102_spill] sm:$0xff]  ;;  %v11848_v39 = vld [vmem:[#allocation103_spill] sm:$0xff] }
  0xfa   :  { %5581 = vmatprep.subr.bf16.mxu0 %v5580_v47  ;;  %v5586_v57 = vpack.c.bf16 %v11838_v48, %v11837_v27  ;;  %v11841_v47 = vld [vmem:[#allocation87_spill] sm:$0xff]  ;;  %v5592_v48 = vpack.c.bf16 %v11848_v39, %v11847_v24  ;;  %v11850_v27 = vld [vmem:[#allocation100_spill] sm:$0xff] }
  0xfb   :  { %v5970_v2 = vpack.c.bf16 %v11842_v17, %v11841_v47  ;;  %v11852_v17 = vld [vmem:[#allocation106_spill] sm:$0xff] }
  0xfc   :  { %5963 = vmatpush1.bf16.msra.mxu1 %v5962_v60  ;;  %v11843_v60 = vld [vmem:[#allocation92_spill] sm:$0xff] }
  0xfd   :  { %5965 = vmatprep.subr.bf16.mxu1 %v5964_v29  ;;  %5583 = vmatpush1.bf16.msra.mxu0 %v5582_v1  ;;  %v5972_v29 = vpack.c.bf16 %v11844_v36, %v11843_v60  ;;  %v11845_v1 = vld [vmem:[#allocation96_spill] sm:$0xff] }
  0xfe   :  { %5585 = vmatprep.subr.bf16.mxu0 %v5584_v22  ;;  %v5590_v14 = vpack.c.bf16 %v11846_v20, %v11845_v1  ;;  %v11849_v22 = vld [vmem:[#allocation99_spill] sm:$0xff] }
  0xff   :  { %v5974_v9 = vpack.c.bf16 %v11850_v27, %v11849_v22 }
 0x100   :  { %5967 = vmatpush1.bf16.msra.mxu1 %v5966_v49  ;;  %v11851_v49 = vld [vmem:[#allocation104_spill] sm:$0xff] }
 0x101   :  { %5969 = vmatprep.subr.bf16.mxu1 %v5968_v8  ;;  %5587 = vmatpush1.bf16.msra.mxu0 %v5586_v57  ;;  %v5976_v8 = vpack.c.bf16 %v11852_v17, %v11851_v49  ;;  %v11853_v57 = vpack.c.bf16 %v11773_v11, %v11772_v37 }
 0x102   :  { %5589 = vmatprep.subr.bf16.mxu0 %v5588_v52  ;;  %v11854_v52 = vpack.c.bf16 %v11777_v33, %v11776_v18 }
 0x104   :  { %5971 = vmatpush1.bf16.msra.mxu1 %v5970_v2  ;;  %v11855_v2 = vpack.c.bf16 %v11775_v44, %v11774_v34 }
 0x105   :  { %5973 = vmatprep.subr.bf16.mxu1 %v5972_v29  ;;  %5591 = vmatpush1.bf16.msra.mxu0 %v5590_v14  ;;  %v11856_v14 = vpack.c.bf16 %v11779_v51, %v11778_v56  ;;  %v11859_v29 = vpack.c.bf16 %v11783_v5, %v11782_v58 }
 0x106   :  { %5593 = vmatprep.subr.bf16.mxu0 %v5592_v48  ;;  %v11857_v48 = vpack.c.bf16 %v11781_v35, %v11780_v63 }
 0x108   :  { %5975 = vmatpush1.bf16.msra.mxu1 %v5974_v9  ;;  %v11858_v9 = vpack.c.bf16 %v11785_v4, %v11784_v3 }
 0x109   :  { %5977 = vmatprep.subr.bf16.mxu1 %v5976_v8  ;;  %5595 = vmatpush1.bf16.msra.mxu0 %v11853_v57  ;;  %v11860_v8 = vpack.c.bf16 %v11787_v43, %v11786_v62  ;;  %v11861_v57 = vpack.c.bf16 %v11789_v13, %v11788_v6  ;;  %v11872_v13 = vld [vmem:[#allocation147_spill] sm:$0xff] }
 0x10a   :  { %5597 = vmatprep.subr.bf16.mxu0 %v11854_v52  ;;  %v11862_v52 = vpack.c.bf16 %v11793_v50, %v11792_v54 }
 0x10c   :  { %5979 = vmatpush1.bf16.msra.mxu1 %v11855_v2  ;;  %v11863_v2 = vld [vmem:[#allocation135_spill] sm:$0xff] }
 0x10d   :  { %5981 = vmatprep.subr.bf16.mxu1 %v11856_v14  ;;  %5599 = vmatpush1.bf16.msra.mxu0 %v11857_v48  ;;  %v11864_v14 = vpack.c.bf16 %v11791_v12, %v11863_v2  ;;  %v11865_v48 = vld [vmem:[#allocation142_spill] sm:$0xff] }
 0x10e   :  { %5601 = vmatprep.subr.bf16.mxu0 %v11858_v9  ;;  %v11866_v9 = vld [vmem:[#allocation140_spill] sm:$0xff] }
 0x10f   :  { %v11867_v5 = vpack.c.bf16 %v11865_v48, %v11866_v9 }
 0x110   :  { %5983 = vmatpush1.bf16.msra.mxu1 %v11859_v29  ;;  %v11868_v29 = vld [vmem:[#allocation144_spill] sm:$0xff] }
 0x111   :  { %5985 = vmatprep.subr.bf16.mxu1 %v11860_v8  ;;  %5603 = vmatpush1.bf16.msra.mxu0 %v11861_v57  ;;  %v11869_v43 = vpack.c.bf16 %v11797_v46, %v11868_v29  ;;  %v11870_v8 = vpack.c.bf16 %v11801_v10, %v11800_v25  ;;  %v11871_v57 = vld [vmem:[#allocation148_spill] sm:$0xff]  ;;  %v11878_v46 = vld [vmem:[#allocation159_spill] sm:$0xff] }
 0x112   :  { %5605 = vmatprep.subr.bf16.mxu0 %v11862_v52  ;;  %v11873_v50 = vpack.c.bf16 %v11871_v57, %v11872_v13  ;;  %v11874_v52 = vpack.c.bf16 %v11804_v0, %v11803_v61 }
 0x114   :  { %5987 = vmatpush1.bf16.msra.mxu1 %v11864_v14  ;;  %v11875_v14 = vpack.c.bf16 %v11752_v26, %v11805_v16 }
 0x115   :  { %5989 = vmatprep.subr.bf16.mxu1 %v11867_v5  ;;  %5607 = vmatpush1.bf16.msra.mxu0 %v11869_v43  ;;  %v11876_v5 = vpack.c.bf16 %v11809_v41, %v11808_v40  ;;  %v11877_v43 = vld [vmem:[#allocation160_spill] sm:$0xff]  ;;  %v11996_v40 = vld [vmem:[#allocation31_spill] sm:$0xff] }
 0x116   :  { %5609 = vmatprep.subr.bf16.mxu0 %v11870_v8  ;;  %v11879_v10 = vpack.c.bf16 %v11877_v43, %v11878_v46  ;;  %v11880_v8 = vpack.c.bf16 %v11811_v53, %v11810_v42  ;;  %v11984_v42 = vld [vmem:[#allocation16_spill] sm:$0xff] }
 0x118   :  { %5991 = vmatpush1.bf16.msra.mxu1 %v11873_v50  ;;  %v11881_v50 = vpack.c.bf16 %v11759_v21, %v11812_v31  ;;  %v11890_v31 = vld [vmem:[#allocation183_spill] sm:$0xff] }
 0x119   :  { %5993 = vmatprep.subr.bf16.mxu1 %v11874_v52  ;;  %5611 = vmatpush1.bf16.msra.mxu0 %v11875_v14  ;;  %v11882_v52 = vpack.c.bf16 %v11763_v23, %v11762_v7  ;;  %v11883_v14 = vpack.c.bf16 %v11761_v55, %v11760_v38  ;;  %v11980_v38 = vld [vmem:[#allocation195_spill] sm:$0xff] }
 0x11a   :  { %5613 = vmatprep.subr.bf16.mxu0 %v11876_v5  ;;  %v11884_v5 = vpack.c.bf16 %v11813_v19, %v11764_v28  ;;  %v11974_v28 = vld [vmem:[#allocation13_spill] sm:$0xff] }
 0x11c   :  { %5995 = vmatpush1.bf16.msra.mxu1 %v11879_v10  ;;  %v11885_v10 = vld [vmem:[#allocation180_spill] sm:$0xff] }
 0x11d   :  { %5997 = vmatprep.subr.bf16.mxu1 %v11880_v8  ;;  %5615 = vmatpush1.bf16.msra.mxu0 %v11881_v50  ;;  %v11886_v53 = vpack.c.bf16 %v7474_v45, %v11885_v10  ;;  %v11887_v8 = vld [vmem:[#allocation186_spill] sm:$0xff]  ;;  %v11889_v50 = vld [vmem:[#allocation184_spill] sm:$0xff]  ;;  %v11897_v45 = vld [vmem:[#allocation197_spill] sm:$0xff] }
 0x11e   :  { %5617 = vmatprep.subr.bf16.mxu0 %v11882_v52  ;;  %v11888_v21 = vpack.c.bf16 %v11765_v15, %v11887_v8  ;;  %v11891_v23 = vpack.c.bf16 %v11889_v50, %v11890_v31  ;;  %v11892_v52 = vld [vmem:[#allocation188_spill] sm:$0xff]  ;;  %v11900_v15 = vld [vmem:[#allocation201_spill] sm:$0xff]  ;;  %v11902_v8 = vld [vmem:[#allocation11_spill] sm:$0xff] }
 0x11f   :  { %v11893_v7 = vpack.c.bf16 %v7502_v59, %v11892_v52  ;;  %v11904_v59 = vld [vmem:[#allocation200_spill] sm:$0xff] }
 0x120   :  { %5999 = vmatpush1.bf16.msra.mxu1 %v11883_v14  ;;  %v11894_v14 = vld [vmem:[#allocation193_spill] sm:$0xff]  ;;  %v11972_v31 = vld [vmem:[#allocation12_spill] sm:$0xff] }
 0x121   :  { %6001 = vmatprep.subr.bf16.mxu1 %v11884_v5  ;;  %5619 = vmatpush1.bf16.msra.mxu0 %v11886_v53  ;;  %v11895_v19 = vpack.c.bf16 %v11815_v30, %v11894_v14  ;;  %v11896_v5 = vld [vmem:[#allocation5_spill] sm:$0xff]  ;;  %v11898_v53 = vld [vmem:[#allocation196_spill] sm:$0xff]  ;;  %v11963_v30 = vld [vmem:[#allocation7_spill] sm:$0xff] }
 0x122   :  { %5621 = vmatprep.subr.bf16.mxu0 %v11888_v21  ;;  %v11899_v10 = vpack.c.bf16 %v11897_v45, %v11898_v53  ;;  %v11901_v21 = vld [vmem:[#allocation9_spill] sm:$0xff]  ;;  %v11909_v45 = vld [vmem:[#allocation27_spill] sm:$0xff]  ;;  %v11913_v53 = vld [vmem:[#allocation38_spill] sm:$0xff] }
 0x124   :  { %6003 = vmatpush1.bf16.msra.mxu1 %v11891_v23  ;;  %v11903_v23 = vld [vmem:[#allocation18_spill] sm:$0xff] }
 0x125   :  { %6005 = vmatprep.subr.bf16.mxu1 %v11893_v7  ;;  %5623 = vmatpush1.bf16.msra.mxu0 %v11895_v19  ;;  %v11905_v7 = vld [vmem:[#allocation14_spill] sm:$0xff]  ;;  %v11906_v19 = vld [vmem:[#allocation20_spill] sm:$0xff] }
 0x126   :  { %5625 = vmatprep.subr.bf16.mxu0 %v11896_v5  ;;  %v11907_v5 = vld [vmem:[#allocation24_spill] sm:$0xff] }
 0x128   :  { %6007 = vmatpush1.bf16.msra.mxu1 %v11899_v10  ;;  %1018 = vmatmul.mubr.f32.vlgmr.msra.gmra.mrb[0].mxu0 %v11900_v15  ;;  %v11908_v10 = vld [vmem:[#allocation29_spill] sm:$0xff] }
 0x129   :  { %6009 = vmatprep.subr.bf16.mxu1 %v11901_v21  ;;  %5627 = vmatpush1.bf16.msra.mxu0 %v11902_v8  ;;  %v11910_v21 = vld [vmem:[#allocation32_spill] sm:$0xff]  ;;  %v11911_v8 = vld [vmem:[#allocation35_spill] sm:$0xff] }
 0x12a   :  { %5629 = vmatprep.subr.bf16.mxu0 %v11903_v23  ;;  %1155 = vmatprep.mubr.f32.mxu0 %v11904_v59  ;;  %v11912_v23 = vld [vmem:[#allocation41_spill] sm:$0xff] }
 0x12b   :  { %2302 = vmatmul.mubr.f32.vlgmr.msra.gmra.mrb[0].mxu1 %v11900_v15  ;;  %v11914_v15 = vld [vmem:[#allocation44_spill] sm:$0xff] }
 0x12c   :  { %6011 = vmatpush1.bf16.msra.mxu1 %v11905_v7  ;;  %2439 = vmatprep.mubr.f32.mxu1 %v11904_v59  ;;  %v11915_v7 = vld [vmem:[#allocation48_spill] sm:$0xff]  ;;  %v11916_v59 = vld [vmem:[#allocation53_spill] sm:$0xff] }
 0x12d   :  { %6013 = vmatprep.subr.bf16.mxu1 %v11906_v19  ;;  %5631 = vmatpush1.bf16.msra.mxu0 %v11907_v5  ;;  %v11917_v19 = vld [vmem:[#allocation50_spill] sm:$0xff]  ;;  %v11918_v5 = vld [vmem:[#allocation57_spill] sm:$0xff] }
 0x12e   :  { %5633 = vmatprep.subr.bf16.mxu0 %v11908_v10  ;;  %v11919_v10 = vld [vmem:[#allocation59_spill] sm:$0xff] }
 0x130   :  { %6015 = vmatpush1.bf16.msra.mxu1 %v11909_v45  ;;  %v11920_v45 = vld [vmem:[#allocation65_spill] sm:$0xff] }
 0x131   :  { %6017 = vmatprep.subr.bf16.mxu1 %v11910_v21  ;;  %5635 = vmatpush1.bf16.msra.mxu0 %v11911_v8  ;;  %v11921_v21 = vld [vmem:[#allocation62_spill] sm:$0xff]  ;;  %v11922_v8 = vld [vmem:[#allocation69_spill] sm:$0xff] }
 0x132   :  { %5637 = vmatprep.subr.bf16.mxu0 %v11912_v23  ;;  %v11923_v23 = vld [vmem:[#allocation71_spill] sm:$0xff] }
 0x134   :  { %6019 = vmatpush1.bf16.msra.mxu1 %v11913_v53  ;;  %v11924_v53 = vld [vmem:[#allocation77_spill] sm:$0xff] }
 0x135   :  { %6021 = vmatprep.subr.bf16.mxu1 %v11914_v15  ;;  %5639 = vmatpush1.bf16.msra.mxu0 %v11915_v7  ;;  %v11925_v15 = vld [vmem:[#allocation74_spill] sm:$0xff]  ;;  %v11926_v7 = vld [vmem:[#allocation81_spill] sm:$0xff] }
 0x136   :  { %5641 = vmatprep.subr.bf16.mxu0 %v11916_v59  ;;  %v11927_v59 = vld [vmem:[#allocation83_spill] sm:$0xff] }
 0x138   :  { %6023 = vmatpush1.bf16.msra.mxu1 %v11917_v19  ;;  %v11928_v19 = vld [vmem:[#allocation89_spill] sm:$0xff] }
 0x139   :  { %6025 = vmatprep.subr.bf16.mxu1 %v11918_v5  ;;  %5643 = vmatpush1.bf16.msra.mxu0 %v11919_v10  ;;  %v11929_v5 = vld [vmem:[#allocation86_spill] sm:$0xff]  ;;  %v11930_v10 = vld [vmem:[#allocation93_spill] sm:$0xff] }
 0x13a   :  { %5645 = vmatprep.subr.bf16.mxu0 %v11920_v45  ;;  %v11931_v45 = vld [vmem:[#allocation95_spill] sm:$0xff] }
 0x13c   :  { %6027 = vmatpush1.bf16.msra.mxu1 %v11921_v21  ;;  %v11932_v21 = vld [vmem:[#allocation101_spill] sm:$0xff] }
 0x13d   :  { %6029 = vmatprep.subr.bf16.mxu1 %v11922_v8  ;;  %5647 = vmatpush1.bf16.msra.mxu0 %v11923_v23  ;;  %v11933_v8 = vld [vmem:[#allocation98_spill] sm:$0xff]  ;;  %v11934_v23 = vld [vmem:[#allocation105_spill] sm:$0xff] }
 0x13e   :  { %5649 = vmatprep.subr.bf16.mxu0 %v11924_v53  ;;  %v11935_v53 = vld [vmem:[#allocation107_spill] sm:$0xff] }
 0x140   :  { %6031 = vmatpush1.bf16.msra.mxu1 %v11925_v15  ;;  %v11936_v15 = vld [vmem:[#allocation113_spill] sm:$0xff] }
 0x141   :  { %6033 = vmatprep.subr.bf16.mxu1 %v11926_v7  ;;  %5651 = vmatpush1.bf16.msra.mxu0 %v11927_v59  ;;  %v11937_v7 = vld [vmem:[#allocation110_spill] sm:$0xff]  ;;  %v11938_v59 = vld [vmem:[#allocation117_spill] sm:$0xff] }
 0x142   :  { %5653 = vmatprep.subr.bf16.mxu0 %v11928_v19  ;;  %v11939_v19 = vld [vmem:[#allocation119_spill] sm:$0xff] }
 0x144   :  { %6035 = vmatpush1.bf16.msra.mxu1 %v11929_v5  ;;  %v11940_v5 = vld [vmem:[#allocation125_spill] sm:$0xff] }
 0x145   :  { %6037 = vmatprep.subr.bf16.mxu1 %v11930_v10  ;;  %5655 = vmatpush1.bf16.msra.mxu0 %v11931_v45  ;;  %v11941_v10 = vld [vmem:[#allocation122_spill] sm:$0xff]  ;;  %v11942_v45 = vld [vmem:[#allocation129_spill] sm:$0xff] }
 0x146   :  { %5657 = vmatprep.subr.bf16.mxu0 %v11932_v21  ;;  %v11943_v21 = vld [vmem:[#allocation131_spill] sm:$0xff] }
 0x148   :  { %6039 = vmatpush1.bf16.msra.mxu1 %v11933_v8  ;;  %v11944_v8 = vld [vmem:[#allocation137_spill] sm:$0xff] }
 0x149   :  { %6041 = vmatprep.subr.bf16.mxu1 %v11934_v23  ;;  %5659 = vmatpush1.bf16.msra.mxu0 %v11935_v53  ;;  %v11945_v23 = vld [vmem:[#allocation134_spill] sm:$0xff]  ;;  %v11946_v53 = vld [vmem:[#allocation141_spill] sm:$0xff] }
 0x14a   :  { %5661 = vmatprep.subr.bf16.mxu0 %v11936_v15  ;;  %v11947_v15 = vld [vmem:[#allocation143_spill] sm:$0xff] }
 0x14c   :  { %6043 = vmatpush1.bf16.msra.mxu1 %v11937_v7  ;;  %v11948_v7 = vld [vmem:[#allocation149_spill] sm:$0xff] }
 0x14d   :  { %6045 = vmatprep.subr.bf16.mxu1 %v11938_v59  ;;  %5663 = vmatpush1.bf16.msra.mxu0 %v11939_v19  ;;  %v11949_v59 = vld [vmem:[#allocation146_spill] sm:$0xff]  ;;  %v11950_v19 = vld [vmem:[#allocation153_spill] sm:$0xff] }
 0x14e   :  { %5665 = vmatprep.subr.bf16.mxu0 %v11940_v5  ;;  %v11951_v5 = vld [vmem:[#allocation155_spill] sm:$0xff] }
 0x150   :  { %6047 = vmatpush1.bf16.msra.mxu1 %v11941_v10  ;;  %v11952_v10 = vld [vmem:[#allocation161_spill] sm:$0xff] }
 0x151   :  { %6049 = vmatprep.subr.bf16.mxu1 %v11942_v45  ;;  %5667 = vmatpush1.bf16.msra.mxu0 %v11943_v21  ;;  %v11953_v45 = vld [vmem:[#allocation158_spill] sm:$0xff]  ;;  %v11954_v21 = vld [vmem:[#allocation165_spill] sm:$0xff] }
 0x152   :  { %5669 = vmatprep.subr.bf16.mxu0 %v11944_v8  ;;  %v11955_v8 = vld [vmem:[#allocation167_spill] sm:$0xff] }
 0x154   :  { %6051 = vmatpush1.bf16.msra.mxu1 %v11945_v23  ;;  %v11956_v23 = vld [vmem:[#allocation173_spill] sm:$0xff] }
 0x155   :  { %6053 = vmatprep.subr.bf16.mxu1 %v11946_v53  ;;  %5671 = vmatpush1.bf16.msra.mxu0 %v11947_v15  ;;  %v11957_v53 = vld [vmem:[#allocation170_spill] sm:$0xff]  ;;  %v11958_v15 = vld [vmem:[#allocation177_spill] sm:$0xff] }
 0x156   :  { %5673 = vmatprep.subr.bf16.mxu0 %v11948_v7  ;;  %v11959_v7 = vld [vmem:[#allocation179_spill] sm:$0xff] }
 0x158   :  { %6055 = vmatpush1.bf16.msra.mxu1 %v11949_v59  ;;  %v11960_v59 = vld [vmem:[#allocation185_spill] sm:$0xff] }
 0x159   :  { %6057 = vmatprep.subr.bf16.mxu1 %v11950_v19  ;;  %5675 = vmatpush1.bf16.msra.mxu0 %v11951_v5  ;;  %v11961_v19 = vld [vmem:[#allocation6_spill] sm:$0xff] }
 0x15a   :  { %5677 = vmatprep.subr.bf16.mxu0 %v11952_v10  ;;  %v11962_v5 = vand.u32 4294901760, %v11961_v19  ;;  %v11964_v10 = vand.u32 4294901760, %v11963_v30  ;;  %v11976_v19 = vld [vmem:[#allocation17_spill] sm:$0xff] }
 0x15b   :  { %v11977_v30 = vand.u32 4294901760, %v11976_v19 }
 0x15c   :  { %6059 = vmatpush1.bf16.msra.mxu1 %v11953_v45  ;;  %v5688_v14 = vpack.c.bf16 %v11964_v10, %v11962_v5  ;;  %v11965_v45 = vld [vmem:[#allocation182_spill] sm:$0xff]  ;;  %v11978_v5 = vld [vmem:[#allocation19_spill] sm:$0xff] }
 0x15d   :  { %6061 = vmatprep.subr.bf16.mxu1 %v11954_v21  ;;  %5679 = vmatpush1.bf16.msra.mxu0 %v11955_v8  ;;  %v11966_v21 = vld [vmem:[#allocation190_spill] sm:$0xff]  ;;  %v11967_v8 = vld [vmem:[#allocation192_spill] sm:$0xff]  ;;  %v11979_v10 = vand.u32 4294901760, %v11978_v5  ;;  %v11992_v5 = vld [vmem:[#allocation25_spill] sm:$0xff] }
 0x15e   :  { %5681 = vmatprep.subr.bf16.mxu0 %v11956_v23  ;;  %v11968_v23 = vld [vmem:[#allocation8_spill] sm:$0xff] }
 0x15f   :  { %v11969_v52 = vand.u32 4294901760, %v11968_v23 }
 0x160   :  { %6063 = vmatpush1.bf16.msra.mxu1 %v11957_v53  ;;  %v11970_v53 = vld [vmem:[#allocation10_spill] sm:$0xff] }
 0x161   :  { %6065 = vmatprep.subr.bf16.mxu1 %v11958_v15  ;;  %5683 = vmatpush1.bf16.msra.mxu0 %v11959_v7  ;;  %v11971_v50 = vand.u32 4294901760, %v11970_v53  ;;  %v11973_v7 = vand.u32 4294901760, %v11972_v31  ;;  %v11985_v53 = vand.u32 4294901760, %v11984_v42  ;;  %v11986_v31 = vld [vmem:[#allocation21_spill] sm:$0xff] }
 0x162   :  { %5685 = vmatprep.subr.bf16.mxu0 %v11960_v59  ;;  %v11975_v59 = vand.u32 4294901760, %v11974_v28  ;;  %v11987_v28 = vand.u32 4294901760, %v11986_v31  ;;  %v11998_v42 = vld [vmem:[#allocation189_spill] sm:$0xff] }
 0x163   :  { %v6072_v15 = vpack.c.bf16 %v11971_v50, %v11969_v52 }
 0x164   :  { %6067 = vmatpush1.bf16.msra.mxu1 %v11965_v45  ;;  %v5690_v55 = vpack.c.bf16 %v11975_v59, %v11973_v7  ;;  %v5692_v45 = vpack.c.bf16 %v11979_v10, %v11977_v30  ;;  %v11988_v59 = vld [vmem:[#allocation22_spill] sm:$0xff]  ;;  %v11990_v7 = vld [vmem:[#allocation23_spill] sm:$0xff]  ;;  %v11993_v30 = vand.u32 4294901760, %v11992_v5 }
 0x165   :  { %6069 = vmatprep.subr.bf16.mxu1 %v11966_v21  ;;  %5687 = vmatpush1.bf16.msra.mxu0 %v11967_v8  ;;  %v11981_v21 = vld [vmem:[#allocation202_spill] sm:$0xff]  ;;  %v11982_v8 = vld [vmem:[#allocation15_spill] sm:$0xff]  ;;  %v11989_v52 = vand.u32 4294901760, %v11988_v59  ;;  %v11991_v19 = vand.u32 4294901760, %v11990_v7  ;;  %v12009_v7 = vld [vmem:[#allocation37_spill] sm:$0xff] }
 0x166   :  { %5689 = vmatprep.subr.bf16.mxu0 %v5688_v14  ;;  %v11983_v23 = vand.u32 4294901760, %v11982_v8  ;;  %v11997_v8 = vand.u32 4294901760, %v11996_v40 }
 0x167   :  { %v6076_v14 = vpack.c.bf16 %v11989_v52, %v11987_v28  ;;  %v5694_v10 = vpack.c.bf16 %v11993_v30, %v11991_v19  ;;  %v12010_v19 = vand.u32 4294901760, %v12009_v7 }
 0x168   :  { %6071 = vmatpush1.bf16.msra.mxu1 %v11980_v38  ;;  %1159 = vmatmul.mubr.f32.vlgmr.msra.gmra.mrb[0].mxu0 %v11981_v21  ;;  %v6074_v50 = vpack.c.bf16 %v11985_v53, %v11983_v23  ;;  %v11994_v38 = vld [vmem:[#allocation30_spill] sm:$0xff]  ;;  %v12001_v23 = vld [vmem:[#allocation28_spill] sm:$0xff] }
 0x169   :  { %6073 = vmatprep.subr.bf16.mxu1 %v6072_v15  ;;  %5691 = vmatpush1.bf16.msra.mxu0 %v5690_v55  ;;  %v11995_v41 = vand.u32 4294901760, %v11994_v38  ;;  %v11999_v55 = vld [vmem:[#allocation26_spill] sm:$0xff]  ;;  %v12002_v53 = vand.u32 4294901760, %v12001_v23  ;;  %v12015_v23 = vld [vmem:[#allocation39_spill] sm:$0xff] }
 0x16a   :  { %5693 = vmatprep.subr.bf16.mxu0 %v5692_v45  ;;  %1422 = vmatprep.mubr.f32.mxu0 %v11998_v42  ;;  %v12000_v15 = vand.u32 4294901760, %v11999_v55  ;;  %v12003_v45 = vld [vmem:[#allocation33_spill] sm:$0xff]  ;;  %v12005_v38 = vld [vmem:[#allocation34_spill] sm:$0xff] }
 0x16b   :  { %v5696_v43 = vpack.c.bf16 %v11997_v8, %v11995_v41  ;;  %2443 = vmatmul.mubr.f32.vlgmr.msra.gmra.mrb[0].mxu1 %v11981_v21  ;;  %v12004_v28 = vand.u32 4294901760, %v12003_v45  ;;  %v12006_v59 = vand.u32 4294901760, %v12005_v38  ;;  %v12007_v41 = vld [vmem:[#allocation36_spill] sm:$0xff]  ;;  %v12013_v8 = vld [vmem:[#allocation43_spill] sm:$0xff] }
 0x16c   :  { %6075 = vmatpush1.bf16.msra.mxu1 %v6074_v50  ;;  %v6078_v31 = vpack.c.bf16 %v12002_v53, %v12000_v15  ;;  %2706 = vmatprep.mubr.f32.mxu1 %v11998_v42  ;;  %v12008_v52 = vand.u32 4294901760, %v12007_v41  ;;  %v12011_v50 = vld [vmem:[#allocation42_spill] sm:$0xff]  ;;  %v12014_v55 = vand.u32 4294901760, %v12013_v8  ;;  %v12029_v8 = vld [vmem:[#allocation55_spill] sm:$0xff] }
 0x16d   :  { %6077 = vmatprep.subr.bf16.mxu1 %v6076_v14  ;;  %5695 = vmatpush1.bf16.msra.mxu0 %v5694_v10  ;;  %v6080_v40 = vpack.c.bf16 %v12006_v59, %v12004_v28  ;;  %v12012_v30 = vand.u32 4294901760, %v12011_v50  ;;  %v12016_v14 = vand.u32 4294901760, %v12015_v23  ;;  %v12017_v10 = vld [vmem:[#allocation40_spill] sm:$0xff]  ;;  %v12019_v28 = vld [vmem:[#allocation45_spill] sm:$0xff]  ;;  %v12021_v59 = vld [vmem:[#allocation46_spill] sm:$0xff] }
 0x16e   :  { %v5698_v5 = vpack.c.bf16 %v12010_v19, %v12008_v52  ;;  %5697 = vmatprep.subr.bf16.mxu0 %v5696_v43  ;;  %v12018_v53 = vand.u32 4294901760, %v12017_v10  ;;  %v12020_v38 = vand.u32 4294901760, %v12019_v28  ;;  %v12022_v41 = vand.u32 4294901760, %v12021_v59  ;;  %v12023_v52 = vld [vmem:[#allocation47_spill] sm:$0xff]  ;;  %v12025_v19 = vld [vmem:[#allocation49_spill] sm:$0xff]  ;;  %v12035_v28 = vld [vmem:[#allocation56_spill] sm:$0xff] }
 0x16f   :  { %v5700_v15 = vpack.c.bf16 %v12014_v55, %v12012_v30  ;;  %v12024_v43 = vand.u32 4294901760, %v12023_v52  ;;  %v12026_v50 = vand.u32 4294901760, %v12025_v19  ;;  %v12027_v30 = vld [vmem:[#allocation54_spill] sm:$0xff]  ;;  %v12030_v55 = vand.u32 4294901760, %v12029_v8  ;;  %v12041_v19 = vld [vmem:[#allocation61_spill] sm:$0xff]  ;;  %v12045_v8 = vld [vmem:[#allocation67_spill] sm:$0xff] }
 0x170   :  { %6079 = vmatpush1.bf16.msra.mxu1 %v6078_v31  ;;  %v6082_v45 = vpack.c.bf16 %v12018_v53, %v12016_v14  ;;  %v6084_v7 = vpack.c.bf16 %v12022_v41, %v12020_v38  ;;  %v12028_v31 = vand.u32 4294901760, %v12027_v30  ;;  %v12031_v14 = vld [vmem:[#allocation51_spill] sm:$0xff]  ;;  %v12036_v38 = vand.u32 4294901760, %v12035_v28  ;;  %v12037_v59 = vld [vmem:[#allocation58_spill] sm:$0xff]  ;;  %v12051_v28 = vld [vmem:[#allocation68_spill] sm:$0xff] }
 0x171   :  { %6081 = vmatprep.subr.bf16.mxu1 %v6080_v40  ;;  %5699 = vmatpush1.bf16.msra.mxu0 %v5698_v5  ;;  %v5702_v21 = vpack.c.bf16 %v12026_v50, %v12024_v43  ;;  %v12032_v40 = vand.u32 4294901760, %v12031_v14  ;;  %v12033_v5 = vld [vmem:[#allocation52_spill] sm:$0xff]  ;;  %v12038_v41 = vand.u32 4294901760, %v12037_v59  ;;  %v12042_v50 = vand.u32 4294901760, %v12041_v19  ;;  %v12053_v59 = vld [vmem:[#allocation70_spill] sm:$0xff]  ;;  %v12057_v19 = vld [vmem:[#allocation73_spill] sm:$0xff] }
 0x172   :  { %5701 = vmatprep.subr.bf16.mxu0 %v5700_v15  ;;  %v5704_v23 = vpack.c.bf16 %v12030_v55, %v12028_v31  ;;  %v12034_v10 = vand.u32 4294901760, %v12033_v5  ;;  %v12039_v43 = vld [vmem:[#allocation60_spill] sm:$0xff]  ;;  %v12043_v31 = vld [vmem:[#allocation66_spill] sm:$0xff]  ;;  %v12046_v55 = vand.u32 4294901760, %v12045_v8  ;;  %v12061_v8 = vld [vmem:[#allocation79_spill] sm:$0xff] }
 0x173   :  { %v6088_v52 = vpack.c.bf16 %v12038_v41, %v12036_v38  ;;  %v12040_v15 = vand.u32 4294901760, %v12039_v43  ;;  %v12052_v38 = vand.u32 4294901760, %v12051_v28  ;;  %v12054_v41 = vand.u32 4294901760, %v12053_v59  ;;  %v12067_v28 = vld [vmem:[#allocation80_spill] sm:$0xff]  ;;  %v12069_v59 = vld [vmem:[#allocation82_spill] sm:$0xff] }
 0x174   :  { %6083 = vmatpush1.bf16.msra.mxu1 %v6082_v45  ;;  %v6086_v53 = vpack.c.bf16 %v12034_v10, %v12032_v40  ;;  %v12044_v45 = vand.u32 4294901760, %v12043_v31  ;;  %v12047_v40 = vld [vmem:[#allocation63_spill] sm:$0xff] }
 0x175   :  { %6085 = vmatprep.subr.bf16.mxu1 %v6084_v7  ;;  %5703 = vmatpush1.bf16.msra.mxu0 %v5702_v21  ;;  %v5706_v30 = vpack.c.bf16 %v12042_v50, %v12040_v15  ;;  %v12048_v7 = vand.u32 4294901760, %v12047_v40  ;;  %v12049_v21 = vld [vmem:[#allocation64_spill] sm:$0xff]  ;;  %v6092_v43 = vpack.c.bf16 %v12054_v41, %v12052_v38  ;;  %v12058_v50 = vand.u32 4294901760, %v12057_v19  ;;  %v12073_v19 = vld [vmem:[#allocation85_spill] sm:$0xff] }
 0x176   :  { %5705 = vmatprep.subr.bf16.mxu0 %v5704_v23  ;;  %v5708_v14 = vpack.c.bf16 %v12046_v55, %v12044_v45  ;;  %v12050_v5 = vand.u32 4294901760, %v12049_v21  ;;  %v12055_v15 = vld [vmem:[#allocation72_spill] sm:$0xff]  ;;  %v12059_v45 = vld [vmem:[#allocation78_spill] sm:$0xff]  ;;  %v12062_v55 = vand.u32 4294901760, %v12061_v8  ;;  %v12068_v38 = vand.u32 4294901760, %v12067_v28 }
 0x177   :  { %v12056_v23 = vand.u32 4294901760, %v12055_v15  ;;  %v12070_v41 = vand.u32 4294901760, %v12069_v59 }
 0x178   :  { %6087 = vmatpush1.bf16.msra.mxu1 %v6086_v53  ;;  %v6090_v10 = vpack.c.bf16 %v12050_v5, %v12048_v7  ;;  %v12060_v53 = vand.u32 4294901760, %v12059_v45  ;;  %v12063_v7 = vld [vmem:[#allocation75_spill] sm:$0xff] }
 0x179   :  { %6089 = vmatprep.subr.bf16.mxu1 %v6088_v52  ;;  %5707 = vmatpush1.bf16.msra.mxu0 %v5706_v30  ;;  %v5710_v31 = vpack.c.bf16 %v12058_v50, %v12056_v23  ;;  %v12064_v52 = vand.u32 4294901760, %v12063_v7  ;;  %v12065_v30 = vld [vmem:[#allocation76_spill] sm:$0xff]  ;;  %v6096_v15 = vpack.c.bf16 %v12070_v41, %v12068_v38  ;;  %v12074_v50 = vand.u32 4294901760, %v12073_v19 }
 0x17a   :  { %5709 = vmatprep.subr.bf16.mxu0 %v5708_v14  ;;  %v5712_v40 = vpack.c.bf16 %v12062_v55, %v12060_v53  ;;  %v12066_v21 = vand.u32 4294901760, %v12065_v30  ;;  %v12071_v23 = vld [vmem:[#allocation84_spill] sm:$0xff]  ;;  %v12076_v53 = vld [vmem:[#allocation91_spill] sm:$0xff]  ;;  %v12081_v30 = vand.u32 4294901760, %v11843_v60  ;;  %v12087_v41 = vand.u32 4294901760, %v11849_v22 }
 0x17b   :  { %v12072_v14 = vand.u32 4294901760, %v12071_v23  ;;  %v12077_v8 = vand.u32 4294901760, %v12076_v53  ;;  %v12091_v23 = vand.u32 4294901760, %v11772_v37  ;;  %v12094_v22 = vand.u32 4294901760, %v11777_v33 }
 0x17c   :  { %6091 = vmatpush1.bf16.msra.mxu1 %v6090_v10  ;;  %v6094_v5 = vpack.c.bf16 %v12066_v21, %v12064_v52  ;;  %v12075_v10 = vand.u32 4294901760, %v11839_v32  ;;  %v12082_v21 = vand.u32 4294901760, %v11844_v36  ;;  %v12084_v32 = vand.u32 4294901760, %v11846_v20 }
 0x17d   :  { %6093 = vmatprep.subr.bf16.mxu1 %v6092_v43  ;;  %5711 = vmatpush1.bf16.msra.mxu0 %v5710_v31  ;;  %v5714_v45 = vpack.c.bf16 %v12074_v50, %v12072_v14  ;;  %v12078_v43 = vand.u32 4294901760, %v11841_v47  ;;  %v12079_v31 = vld [vmem:[#allocation88_spill] sm:$0xff]  ;;  %v12086_v47 = vand.u32 4294901760, %v11848_v39  ;;  %v12089_v36 = vand.u32 4294901760, %v11851_v49 }
 0x17e   :  { %5713 = vmatprep.subr.bf16.mxu0 %v5712_v40  ;;  %v5716_v55 = vpack.c.bf16 %v12077_v8, %v12075_v10  ;;  %v12080_v7 = vand.u32 4294901760, %v12079_v31  ;;  %v6100_v28 = vpack.c.bf16 %v12082_v21, %v12081_v30  ;;  %v12083_v40 = vand.u32 4294901760, %v11845_v1  ;;  %v12104_v8 = vld [vmem:[#allocation124_spill] sm:$0xff]  ;;  %v12113_v30 = vld [vmem:[#allocation139_spill] sm:$0xff] }
 0x17f   :  { %v12090_v1 = vand.u32 4294901760, %v11852_v17  ;;  %v12093_v39 = vand.u32 4294901760, %v11776_v18  ;;  %v12096_v50 = vand.u32 4294901760, %v11775_v44  ;;  %v12097_v17 = vand.u32 4294901760, %v11778_v56 }
 0x180   :  { %6095 = vmatpush1.bf16.msra.mxu1 %v6094_v5  ;;  %v6098_v52 = vpack.c.bf16 %v12080_v7, %v12078_v43  ;;  %v5718_v38 = vpack.c.bf16 %v12084_v32, %v12083_v40  ;;  %v12085_v5 = vand.u32 4294901760, %v11847_v24  ;;  %v12092_v24 = vand.u32 4294901760, %v11773_v11  ;;  %v12110_v7 = vld [vmem:[#allocation133_spill] sm:$0xff] }
 0x181   :  { %6097 = vmatprep.subr.bf16.mxu1 %v6096_v15  ;;  %5715 = vmatpush1.bf16.msra.mxu0 %v5714_v45  ;;  %v12088_v15 = vand.u32 4294901760, %v11850_v27  ;;  %v6104_v20 = vpack.c.bf16 %v12090_v1, %v12089_v36  ;;  %v5724_v19 = vpack.c.bf16 %v12094_v22, %v12093_v39  ;;  %v12095_v27 = vand.u32 4294901760, %v11774_v34  ;;  %v12125_v1 = vld [vmem:[#allocation151_spill] sm:$0xff]  ;;  %v31_v39 = vld [vmem:[#allocation2 + $0x20] sm:$0xff] }
 0x182   :  { %5717 = vmatprep.subr.bf16.mxu0 %v5716_v55  ;;  %v5720_v59 = vpack.c.bf16 %v12086_v47, %v12085_v5  ;;  %v5722_v14 = vpack.c.bf16 %v12092_v24, %v12091_v23  ;;  %v12098_v37 = vand.u32 4294901760, %v11779_v51  ;;  %v12099_v45 = vand.u32 4294901760, %v11780_v63  ;;  %v12107_v63 = vld [vmem:[#allocation130_spill] sm:$0xff]  ;;  %v12120_v47 = vld [vmem:[#allocation145_spill] sm:$0xff] }
 0x183   :  { %v6102_v60 = vpack.c.bf16 %v12088_v15, %v12087_v41  ;;  %v6106_v49 = vpack.c.bf16 %v12096_v50, %v12095_v27  ;;  %v12100_v18 = vand.u32 4294901760, %v11781_v35  ;;  %v12101_v33 = vand.u32 4294901760, %v11784_v3  ;;  %v40_v15 = vld [vmem:[#allocation2 + $0x68] sm:$0xff]  ;;  %v39_v22 = vld [vmem:[#allocation2 + $0x60] sm:$0xff] }
 0x184   :  { %6099 = vmatpush1.bf16.msra.mxu1 %v6098_v52  ;;  %v6108_v11 = vpack.c.bf16 %v12098_v37, %v12097_v17  ;;  %v12102_v34 = vand.u32 4294901760, %v11785_v4  ;;  %v12103_v44 = vand.u32 4294901760, %v11782_v58  ;;  %v12105_v55 = vand.u32 4294901760, %v12104_v8  ;;  %v12134_v17 = vld [vmem:[#allocation162_spill] sm:$0xff] }
 0x185   :  { %6101 = vmatprep.subr.bf16.mxu1 %v6100_v28  ;;  %5719 = vmatpush1.bf16.msra.mxu0 %v5718_v38  ;;  %v5726_v10 = vpack.c.bf16 %v12100_v18, %v12099_v45  ;;  %v12106_v51 = vand.u32 4294901760, %v11786_v62  ;;  %v12108_v43 = vand.u32 4294901760, %v12107_v63  ;;  %v12109_v31 = vand.u32 4294901760, %v11788_v6  ;;  %v12138_v45 = vld [vmem:[#allocation164_spill] sm:$0xff] }
 0x186   :  { %5721 = vmatprep.subr.bf16.mxu0 %v5720_v59  ;;  %v5728_v53 = vpack.c.bf16 %v12102_v34, %v12101_v33  ;;  %v6110_v56 = vpack.c.bf16 %v12105_v55, %v12103_v44  ;;  %v12111_v3 = vand.u32 4294901760, %v12110_v7  ;;  %v12112_v4 = vand.u32 4294901760, %v11792_v54  ;;  %v32_v54 = vld [vmem:[#allocation2 + $0x28] sm:$0xff]  ;;  %v12144_v44 = vld [vmem:[#allocation169_spill] sm:$0xff]  ;;  %v12146_v55 = vld [vmem:[#allocation171_spill] sm:$0xff] }
 0x187   :  { %v6112_v35 = vpack.c.bf16 %v12108_v43, %v12106_v51  ;;  %v12114_v58 = vand.u32 4294901760, %v12113_v30  ;;  %v12115_v28 = vand.u32 4294901760, %v11863_v2  ;;  %v12116_v40 = vand.u32 4294901760, %v11791_v12  ;;  %v41_v30 = vld [vmem:[#allocation2 + $0x70] sm:$0xff] }
 0x188   :  { %6103 = vmatpush1.bf16.msra.mxu1 %v6102_v60  ;;  %v5730_v52 = vpack.c.bf16 %v12111_v3, %v12109_v31  ;;  %v12117_v32 = vand.u32 4294901760, %v11866_v9  ;;  %v12118_v38 = vand.u32 4294901760, %v11865_v48  ;;  %v12119_v5 = vand.u32 4294901760, %v11868_v29  ;;  %v34_v60 = vld [vmem:[#allocation2 + $0x38] sm:$0xff] }
 0x189   :  { %6105 = vmatprep.subr.bf16.mxu1 %v6104_v20  ;;  %5723 = vmatpush1.bf16.msra.mxu0 %v5722_v14  ;;  %v5732_v21 = vpack.c.bf16 %v12114_v58, %v12112_v4  ;;  %v6114_v62 = vpack.c.bf16 %v12116_v40, %v12115_v28  ;;  %v12121_v59 = vand.u32 4294901760, %v12120_v47  ;;  %v12122_v2 = vand.u32 4294901760, %v11872_v13  ;;  %v42_v14 = vld [vmem:[#allocation2 + $0x78] sm:$0xff]  ;;  %v33_v4 = vld [vmem:[#allocation2 + $0x30] sm:$0xff]  ;;  %v12150_v58 = vld [vmem:[#allocation174_spill] sm:$0xff] }
 0x18a   :  { %5725 = vmatprep.subr.bf16.mxu0 %v5724_v19  ;;  %v6116_v6 = vpack.c.bf16 %v12118_v38, %v12117_v32  ;;  %v12123_v12 = vand.u32 4294901760, %v11871_v57  ;;  %v12124_v9 = vand.u32 4294901760, %v11800_v25  ;;  %v12126_v48 = vand.u32 4294901760, %v12125_v1  ;;  %v12132_v25 = vld [vmem:[#allocation160_spill] sm:$0xff]  ;;  %v12152_v28 = vld [vmem:[#allocation175_spill] sm:$0xff]  ;;  %v12156_v47 = vld [vmem:[#allocation178_spill] sm:$0xff] }
 0x18b   :  { %v5734_v41 = vpack.c.bf16 %v12121_v59, %v12119_v5  ;;  %v12127_v29 = vand.u32 4294901760, %v11803_v61  ;;  %v12128_v23 = vand.u32 4294901760, %v11804_v0  ;;  %v12129_v19 = vand.u32 4294901760, %v11805_v16  ;;  %v12136_v61 = vld [vmem:[#allocation163_spill] sm:$0xff]  ;;  %v12154_v38 = vld [vmem:[#allocation176_spill] sm:$0xff] }
 0x18c   :  { %6107 = vmatpush1.bf16.msra.mxu1 %v6106_v49  ;;  %v6118_v36 = vpack.c.bf16 %v12123_v12, %v12122_v2  ;;  %v5736_v20 = vpack.c.bf16 %v12126_v48, %v12124_v9  ;;  %v12130_v13 = vand.u32 4294901760, %v11752_v26  ;;  %v12131_v27 = vand.u32 4294901760, %v11878_v46  ;;  %v12160_v9 = vld [vmem:[#allocation181_spill] sm:$0xff] }
 0x18d   :  { %6109 = vmatprep.subr.bf16.mxu1 %v6108_v11  ;;  %5727 = vmatpush1.bf16.msra.mxu0 %v5726_v10  ;;  %v6120_v24 = vpack.c.bf16 %v12128_v23, %v12127_v29  ;;  %v12133_v50 = vand.u32 4294901760, %v12132_v25  ;;  %v12135_v37 = vand.u32 4294901760, %v12134_v17  ;;  %v12137_v11 = vand.u32 4294901760, %v12136_v61  ;;  %v12140_v10 = vld [vmem:[#allocation166_spill] sm:$0xff]  ;;  %v12164_v29 = vld [vmem:[#allocation184_spill] sm:$0xff]  ;;  %v12168_v25 = vld [vmem:[#allocation187_spill] sm:$0xff] }
 0x18e   :  { %5729 = vmatprep.subr.bf16.mxu0 %v5728_v53  ;;  %v5738_v57 = vpack.c.bf16 %v12130_v13, %v12129_v19  ;;  %v12139_v18 = vand.u32 4294901760, %v12138_v45  ;;  %v12141_v33 = vand.u32 4294901760, %v12140_v10  ;;  %v12142_v53 = vld [vmem:[#allocation168_spill] sm:$0xff]  ;;  %v12145_v26 = vand.u32 4294901760, %v12144_v44  ;;  %v12166_v13 = vld [vmem:[#allocation186_spill] sm:$0xff]  ;;  %v12174_v10 = vld [vmem:[#allocation193_spill] sm:$0xff] }
 0x18f   :  { %v6122_v49 = vpack.c.bf16 %v12133_v50, %v12131_v27  ;;  %v5740_v0 = vpack.c.bf16 %v12137_v11, %v12135_v37  ;;  %v12143_v16 = vand.u32 4294901760, %v12142_v53  ;;  %v12147_v46 = vand.u32 4294901760, %v12146_v55  ;;  %v12170_v37 = vld [vmem:[#allocation188_spill] sm:$0xff]  ;;  %v12172_v11 = vld [vmem:[#allocation191_spill] sm:$0xff]  ;;  %v48_v44 = vld [vmem:[#allocation2 + $0xa8] sm:$0xff] }
 0x190   :  { %6111 = vmatpush1.bf16.msra.mxu1 %v6110_v56  ;;  %v6124_v34 = vpack.c.bf16 %v12141_v33, %v12139_v18  ;;  %v12148_v56 = vld [vmem:[#allocation172_spill] sm:$0xff]  ;;  %v2851_v43 = vand.u32 4294901760, %v32_v54  ;;  %v4135_v31 = vand.u32 4294901760, %v34_v60  ;;  %v4139_v7 = vand.u32 4294901760, %v42_v14  ;;  %v12176_v33 = vld [vmem:[#allocation194_spill] sm:$0xff] }
 0x191   :  { %6113 = vmatprep.subr.bf16.mxu1 %v6112_v35  ;;  %5731 = vmatpush1.bf16.msra.mxu0 %v5730_v52  ;;  %v5742_v8 = vpack.c.bf16 %v12145_v26, %v12143_v16  ;;  %v12149_v51 = vand.u32 4294901760, %v12148_v56  ;;  %v2855_v35 = vand.u32 4294901760, %v40_v15  ;;  %v2853_v3 = vand.u32 4294901760, %v31_v39  ;;  %v56_v26 = vld [vmem:[#allocation2 + $0xe8] sm:$0xff]  ;;  %v12178_v55 = vld [vmem:[#allocation196_spill] sm:$0xff]  ;;  %v12180_v56 = vld [vmem:[#allocation197_spill] sm:$0xff] }
 0x192   :  { %5733 = vmatprep.subr.bf16.mxu0 %v5732_v21  ;;  %v2857_v52 = vand.u32 4294901760, %v39_v22  ;;  %v12151_v21 = vand.u32 4294901760, %v12150_v58  ;;  %v12153_v40 = vand.u32 4294901760, %v12152_v28  ;;  %v12155_v5 = vand.u32 4294901760, %v12154_v38  ;;  %v50_v38 = vld [vmem:[#allocation2 + $0xb8] sm:$0xff] }
 0x193   :  { %v8579_v63 = vpack.c.bf16 %v12149_v51, %v12147_v46  ;;  %v12157_v59 = vand.u32 4294901760, %v12156_v47  ;;  %v12161_v1 = vand.u32 4294901760, %v12160_v9  ;;  %v12165_v23 = vand.u32 4294901760, %v12164_v29  ;;  %v47_v9 = vld [vmem:[#allocation2 + $0xa0] sm:$0xff] }
 0x194   :  { %6115 = vmatpush1.bf16.msra.mxu1 %v6114_v62  ;;  %v5744_v32 = vpack.c.bf16 %v12153_v40, %v12151_v21  ;;  %v12158_v62 = vld [vmem:[#allocation180_spill] sm:$0xff]  ;;  %v12167_v27 = vand.u32 4294901760, %v12166_v13  ;;  %v12169_v50 = vand.u32 4294901760, %v12168_v25  ;;  %v12171_v61 = vand.u32 4294901760, %v12170_v37  ;;  %v49_v13 = vld [vmem:[#allocation2 + $0xb0] sm:$0xff]  ;;  %v72_v25 = vld [vmem:[#allocation2 + $0x168] sm:$0xff] }
 0x195   :  { %6117 = vmatprep.subr.bf16.mxu1 %v6116_v6  ;;  %5735 = vmatpush1.bf16.msra.mxu0 %v5734_v41  ;;  %v8589_v2 = vpack.c.bf16 %v12157_v59, %v12155_v5  ;;  %v12159_v12 = vand.u32 4294901760, %v12158_v62  ;;  %v12162_v6 = vld [vmem:[#allocation183_spill] sm:$0xff]  ;;  %v12173_v45 = vand.u32 4294901760, %v12172_v11  ;;  %v12177_v53 = vand.u32 4294901760, %v12176_v33  ;;  %v58_v5 = vld [vmem:[#allocation2 + $0xf8] sm:$0xff]  ;;  %v71_v11 = vld [vmem:[#allocation2 + $0x160] sm:$0xff] }
 0x196   :  { %5737 = vmatprep.subr.bf16.mxu0 %v5736_v20  ;;  %v12163_v41 = vand.u32 4294901760, %v12162_v6  ;;  %v8607_v17 = vpack.c.bf16 %v12169_v50, %v12167_v27  ;;  %v12175_v20 = vand.u32 4294901760, %v12174_v10  ;;  %v12179_v46 = vand.u32 4294901760, %v12178_v55  ;;  %v64_v27 = vld [vmem:[#allocation2 + $0x128] sm:$0xff] }
 0x197   :  { %v8595_v48 = vpack.c.bf16 %v12161_v1, %v12159_v12  ;;  %v8613_v18 = vpack.c.bf16 %v12173_v45, %v12171_v61  ;;  %v12181_v51 = vand.u32 4294901760, %v12180_v56  ;;  %v8627_v21 = vpack.c.bf16 %v2855_v35, %v2851_v43  ;;  %v55_v1 = vld [vmem:[#allocation2 + $0xe0] sm:$0xff] }
 0x198   :  { %v8601_v19 = vpack.c.bf16 %v12165_v23, %v12163_v41  ;;  %v8619_v16 = vpack.c.bf16 %v12177_v53, %v12175_v20  ;;  %v4137_v28 = vand.u32 4294901760, %v33_v4  ;;  %v4141_v40 = vand.u32 4294901760, %v41_v30  ;;  %6119 = vmatpush1.bf16.msra.mxu1 %v6118_v36  ;;  %v57_v36 = vld [vmem:[#allocation2 + $0xf0] sm:$0xff]  ;;  %v63_v61 = vld [vmem:[#allocation2 + $0x120] sm:$0xff] }
 0x199   :  { %v8625_v58 = vpack.c.bf16 %v12181_v51, %v12179_v46  ;;  %12182 = vst [vmem:[#allocation157_spill] sm:$0xff] %v8627_v21  ;;  %v8629_v47 = vsub.f32 %v32_v54, %v2851_v43  ;;  %v8631_v59 = vsub.f32 %v40_v15, %v2855_v35  ;;  %v8633_v62 = vpack.c.bf16 %v4139_v7, %v4135_v31  ;;  %v65_v53 = vld [vmem:[#allocation2 + $0x130] sm:$0xff]  ;;  %v88_v51 = vld [vmem:[#allocation2 + $0x1e8] sm:$0xff] }
 0x19a   :  { %v8635_v12 = vpack.c.bf16 %v2857_v52, %v2853_v3  ;;  %6121 = vmatprep.subr.bf16.mxu1 %v6120_v24  ;;  %5739 = vmatpush1.bf16.msra.mxu0 %v5738_v57  ;;  %v8637_v6 = vsub.f32 %v34_v60, %v4135_v31  ;;  %v8639_v41 = vsub.f32 %v42_v14, %v4139_v7  ;;  %v2859_v29 = vand.u32 4294901760, %v48_v44  ;;  %v66_v57 = vld [vmem:[#allocation2 + $0x138] sm:$0xff] }
 0x19b   :  { %12183 = vst [vmem:[#allocation108_spill] sm:$0xff] %v8629_v47  ;;  %12184 = vst [vmem:[#allocation109_spill] sm:$0xff] %v8631_v59  ;;  %v2863_v23 = vand.u32 4294901760, %v56_v26  ;;  %5741 = vmatprep.subr.bf16.mxu0 %v5740_v0  ;;  %v8641_v54 = vsub.f32 %v31_v39, %v2853_v3  ;;  %v8643_v15 = vsub.f32 %v39_v22, %v2857_v52  ;;  %v4143_v43 = vand.u32 4294901760, %v50_v38  ;;  %v74_v31 = vld [vmem:[#allocation2 + $0x178] sm:$0xff] }
 0x19c   :  { %12185 = vst [vmem:[#allocation111_spill] sm:$0xff] %v8633_v62  ;;  %12186 = vst [vmem:[#allocation112_spill] sm:$0xff] %v8635_v12  ;;  %v4147_v35 = vand.u32 4294901760, %v58_v5  ;;  %v8645_v50 = vpack.c.bf16 %v4141_v40, %v4137_v28  ;;  %v8647_v24 = vsub.f32 %v33_v4, %v4137_v28  ;;  %v2861_v60 = vand.u32 4294901760, %v47_v9  ;;  %6123 = vmatpush1.bf16.msra.mxu1 %v6122_v49  ;;  %v82_v28 = vld [vmem:[#allocation2 + $0x1b8] sm:$0xff] }
 0x19d   :  { %12187 = vst [vmem:[#allocation114_spill] sm:$0xff] %v8637_v6  ;;  %12188 = vst [vmem:[#allocation115_spill] sm:$0xff] %v8639_v41  ;;  %v2865_v14 = vand.u32 4294901760, %v55_v1  ;;  %v8649_v7 = vsub.f32 %v41_v30, %v4141_v40  ;;  %v8651_v0 = vsub.f32 %v48_v44, %v2859_v29  ;;  %v4145_v39 = vand.u32 4294901760, %v49_v13  ;;  %6125 = vmatprep.subr.bf16.mxu1 %v6124_v34  ;;  %v73_v44 = vld [vmem:[#allocation2 + $0x170] sm:$0xff]  ;;  %v90_v40 = vld [vmem:[#allocation2 + $0x1f8] sm:$0xff] }
 0x19e   :  { %12189 = vst [vmem:[#allocation116_spill] sm:$0xff] %v8641_v54  ;;  %12190 = vst [vmem:[#allocation118_spill] sm:$0xff] %v8643_v15  ;;  %v4149_v22 = vand.u32 4294901760, %v57_v36  ;;  %5743 = vmatpush1.bf16.msra.mxu0 %v5742_v8  ;;  %v8653_v3 = vpack.c.bf16 %v2863_v23, %v2859_v29  ;;  %v8655_v52 = vsub.f32 %v56_v26, %v2863_v23  ;;  %v2867_v37 = vand.u32 4294901760, %v64_v27  ;;  %v80_v26 = vld [vmem:[#allocation2 + $0x1a8] sm:$0xff] }
 0x19f   :  { %12191 = vst [vmem:[#allocation120_spill] sm:$0xff] %v8645_v50  ;;  %12192 = vst [vmem:[#allocation121_spill] sm:$0xff] %v8647_v24  ;;  %v2871_v4 = vand.u32 4294901760, %v72_v25  ;;  %5745 = vmatprep.subr.bf16.mxu0 %v5744_v32  ;;  %v8657_v45 = vpack.c.bf16 %v4147_v35, %v4143_v43  ;;  %v8659_v49 = vsub.f32 %v50_v38, %v4143_v43  ;;  %v4151_v30 = vand.u32 4294901760, %v66_v57  ;;  %v87_v43 = vld [vmem:[#allocation2 + $0x1e0] sm:$0xff] }
 0x1a0   :  { %12193 = vst [vmem:[#allocation123_spill] sm:$0xff] %v8649_v7  ;;  %12194 = vst [vmem:[#allocation126_spill] sm:$0xff] %v8651_v0  ;;  %v4155_v10 = vand.u32 4294901760, %v74_v31  ;;  %v8661_v20 = vsub.f32 %v58_v5, %v4147_v35  ;;  %v8663_v33 = vpack.c.bf16 %v2865_v14, %v2861_v60  ;;  %v8665_v34 = vsub.f32 %v47_v9, %v2861_v60 }
 0x1a1   :  { %12195 = vst [vmem:[#allocation127_spill] sm:$0xff] %v8653_v3  ;;  %12196 = vst [vmem:[#allocation128_spill] sm:$0xff] %v8655_v52  ;;  %v8667_v8 = vsub.f32 %v55_v1, %v2865_v14  ;;  %6127 = vmatpush1.bf16.msra.mxu1 %v8579_v63  ;;  %v8670_v32 = vpack.c.bf16 %v4149_v22, %v4145_v39  ;;  %v8672_v55 = vsub.f32 %v49_v13, %v4145_v39  ;;  %v79_v13 = vld [vmem:[#allocation2 + $0x1a0] sm:$0xff]  ;;  %v89_v14 = vld [vmem:[#allocation2 + $0x1f0] sm:$0xff] }
 0x1a2   :  { %12197 = vst [vmem:[#allocation132_spill] sm:$0xff] %v8657_v45  ;;  %12198 = vst [vmem:[#allocation136_spill] sm:$0xff] %v8659_v49  ;;  %v2869_v46 = vand.u32 4294901760, %v63_v61  ;;  %v2873_v56 = vand.u32 4294901760, %v71_v11  ;;  %6129 = vmatprep.subr.bf16.mxu1 %v8589_v2  ;;  %5747 = vmatpush1.bf16.msra.mxu0 %v8595_v48  ;;  %v8676_v38 = vsub.f32 %v57_v36, %v4149_v22  ;;  %v4153_v29 = vand.u32 4294901760, %v65_v53  ;;  %v81_v36 = vld [vmem:[#allocation2 + $0x1b0] sm:$0xff] }
 0x1a3   :  { %12199 = vst [vmem:[#allocation138_spill] sm:$0xff] %v8661_v20  ;;  %12200 = vst [vmem:[#allocation150_spill] sm:$0xff] %v8663_v33  ;;  %v8678_v5 = vpack.c.bf16 %v2871_v4, %v2867_v37  ;;  %v8680_v9 = vsub.f32 %v64_v27, %v2867_v37  ;;  %5749 = vmatprep.subr.bf16.mxu0 %v8607_v17  ;;  %v8683_v63 = vsub.f32 %v72_v25, %v2871_v4 }
 0x1a4   :  { %12201 = vst [vmem:[#allocation152_spill] sm:$0xff] %v8665_v34  ;;  %12202 = vst [vmem:[#allocation154_spill] sm:$0xff] %v8667_v8  ;;  %v8685_v1 = vpack.c.bf16 %v4155_v10, %v4151_v30  ;;  %v4157_v23 = vand.u32 4294901760, %v73_v44  ;;  %v2875_v35 = vand.u32 4294901760, %v80_v26  ;;  %v2879_v2 = vand.u32 4294901760, %v88_v51 }
 0x1a5   :  { %12203 = vst [vmem:[#allocation156_spill] sm:$0xff] %v8670_v32  ;;  %12204 = vst [vmem:[#allocation90_spill] sm:$0xff] %v8672_v55  ;;  %v4159_v60 = vand.u32 4294901760, %v82_v28  ;;  %v4163_v48 = vand.u32 4294901760, %v90_v40  ;;  %6131 = vmatpush1.bf16.msra.mxu1 %v8601_v19  ;;  %v8688_v27 = vsub.f32 %v66_v57, %v4151_v30  ;;  %v8690_v39 = vsub.f32 %v74_v31, %v4155_v10  ;;  %v104_v19 = vld [vmem:[#allocation2 + $0x268] sm:$0xff]  ;;  %v12216_v57 = vld [vmem:[#allocation5_spill] sm:$0xff] }
 0x1a6   :  { %12205 = vst [vmem:[#allocation87_spill] sm:$0xff] %v8676_v38  ;;  %12206 = vst [vmem:[#allocation92_spill] sm:$0xff] %v8678_v5  ;;  %v8692_v17 = vpack.c.bf16 %v2873_v56, %v2869_v46  ;;  %v8694_v25 = vsub.f32 %v63_v61, %v2869_v46  ;;  %6133 = vmatprep.subr.bf16.mxu1 %v8613_v18  ;;  %5751 = vmatpush1.bf16.msra.mxu0 %v8619_v16  ;;  %v2877_v4 = vand.u32 4294901760, %v79_v13  ;;  %v98_v46 = vld [vmem:[#allocation2 + $0x238] sm:$0xff] }
 0x1a7   :  { %12207 = vst [vmem:[#allocation94_spill] sm:$0xff] %v8680_v9  ;;  %12208 = vst [vmem:[#allocation96_spill] sm:$0xff] %v8683_v63  ;;  %v8698_v22 = vsub.f32 %v71_v11, %v2873_v56  ;;  %v8700_v37 = vsub.f32 %v65_v53, %v4153_v29  ;;  %v96_v63 = vld [vmem:[#allocation2 + $0x228] sm:$0xff]  ;;  %5753 = vmatprep.subr.bf16.mxu0 %v12216_v57  ;;  %v8703_v31 = vpack.c.bf16 %v4157_v23, %v4153_v29  ;;  %v106_v18 = vld [vmem:[#allocation2 + $0x278] sm:$0xff] }
 0x1a8   :  { %12209 = vst [vmem:[#allocation97_spill] sm:$0xff] %v8685_v1  ;;  %12210 = vst [vmem:[#allocation102_spill] sm:$0xff] %v8688_v27  ;;  %v2881_v1 = vand.u32 4294901760, %v87_v43  ;;  %v8705_v30 = vsub.f32 %v73_v44, %v4157_v23  ;;  %v4161_v61 = vand.u32 4294901760, %v81_v36  ;;  %v4165_v10 = vand.u32 4294901760, %v89_v14  ;;  %v95_v56 = vld [vmem:[#allocation2 + $0x220] sm:$0xff] }
 0x1a9   :  { %12211 = vst [vmem:[#allocation103_spill] sm:$0xff] %v8690_v39  ;;  %12212 = vst [vmem:[#allocation99_spill] sm:$0xff] %v8692_v17  ;;  %v8709_v16 = vsub.f32 %v80_v26, %v2875_v35  ;;  %v8711_v11 = vsub.f32 %v88_v51, %v2879_v2  ;;  %v8713_v53 = vpack.c.bf16 %v4163_v48, %v4159_v60  ;;  %6135 = vmatpush1.bf16.msra.mxu1 %v8625_v58  ;;  %v12223_v29 = vld [vmem:[#allocation199_spill] sm:$0xff]  ;;  %v12226_v26 = vld [vmem:[#allocation9_spill] sm:$0xff] }
 0x1aa   :  { %12213 = vst [vmem:[#allocation100_spill] sm:$0xff] %v8694_v25  ;;  %12214 = vst [vmem:[#allocation104_spill] sm:$0xff] %v8698_v22  ;;  %v8707_v25 = vpack.c.bf16 %v2879_v2, %v2875_v35  ;;  %1424 = vmatmul.mubr.f32.vlgmr.msra.gmra.mrb[0].mxu0 %v12223_v29  ;;  %v8717_v44 = vsub.f32 %v82_v28, %v4159_v60  ;;  %v8719_v23 = vsub.f32 %v90_v40, %v4163_v48  ;;  %v97_v22 = vld [vmem:[#allocation2 + $0x230] sm:$0xff] }
 0x1ab   :  { %12215 = vst [vmem:[#allocation106_spill] sm:$0xff] %v8700_v37  ;;  %12217 = vst [vmem:[#allocation135_spill] sm:$0xff] %v8703_v31  ;;  %v103_v37 = vld [vmem:[#allocation2 + $0x260] sm:$0xff]  ;;  %v2883_v57 = vand.u32 4294901760, %v96_v63  ;;  %v105_v39 = vld [vmem:[#allocation2 + $0x270] sm:$0xff]  ;;  %6137 = vmatprep.subr.bf16.mxu1 %v12226_v26  ;;  %v8723_v35 = vpack.c.bf16 %v2881_v1, %v2877_v4  ;;  %v8725_v2 = vsub.f32 %v79_v13, %v2877_v4  ;;  %v4171_v58 = vand.u32 4294901760, %v106_v18 }
 0x1ac   :  { %12218 = vst [vmem:[#allocation142_spill] sm:$0xff] %v8705_v30  ;;  %12219 = vst [vmem:[#allocation140_spill] sm:$0xff] %v8707_v25  ;;  %v2887_v30 = vand.u32 4294901760, %v104_v19  ;;  %v12227_v51 = vld [vmem:[#allocation11_spill] sm:$0xff]  ;;  %1559 = vmatprep.mubr.f32.mxu0 %v11998_v42  ;;  %v8729_v28 = vsub.f32 %v87_v43, %v2881_v1  ;;  %v8731_v40 = vpack.c.bf16 %v4165_v10, %v4161_v61  ;;  %v2885_v60 = vand.u32 4294901760, %v95_v56  ;;  %v120_v26 = vld [vmem:[#allocation2 + $0x2e8] sm:$0xff] }
 0x1ad   :  { %12220 = vst [vmem:[#allocation144_spill] sm:$0xff] %v8709_v16  ;;  %12221 = vst [vmem:[#allocation148_spill] sm:$0xff] %v8711_v11  ;;  %5755 = vmatpush1.bf16.msra.mxu0 %v12227_v51  ;;  %v4167_v11 = vand.u32 4294901760, %v98_v46  ;;  %v12230_v16 = vld [vmem:[#allocation18_spill] sm:$0xff]  ;;  %v2889_v48 = vand.u32 4294901760, %v103_v37  ;;  %2708 = vmatmul.mubr.f32.vlgmr.msra.gmra.mrb[0].mxu1 %v12223_v29  ;;  %v8734_v51 = vsub.f32 %v81_v36, %v4161_v61  ;;  %v4169_v4 = vand.u32 4294901760, %v97_v22 }
 0x1ae   :  { %12222 = vst [vmem:[#allocation147_spill] sm:$0xff] %v8713_v53  ;;  %12224 = vst [vmem:[#allocation159_spill] sm:$0xff] %v8717_v44  ;;  %5757 = vmatprep.subr.bf16.mxu0 %v12230_v16  ;;  %v8736_v13 = vsub.f32 %v89_v14, %v4165_v10  ;;  %v114_v44 = vld [vmem:[#allocation2 + $0x2b8] sm:$0xff]  ;;  %2843 = vmatprep.mubr.f32.mxu1 %v11998_v42  ;;  %v8740_v1 = vpack.c.bf16 %v2887_v30, %v2883_v57  ;;  %v121_v42 = vld [vmem:[#allocation2 + $0x2f0] sm:$0xff] }
 0x1af   :  { %12225 = vst [vmem:[#allocation6_spill] sm:$0xff] %v8719_v23  ;;  %12228 = vst [vmem:[#allocation7_spill] sm:$0xff] %v8723_v35  ;;  %v112_v23 = vld [vmem:[#allocation2 + $0x2a8] sm:$0xff]  ;;  %v122_v16 = vld [vmem:[#allocation2 + $0x2f8] sm:$0xff]  ;;  %v8742_v43 = vsub.f32 %v96_v63, %v2883_v57  ;;  %v8748_v14 = vpack.c.bf16 %v4171_v58, %v4167_v11  ;;  %v8750_v61 = vsub.f32 %v98_v46, %v4167_v11 }
 0x1b0   :  { %12229 = vst [vmem:[#allocation8_spill] sm:$0xff] %v8725_v2  ;;  %12231 = vst [vmem:[#allocation10_spill] sm:$0xff] %v8729_v28  ;;  %v4173_v2 = vand.u32 4294901760, %v105_v39  ;;  %v12235_v35 = vld [vmem:[#allocation14_spill] sm:$0xff]  ;;  %v8744_v28 = vsub.f32 %v104_v19, %v2887_v30  ;;  %v12239_v53 = vld [vmem:[#allocation20_spill] sm:$0xff]  ;;  %v2891_v10 = vand.u32 4294901760, %v112_v23  ;;  %v8753_v63 = vsub.f32 %v106_v18, %v4171_v58 }
 0x1b1   :  { %12232 = vst [vmem:[#allocation12_spill] sm:$0xff] %v8731_v40  ;;  %12233 = vst [vmem:[#allocation13_spill] sm:$0xff] %v8734_v51  ;;  %6139 = vmatpush1.bf16.msra.mxu1 %v12235_v35  ;;  %v111_v40 = vld [vmem:[#allocation2 + $0x2a0] sm:$0xff]  ;;  %v12240_v36 = vld [vmem:[#allocation24_spill] sm:$0xff]  ;;  %v8755_v19 = vpack.c.bf16 %v2889_v48, %v2885_v60  ;;  %v4175_v30 = vand.u32 4294901760, %v114_v44  ;;  %v4179_v57 = vand.u32 4294901760, %v122_v16  ;;  %v8763_v46 = vsub.f32 %v97_v22, %v4169_v4 }
 0x1b2   :  { %12234 = vst [vmem:[#allocation17_spill] sm:$0xff] %v8736_v13  ;;  %12236 = vst [vmem:[#allocation19_spill] sm:$0xff] %v8740_v1  ;;  %6141 = vmatprep.subr.bf16.mxu1 %v12239_v53  ;;  %5759 = vmatpush1.bf16.msra.mxu0 %v12240_v36  ;;  %v2895_v13 = vand.u32 4294901760, %v120_v26  ;;  %v119_v35 = vld [vmem:[#allocation2 + $0x2e0] sm:$0xff]  ;;  %v113_v51 = vld [vmem:[#allocation2 + $0x2b0] sm:$0xff]  ;;  %v8757_v53 = vsub.f32 %v95_v56, %v2885_v60  ;;  %v8759_v36 = vsub.f32 %v103_v37, %v2889_v48 }
 0x1b3   :  { %12237 = vst [vmem:[#allocation15_spill] sm:$0xff] %v8742_v43  ;;  %12238 = vst [vmem:[#allocation16_spill] sm:$0xff] %v8744_v28  ;;  %v12243_v31 = vld [vmem:[#allocation29_spill] sm:$0xff]  ;;  %v8761_v28 = vpack.c.bf16 %v4173_v2, %v4169_v4  ;;  %v128_v11 = vld [vmem:[#allocation2 + $0x328] sm:$0xff]  ;;  %v4177_v18 = vand.u32 4294901760, %v113_v51  ;;  %v4181_v58 = vand.u32 4294901760, %v121_v42  ;;  %v8768_v37 = vsub.f32 %v105_v39, %v4173_v2 }
 0x1b4   :  { %12241 = vst [vmem:[#allocation21_spill] sm:$0xff] %v8748_v14  ;;  %12242 = vst [vmem:[#allocation22_spill] sm:$0xff] %v8750_v61  ;;  %5761 = vmatprep.subr.bf16.mxu0 %v12243_v31  ;;  %v136_v61 = vld [vmem:[#allocation2 + $0x368] sm:$0xff]  ;;  %v12250_v43 = vld [vmem:[#allocation27_spill] sm:$0xff]  ;;  %v2893_v14 = vand.u32 4294901760, %v111_v40  ;;  %v2897_v31 = vand.u32 4294901760, %v119_v35  ;;  %v8770_v60 = vpack.c.bf16 %v2895_v13, %v2891_v10  ;;  %v8772_v22 = vsub.f32 %v112_v23, %v2891_v10 }
 0x1b5   :  { %12244 = vst [vmem:[#allocation23_spill] sm:$0xff] %v8753_v63  ;;  %12245 = vst [vmem:[#allocation25_spill] sm:$0xff] %v8755_v19  ;;  %6143 = vmatpush1.bf16.msra.mxu1 %v12250_v43  ;;  %v130_v63 = vld [vmem:[#allocation2 + $0x338] sm:$0xff]  ;;  %v12252_v56 = vld [vmem:[#allocation35_spill] sm:$0xff]  ;;  %v8775_v4 = vsub.f32 %v120_v26, %v2895_v13  ;;  %v8777_v43 = vpack.c.bf16 %v4179_v57, %v4175_v30  ;;  %v8779_v27 = vsub.f32 %v114_v44, %v4175_v30 }
 0x1b6   :  { %12246 = vst [vmem:[#allocation30_spill] sm:$0xff] %v8757_v53  ;;  %12247 = vst [vmem:[#allocation31_spill] sm:$0xff] %v8759_v36  ;;  %v138_v19 = vld [vmem:[#allocation2 + $0x378] sm:$0xff]  ;;  %5763 = vmatpush1.bf16.msra.mxu0 %v12252_v56  ;;  %v12256_v48 = vld [vmem:[#allocation41_spill] sm:$0xff]  ;;  %v2903_v36 = vand.u32 4294901760, %v136_v61  ;;  %v4183_v39 = vand.u32 4294901760, %v130_v63  ;;  %v8784_v10 = vpack.c.bf16 %v2897_v31, %v2893_v14  ;;  %v8786_v26 = vsub.f32 %v111_v40, %v2893_v14 }
 0x1b7   :  { %12248 = vst [vmem:[#allocation26_spill] sm:$0xff] %v8761_v28  ;;  %12249 = vst [vmem:[#allocation28_spill] sm:$0xff] %v8763_v46  ;;  %v12251_v1 = vld [vmem:[#allocation32_spill] sm:$0xff]  ;;  %5765 = vmatprep.subr.bf16.mxu0 %v12256_v48  ;;  %v2899_v46 = vand.u32 4294901760, %v128_v11  ;;  %v127_v53 = vld [vmem:[#allocation2 + $0x320] sm:$0xff]  ;;  %v4187_v2 = vand.u32 4294901760, %v138_v19  ;;  %v8788_v13 = vsub.f32 %v119_v35, %v2897_v31  ;;  %v8790_v48 = vpack.c.bf16 %v4181_v58, %v4177_v18 }
 0x1b8   :  { %6145 = vmatprep.subr.bf16.mxu1 %v12251_v1  ;;  %12253 = vst [vmem:[#allocation33_spill] sm:$0xff] %v8768_v37  ;;  %12254 = vst [vmem:[#allocation34_spill] sm:$0xff] %v8770_v60  ;;  %v135_v28 = vld [vmem:[#allocation2 + $0x360] sm:$0xff]  ;;  %v8781_v1 = vsub.f32 %v122_v16, %v4179_v57  ;;  %v129_v56 = vld [vmem:[#allocation2 + $0x330] sm:$0xff]  ;;  %v8794_v16 = vsub.f32 %v113_v51, %v4177_v18  ;;  %v8796_v30 = vsub.f32 %v121_v42, %v4181_v58 }
 0x1b9   :  { %12255 = vst [vmem:[#allocation36_spill] sm:$0xff] %v8772_v22  ;;  %12257 = vst [vmem:[#allocation37_spill] sm:$0xff] %v8775_v4  ;;  %v137_v37 = vld [vmem:[#allocation2 + $0x370] sm:$0xff]  ;;  %v12261_v23 = vld [vmem:[#allocation38_spill] sm:$0xff]  ;;  %v2901_v57 = vand.u32 4294901760, %v127_v53  ;;  %v8799_v14 = vpack.c.bf16 %v2903_v36, %v2899_v46  ;;  %v8801_v35 = vsub.f32 %v128_v11, %v2899_v46  ;;  %v4185_v31 = vand.u32 4294901760, %v129_v56 }
 0x1ba   :  { %12258 = vst [vmem:[#allocation42_spill] sm:$0xff] %v8777_v43  ;;  %12259 = vst [vmem:[#allocation43_spill] sm:$0xff] %v8779_v27  ;;  %6147 = vmatpush1.bf16.msra.mxu1 %v12261_v23  ;;  %v144_v4 = vld [vmem:[#allocation2 + $0x3a8] sm:$0xff]  ;;  %v12266_v22 = vld [vmem:[#allocation44_spill] sm:$0xff]  ;;  %v8807_v51 = vsub.f32 %v130_v63, %v4183_v39  ;;  %v8809_v42 = vsub.f32 %v138_v19, %v4187_v2 }
 0x1bb   :  { %12260 = vst [vmem:[#allocation39_spill] sm:$0xff] %v8781_v1  ;;  %12262 = vst [vmem:[#allocation40_spill] sm:$0xff] %v8784_v10  ;;  %6149 = vmatprep.subr.bf16.mxu1 %v12266_v22  ;;  %v12267_v44 = vld [vmem:[#allocation48_spill] sm:$0xff]  ;;  %v2905_v1 = vand.u32 4294901760, %v135_v28  ;;  %v152_v23 = vld [vmem:[#allocation2 + $0x3e8] sm:$0xff]  ;;  %v8803_v22 = vsub.f32 %v136_v61, %v2903_v36  ;;  %v8816_v63 = vsub.f32 %v127_v53, %v2901_v57 }
 0x1bc   :  { %12263 = vst [vmem:[#allocation45_spill] sm:$0xff] %v8786_v26  ;;  %12264 = vst [vmem:[#allocation46_spill] sm:$0xff] %v8788_v13  ;;  %5767 = vmatpush1.bf16.msra.mxu0 %v12267_v44  ;;  %v146_v27 = vld [vmem:[#allocation2 + $0x3b8] sm:$0xff]  ;;  %v12270_v40 = vld [vmem:[#allocation53_spill] sm:$0xff]  ;;  %v4189_v13 = vand.u32 4294901760, %v137_v37  ;;  %v8805_v44 = vpack.c.bf16 %v4187_v2, %v4183_v39 }
 0x1bd   :  { %12265 = vst [vmem:[#allocation47_spill] sm:$0xff] %v8790_v48  ;;  %12268 = vst [vmem:[#allocation49_spill] sm:$0xff] %v8794_v16  ;;  %v154_v10 = vld [vmem:[#allocation2 + $0x3f8] sm:$0xff]  ;;  %5769 = vmatprep.subr.bf16.mxu0 %v12270_v40  ;;  %v143_v18 = vld [vmem:[#allocation2 + $0x3a0] sm:$0xff]  ;;  %v2907_v16 = vand.u32 4294901760, %v144_v4  ;;  %v2911_v40 = vand.u32 4294901760, %v152_v23  ;;  %v8814_v36 = vpack.c.bf16 %v2905_v1, %v2901_v57  ;;  %v8818_v19 = vsub.f32 %v135_v28, %v2905_v1 }
 0x1be   :  { %12269 = vst [vmem:[#allocation54_spill] sm:$0xff] %v8796_v30  ;;  %12271 = vst [vmem:[#allocation55_spill] sm:$0xff] %v8799_v14  ;;  %v151_v58 = vld [vmem:[#allocation2 + $0x3e0] sm:$0xff]  ;;  %v12277_v30 = vld [vmem:[#allocation50_spill] sm:$0xff]  ;;  %v4191_v26 = vand.u32 4294901760, %v146_v27  ;;  %v4195_v48 = vand.u32 4294901760, %v154_v10  ;;  %v8825_v43 = vsub.f32 %v137_v37, %v4189_v13 }
 0x1bf   :  { %12272 = vst [vmem:[#allocation51_spill] sm:$0xff] %v8801_v35  ;;  %12273 = vst [vmem:[#allocation52_spill] sm:$0xff] %v8803_v22  ;;  %6151 = vmatpush1.bf16.msra.mxu1 %v12277_v30  ;;  %v145_v46 = vld [vmem:[#allocation2 + $0x3b0] sm:$0xff]  ;;  %v12278_v35 = vld [vmem:[#allocation57_spill] sm:$0xff]  ;;  %v8821_v30 = vpack.c.bf16 %v4189_v13, %v4185_v31  ;;  %v2913_v22 = vand.u32 4294901760, %v151_v58  ;;  %v8830_v1 = vpack.c.bf16 %v2911_v40, %v2907_v16 }
 0x1c0   :  { %12274 = vst [vmem:[#allocation56_spill] sm:$0xff] %v8805_v44  ;;  %12275 = vst [vmem:[#allocation58_spill] sm:$0xff] %v8807_v51  ;;  %v153_v11 = vld [vmem:[#allocation2 + $0x3f0] sm:$0xff]  ;;  %6153 = vmatprep.subr.bf16.mxu1 %v12278_v35  ;;  %v160_v39 = vld [vmem:[#allocation2 + $0x428] sm:$0xff]  ;;  %v2909_v51 = vand.u32 4294901760, %v143_v18  ;;  %v4193_v53 = vand.u32 4294901760, %v145_v46 }
 0x1c1   :  { %12276 = vst [vmem:[#allocation60_spill] sm:$0xff] %v8809_v42  ;;  %v12279_v61 = vld [vmem:[#allocation59_spill] sm:$0xff]  ;;  %12280 = vst [vmem:[#allocation61_spill] sm:$0xff] %v8814_v36  ;;  %v12283_v2 = vld [vmem:[#allocation65_spill] sm:$0xff]  ;;  %v8823_v42 = vsub.f32 %v129_v56, %v4185_v31  ;;  %v4197_v57 = vand.u32 4294901760, %v153_v11  ;;  %v8836_v56 = vsub.f32 %v146_v27, %v4191_v26 }
 0x1c2   :  { %5771 = vmatpush1.bf16.msra.mxu0 %v12279_v61  ;;  %12281 = vst [vmem:[#allocation66_spill] sm:$0xff] %v8816_v63  ;;  %12282 = vst [vmem:[#allocation67_spill] sm:$0xff] %v8818_v19  ;;  %v168_v44 = vld [vmem:[#allocation2 + $0x468] sm:$0xff]  ;;  %v162_v14 = vld [vmem:[#allocation2 + $0x438] sm:$0xff]  ;;  %v8827_v61 = vsub.f32 %v144_v4, %v2907_v16  ;;  %v8834_v19 = vpack.c.bf16 %v4195_v48, %v4191_v26  ;;  %v2915_v4 = vand.u32 4294901760, %v160_v39 }
 0x1c3   :  { %5773 = vmatprep.subr.bf16.mxu0 %v12283_v2  ;;  %12284 = vst [vmem:[#allocation63_spill] sm:$0xff] %v8821_v30  ;;  %12285 = vst [vmem:[#allocation64_spill] sm:$0xff] %v8823_v42  ;;  %v170_v35 = vld [vmem:[#allocation2 + $0x478] sm:$0xff]  ;;  %v12288_v28 = vld [vmem:[#allocation62_spill] sm:$0xff]  ;;  %v8832_v2 = vsub.f32 %v152_v23, %v2911_v40  ;;  %v2919_v13 = vand.u32 4294901760, %v168_v44  ;;  %v8841_v23 = vsub.f32 %v154_v10, %v4195_v48 }
 0x1c4   :  { %12286 = vst [vmem:[#allocation68_spill] sm:$0xff] %v8825_v43  ;;  %12287 = vst [vmem:[#allocation70_spill] sm:$0xff] %v8827_v61  ;;  %6155 = vmatpush1.bf16.msra.mxu1 %v12288_v28  ;;  %v159_v31 = vld [vmem:[#allocation2 + $0x420] sm:$0xff]  ;;  %v12294_v37 = vld [vmem:[#allocation71_spill] sm:$0xff]  ;;  %v4199_v61 = vand.u32 4294901760, %v162_v14  ;;  %v4203_v43 = vand.u32 4294901760, %v170_v35  ;;  %v8843_v40 = vpack.c.bf16 %v2913_v22, %v2909_v51  ;;  %v8845_v27 = vsub.f32 %v143_v18, %v2909_v51 }
 0x1c5   :  { %12289 = vst [vmem:[#allocation72_spill] sm:$0xff] %v8830_v1  ;;  %12290 = vst [vmem:[#allocation73_spill] sm:$0xff] %v8832_v2  ;;  %v167_v42 = vld [vmem:[#allocation2 + $0x460] sm:$0xff]  ;;  %v161_v30 = vld [vmem:[#allocation2 + $0x430] sm:$0xff]  ;;  %v8847_v26 = vsub.f32 %v151_v58, %v2913_v22  ;;  %v2917_v2 = vand.u32 4294901760, %v159_v31  ;;  %v8854_v10 = vsub.f32 %v153_v11, %v4197_v57  ;;  %v8856_v48 = vsub.f32 %v160_v39, %v2915_v4 }
 0x1c6   :  { %12291 = vst [vmem:[#allocation78_spill] sm:$0xff] %v8834_v19  ;;  %12292 = vst [vmem:[#allocation79_spill] sm:$0xff] %v8836_v56  ;;  %v12293_v63 = vld [vmem:[#allocation69_spill] sm:$0xff]  ;;  %5775 = vmatpush1.bf16.msra.mxu0 %v12294_v37  ;;  %v169_v28 = vld [vmem:[#allocation2 + $0x470] sm:$0xff]  ;;  %v8851_v37 = vsub.f32 %v145_v46, %v4193_v53  ;;  %v2921_v19 = vand.u32 4294901760, %v167_v42  ;;  %v4201_v51 = vand.u32 4294901760, %v161_v30  ;;  %v8862_v46 = vsub.f32 %v168_v44, %v2919_v13 }
 0x1c7   :  { %6157 = vmatprep.subr.bf16.mxu1 %v12293_v63  ;;  %v12295_v16 = vld [vmem:[#allocation77_spill] sm:$0xff]  ;;  %12296 = vst [vmem:[#allocation75_spill] sm:$0xff] %v8841_v23  ;;  %12297 = vst [vmem:[#allocation76_spill] sm:$0xff] %v8843_v40  ;;  %v176_v56 = vld [vmem:[#allocation2 + $0x4a8] sm:$0xff]  ;;  %v8849_v63 = vpack.c.bf16 %v4197_v57, %v4193_v53  ;;  %v4205_v18 = vand.u32 4294901760, %v169_v28  ;;  %v8864_v53 = vpack.c.bf16 %v4203_v43, %v4199_v61 }
 0x1c8   :  { %5777 = vmatprep.subr.bf16.mxu0 %v12295_v16  ;;  %12298 = vst [vmem:[#allocation80_spill] sm:$0xff] %v8845_v27  ;;  %12299 = vst [vmem:[#allocation82_spill] sm:$0xff] %v8847_v26  ;;  %v184_v1 = vld [vmem:[#allocation2 + $0x4e8] sm:$0xff]  ;;  %v178_v36 = vld [vmem:[#allocation2 + $0x4b8] sm:$0xff]  ;;  %v8860_v16 = vpack.c.bf16 %v2919_v13, %v2915_v4  ;;  %v8867_v23 = vsub.f32 %v162_v14, %v4199_v61  ;;  %v8871_v4 = vpack.c.bf16 %v2921_v19, %v2917_v2 }
 0x1c9   :  { %12300 = vst [vmem:[#allocation84_spill] sm:$0xff] %v8849_v63  ;;  %12301 = vst [vmem:[#allocation85_spill] sm:$0xff] %v8851_v37  ;;  %v186_v60 = vld [vmem:[#allocation2 + $0x4f8] sm:$0xff]  ;;  %v12302_v25 = vld [vmem:[#allocation74_spill] sm:$0xff]  ;;  %v2927_v11 = vand.u32 4294901760, %v184_v1  ;;  %v4207_v39 = vand.u32 4294901760, %v178_v36  ;;  %v8873_v44 = vsub.f32 %v159_v31, %v2917_v2 }
 0x1ca   :  { %6159 = vmatpush1.bf16.msra.mxu1 %v12302_v25  ;;  %12303 = vst [vmem:[#allocation91_spill] sm:$0xff] %v8854_v10  ;;  %12304 = vst [vmem:[#allocation88_spill] sm:$0xff] %v8856_v48  ;;  %v12305_v22 = vld [vmem:[#allocation81_spill] sm:$0xff]  ;;  %v12306_v58 = vld [vmem:[#allocation83_spill] sm:$0xff]  ;;  %v2923_v25 = vand.u32 4294901760, %v176_v56  ;;  %v4211_v57 = vand.u32 4294901760, %v186_v60 }
 0x1cb   :  { %6161 = vmatprep.subr.bf16.mxu1 %v12305_v22  ;;  %5779 = vmatpush1.bf16.msra.mxu0 %v12306_v58  ;;  %12307 = vst [vmem:[#allocation124_spill] sm:$0xff] %v8860_v16  ;;  %12308 = vst [vmem:[#allocation130_spill] sm:$0xff] %v8862_v46  ;;  %v175_v37 = vld [vmem:[#allocation2 + $0x4a0] sm:$0xff]  ;;  %v177_v48 = vld [vmem:[#allocation2 + $0x4b0] sm:$0xff]  ;;  %v8869_v22 = vsub.f32 %v170_v35, %v4203_v43  ;;  %v8876_v58 = vsub.f32 %v167_v42, %v2921_v19 }
 0x1cc   :  { %12309 = vst [vmem:[#allocation133_spill] sm:$0xff] %v8864_v53  ;;  %v183_v26 = vld [vmem:[#allocation2 + $0x4e0] sm:$0xff]  ;;  %v185_v10 = vld [vmem:[#allocation2 + $0x4f0] sm:$0xff]  ;;  %12311 = vst [vmem:[#allocation139_spill] sm:$0xff] %v8867_v23  ;;  %v8878_v46 = vpack.c.bf16 %v4205_v18, %v4201_v51  ;;  %v8882_v43 = vsub.f32 %v161_v30, %v4201_v51  ;;  %v8884_v35 = vsub.f32 %v169_v28, %v4205_v18  ;;  %v4209_v61 = vand.u32 4294901760, %v177_v48 }
 0x1cd   :  { %v12310_v27 = vld [vmem:[#allocation89_spill] sm:$0xff]  ;;  %12312 = vst [vmem:[#allocation145_spill] sm:$0xff] %v8869_v22  ;;  %12313 = vst [vmem:[#allocation151_spill] sm:$0xff] %v8871_v4  ;;  %v12315_v13 = vld [vmem:[#allocation86_spill] sm:$0xff]  ;;  %v2929_v53 = vand.u32 4294901760, %v183_v26  ;;  %v4213_v2 = vand.u32 4294901760, %v185_v10  ;;  %v8887_v19 = vpack.c.bf16 %v2927_v11, %v2923_v25  ;;  %v8893_v22 = vpack.c.bf16 %v4211_v57, %v4207_v39 }
 0x1ce   :  { %5781 = vmatprep.subr.bf16.mxu0 %v12310_v27  ;;  %12314 = vst [vmem:[#allocation160_spill] sm:$0xff] %v8873_v44  ;;  %6163 = vmatpush1.bf16.msra.mxu1 %v12315_v13  ;;  %12316 = vst [vmem:[#allocation162_spill] sm:$0xff] %v8876_v58  ;;  %v2925_v27 = vand.u32 4294901760, %v175_v37  ;;  %v192_v63 = vld [vmem:[#allocation2 + $0x528] sm:$0xff]  ;;  %v12318_v40 = vld [vmem:[#allocation93_spill] sm:$0xff]  ;;  %v8889_v58 = vsub.f32 %v176_v56, %v2923_v25  ;;  %v8891_v44 = vsub.f32 %v184_v1, %v2927_v11 }
 0x1cf   :  { %12317 = vst [vmem:[#allocation163_spill] sm:$0xff] %v8878_v46  ;;  %v200_v16 = vld [vmem:[#allocation2 + $0x568] sm:$0xff]  ;;  %6165 = vmatprep.subr.bf16.mxu1 %v12318_v40  ;;  %v12319_v14 = vld [vmem:[#allocation95_spill] sm:$0xff]  ;;  %12320 = vst [vmem:[#allocation164_spill] sm:$0xff] %v8882_v43  ;;  %v8895_v30 = vsub.f32 %v178_v36, %v4207_v39  ;;  %v8897_v28 = vsub.f32 %v186_v60, %v4211_v57  ;;  %v2931_v51 = vand.u32 4294901760, %v192_v63 }
 0x1d0   :  { %5783 = vmatpush1.bf16.msra.mxu0 %v12319_v14  ;;  %12321 = vst [vmem:[#allocation166_spill] sm:$0xff] %v8884_v35  ;;  %v194_v31 = vld [vmem:[#allocation2 + $0x538] sm:$0xff]  ;;  %v12322_v42 = vld [vmem:[#allocation101_spill] sm:$0xff]  ;;  %12323 = vst [vmem:[#allocation168_spill] sm:$0xff] %v8887_v19  ;;  %v2935_v18 = vand.u32 4294901760, %v200_v16  ;;  %v8902_v56 = vsub.f32 %v175_v37, %v2925_v27  ;;  %v8906_v60 = vsub.f32 %v183_v26, %v2929_v53 }
 0x1d1   :  { %v202_v13 = vld [vmem:[#allocation2 + $0x578] sm:$0xff]  ;;  %5785 = vmatprep.subr.bf16.mxu0 %v12322_v42  ;;  %12324 = vst [vmem:[#allocation169_spill] sm:$0xff] %v8889_v58  ;;  %12325 = vst [vmem:[#allocation171_spill] sm:$0xff] %v8891_v44  ;;  %v191_v40 = vld [vmem:[#allocation2 + $0x520] sm:$0xff]  ;;  %v8900_v42 = vpack.c.bf16 %v2929_v53, %v2925_v27  ;;  %v4215_v1 = vand.u32 4294901760, %v194_v31  ;;  %v8908_v39 = vpack.c.bf16 %v4213_v2, %v4209_v61 }
 0x1d2   :  { %12326 = vst [vmem:[#allocation172_spill] sm:$0xff] %v8893_v22  ;;  %v199_v14 = vld [vmem:[#allocation2 + $0x560] sm:$0xff]  ;;  %12327 = vst [vmem:[#allocation174_spill] sm:$0xff] %v8895_v30  ;;  %v193_v35 = vld [vmem:[#allocation2 + $0x530] sm:$0xff]  ;;  %v4219_v25 = vand.u32 4294901760, %v202_v13  ;;  %v2933_v57 = vand.u32 4294901760, %v191_v40  ;;  %v8913_v37 = vsub.f32 %v185_v10, %v4213_v2  ;;  %v8915_v46 = vpack.c.bf16 %v2935_v18, %v2931_v51 }
 0x1d3   :  { %12328 = vst [vmem:[#allocation175_spill] sm:$0xff] %v8897_v28  ;;  %v201_v43 = vld [vmem:[#allocation2 + $0x570] sm:$0xff]  ;;  %v12329_v23 = vld [vmem:[#allocation98_spill] sm:$0xff]  ;;  %12330 = vst [vmem:[#allocation176_spill] sm:$0xff] %v8900_v42  ;;  %v2937_v28 = vand.u32 4294901760, %v199_v14  ;;  %v4217_v27 = vand.u32 4294901760, %v193_v35 }
 0x1d4   :  { %6167 = vmatpush1.bf16.msra.mxu1 %v12329_v23  ;;  %12331 = vst [vmem:[#allocation178_spill] sm:$0xff] %v8902_v56  ;;  %v208_v11 = vld [vmem:[#allocation2 + $0x5a8] sm:$0xff]  ;;  %v12332_v58 = vld [vmem:[#allocation105_spill] sm:$0xff]  ;;  %v12333_v36 = vld [vmem:[#allocation107_spill] sm:$0xff]  ;;  %v8911_v23 = vsub.f32 %v177_v48, %v4209_v61  ;;  %v4221_v56 = vand.u32 4294901760, %v201_v43  ;;  %v8924_v48 = vsub.f32 %v194_v31, %v4215_v1  ;;  %v8926_v10 = vsub.f32 %v202_v13, %v4219_v25 }
 0x1d5   :  { %v216_v44 = vld [vmem:[#allocation2 + $0x5e8] sm:$0xff]  ;;  %6169 = vmatprep.subr.bf16.mxu1 %v12332_v58  ;;  %5787 = vmatpush1.bf16.msra.mxu0 %v12333_v36  ;;  %12334 = vst [vmem:[#allocation180_spill] sm:$0xff] %v8906_v60  ;;  %12335 = vst [vmem:[#allocation181_spill] sm:$0xff] %v8908_v39  ;;  %v12336_v30 = vld [vmem:[#allocation113_spill] sm:$0xff]  ;;  %v8917_v58 = vsub.f32 %v192_v63, %v2931_v51  ;;  %v2939_v26 = vand.u32 4294901760, %v208_v11  ;;  %v8920_v39 = vsub.f32 %v200_v16, %v2935_v18 }
 0x1d6   :  { %5789 = vmatprep.subr.bf16.mxu0 %v12336_v30  ;;  %12337 = vst [vmem:[#allocation183_spill] sm:$0xff] %v8911_v23  ;;  %12338 = vst [vmem:[#allocation184_spill] sm:$0xff] %v8913_v37  ;;  %v210_v42 = vld [vmem:[#allocation2 + $0x5b8] sm:$0xff]  ;;  %v2943_v53 = vand.u32 4294901760, %v216_v44  ;;  %v207_v36 = vld [vmem:[#allocation2 + $0x5a0] sm:$0xff]  ;;  %v8922_v30 = vpack.c.bf16 %v4219_v25, %v4215_v1  ;;  %v8930_v63 = vpack.c.bf16 %v2937_v28, %v2933_v57 }
 0x1d7   :  { %v218_v22 = vld [vmem:[#allocation2 + $0x5f8] sm:$0xff]  ;;  %12339 = vst [vmem:[#allocation186_spill] sm:$0xff] %v8915_v46  ;;  %12340 = vst [vmem:[#allocation187_spill] sm:$0xff] %v8917_v58  ;;  %v12341_v60 = vld [vmem:[#allocation110_spill] sm:$0xff]  ;;  %v8932_v51 = vsub.f32 %v191_v40, %v2933_v57  ;;  %v4223_v58 = vand.u32 4294901760, %v210_v42  ;;  %v8935_v31 = vsub.f32 %v199_v14, %v2937_v28  ;;  %v8937_v13 = vpack.c.bf16 %v4221_v56, %v4217_v27 }
 0x1d8   :  { %6171 = vmatpush1.bf16.msra.mxu1 %v12341_v60  ;;  %12342 = vst [vmem:[#allocation188_spill] sm:$0xff] %v8920_v39  ;;  %12343 = vst [vmem:[#allocation191_spill] sm:$0xff] %v8922_v30  ;;  %v215_v61 = vld [vmem:[#allocation2 + $0x5e0] sm:$0xff]  ;;  %v209_v2 = vld [vmem:[#allocation2 + $0x5b0] sm:$0xff]  ;;  %v4227_v60 = vand.u32 4294901760, %v218_v22  ;;  %v8939_v1 = vsub.f32 %v193_v35, %v4217_v27  ;;  %v2941_v25 = vand.u32 4294901760, %v207_v36  ;;  %v8945_v40 = vsub.f32 %v208_v11, %v2939_v26 }
 0x1d9   :  { %12344 = vst [vmem:[#allocation193_spill] sm:$0xff] %v8924_v48  ;;  %12345 = vst [vmem:[#allocation194_spill] sm:$0xff] %v8926_v10  ;;  %v12346_v37 = vld [vmem:[#allocation117_spill] sm:$0xff]  ;;  %v12347_v23 = vld [vmem:[#allocation119_spill] sm:$0xff]  ;;  %v2945_v57 = vand.u32 4294901760, %v215_v61  ;;  %v8954_v11 = vsub.f32 %v210_v42, %v4223_v58 }
 0x1da   :  { %6173 = vmatprep.subr.bf16.mxu1 %v12346_v37  ;;  %5791 = vmatpush1.bf16.msra.mxu0 %v12347_v23  ;;  %12348 = vst [vmem:[#allocation196_spill] sm:$0xff] %v8930_v63  ;;  %12349 = vst [vmem:[#allocation197_spill] sm:$0xff] %v8932_v51  ;;  %v217_v16 = vld [vmem:[#allocation2 + $0x5f0] sm:$0xff]  ;;  %v224_v18 = vld [vmem:[#allocation2 + $0x628] sm:$0xff]  ;;  %v8941_v37 = vsub.f32 %v201_v43, %v4221_v56  ;;  %v8943_v23 = vpack.c.bf16 %v2943_v53, %v2939_v26  ;;  %v4225_v63 = vand.u32 4294901760, %v209_v2 }
 0x1db   :  { %v232_v39 = vld [vmem:[#allocation2 + $0x668] sm:$0xff]  ;;  %v12350_v30 = vld [vmem:[#allocation125_spill] sm:$0xff]  ;;  %12351 = vst [vmem:[#allocation5_spill] sm:$0xff] %v8935_v31  ;;  %12352 = vst [vmem:[#allocation9_spill] sm:$0xff] %v8937_v13  ;;  %v2947_v14 = vand.u32 4294901760, %v224_v18  ;;  %v8950_v43 = vsub.f32 %v216_v44, %v2943_v53  ;;  %v8952_v56 = vpack.c.bf16 %v4227_v60, %v4223_v58  ;;  %v8961_v19 = vpack.c.bf16 %v2945_v57, %v2941_v25 }
 0x1dc   :  { %5793 = vmatprep.subr.bf16.mxu0 %v12350_v30  ;;  %12353 = vst [vmem:[#allocation11_spill] sm:$0xff] %v8939_v1  ;;  %12354 = vst [vmem:[#allocation18_spill] sm:$0xff] %v8941_v37  ;;  %v226_v51 = vld [vmem:[#allocation2 + $0x638] sm:$0xff]  ;;  %v12357_v48 = vld [vmem:[#allocation122_spill] sm:$0xff]  ;;  %v4229_v30 = vand.u32 4294901760, %v217_v16  ;;  %v2951_v28 = vand.u32 4294901760, %v232_v39 }
 0x1dd   :  { %12355 = vst [vmem:[#allocation14_spill] sm:$0xff] %v8943_v23  ;;  %12356 = vst [vmem:[#allocation20_spill] sm:$0xff] %v8945_v40  ;;  %v234_v10 = vld [vmem:[#allocation2 + $0x678] sm:$0xff]  ;;  %6175 = vmatpush1.bf16.msra.mxu1 %v12357_v48  ;;  %v223_v31 = vld [vmem:[#allocation2 + $0x620] sm:$0xff]  ;;  %v8957_v40 = vsub.f32 %v218_v22, %v4227_v60  ;;  %v8959_v48 = vsub.f32 %v207_v36, %v2941_v25  ;;  %v4231_v37 = vand.u32 4294901760, %v226_v51 }
 0x1de   :  { %v231_v13 = vld [vmem:[#allocation2 + $0x660] sm:$0xff]  ;;  %v12359_v27 = vld [vmem:[#allocation131_spill] sm:$0xff]  ;;  %12360 = vst [vmem:[#allocation24_spill] sm:$0xff] %v8950_v43  ;;  %12361 = vst [vmem:[#allocation29_spill] sm:$0xff] %v8952_v56  ;;  %v4235_v1 = vand.u32 4294901760, %v234_v10  ;;  %v2949_v44 = vand.u32 4294901760, %v223_v31  ;;  %v8966_v58 = vpack.c.bf16 %v4229_v30, %v4225_v63  ;;  %v8968_v22 = vsub.f32 %v209_v2, %v4225_v63 }
 0x1df   :  { %v12358_v35 = vld [vmem:[#allocation129_spill] sm:$0xff]  ;;  %5795 = vmatpush1.bf16.msra.mxu0 %v12359_v27  ;;  %12362 = vst [vmem:[#allocation27_spill] sm:$0xff] %v8954_v11  ;;  %12364 = vst [vmem:[#allocation32_spill] sm:$0xff] %v8957_v40  ;;  %v225_v23 = vld [vmem:[#allocation2 + $0x630] sm:$0xff]  ;;  %v2953_v53 = vand.u32 4294901760, %v231_v13  ;;  %v8970_v36 = vsub.f32 %v217_v16, %v4229_v30  ;;  %v8972_v60 = vpack.c.bf16 %v2951_v28, %v2947_v14 }
 0x1e0   :  { %6177 = vmatprep.subr.bf16.mxu1 %v12358_v35  ;;  %v12363_v26 = vld [vmem:[#allocation137_spill] sm:$0xff]  ;;  %12365 = vst [vmem:[#allocation35_spill] sm:$0xff] %v8959_v48  ;;  %v233_v46 = vld [vmem:[#allocation2 + $0x670] sm:$0xff]  ;;  %12366 = vst [vmem:[#allocation41_spill] sm:$0xff] %v8961_v19  ;;  %v8963_v35 = vsub.f32 %v215_v61, %v2945_v57  ;;  %v8976_v57 = vsub.f32 %v224_v18, %v2947_v14  ;;  %v4233_v40 = vand.u32 4294901760, %v225_v23 }
 0x1e1   :  { %5797 = vmatprep.subr.bf16.mxu0 %v12363_v26  ;;  %v240_v27 = vld [vmem:[#allocation2 + $0x6a8] sm:$0xff]  ;;  %12369 = vst [vmem:[#allocation44_spill] sm:$0xff] %v8966_v58  ;;  %12370 = vst [vmem:[#allocation48_spill] sm:$0xff] %v8968_v22  ;;  %v242_v26 = vld [vmem:[#allocation2 + $0x6b8] sm:$0xff]  ;;  %v8981_v63 = vpack.c.bf16 %v4235_v1, %v4231_v37  ;;  %v8983_v16 = vsub.f32 %v226_v51, %v4231_v37  ;;  %v8987_v18 = vpack.c.bf16 %v2953_v53, %v2949_v44 }
 0x1e2   :  { %12367 = vst [vmem:[#allocation38_spill] sm:$0xff] %v8963_v35  ;;  %v248_v43 = vld [vmem:[#allocation2 + $0x6e8] sm:$0xff]  ;;  %12371 = vst [vmem:[#allocation53_spill] sm:$0xff] %v8970_v36  ;;  %v250_v48 = vld [vmem:[#allocation2 + $0x6f8] sm:$0xff]  ;;  %v8978_v35 = vsub.f32 %v232_v39, %v2951_v28  ;;  %v2955_v30 = vand.u32 4294901760, %v240_v27  ;;  %v4239_v39 = vand.u32 4294901760, %v242_v26 }
 0x1e3   :  { %v12368_v42 = vld [vmem:[#allocation134_spill] sm:$0xff]  ;;  %12372 = vst [vmem:[#allocation50_spill] sm:$0xff] %v8972_v60  ;;  %v12373_v25 = vld [vmem:[#allocation141_spill] sm:$0xff]  ;;  %v12374_v61 = vld [vmem:[#allocation143_spill] sm:$0xff]  ;;  %v2959_v36 = vand.u32 4294901760, %v248_v43  ;;  %v8985_v60 = vsub.f32 %v234_v10, %v4235_v1  ;;  %v4243_v14 = vand.u32 4294901760, %v250_v48  ;;  %v8998_v1 = vsub.f32 %v225_v23, %v4233_v40 }
 0x1e4   :  { %6179 = vmatpush1.bf16.msra.mxu1 %v12368_v42  ;;  %5799 = vmatpush1.bf16.msra.mxu0 %v12374_v61  ;;  %12375 = vst [vmem:[#allocation57_spill] sm:$0xff] %v8976_v57  ;;  %12376 = vst [vmem:[#allocation59_spill] sm:$0xff] %v8978_v35  ;;  %v4237_v42 = vand.u32 4294901760, %v233_v46  ;;  %v239_v11 = vld [vmem:[#allocation2 + $0x6a0] sm:$0xff]  ;;  %v241_v22 = vld [vmem:[#allocation2 + $0x6b0] sm:$0xff]  ;;  %v8990_v61 = vsub.f32 %v223_v31, %v2949_v44  ;;  %v8992_v35 = vsub.f32 %v231_v13, %v2953_v53 }
 0x1e5   :  { %6181 = vmatprep.subr.bf16.mxu1 %v12373_v25  ;;  %v247_v58 = vld [vmem:[#allocation2 + $0x6e0] sm:$0xff]  ;;  %12378 = vst [vmem:[#allocation65_spill] sm:$0xff] %v8981_v63  ;;  %12379 = vst [vmem:[#allocation62_spill] sm:$0xff] %v8983_v16  ;;  %v249_v25 = vld [vmem:[#allocation2 + $0x6f0] sm:$0xff]  ;;  %v9003_v44 = vpack.c.bf16 %v2959_v36, %v2955_v30  ;;  %v9005_v53 = vsub.f32 %v240_v27, %v2955_v30  ;;  %v9014_v56 = vsub.f32 %v250_v48, %v4243_v14 }
 0x1e6   :  { %v12377_v2 = vld [vmem:[#allocation149_spill] sm:$0xff]  ;;  %12380 = vst [vmem:[#allocation69_spill] sm:$0xff] %v8985_v60  ;;  %12381 = vst [vmem:[#allocation71_spill] sm:$0xff] %v8987_v18  ;;  %v12382_v28 = vld [vmem:[#allocation146_spill] sm:$0xff]  ;;  %v2961_v57 = vand.u32 4294901760, %v247_v58  ;;  %v8996_v10 = vpack.c.bf16 %v4237_v42, %v4233_v40  ;;  %v4241_v60 = vand.u32 4294901760, %v241_v22  ;;  %v9001_v13 = vsub.f32 %v233_v46, %v4237_v42 }
 0x1e7   :  { %5801 = vmatprep.subr.bf16.mxu0 %v12377_v2  ;;  %12383 = vst [vmem:[#allocation77_spill] sm:$0xff] %v8990_v61  ;;  %12384 = vst [vmem:[#allocation74_spill] sm:$0xff] %v8992_v35  ;;  %v2957_v2 = vand.u32 4294901760, %v239_v11  ;;  %v256_v51 = vld [vmem:[#allocation2 + $0x728] sm:$0xff]  ;;  %v12385_v16 = vld [vmem:[#allocation153_spill] sm:$0xff]  ;;  %v4245_v18 = vand.u32 4294901760, %v249_v25  ;;  %v9007_v35 = vsub.f32 %v248_v43, %v2959_v36 }
 0x1e8   :  { %6183 = vmatpush1.bf16.msra.mxu1 %v12382_v28  ;;  %v264_v37 = vld [vmem:[#allocation2 + $0x768] sm:$0xff]  ;;  %v12386_v63 = vld [vmem:[#allocation155_spill] sm:$0xff]  ;;  %12387 = vst [vmem:[#allocation81_spill] sm:$0xff] %v8996_v10  ;;  %12388 = vst [vmem:[#allocation83_spill] sm:$0xff] %v8998_v1  ;;  %v2963_v23 = vand.u32 4294901760, %v256_v51  ;;  %v9027_v48 = vsub.f32 %v241_v22, %v4241_v60 }
 0x1e9   :  { %6185 = vmatprep.subr.bf16.mxu1 %v12385_v16  ;;  %5803 = vmatpush1.bf16.msra.mxu0 %v12386_v63  ;;  %v258_v19 = vld [vmem:[#allocation2 + $0x738] sm:$0xff]  ;;  %v12389_v31 = vld [vmem:[#allocation161_spill] sm:$0xff]  ;;  %12390 = vst [vmem:[#allocation89_spill] sm:$0xff] %v9001_v13  ;;  %12391 = vst [vmem:[#allocation86_spill] sm:$0xff] %v9003_v44  ;;  %v9009_v16 = vpack.c.bf16 %v4243_v14, %v4239_v39  ;;  %v9011_v63 = vsub.f32 %v242_v26, %v4239_v39  ;;  %v2967_v40 = vand.u32 4294901760, %v264_v37 }
 0x1ea   :  { %v266_v28 = vld [vmem:[#allocation2 + $0x778] sm:$0xff]  ;;  %5805 = vmatprep.subr.bf16.mxu0 %v12389_v31  ;;  %12392 = vst [vmem:[#allocation93_spill] sm:$0xff] %v9005_v53  ;;  %12393 = vst [vmem:[#allocation95_spill] sm:$0xff] %v9007_v35  ;;  %v255_v1 = vld [vmem:[#allocation2 + $0x720] sm:$0xff]  ;;  %v9016_v46 = vpack.c.bf16 %v2961_v57, %v2957_v2  ;;  %v4247_v42 = vand.u32 4294901760, %v258_v19  ;;  %v9020_v26 = vsub.f32 %v239_v11, %v2957_v2 }
 0x1eb   :  { %12394 = vst [vmem:[#allocation101_spill] sm:$0xff] %v9009_v16  ;;  %12395 = vst [vmem:[#allocation98_spill] sm:$0xff] %v9011_v63  ;;  %v263_v61 = vld [vmem:[#allocation2 + $0x760] sm:$0xff]  ;;  %v12396_v10 = vld [vmem:[#allocation158_spill] sm:$0xff]  ;;  %v4251_v31 = vand.u32 4294901760, %v266_v28  ;;  %v9022_v39 = vsub.f32 %v247_v58, %v2961_v57  ;;  %v9024_v63 = vpack.c.bf16 %v4245_v18, %v4241_v60  ;;  %v9029_v14 = vsub.f32 %v249_v25, %v4245_v18 }
 0x1ec   :  { %6187 = vmatpush1.bf16.msra.mxu1 %v12396_v10  ;;  %12397 = vst [vmem:[#allocation105_spill] sm:$0xff] %v9014_v56  ;;  %12398 = vst [vmem:[#allocation107_spill] sm:$0xff] %v9016_v46  ;;  %v257_v27 = vld [vmem:[#allocation2 + $0x730] sm:$0xff]  ;;  %v12399_v43 = vld [vmem:[#allocation165_spill] sm:$0xff]  ;;  %v2965_v56 = vand.u32 4294901760, %v255_v1  ;;  %v2969_v53 = vand.u32 4294901760, %v263_v61  ;;  %v9031_v16 = vpack.c.bf16 %v2967_v40, %v2963_v23  ;;  %v9033_v11 = vsub.f32 %v256_v51, %v2963_v23 }
 0x1ed   :  { %v265_v30 = vld [vmem:[#allocation2 + $0x770] sm:$0xff]  ;;  %6189 = vmatprep.subr.bf16.mxu1 %v12399_v43  ;;  %12401 = vst [vmem:[#allocation113_spill] sm:$0xff] %v9020_v26  ;;  %12402 = vst [vmem:[#allocation110_spill] sm:$0xff] %v9022_v39  ;;  %v272_v35 = vld [vmem:[#allocation2 + $0x7a8] sm:$0xff]  ;;  %v4249_v58 = vand.u32 4294901760, %v257_v27  ;;  %v9038_v22 = vpack.c.bf16 %v4251_v31, %v4247_v42  ;;  %v9040_v60 = vsub.f32 %v258_v19, %v4247_v42 }
 0x1ee   :  { %v12400_v36 = vld [vmem:[#allocation167_spill] sm:$0xff]  ;;  %12403 = vst [vmem:[#allocation117_spill] sm:$0xff] %v9024_v63  ;;  %v12404_v10 = vld [vmem:[#allocation173_spill] sm:$0xff]  ;;  %12405 = vst [vmem:[#allocation119_spill] sm:$0xff] %v9027_v48  ;;  %v4253_v57 = vand.u32 4294901760, %v265_v30  ;;  %v9042_v25 = vsub.f32 %v266_v28, %v4251_v31  ;;  %v9053_v19 = vsub.f32 %v255_v1, %v2965_v56  ;;  %v9055_v31 = vsub.f32 %v263_v61, %v2969_v53 }
 0x1ef   :  { %5807 = vmatpush1.bf16.msra.mxu0 %v12400_v36  ;;  %12406 = vst [vmem:[#allocation125_spill] sm:$0xff] %v9029_v14  ;;  %v280_v13 = vld [vmem:[#allocation2 + $0x7e8] sm:$0xff]  ;;  %v274_v46 = vld [vmem:[#allocation2 + $0x7b8] sm:$0xff]  ;;  %12407 = vst [vmem:[#allocation122_spill] sm:$0xff] %v9031_v16 }
 0x1f0   :  { %5809 = vmatprep.subr.bf16.mxu0 %v12404_v10  ;;  %v282_v43 = vld [vmem:[#allocation2 + $0x7f8] sm:$0xff]  ;;  %12408 = vst [vmem:[#allocation129_spill] sm:$0xff] %v9033_v11  ;;  %v271_v2 = vld [vmem:[#allocation2 + $0x7a0] sm:$0xff]  ;;  %v12409_v39 = vld [vmem:[#allocation170_spill] sm:$0xff]  ;;  %v9036_v10 = vsub.f32 %v264_v37, %v2967_v40  ;;  %v2971_v11 = vand.u32 4294901760, %v272_v35  ;;  %v2975_v48 = vand.u32 4294901760, %v280_v13  ;;  %v9051_v40 = vpack.c.bf16 %v2969_v53, %v2965_v56 }
 0x1f1   :  { %v279_v36 = vld [vmem:[#allocation2 + $0x7e0] sm:$0xff]  ;;  %6191 = vmatpush1.bf16.msra.mxu1 %v12409_v39  ;;  %12411 = vst [vmem:[#allocation137_spill] sm:$0xff] %v9038_v22  ;;  %12412 = vst [vmem:[#allocation134_spill] sm:$0xff] %v9040_v60  ;;  %v9044_v18 = vld [vmem:[#allocation2 + $0x7b0] sm:$0xff]  ;;  %v4255_v26 = vand.u32 4294901760, %v274_v46  ;;  %v4259_v39 = vand.u32 4294901760, %v282_v43  ;;  %v9064_v22 = vsub.f32 %v265_v30, %v4253_v57 }
 0x1f2   :  { %12410 = vst [vmem:[#allocation131_spill] sm:$0xff] %v9036_v10  ;;  %12413 = vst [vmem:[#allocation141_spill] sm:$0xff] %v9042_v25  ;;  %v9046_v14 = vld [vmem:[#allocation2 + $0x7f0] sm:$0xff]  ;;  %v12414_v51 = vld [vmem:[#allocation177_spill] sm:$0xff]  ;;  %v2973_v28 = vand.u32 4294901760, %v271_v2  ;;  %v2977_v42 = vand.u32 4294901760, %v279_v36  ;;  %v9057_v25 = vpack.c.bf16 %v4253_v57, %v4249_v58  ;;  %v9062_v10 = vsub.f32 %v257_v27, %v4249_v58 }
 0x1f3   :  { %6193 = vmatprep.subr.bf16.mxu1 %v12414_v51  ;;  %v12415_v23 = vld [vmem:[#allocation179_spill] sm:$0xff]  ;;  %v12416_v37 = vld [vmem:[#allocation185_spill] sm:$0xff]  ;;  %12417 = vst [vmem:[#allocation143_spill] sm:$0xff] %v9051_v40  ;;  %12418 = vst [vmem:[#allocation149_spill] sm:$0xff] %v9053_v19  ;;  %v11263_v56 = vand.u32 4294901760, %v8629_v47  ;;  %v9071_v53 = vpack.c.bf16 %v2975_v48, %v2971_v11  ;;  %v9075_v51 = vpack.c.bf16 %v4259_v39, %v4255_v26 }
 0x1f4   :  { %5811 = vmatpush1.bf16.msra.mxu0 %v12415_v23  ;;  %12419 = vst [vmem:[#allocation146_spill] sm:$0xff] %v9055_v31  ;;  %12420 = vst [vmem:[#allocation153_spill] sm:$0xff] %v9057_v25  ;;  %v11264_v23 = vand.u32 4294901760, %v9046_v14  ;;  %v12421_v60 = vld [vmem:[#allocation182_spill] sm:$0xff]  ;;  %v12426_v61 = vld [vmem:[#allocation192_spill] sm:$0xff]  ;;  %v9073_v31 = vsub.f32 %v280_v13, %v2975_v48  ;;  %v9079_v27 = vsub.f32 %v274_v46, %v4255_v26  ;;  %v11266_v48 = vand.u32 4294901760, %v8637_v6 }
 0x1f5   :  { %5813 = vmatprep.subr.bf16.mxu0 %v12416_v37  ;;  %6195 = vmatpush1.bf16.msra.mxu1 %v12421_v60  ;;  %12422 = vst [vmem:[#allocation155_spill] sm:$0xff] %v9062_v10  ;;  %12423 = vst [vmem:[#allocation161_spill] sm:$0xff] %v9064_v22  ;;  %v9066_v37 = vsub.f32 %v272_v35, %v2971_v11  ;;  %v12425_v1 = vld [vmem:[#allocation190_spill] sm:$0xff]  ;;  %v11265_v60 = vand.u32 4294901760, %v8631_v59  ;;  %v9081_v35 = vsub.f32 %v282_v43, %v4259_v39  ;;  %v12437_v46 = vld [vmem:[#allocation195_spill] sm:$0xff] }
 0x1f6   :  { %6197 = vmatprep.subr.bf16.mxu1 %v12425_v1  ;;  %12427 = vst [vmem:[#allocation165_spill] sm:$0xff] %v9071_v53  ;;  %12428 = vst [vmem:[#allocation167_spill] sm:$0xff] %v9073_v31  ;;  %v9083_v30 = vpack.c.bf16 %v2977_v42, %v2973_v28  ;;  %v9085_v58 = vsub.f32 %v271_v2, %v2973_v28  ;;  %v9087_v57 = vsub.f32 %v279_v36, %v2977_v42  ;;  %v12563_v31 = vld [vmem:[#allocation70_spill] sm:$0xff] }
 0x1f7   :  { %12424 = vst [vmem:[#allocation158_spill] sm:$0xff] %v9066_v37  ;;  %12429 = vst [vmem:[#allocation173_spill] sm:$0xff] %v9075_v51  ;;  %v12435_v11 = vand.u32 4294901760, %v9044_v18  ;;  %v11267_v1 = vand.u32 4294901760, %v8639_v41  ;;  %v9102_v26 = vsub.f32 %v8629_v47, %v11263_v56  ;;  %v11268_v43 = vand.u32 4294901760, %v8641_v54  ;;  %v12507_v47 = vld [vmem:[#allocation72_spill] sm:$0xff] }
 0x1f8   :  { %5815 = vmatpush1.bf16.msra.mxu0 %v12426_v61  ;;  %12430 = vst [vmem:[#allocation170_spill] sm:$0xff] %v9079_v27  ;;  %12431 = vst [vmem:[#allocation177_spill] sm:$0xff] %v9081_v35  ;;  %v11269_v2 = vand.u32 4294901760, %v8643_v15  ;;  %v9112_v39 = vsub.f32 %v8631_v59, %v11265_v60  ;;  %v11274_v28 = vand.u32 4294901760, %v8649_v7  ;;  %v4283_v60 = vsub.f32 %v8637_v6, %v11266_v48  ;;  %v12505_v59 = vld [vmem:[#allocation56_spill] sm:$0xff]  ;;  %v12559_v35 = vld [vmem:[#allocation191_spill] sm:$0xff] }
 0x1f9   :  { %6201 = vmatprep.subr.bf16.mxu0 %v8627_v21  ;;  %12432 = vst [vmem:[#allocation179_spill] sm:$0xff] %v9083_v30  ;;  %12433 = vst [vmem:[#allocation185_spill] sm:$0xff] %v9085_v58  ;;  %v9093_v13 = vpack.c.bf16 %v11264_v23, %v12435_v11  ;;  %6199 = vmatpush1.bf16.msra.mxu1 %v12437_v46  ;;  %v12438_v11 = vld [vmem:[#allocation203_spill] sm:$0xff]  ;;  %v4295_v61 = vsub.f32 %v8639_v41, %v11267_v1  ;;  %v3000_v23 = vand.u32 4294901760, %v9102_v26  ;;  %v12503_v41 = vld [vmem:[#allocation30_spill] sm:$0xff] }
 0x1fa   :  { %12434 = vst [vmem:[#allocation182_spill] sm:$0xff] %v9087_v57  ;;  %6585 = vmatprep.subr.bf16.mxu1 %v8633_v62  ;;  %v3005_v36 = vsub.f32 %v8641_v54, %v11268_v43  ;;  %v3017_v48 = vsub.f32 %v8643_v15, %v11269_v2  ;;  %v12439_v1 = vand.u32 4294901760, %v8647_v24  ;;  %v3012_v26 = vand.u32 4294901760, %v9112_v39  ;;  %v12500_v54 = vld [vmem:[#allocation47_spill] sm:$0xff]  ;;  %v12542_v58 = vld [vmem:[#allocation172_spill] sm:$0xff] }
 0x1fb   :  { %12436 = vst [vmem:[#allocation190_spill] sm:$0xff] %v9093_v13  ;;  %1561 = vmatmul.mubr.f32.vlgmr.msra.gmra.mrb[0].mxu0 %v12223_v29  ;;  %v12440_v43 = vand.u32 4294901760, %v8651_v0  ;;  %v12441_v2 = vand.u32 4294901760, %v8655_v52  ;;  %v12443_v39 = vand.u32 4294901760, %v8661_v20  ;;  %v12447_v62 = vand.u32 4294901760, %v8676_v38 }
 0x1fc   :  { %6203 = vmatpush1.bf16.msra.mxu0 %v8635_v12  ;;  %2984 = vmatprep.mubr.f32.mxu0 %v12438_v11  ;;  %v4289_v42 = vsub.f32 %v8647_v24, %v12439_v1  ;;  %v12442_v1 = vand.u32 4294901760, %v8659_v49  ;;  %v4284_v12 = vand.u32 4294901760, %v4283_v60 }
 0x1fd   :  { %6205 = vmatprep.subr.bf16.mxu0 %v8653_v3  ;;  %2845 = vmatmul.mubr.f32.vlgmr.msra.gmra.mrb[0].mxu1 %v12223_v29  ;;  %v3023_v46 = vsub.f32 %v8651_v0, %v12440_v43  ;;  %v3035_v56 = vsub.f32 %v8655_v52, %v12441_v2  ;;  %v12445_v43 = vand.u32 4294901760, %v8667_v8  ;;  %v12446_v2 = vand.u32 4294901760, %v8672_v55  ;;  %v12482_v29 = vld [vmem:[#allocation15_spill] sm:$0xff]  ;;  %v12483_v52 = vld [vmem:[#allocation26_spill] sm:$0xff] }
 0x1fe   :  { %6587 = vmatpush1.bf16.msra.mxu1 %v8645_v50  ;;  %4268 = vmatprep.mubr.f32.mxu1 %v12438_v11  ;;  %v4301_v11 = vsub.f32 %v8649_v7, %v11274_v28  ;;  %v12444_v28 = vand.u32 4294901760, %v8665_v34  ;;  %v12449_v7 = vld [vmem:[#allocation97_spill] sm:$0xff]  ;;  %v4290_v60 = vand.u32 4294901760, %v4289_v42  ;;  %v12454_v42 = vand.u32 4294901760, %v9044_v18  ;;  %v12486_v0 = vld [vmem:[#allocation42_spill] sm:$0xff] }
 0x1ff   :  { %6589 = vmatprep.subr.bf16.mxu1 %v8657_v45  ;;  %v4319_v45 = vsub.f32 %v8661_v20, %v12443_v39  ;;  %v3041_v3 = vsub.f32 %v8667_v8, %v12445_v43  ;;  %v4296_v39 = vand.u32 4294901760, %v4295_v61  ;;  %v3006_v20 = vand.u32 4294901760, %v3005_v36  ;;  %v12450_v8 = vld [vmem:[#allocation140_spill] sm:$0xff] }
 0x200   :  { %6207 = vmatpush1.bf16.msra.mxu0 %v8663_v33  ;;  %v4307_v33 = vsub.f32 %v8659_v49, %v12442_v1  ;;  %v3029_v50 = vsub.f32 %v8665_v34, %v12444_v28  ;;  %v4325_v1 = vsub.f32 %v8676_v38, %v12447_v62  ;;  %v3018_v28 = vand.u32 4294901760, %v3017_v48  ;;  %v12448_v34 = vld [vmem:[#allocation96_spill] sm:$0xff]  ;;  %v12452_v49 = vld [vmem:[#allocation102_spill] sm:$0xff] }
 0x201   :  { %6209 = vmatprep.subr.bf16.mxu0 %v8678_v5  ;;  %v4313_v5 = vsub.f32 %v8672_v55, %v12446_v2  ;;  %v4302_v43 = vand.u32 4294901760, %v4301_v11  ;;  %v3024_v2 = vand.u32 4294901760, %v3023_v46  ;;  %v3036_v55 = vand.u32 4294901760, %v3035_v56  ;;  %v12459_v11 = vld [vmem:[#allocation147_spill] sm:$0xff] }
 0x202   :  { %6591 = vmatpush1.bf16.msra.mxu1 %v8670_v32  ;;  %v4308_v62 = vand.u32 4294901760, %v4307_v33  ;;  %v4320_v38 = vand.u32 4294901760, %v4319_v45  ;;  %v3030_v21 = vand.u32 4294901760, %v3029_v50  ;;  %v3042_v24 = vand.u32 4294901760, %v3041_v3  ;;  %v12457_v3 = vld [vmem:[#allocation103_spill] sm:$0xff] }
 0x203   :  { %6593 = vmatprep.subr.bf16.mxu1 %v12449_v7  ;;  %v4314_v32 = vand.u32 4294901760, %v4313_v5  ;;  %v4326_v61 = vand.u32 4294901760, %v4325_v1  ;;  %v12451_v48 = vand.u32 4294901760, %v8680_v9  ;;  %v9191_v56 = vsub.f32 %v9044_v18, %v12454_v42  ;;  %v12458_v5 = vld [vmem:[#allocation100_spill] sm:$0xff]  ;;  %v12460_v1 = vld [vmem:[#allocation7_spill] sm:$0xff] }
 0x204   :  { %6211 = vmatpush1.bf16.msra.mxu0 %v8692_v17  ;;  %v12453_v17 = vld [vmem:[#allocation135_spill] sm:$0xff]  ;;  %v12456_v45 = vand.u32 4294901760, %v12448_v34  ;;  %v9207_v18 = vpack.c.bf16 %v3012_v26, %v3000_v23  ;;  %v9209_v42 = vpack.c.bf16 %v4296_v39, %v4284_v12  ;;  %v9213_v33 = vpack.c.bf16 %v3018_v28, %v3006_v20  ;;  %v12466_v39 = vld [vmem:[#allocation12_spill] sm:$0xff]  ;;  %v12475_v23 = vld [vmem:[#allocation34_spill] sm:$0xff] }
 0x205   :  { %6213 = vmatprep.subr.bf16.mxu0 %v12450_v8  ;;  %v9184_v36 = vsub.f32 %v8680_v9, %v12451_v48  ;;  %12455 = vst [vmem:[#allocation192_spill] sm:$0xff] %v9191_v56  ;;  %v12461_v48 = vand.u32 4294901760, %v9046_v14  ;;  %v12464_v8 = vld [vmem:[#allocation19_spill] sm:$0xff]  ;;  %v9215_v46 = vpack.c.bf16 %v4302_v43, %v4290_v60  ;;  %v12465_v12 = vand.u32 4294901760, %v12452_v49  ;;  %v12470_v60 = vld [vmem:[#allocation21_spill] sm:$0xff]  ;;  %v12477_v28 = vld [vmem:[#allocation6_spill] sm:$0xff] }
 0x206   :  { %6595 = vmatpush1.bf16.msra.mxu1 %v12453_v17  ;;  %v9196_v50 = vsub.f32 %v12448_v34, %v12456_v45  ;;  %v12463_v17 = vld [vmem:[#allocation104_spill] sm:$0xff]  ;;  %v9221_v34 = vpack.c.bf16 %v3042_v24, %v3030_v21  ;;  %v12468_v21 = vand.u32 4294901760, %v12458_v5  ;;  %v12471_v43 = vld [vmem:[#allocation25_spill] sm:$0xff] }
 0x207   :  { %6597 = vmatprep.subr.bf16.mxu1 %v12459_v11  ;;  %v9205_v7 = vsub.f32 %v9046_v14, %v12461_v48  ;;  %v11311_v45 = vand.u32 4294901760, %v12463_v17  ;;  %v9217_v11 = vpack.c.bf16 %v3036_v55, %v3024_v2  ;;  %v9223_v14 = vpack.c.bf16 %v4326_v61, %v4314_v32  ;;  %v12469_v32 = vld [vmem:[#allocation106_spill] sm:$0xff]  ;;  %v12473_v48 = vld [vmem:[#allocation144_spill] sm:$0xff]  ;;  %v12481_v9 = vld [vmem:[#allocation17_spill] sm:$0xff] }
 0x208   :  { %6215 = vmatpush1.bf16.msra.mxu0 %v12460_v1  ;;  %v9219_v1 = vpack.c.bf16 %v4320_v38, %v4308_v62  ;;  %v9229_v26 = vsub.f32 %v12452_v49, %v12465_v12  ;;  %v12467_v55 = vand.u32 4294901760, %v12457_v3  ;;  %v9241_v24 = vsub.f32 %v12458_v5, %v12468_v21  ;;  %v12472_v62 = vld [vmem:[#allocation142_spill] sm:$0xff]  ;;  %v12476_v21 = vld [vmem:[#allocation159_spill] sm:$0xff] }
 0x209   :  { %12462 = vst [vmem:[#allocation195_spill] sm:$0xff] %v9205_v7  ;;  %6217 = vmatprep.subr.bf16.mxu0 %v12464_v8  ;;  %v9249_v2 = vsub.f32 %v12463_v17, %v11311_v45  ;;  %v12480_v45 = vld [vmem:[#allocation13_spill] sm:$0xff]  ;;  %v12484_v8 = vand.u32 4294901760, %v12469_v32  ;;  %v12488_v12 = vand.u32 4294901760, %v12472_v62 }
 0x20a   :  { %6599 = vmatpush1.bf16.msra.mxu1 %v12466_v39  ;;  %v9236_v38 = vsub.f32 %v12457_v3, %v12467_v55  ;;  %v12474_v55 = vld [vmem:[#allocation148_spill] sm:$0xff]  ;;  %v4332_v49 = vand.u32 4294901760, %v9229_v26  ;;  %v3054_v39 = vand.u32 4294901760, %v9241_v24  ;;  %v12492_v3 = vand.u32 4294901760, %v12476_v21 }
 0x20b   :  { %6601 = vmatprep.subr.bf16.mxu1 %v12470_v60  ;;  %v12478_v60 = vld [vmem:[#allocation8_spill] sm:$0xff]  ;;  %v4337_v5 = vsub.f32 %v12469_v32, %v12484_v8  ;;  %v3066_v61 = vand.u32 4294901760, %v9249_v2  ;;  %v4349_v17 = vsub.f32 %v12472_v62, %v12488_v12  ;;  %v12491_v32 = vld [vmem:[#allocation55_spill] sm:$0xff]  ;;  %v12493_v2 = vand.u32 4294901760, %v12477_v28 }
 0x20c   :  { %6219 = vmatpush1.bf16.msra.mxu0 %v12471_v43  ;;  %v12479_v43 = vld [vmem:[#allocation10_spill] sm:$0xff]  ;;  %v4344_v20 = vand.u32 4294901760, %v9236_v38  ;;  %v12487_v26 = vld [vmem:[#allocation40_spill] sm:$0xff]  ;;  %v12489_v38 = vand.u32 4294901760, %v12473_v48  ;;  %v12494_v12 = vand.u32 4294901760, %v12478_v60 }
 0x20d   :  { %6221 = vmatprep.subr.bf16.mxu0 %v12475_v23  ;;  %v12485_v23 = vld [vmem:[#allocation16_spill] sm:$0xff] }
 0x20e   :  { %6603 = vmatpush1.bf16.msra.mxu1 %v12483_v52  ;;  %v3071_v24 = vsub.f32 %v12473_v48, %v12489_v38  ;;  %v12490_v52 = vand.u32 4294901760, %v12474_v55  ;;  %v3077_v62 = vsub.f32 %v12478_v60, %v12494_v12  ;;  %v12495_v38 = vand.u32 4294901760, %v12479_v43 }
 0x20f   :  { %6605 = vmatprep.subr.bf16.mxu1 %v12486_v0  ;;  %v4367_v0 = vsub.f32 %v12477_v28, %v12493_v2  ;;  %v12499_v28 = vld [vmem:[#allocation22_spill] sm:$0xff]  ;;  %v12501_v12 = vand.u32 4294901760, %v12485_v23 }
 0x210   :  { %6223 = vmatpush1.bf16.msra.mxu0 %v12487_v26  ;;  %v3083_v8 = vsub.f32 %v12474_v55, %v12490_v52  ;;  %v4355_v26 = vsub.f32 %v12476_v21, %v12492_v3  ;;  %v3089_v48 = vsub.f32 %v12479_v43, %v12495_v38  ;;  %v12496_v52 = vand.u32 4294901760, %v12480_v45  ;;  %v12502_v43 = vld [vmem:[#allocation23_spill] sm:$0xff] }
 0x211   :  { %6225 = vmatprep.subr.bf16.mxu0 %v12491_v32  ;;  %v12497_v55 = vand.u32 4294901760, %v12481_v9  ;;  %v12498_v21 = vand.u32 4294901760, %v12482_v29  ;;  %v3107_v38 = vsub.f32 %v12485_v23, %v12501_v12  ;;  %v4368_v7 = vand.u32 4294901760, %v4367_v0 }
 0x212   :  { %v4361_v32 = vsub.f32 %v12480_v45, %v12496_v52  ;;  %6607 = vmatpush1.bf16.msra.mxu1 %v12500_v54  ;;  %v12504_v45 = vld [vmem:[#allocation31_spill] sm:$0xff]  ;;  %v3084_v15 = vand.u32 4294901760, %v3083_v8  ;;  %v4356_v54 = vand.u32 4294901760, %v4355_v26  ;;  %v3078_v56 = vand.u32 4294901760, %v3077_v62  ;;  %v12513_v26 = vld [vmem:[#allocation78_spill] sm:$0xff]  ;;  %v12514_v8 = vld [vmem:[#allocation76_spill] sm:$0xff] }
 0x213   :  { %v4373_v3 = vsub.f32 %v12481_v9, %v12497_v55  ;;  %v3095_v2 = vsub.f32 %v12482_v29, %v12498_v21  ;;  %6609 = vmatprep.subr.bf16.mxu1 %v12505_v59  ;;  %v12506_v55 = vld [vmem:[#allocation61_spill] sm:$0xff]  ;;  %v4338_v9 = vand.u32 4294901760, %v4337_v5  ;;  %v4350_v21 = vand.u32 4294901760, %v4349_v17  ;;  %v12509_v59 = vld [vmem:[#allocation63_spill] sm:$0xff] }
 0x214   :  { %6227 = vmatpush1.bf16.msra.mxu0 %v12506_v55  ;;  %v3072_v29 = vand.u32 4294901760, %v3071_v24  ;;  %v3090_v12 = vand.u32 4294901760, %v3089_v48  ;;  %v4362_v23 = vand.u32 4294901760, %v4361_v32  ;;  %v12508_v52 = vand.u32 4294901760, %v12499_v28 }
 0x215   :  { %6229 = vmatprep.subr.bf16.mxu0 %v12507_v47  ;;  %v4374_v60 = vand.u32 4294901760, %v4373_v3  ;;  %v3096_v57 = vand.u32 4294901760, %v3095_v2  ;;  %v3108_v5 = vand.u32 4294901760, %v3107_v38  ;;  %v12510_v17 = vand.u32 4294901760, %v12502_v43  ;;  %v12519_v47 = vld [vmem:[#allocation36_spill] sm:$0xff] }
 0x216   :  { %v9318_v6 = vsub.f32 %v12499_v28, %v12508_v52  ;;  %6611 = vmatpush1.bf16.msra.mxu1 %v12509_v59  ;;  %v12511_v0 = vand.u32 4294901760, %v12503_v41  ;;  %v12512_v32 = vand.u32 4294901760, %v12504_v45  ;;  %v12515_v3 = vand.u32 4294901760, %v9184_v36  ;;  %v12517_v52 = vld [vmem:[#allocation28_spill] sm:$0xff]  ;;  %v12518_v59 = vld [vmem:[#allocation33_spill] sm:$0xff]  ;;  %v12541_v28 = vld [vmem:[#allocation67_spill] sm:$0xff] }
 0x217   :  { %v9324_v24 = vsub.f32 %v12502_v43, %v12510_v17  ;;  %6613 = vmatprep.subr.bf16.mxu1 %v12513_v26  ;;  %v12516_v2 = vand.u32 4294901760, %v9196_v50  ;;  %v11349_v17 = vand.u32 4294901760, %v12517_v52  ;;  %v9352_v26 = vpack.c.bf16 %v4350_v21, %v4338_v9  ;;  %v12540_v43 = vld [vmem:[#allocation66_spill] sm:$0xff] }
 0x218   :  { %v9329_v62 = vsub.f32 %v12503_v41, %v12511_v0  ;;  %v9334_v48 = vsub.f32 %v12504_v45, %v12512_v32  ;;  %6231 = vmatpush1.bf16.msra.mxu0 %v12514_v8  ;;  %v12520_v41 = vld [vmem:[#allocation124_spill] sm:$0xff]  ;;  %v9348_v32 = vpack.c.bf16 %v4344_v20, %v4332_v49  ;;  %v9350_v45 = vpack.c.bf16 %v3066_v61, %v3054_v39  ;;  %v12529_v61 = vld [vmem:[#allocation43_spill] sm:$0xff]  ;;  %v12532_v39 = vld [vmem:[#allocation46_spill] sm:$0xff] }
 0x219   :  { %v9342_v38 = vpack.c.bf16 %v12516_v2, %v12515_v3  ;;  %6233 = vmatprep.subr.bf16.mxu0 %v12520_v41  ;;  %v9354_v8 = vpack.c.bf16 %v3084_v15, %v3072_v29  ;;  %v9356_v36 = vpack.c.bf16 %v4368_v7, %v4356_v54  ;;  %v9358_v50 = vpack.c.bf16 %v3090_v12, %v3078_v56  ;;  %v12522_v0 = vld [vmem:[#allocation84_spill] sm:$0xff]  ;;  %v12524_v15 = vld [vmem:[#allocation133_spill] sm:$0xff]  ;;  %v12530_v12 = vld [vmem:[#allocation39_spill] sm:$0xff] }
 0x21a   :  { %v9360_v3 = vpack.c.bf16 %v4374_v60, %v4362_v23  ;;  %6615 = vmatpush1.bf16.msra.mxu1 %v12522_v0  ;;  %v9364_v55 = vpack.c.bf16 %v3108_v5, %v3096_v57  ;;  %v9374_v54 = vsub.f32 %v12517_v52, %v11349_v17  ;;  %v12525_v7 = vand.u32 4294901760, %v12518_v59  ;;  %v12527_v23 = vld [vmem:[#allocation37_spill] sm:$0xff]  ;;  %v12528_v60 = vld [vmem:[#allocation168_spill] sm:$0xff]  ;;  %v12535_v0 = vld [vmem:[#allocation51_spill] sm:$0xff] }
 0x21b   :  { %6617 = vmatprep.subr.bf16.mxu1 %v12524_v15  ;;  %v12526_v57 = vand.u32 4294901760, %v12519_v47  ;;  %v12531_v17 = vld [vmem:[#allocation45_spill] sm:$0xff]  ;;  %v12537_v52 = vld [vmem:[#allocation163_spill] sm:$0xff]  ;;  %v12538_v20 = vld [vmem:[#allocation58_spill] sm:$0xff]  ;;  %v12546_v5 = vand.u32 4294901760, %v12529_v61  ;;  %v12547_v21 = vand.u32 4294901760, %v12530_v12 }
 0x21c   :  { %12521 = vst [vmem:[#allocation203_spill] sm:$0xff] %v9360_v3  ;;  %12523 = vst [vmem:[#allocation205_spill] sm:$0xff] %v9364_v55  ;;  %6235 = vmatpush1.bf16.msra.mxu0 %v8871_v4  ;;  %v9379_v29 = vsub.f32 %v12518_v59, %v12525_v7  ;;  %v12533_v2 = vld [vmem:[#allocation49_spill] sm:$0xff]  ;;  %v12534_v4 = vld [vmem:[#allocation54_spill] sm:$0xff]  ;;  %v4386_v15 = vand.u32 4294901760, %v9374_v54  ;;  %v12544_v7 = vand.u32 4294901760, %v12527_v23 }
 0x21d   :  { %v9384_v56 = vsub.f32 %v12519_v47, %v12526_v57  ;;  %6237 = vmatprep.subr.bf16.mxu0 %v12528_v60  ;;  %v12536_v57 = vld [vmem:[#allocation52_spill] sm:$0xff]  ;;  %v4403_v9 = vsub.f32 %v12529_v61, %v12546_v5  ;;  %v12548_v54 = vand.u32 4294901760, %v12531_v17  ;;  %v12552_v61 = vand.u32 4294901760, %v12535_v0  ;;  %v12566_v55 = vld [vmem:[#allocation29_spill] sm:$0xff] }
 0x21e   :  { %6619 = vmatpush1.bf16.msra.mxu1 %v12537_v52  ;;  %v12539_v47 = vld [vmem:[#allocation60_spill] sm:$0xff]  ;;  %v4398_v41 = vand.u32 4294901760, %v9379_v29  ;;  %v3131_v60 = vsub.f32 %v12527_v23, %v12544_v7  ;;  %v12545_v52 = vld [vmem:[#allocation186_spill] sm:$0xff]  ;;  %v12550_v7 = vand.u32 4294901760, %v12533_v2  ;;  %v12551_v23 = vand.u32 4294901760, %v12534_v4 }
 0x21f   :  { %6621 = vmatprep.subr.bf16.mxu1 %v12542_v58  ;;  %v12543_v49 = vld [vmem:[#allocation176_spill] sm:$0xff]  ;;  %v3120_v59 = vand.u32 4294901760, %v9384_v56  ;;  %v3125_v29 = vsub.f32 %v12531_v17, %v12548_v54  ;;  %v12549_v56 = vand.u32 4294901760, %v12532_v39  ;;  %v12554_v17 = vld [vmem:[#allocation181_spill] sm:$0xff] }
 0x220   :  { %6239 = vmatpush1.bf16.msra.mxu0 %v12543_v49  ;;  %v4415_v49 = vsub.f32 %v12530_v12, %v12547_v21  ;;  %v4421_v5 = vsub.f32 %v12534_v4, %v12551_v23  ;;  %v3143_v21 = vsub.f32 %v12535_v0, %v12552_v61  ;;  %v12553_v12 = vand.u32 4294901760, %v12536_v57 }
 0x221   :  { %6241 = vmatprep.subr.bf16.mxu0 %v12545_v52  ;;  %v3137_v58 = vsub.f32 %v12532_v39, %v12549_v56  ;;  %v4409_v52 = vsub.f32 %v12533_v2, %v12550_v7  ;;  %v12555_v56 = vand.u32 4294901760, %v12538_v20  ;;  %v12556_v7 = vand.u32 4294901760, %v12539_v47 }
 0x222   :  { %v3155_v54 = vsub.f32 %v12536_v57, %v12553_v12  ;;  %6623 = vmatpush1.bf16.msra.mxu1 %v12554_v17  ;;  %v12557_v23 = vand.u32 4294901760, %v12540_v43  ;;  %v12558_v61 = vand.u32 4294901760, %v12541_v28  ;;  %v12560_v12 = vld [vmem:[#allocation196_spill] sm:$0xff]  ;;  %v3132_v17 = vand.u32 4294901760, %v3131_v60 }
 0x223   :  { %v4427_v39 = vsub.f32 %v12538_v20, %v12555_v56  ;;  %v4439_v2 = vsub.f32 %v12539_v47, %v12556_v7  ;;  %6625 = vmatprep.subr.bf16.mxu1 %v12559_v35  ;;  %v12561_v57 = vld [vmem:[#allocation64_spill] sm:$0xff]  ;;  %v12564_v7 = vld [vmem:[#allocation14_spill] sm:$0xff]  ;;  %v4404_v47 = vand.u32 4294901760, %v4403_v9  ;;  %v4416_v22 = vand.u32 4294901760, %v4415_v49  ;;  %v12565_v35 = vld [vmem:[#allocation9_spill] sm:$0xff] }
 0x224   :  { %v3149_v4 = vsub.f32 %v12540_v43, %v12557_v23  ;;  %v3161_v0 = vsub.f32 %v12541_v28, %v12558_v61  ;;  %6243 = vmatpush1.bf16.msra.mxu0 %v12560_v12  ;;  %v12562_v56 = vld [vmem:[#allocation68_spill] sm:$0xff]  ;;  %v3126_v23 = vand.u32 4294901760, %v3125_v29  ;;  %v3138_v43 = vand.u32 4294901760, %v3137_v58  ;;  %v12567_v20 = vld [vmem:[#allocation41_spill] sm:$0xff] }
 0x225   :  { %6245 = vmatprep.subr.bf16.mxu0 %v12564_v7  ;;  %v4410_v10 = vand.u32 4294901760, %v4409_v52  ;;  %v4422_v19 = vand.u32 4294901760, %v4421_v5  ;;  %v3144_v61 = vand.u32 4294901760, %v3143_v21  ;;  %v3156_v28 = vand.u32 4294901760, %v3155_v54  ;;  %v12594_v7 = vld [vmem:[#allocation162_spill] sm:$0xff] }
 0x226   :  { %6627 = vmatpush1.bf16.msra.mxu1 %v12565_v35  ;;  %v4428_v12 = vand.u32 4294901760, %v4427_v39  ;;  %v4440_v60 = vand.u32 4294901760, %v4439_v2  ;;  %v3150_v3 = vand.u32 4294901760, %v3149_v4  ;;  %v3162_v27 = vand.u32 4294901760, %v3161_v0  ;;  %v12571_v39 = vld [vmem:[#allocation73_spill] sm:$0xff]  ;;  %v12572_v4 = vld [vmem:[#allocation50_spill] sm:$0xff] }
 0x227   :  { %6629 = vmatprep.subr.bf16.mxu1 %v12566_v55  ;;  %v12568_v37 = vand.u32 4294901760, %v12561_v57  ;;  %v12569_v58 = vand.u32 4294901760, %v12562_v56  ;;  %v12570_v9 = vand.u32 4294901760, %v12563_v31  ;;  %v12573_v0 = vand.u32 4294901760, %v9318_v6  ;;  %v12577_v55 = vld [vmem:[#allocation79_spill] sm:$0xff] }
 0x228   :  { %6247 = vmatpush1.bf16.msra.mxu0 %v12567_v20  ;;  %v12574_v5 = vand.u32 4294901760, %v9324_v24  ;;  %v12576_v54 = vand.u32 4294901760, %v9334_v48  ;;  %v9482_v35 = vpack.c.bf16 %v3132_v17, %v3120_v59  ;;  %v9484_v2 = vpack.c.bf16 %v4416_v22, %v4404_v47  ;;  %v12578_v24 = vld [vmem:[#allocation44_spill] sm:$0xff]  ;;  %v12581_v59 = vld [vmem:[#allocation71_spill] sm:$0xff] }
 0x229   :  { %v4433_v49 = vsub.f32 %v12561_v57, %v12568_v37  ;;  %v4445_v52 = vsub.f32 %v12562_v56, %v12569_v58  ;;  %v3167_v29 = vsub.f32 %v12563_v31, %v12570_v9  ;;  %6249 = vmatprep.subr.bf16.mxu0 %v12572_v4  ;;  %v12575_v37 = vand.u32 4294901760, %v9329_v62 }
 0x22a   :  { %v9471_v21 = vpack.c.bf16 %v12574_v5, %v12573_v0  ;;  %v9479_v58 = vpack.c.bf16 %v4398_v41, %v4386_v15  ;;  %v11380_v9 = vand.u32 4294901760, %v12577_v55  ;;  %v9486_v4 = vpack.c.bf16 %v3138_v43, %v3126_v23  ;;  %6631 = vmatpush1.bf16.msra.mxu1 %v12578_v24  ;;  %v12579_v41 = vld [vmem:[#allocation75_spill] sm:$0xff]  ;;  %v12580_v5 = vld [vmem:[#allocation65_spill] sm:$0xff]  ;;  %v12593_v24 = vld [vmem:[#allocation160_spill] sm:$0xff] }
 0x22b   :  { %v9477_v20 = vpack.c.bf16 %v12576_v54, %v12575_v37  ;;  %v9488_v6 = vpack.c.bf16 %v4422_v19, %v4410_v10  ;;  %v9491_v0 = vpack.c.bf16 %v3156_v28, %v3144_v61  ;;  %v9493_v62 = vpack.c.bf16 %v4440_v60, %v4428_v12  ;;  %6633 = vmatprep.subr.bf16.mxu1 %v12580_v5  ;;  %v12583_v28 = vld [vmem:[#allocation80_spill] sm:$0xff]  ;;  %v12585_v23 = vld [vmem:[#allocation85_spill] sm:$0xff]  ;;  %v12586_v60 = vld [vmem:[#allocation91_spill] sm:$0xff] }
 0x22c   :  { %v9495_v48 = vpack.c.bf16 %v3162_v27, %v3150_v3  ;;  %6251 = vmatpush1.bf16.msra.mxu0 %v12581_v59  ;;  %v4434_v47 = vand.u32 4294901760, %v4433_v49  ;;  %v4446_v22 = vand.u32 4294901760, %v4445_v52  ;;  %v3168_v43 = vand.u32 4294901760, %v3167_v29  ;;  %v12584_v3 = vld [vmem:[#allocation82_spill] sm:$0xff]  ;;  %v12587_v52 = vld [vmem:[#allocation88_spill] sm:$0xff]  ;;  %v12592_v5 = vld [vmem:[#allocation145_spill] sm:$0xff] }
 0x22d   :  { %v12582_v10 = vand.u32 4294901760, %v12571_v39  ;;  %6253 = vmatprep.subr.bf16.mxu0 %v9003_v44  ;;  %v9507_v27 = vsub.f32 %v12577_v55, %v11380_v9  ;;  %v12588_v37 = vld [vmem:[#allocation130_spill] sm:$0xff]  ;;  %v12590_v44 = vld [vmem:[#allocation81_spill] sm:$0xff]  ;;  %v12591_v59 = vand.u32 4294901760, %v12579_v41  ;;  %v12596_v49 = vld [vmem:[#allocation107_spill] sm:$0xff]  ;;  %v12600_v17 = vand.u32 4294901760, %v12583_v28 }
 0x22e   :  { %6635 = vmatpush1.bf16.msra.mxu1 %v12590_v44  ;;  %v12595_v55 = vld [vmem:[#allocation101_spill] sm:$0xff]  ;;  %v9525_v29 = vpack.c.bf16 %v4446_v22, %v4434_v47  ;;  %v12598_v15 = vld [vmem:[#allocation164_spill] sm:$0xff]  ;;  %v12599_v44 = vld [vmem:[#allocation166_spill] sm:$0xff]  ;;  %v12601_v61 = vand.u32 4294901760, %v12584_v3  ;;  %v12602_v47 = vand.u32 4294901760, %v12585_v23  ;;  %v12604_v56 = vand.u32 4294901760, %v12587_v52 }
 0x22f   :  { %v3179_v19 = vsub.f32 %v12571_v39, %v12582_v10  ;;  %v12589_v10 = vld [vmem:[#allocation139_spill] sm:$0xff]  ;;  %v4463_v9 = vsub.f32 %v12579_v41, %v12591_v59  ;;  %6637 = vmatprep.subr.bf16.mxu1 %v12595_v55  ;;  %v4452_v59 = vand.u32 4294901760, %v9507_v27  ;;  %v3173_v12 = vsub.f32 %v12583_v28, %v12600_v17 }
 0x230   :  { %6255 = vmatpush1.bf16.msra.mxu0 %v12596_v49  ;;  %12597 = vst [vmem:[#allocation206_spill] sm:$0xff] %v9525_v29  ;;  %v3185_v55 = vsub.f32 %v12584_v3, %v12601_v61  ;;  %v4457_v22 = vsub.f32 %v12585_v23, %v12602_v47  ;;  %v3191_v27 = vsub.f32 %v12587_v52, %v12604_v56  ;;  %v12606_v49 = vand.u32 4294901760, %v12589_v10  ;;  %v12610_v3 = vld [vmem:[#allocation169_spill] sm:$0xff] }
 0x231   :  { %v3180_v54 = vand.u32 4294901760, %v3179_v19  ;;  %6257 = vmatprep.subr.bf16.mxu0 %v9031_v16  ;;  %v12603_v19 = vand.u32 4294901760, %v12586_v60  ;;  %v12605_v16 = vand.u32 4294901760, %v12588_v37  ;;  %v12607_v47 = vand.u32 4294901760, %v12592_v5 }
 0x232   :  { %v4475_v61 = vsub.f32 %v12589_v10, %v12606_v49  ;;  %6639 = vmatpush1.bf16.msra.mxu1 %v9024_v63  ;;  %v12609_v56 = vand.u32 4294901760, %v12594_v7  ;;  %v4464_v63 = vand.u32 4294901760, %v4463_v9  ;;  %v12612_v10 = vand.u32 4294901760, %v12598_v15 }
 0x233   :  { %v4469_v57 = vsub.f32 %v12586_v60, %v12603_v19  ;;  %v3203_v17 = vsub.f32 %v12588_v37, %v12605_v16  ;;  %v4487_v23 = vsub.f32 %v12592_v5, %v12607_v47  ;;  %v12608_v19 = vand.u32 4294901760, %v12593_v24  ;;  %v12611_v37 = vld [vmem:[#allocation137_spill] sm:$0xff] }
 0x234   :  { %v3209_v52 = vsub.f32 %v12594_v7, %v12609_v56  ;;  %6641 = vmatprep.subr.bf16.mxu1 %v12611_v37  ;;  %6259 = vmatpush1.bf16.msra.mxu0 %v9051_v40  ;;  %v9565_v49 = vpack.c.bf16 %v3180_v54, %v3168_v43  ;;  %v4481_v47 = vsub.f32 %v12598_v15, %v12612_v10  ;;  %v12613_v5 = vand.u32 4294901760, %v12599_v44 }
 0x235   :  { %v3197_v60 = vsub.f32 %v12593_v24, %v12608_v19  ;;  %6261 = vmatprep.subr.bf16.mxu0 %v9071_v53  ;;  %v3174_v56 = vand.u32 4294901760, %v3173_v12  ;;  %v3186_v7 = vand.u32 4294901760, %v3185_v55  ;;  %v4458_v16 = vand.u32 4294901760, %v4457_v22  ;;  %v12614_v24 = vld [vmem:[#allocation171_spill] sm:$0xff] }
 0x236   :  { %v4493_v19 = vsub.f32 %v12599_v44, %v12613_v5  ;;  %v11408_v37 = vand.u32 4294901760, %v12614_v24  ;;  %v4470_v28 = vand.u32 4294901760, %v4469_v57  ;;  %v3192_v40 = vand.u32 4294901760, %v3191_v27  ;;  %6643 = vmatpush1.bf16.msra.mxu1 %v9057_v25  ;;  %v12616_v57 = vld [vmem:[#allocation174_spill] sm:$0xff]  ;;  %v12617_v27 = vld [vmem:[#allocation175_spill] sm:$0xff]  ;;  %v12690_v44 = vld [vmem:[#allocation185_spill] sm:$0xff] }
 0x237   :  { %v3204_v43 = vand.u32 4294901760, %v3203_v17  ;;  %v4476_v54 = vand.u32 4294901760, %v4475_v61  ;;  %v4488_v9 = vand.u32 4294901760, %v4487_v23  ;;  %v3198_v41 = vand.u32 4294901760, %v3197_v60  ;;  %6645 = vmatprep.subr.bf16.mxu1 %v9075_v51  ;;  %v12618_v60 = vld [vmem:[#allocation178_spill] sm:$0xff]  ;;  %v12620_v51 = vld [vmem:[#allocation183_spill] sm:$0xff] }
 0x238   :  { %v3210_v10 = vand.u32 4294901760, %v3209_v52  ;;  %v12615_v39 = vand.u32 4294901760, %v12610_v3  ;;  %6263 = vmatpush1.bf16.msra.mxu0 %v9083_v30  ;;  %v4482_v55 = vand.u32 4294901760, %v4481_v47  ;;  %v4494_v12 = vand.u32 4294901760, %v4493_v19  ;;  %v12619_v52 = vld [vmem:[#allocation180_spill] sm:$0xff] }
 0x239   :  { %6265 = vmatprep.subr.bf16.mxu0 %v9207_v18  ;;  %v9589_v23 = vsub.f32 %v12614_v24, %v11408_v37  ;;  %v11412_v61 = vand.u32 4294901760, %v12619_v52  ;;  %v11411_v25 = vand.u32 4294901760, %v12620_v51  ;;  %v9594_v30 = vpack.c.bf16 %v4464_v63, %v4452_v59  ;;  %v12624_v17 = vld [vmem:[#allocation184_spill] sm:$0xff]  ;;  %v12679_v24 = vld [vmem:[#allocation203_spill] sm:$0xff] }
 0x23a   :  { %v9579_v5 = vsub.f32 %v12610_v3, %v12615_v39  ;;  %v9596_v47 = vpack.c.bf16 %v3186_v7, %v3174_v56  ;;  %v9598_v19 = vpack.c.bf16 %v4470_v28, %v4458_v16  ;;  %v11416_v22 = vand.u32 4294901760, %v12624_v17  ;;  %6647 = vmatpush1.bf16.msra.mxu1 %v9093_v13  ;;  %v12625_v18 = vld [vmem:[#allocation204_spill] sm:$0xff]  ;;  %v12639_v7 = vld [vmem:[#allocation5_spill] sm:$0xff]  ;;  %v12688_v3 = vld [vmem:[#allocation170_spill] sm:$0xff] }
 0x23b   :  { %12621 = vst [vmem:[#allocation207_spill] sm:$0xff] %v9594_v30  ;;  %2990 = vmatmul.mubr.f32.vlgmr.msra.gmra.mrb[2].mxu0 %v12625_v18  ;;  %v9603_v37 = vpack.c.bf16 %v3204_v43, %v3192_v40  ;;  %v9605_v53 = vpack.c.bf16 %v4488_v9, %v4476_v54  ;;  %v9607_v39 = vpack.c.bf16 %v3210_v10, %v3198_v41  ;;  %v12630_v28 = vand.u32 4294901760, %v12616_v57  ;;  %v12633_v54 = vld [vmem:[#allocation189_spill] sm:$0xff]  ;;  %v12634_v9 = vld [vmem:[#allocation187_spill] sm:$0xff]  ;;  %v12642_v10 = vld [vmem:[#allocation20_spill] sm:$0xff] }
 0x23c   :  { %12622 = vst [vmem:[#allocation208_spill] sm:$0xff] %v9596_v47  ;;  %12623 = vst [vmem:[#allocation209_spill] sm:$0xff] %v9598_v19  ;;  %6649 = vmatprep.subr.bf16.mxu1 %v9209_v42  ;;  %6267 = vmatpush1.bf16.msra.mxu0 %v9213_v33  ;;  %v9611_v63 = vpack.c.bf16 %v4494_v12, %v4482_v55  ;;  %v12631_v40 = vand.u32 4294901760, %v12617_v27  ;;  %v12632_v33 = vand.u32 4294901760, %v12618_v60  ;;  %v12635_v55 = vld [vmem:[#allocation188_spill] sm:$0xff]  ;;  %v12641_v12 = vld [vmem:[#allocation18_spill] sm:$0xff] }
 0x23d   :  { %12626 = vst [vmem:[#allocation204_spill] sm:$0xff] %v9603_v37  ;;  %12627 = vst [vmem:[#allocation210_spill] sm:$0xff] %v9605_v53  ;;  %v9617_v59 = vsub.f32 %v12616_v57, %v12630_v28  ;;  %6269 = vmatprep.subr.bf16.mxu0 %v9217_v11  ;;  %v9634_v56 = vsub.f32 %v12619_v52, %v11412_v61  ;;  %v9639_v43 = vsub.f32 %v12620_v51, %v11411_v25  ;;  %v12636_v28 = vld [vmem:[#allocation193_spill] sm:$0xff]  ;;  %v12654_v19 = vld [vmem:[#allocation32_spill] sm:$0xff] }
 0x23e   :  { %12628 = vst [vmem:[#allocation211_spill] sm:$0xff] %v9607_v39  ;;  %12629 = vst [vmem:[#allocation212_spill] sm:$0xff] %v9611_v63  ;;  %v9622_v16 = vsub.f32 %v12617_v27, %v12631_v40  ;;  %v9629_v41 = vsub.f32 %v12618_v60, %v12632_v33  ;;  %3381 = vmatprep.mubr.f32.mxu0 %v12633_v54  ;;  %4274 = vmatmul.mubr.f32.vlgmr.msra.gmra.mrb[2].mxu1 %v12625_v18  ;;  %v12637_v33 = vld [vmem:[#allocation194_spill] sm:$0xff]  ;;  %v12638_v61 = vld [vmem:[#allocation197_spill] sm:$0xff]  ;;  %v12698_v29 = vand.u32 4294901760, %v9579_v5 }
 0x23f   :  { %v9646_v11 = vsub.f32 %v12624_v17, %v11416_v22  ;;  %6651 = vmatpush1.bf16.msra.mxu1 %v9215_v46  ;;  %v12640_v18 = vld [vmem:[#allocation11_spill] sm:$0xff]  ;;  %4665 = vmatprep.mubr.f32.mxu1 %v12633_v54  ;;  %v12643_v54 = vld [vmem:[#allocation24_spill] sm:$0xff]  ;;  %v12644_v22 = vand.u32 4294901760, %v12634_v9  ;;  %v12645_v46 = vand.u32 4294901760, %v12635_v55  ;;  %v12647_v42 = vand.u32 4294901760, %v12637_v33  ;;  %v12663_v53 = vld [vmem:[#allocation62_spill] sm:$0xff] }
 0x240   :  { %6653 = vmatprep.subr.bf16.mxu1 %v9219_v1  ;;  %6271 = vmatpush1.bf16.msra.mxu0 %v9221_v34  ;;  %v12656_v37 = vld [vmem:[#allocation35_spill] sm:$0xff]  ;;  %v12668_v51 = vld [vmem:[#allocation89_spill] sm:$0xff]  ;;  %v12674_v57 = vld [vmem:[#allocation110_spill] sm:$0xff] }
 0x241   :  { %6273 = vmatprep.subr.bf16.mxu0 %v9342_v38  ;;  %v9672_v40 = vsub.f32 %v12634_v9, %v12644_v22  ;;  %v9677_v25 = vsub.f32 %v12635_v55, %v12645_v46  ;;  %v12646_v38 = vand.u32 4294901760, %v12636_v28  ;;  %v9688_v34 = vsub.f32 %v12637_v33, %v12647_v42  ;;  %v12673_v52 = vld [vmem:[#allocation113_spill] sm:$0xff]  ;;  %v12675_v27 = vld [vmem:[#allocation119_spill] sm:$0xff]  ;;  %v12686_v60 = vld [vmem:[#allocation158_spill] sm:$0xff] }
 0x242   :  { %v12648_v22 = vand.u32 4294901760, %v12638_v61  ;;  %v12649_v46 = vand.u32 4294901760, %v12639_v7  ;;  %v12682_v30 = vld [vmem:[#allocation149_spill] sm:$0xff]  ;;  %v12684_v9 = vld [vmem:[#allocation155_spill] sm:$0xff]  ;;  %v12692_v33 = vld [vmem:[#allocation192_spill] sm:$0xff] }
 0x243   :  { %v9682_v31 = vsub.f32 %v12636_v28, %v12646_v38  ;;  %6655 = vmatpush1.bf16.msra.mxu1 %v9223_v14  ;;  %v12650_v38 = vand.u32 4294901760, %v12640_v18  ;;  %v12651_v14 = vand.u32 4294901760, %v12641_v12  ;;  %v12658_v28 = vld [vmem:[#allocation48_spill] sm:$0xff]  ;;  %v12685_v17 = vld [vmem:[#allocation161_spill] sm:$0xff]  ;;  %v12687_v55 = vld [vmem:[#allocation167_spill] sm:$0xff] }
 0x244   :  { %v9693_v13 = vsub.f32 %v12638_v61, %v12648_v22  ;;  %v9698_v1 = vsub.f32 %v12639_v7, %v12649_v46  ;;  %6657 = vmatprep.subr.bf16.mxu1 %v9348_v32  ;;  %6275 = vmatpush1.bf16.msra.mxu0 %v9350_v45  ;;  %v12652_v22 = vand.u32 4294901760, %v12642_v10  ;;  %v12653_v46 = vld [vmem:[#allocation27_spill] sm:$0xff]  ;;  %v12655_v32 = vand.u32 4294901760, %v12643_v54  ;;  %v12660_v7 = vld [vmem:[#allocation57_spill] sm:$0xff] }
 0x245   :  { %v9703_v63 = vsub.f32 %v12640_v18, %v12650_v38  ;;  %v9710_v42 = vsub.f32 %v12641_v12, %v12651_v14  ;;  %6277 = vmatprep.subr.bf16.mxu0 %v9354_v8  ;;  %v12659_v38 = vld [vmem:[#allocation53_spill] sm:$0xff]  ;;  %v12693_v14 = vld [vmem:[#allocation195_spill] sm:$0xff]  ;;  %v3240_v61 = vand.u32 4294901760, %v9672_v40  ;;  %v3252_v18 = vand.u32 4294901760, %v9677_v25 }
 0x246   :  { %v9715_v39 = vsub.f32 %v12642_v10, %v12652_v22  ;;  %v9723_v45 = vsub.f32 %v12643_v54, %v12655_v32  ;;  %v12661_v22 = vld [vmem:[#allocation59_spill] sm:$0xff]  ;;  %v12662_v12 = vld [vmem:[#allocation205_spill] sm:$0xff]  ;;  %v12691_v32 = vld [vmem:[#allocation182_spill] sm:$0xff]  ;;  %v3246_v15 = vand.u32 4294901760, %v9693_v13  ;;  %v3258_v8 = vand.u32 4294901760, %v9698_v1 }
 0x247   :  { %6659 = vmatpush1.bf16.msra.mxu1 %v9352_v26  ;;  %v12657_v26 = vld [vmem:[#allocation38_spill] sm:$0xff]  ;;  %v12664_v10 = vld [vmem:[#allocation69_spill] sm:$0xff]  ;;  %v4542_v47 = vand.u32 4294901760, %v9710_v42  ;;  %v12695_v25 = vand.u32 4294901760, %v12654_v19  ;;  %v12696_v1 = vand.u32 4294901760, %v12656_v37 }
 0x248   :  { %6661 = vmatprep.subr.bf16.mxu1 %v9356_v36  ;;  %6279 = vmatpush1.bf16.msra.mxu0 %v9358_v50  ;;  %v12665_v54 = vld [vmem:[#allocation77_spill] sm:$0xff]  ;;  %v12666_v36 = vld [vmem:[#allocation74_spill] sm:$0xff]  ;;  %v12667_v50 = vld [vmem:[#allocation83_spill] sm:$0xff] }
 0x249   :  { %6281 = vmatprep.subr.bf16.mxu0 %v12662_v12  ;;  %v12676_v12 = vld [vmem:[#allocation125_spill] sm:$0xff]  ;;  %v3269_v42 = vsub.f32 %v12656_v37, %v12696_v1  ;;  %v12703_v1 = vand.u32 4294901760, %v9634_v56 }
 0x24b   :  { %6663 = vmatpush1.bf16.msra.mxu1 %v12679_v24  ;;  %v4530_v24 = vand.u32 4294901760, %v9703_v63  ;;  %v3264_v63 = vand.u32 4294901760, %v9715_v39  ;;  %v12701_v39 = vand.u32 4294901760, %v9622_v16 }
 0x24c   :  { %6665 = vmatprep.subr.bf16.mxu1 %v9471_v21  ;;  %6283 = vmatpush1.bf16.msra.mxu0 %v9477_v20  ;;  %v4524_v21 = vand.u32 4294901760, %v9682_v31  ;;  %v4536_v20 = vand.u32 4294901760, %v9688_v34  ;;  %v4559_v31 = vsub.f32 %v12654_v19, %v12695_v25  ;;  %v12702_v34 = vand.u32 4294901760, %v9629_v41 }
 0x24d   :  { %6285 = vmatprep.subr.bf16.mxu0 %v9482_v35  ;;  %v12694_v35 = vand.u32 4294901760, %v12653_v46  ;;  %v9849_v16 = vpack.c.bf16 %v4542_v47, %v4530_v24  ;;  %v11439_v24 = vand.u32 4294901760, %v12664_v10 }
 0x24e   :  { %v9835_v37 = vpack.c.bf16 %v12703_v1, %v12702_v34  ;;  %v4560_v56 = vand.u32 4294901760, %v4559_v31  ;;  %v12706_v34 = vand.u32 4294901760, %v12658_v28  ;;  %v12712_v1 = vld [vmem:[#allocation208_spill] sm:$0xff]  ;;  %v12714_v31 = vld [vmem:[#allocation105_spill] sm:$0xff] }
 0x24f   :  { %6667 = vmatpush1.bf16.msra.mxu1 %v9479_v58  ;;  %v4547_v40 = vsub.f32 %v12653_v46, %v12694_v35  ;;  %v3276_v58 = vand.u32 4294901760, %v9723_v45  ;;  %v12697_v35 = vand.u32 4294901760, %v12657_v26 }
 0x250   :  { %6669 = vmatprep.subr.bf16.mxu1 %v9484_v2  ;;  %6287 = vmatpush1.bf16.msra.mxu0 %v9486_v4  ;;  %v12699_v2 = vand.u32 4294901760, %v9589_v23  ;;  %v12700_v4 = vand.u32 4294901760, %v9617_v59  ;;  %v9843_v23 = vpack.c.bf16 %v3252_v18, %v3240_v61  ;;  %v9847_v59 = vpack.c.bf16 %v3258_v8, %v3246_v15 }
 0x251   :  { %v3281_v25 = vsub.f32 %v12657_v26, %v12697_v35  ;;  %6289 = vmatprep.subr.bf16.mxu0 %v9491_v0  ;;  %v12704_v35 = vand.u32 4294901760, %v9639_v43  ;;  %v12705_v0 = vand.u32 4294901760, %v9646_v11  ;;  %v4548_v41 = vand.u32 4294901760, %v4547_v40  ;;  %v12708_v40 = vld [vmem:[#allocation93_spill] sm:$0xff] }
 0x252   :  { %v6300_v13 = vpack.c.bf16 %v12699_v2, %v12698_v29  ;;  %v9829_v45 = vpack.c.bf16 %v12701_v39, %v12700_v4  ;;  %v9845_v29 = vpack.c.bf16 %v4536_v20, %v4524_v21  ;;  %v4553_v43 = vsub.f32 %v12658_v28, %v12706_v34  ;;  %v12711_v39 = vld [vmem:[#allocation207_spill] sm:$0xff]  ;;  %v12713_v34 = vld [vmem:[#allocation98_spill] sm:$0xff] }
 0x253   :  { %v9841_v5 = vpack.c.bf16 %v12705_v0, %v12704_v35  ;;  %6671 = vmatpush1.bf16.msra.mxu1 %v9488_v6  ;;  %v12707_v11 = vand.u32 4294901760, %v12659_v38  ;;  %v9860_v15 = vpack.c.bf16 %v3276_v58, %v3264_v63  ;;  %v3270_v61 = vand.u32 4294901760, %v3269_v42  ;;  %v12709_v63 = vld [vmem:[#allocation206_spill] sm:$0xff] }
 0x254   :  { %6673 = vmatprep.subr.bf16.mxu1 %v9493_v62  ;;  %6291 = vmatpush1.bf16.msra.mxu0 %v9495_v48  ;;  %v3282_v47 = vand.u32 4294901760, %v3281_v25  ;;  %v11445_v6 = vand.u32 4294901760, %v12660_v7  ;;  %v11441_v18 = vand.u32 4294901760, %v12661_v22  ;;  %v11440_v8 = vand.u32 4294901760, %v12663_v53  ;;  %v12710_v25 = vld [vmem:[#allocation95_spill] sm:$0xff] }
 0x255   :  { %v4565_v2 = vsub.f32 %v12659_v38, %v12707_v11  ;;  %6293 = vmatprep.subr.bf16.mxu0 %v9565_v49  ;;  %v11443_v21 = vand.u32 4294901760, %v12665_v54  ;;  %v11442_v62 = vand.u32 4294901760, %v12666_v36  ;;  %v11444_v48 = vand.u32 4294901760, %v12667_v50 }
 0x256   :  { %v11446_v20 = vand.u32 4294901760, %v12668_v51  ;;  %v9873_v58 = vpack.c.bf16 %v4560_v56, %v4548_v41  ;;  %v4554_v49 = vand.u32 4294901760, %v4553_v43  ;;  %v11447_v4 = vand.u32 4294901760, %v12710_v25  ;;  %v12715_v41 = vld [vmem:[#allocation204_spill] sm:$0xff] }
 0x257   :  { %6675 = vmatpush1.bf16.msra.mxu1 %v12709_v63  ;;  %v4566_v42 = vand.u32 4294901760, %v4565_v2  ;;  %v9878_v35 = vpack.c.bf16 %v3282_v47, %v3270_v61  ;;  %v3287_v0 = vsub.f32 %v12660_v7, %v11445_v6  ;;  %v11452_v11 = vand.u32 4294901760, %v12713_v34  ;;  %v12718_v6 = vld [vmem:[#allocation210_spill] sm:$0xff]  ;;  %v12719_v63 = vld [vmem:[#allocation211_spill] sm:$0xff] }
 0x258   :  { %6677 = vmatprep.subr.bf16.mxu1 %v12711_v39  ;;  %6295 = vmatpush1.bf16.msra.mxu0 %v12712_v1  ;;  %v3299_v56 = vsub.f32 %v12661_v22, %v11441_v18  ;;  %v4571_v43 = vsub.f32 %v12663_v53, %v11440_v8  ;;  %v4583_v2 = vsub.f32 %v12664_v10, %v11439_v24  ;;  %v12717_v8 = vld [vmem:[#allocation209_spill] sm:$0xff] }
 0x259   :  { %6297 = vmatprep.subr.bf16.mxu0 %v12715_v41  ;;  %v3293_v61 = vsub.f32 %v12665_v54, %v11443_v21  ;;  %v3305_v47 = vsub.f32 %v12666_v36, %v11442_v62  ;;  %v4577_v39 = vsub.f32 %v12667_v50, %v11444_v48  ;;  %v4589_v1 = vsub.f32 %v12668_v51, %v11446_v20 }
 0x25a   :  { %v12716_v41 = vand.u32 4294901760, %v12708_v40  ;;  %v9911_v18 = vpack.c.bf16 %v4566_v42, %v4554_v49  ;;  %v3323_v62 = vsub.f32 %v12710_v25, %v11447_v4  ;;  %v3288_v20 = vand.u32 4294901760, %v3287_v0  ;;  %v12721_v0 = vld [vmem:[#allocation212_spill] sm:$0xff] }
 0x25b   :  { %6679 = vmatpush1.bf16.msra.mxu1 %v12717_v8  ;;  %v12720_v8 = vand.u32 4294901760, %v12714_v31  ;;  %v3300_v4 = vand.u32 4294901760, %v3299_v56  ;;  %v4572_v21 = vand.u32 4294901760, %v4571_v43  ;;  %v4584_v50 = vand.u32 4294901760, %v4583_v2  ;;  %v12725_v2 = vld [vmem:[#allocation129_spill] sm:$0xff] }
 0x25c   :  { %v3311_v24 = vsub.f32 %v12708_v40, %v12716_v41  ;;  %6681 = vmatprep.subr.bf16.mxu1 %v12718_v6  ;;  %6299 = vmatpush1.bf16.msra.mxu0 %v12719_v63  ;;  %v4595_v41 = vsub.f32 %v12713_v34, %v11452_v11  ;;  %v3294_v48 = vand.u32 4294901760, %v3293_v61  ;;  %v3306_v51 = vand.u32 4294901760, %v3305_v47 }
 0x25d   :  { %v4607_v49 = vsub.f32 %v12714_v31, %v12720_v8  ;;  %6301 = vmatprep.subr.bf16.mxu0 %v6300_v13  ;;  %v4578_v6 = vand.u32 4294901760, %v4577_v39  ;;  %v4590_v40 = vand.u32 4294901760, %v4589_v1  ;;  %v3324_v25 = vand.u32 4294901760, %v3323_v62  ;;  %v12726_v39 = vld [vmem:[#allocation131_spill] sm:$0xff]  ;;  %v12728_v13 = vld [vmem:[#allocation141_spill] sm:$0xff] }
 0x25e   :  { %v3312_v63 = vand.u32 4294901760, %v3311_v24  ;;  %v12722_v11 = vand.u32 4294901760, %v12673_v52  ;;  %v12723_v8 = vand.u32 4294901760, %v12674_v57  ;;  %v4596_v56 = vand.u32 4294901760, %v4595_v41 }
 0x25f   :  { %6683 = vmatpush1.bf16.msra.mxu1 %v12721_v0  ;;  %v4608_v43 = vand.u32 4294901760, %v4607_v49  ;;  %v12724_v24 = vand.u32 4294901760, %v12675_v27  ;;  %v6696_v47 = vpack.c.bf16 %v4584_v50, %v4572_v21  ;;  %v11470_v1 = vand.u32 4294901760, %v12726_v39  ;;  %v12727_v0 = vld [vmem:[#allocation134_spill] sm:$0xff] }
 0x260   :  { %v3317_v34 = vsub.f32 %v12673_v52, %v12722_v11  ;;  %v3329_v42 = vsub.f32 %v12674_v57, %v12723_v8  ;;  %6685 = vmatprep.subr.bf16.mxu1 %v9829_v45  ;;  %6303 = vmatpush1.bf16.msra.mxu0 %v9835_v37  ;;  %v6312_v11 = vpack.c.bf16 %v3300_v4, %v3288_v20  ;;  %v11464_v8 = vand.u32 4294901760, %v12727_v0  ;;  %v12729_v49 = vld [vmem:[#allocation146_spill] sm:$0xff] }
 0x261   :  { %v9940_v62 = vsub.f32 %v12675_v27, %v12724_v24  ;;  %6305 = vmatprep.subr.bf16.mxu0 %v9843_v23  ;;  %v6314_v45 = vpack.c.bf16 %v3306_v51, %v3294_v48  ;;  %v11458_v37 = vand.u32 4294901760, %v12728_v13  ;;  %v11456_v41 = vand.u32 4294901760, %v12682_v30 }
 0x262   :  { %v11457_v52 = vand.u32 4294901760, %v12729_v49  ;;  %v6698_v24 = vpack.c.bf16 %v4590_v40, %v4578_v6  ;;  %v3318_v27 = vand.u32 4294901760, %v3317_v34  ;;  %v3330_v61 = vand.u32 4294901760, %v3329_v42 }
 0x263   :  { %6687 = vmatpush1.bf16.msra.mxu1 %v9841_v5  ;;  %v12730_v23 = vand.u32 4294901760, %v12676_v12  ;;  %v6316_v51 = vpack.c.bf16 %v3324_v25, %v3312_v63  ;;  %v6700_v21 = vpack.c.bf16 %v4608_v43, %v4596_v56  ;;  %v4602_v48 = vand.u32 4294901760, %v9940_v62 }
 0x264   :  { %6689 = vmatprep.subr.bf16.mxu1 %v9845_v29  ;;  %6307 = vmatpush1.bf16.msra.mxu0 %v9847_v59  ;;  %v12731_v20 = vand.u32 4294901760, %v12725_v2  ;;  %v3347_v5 = vsub.f32 %v12726_v39, %v11470_v1  ;;  %v4619_v29 = vsub.f32 %v12727_v0, %v11464_v8  ;;  %v11463_v59 = vand.u32 4294901760, %v12686_v60 }
 0x265   :  { %v4613_v50 = vsub.f32 %v12676_v12, %v12730_v23  ;;  %6309 = vmatprep.subr.bf16.mxu0 %v9860_v15  ;;  %v11462_v40 = vand.u32 4294901760, %v12687_v55  ;;  %v4631_v25 = vsub.f32 %v12728_v13, %v11458_v37  ;;  %v3341_v15 = vsub.f32 %v12682_v30, %v11456_v41  ;;  %v12732_v23 = vld [vmem:[#allocation177_spill] sm:$0xff] }
 0x266   :  { %v3335_v4 = vsub.f32 %v12725_v2, %v12731_v20  ;;  %v3353_v34 = vsub.f32 %v12729_v49, %v11457_v52  ;;  %v11461_v42 = vand.u32 4294901760, %v12684_v9  ;;  %v6318_v6 = vpack.c.bf16 %v3330_v61, %v3318_v27 }
 0x267   :  { %6691 = vmatpush1.bf16.msra.mxu1 %v9849_v16  ;;  %v4614_v63 = vand.u32 4294901760, %v4613_v50  ;;  %v11460_v56 = vand.u32 4294901760, %v12685_v17  ;;  %v11459_v43 = vand.u32 4294901760, %v12688_v3  ;;  %v11465_v20 = vand.u32 4294901760, %v12732_v23 }
 0x268   :  { %6693 = vmatprep.subr.bf16.mxu1 %v9873_v58  ;;  %6311 = vmatpush1.bf16.msra.mxu0 %v9878_v35  ;;  %v3336_v62 = vand.u32 4294901760, %v3335_v4  ;;  %v11466_v41 = vand.u32 4294901760, %v12690_v44  ;;  %v11469_v52 = vand.u32 4294901760, %v12691_v32  ;;  %v3348_v37 = vand.u32 4294901760, %v3347_v5 }
 0x269   :  { %6313 = vmatprep.subr.bf16.mxu0 %v6312_v11  ;;  %v4620_v16 = vand.u32 4294901760, %v4619_v29  ;;  %v3359_v27 = vsub.f32 %v12686_v60, %v11463_v59  ;;  %v3371_v58 = vsub.f32 %v12687_v55, %v11462_v40  ;;  %v4632_v61 = vand.u32 4294901760, %v4631_v25 }
 0x26a   :  { %v3342_v35 = vand.u32 4294901760, %v3341_v15  ;;  %v3354_v50 = vand.u32 4294901760, %v3353_v34  ;;  %v4625_v4 = vsub.f32 %v12684_v9, %v11461_v42  ;;  %v4637_v11 = vsub.f32 %v12685_v17, %v11460_v56 }
 0x26b   :  { %6695 = vmatpush1.bf16.msra.mxu1 %v9911_v18  ;;  %v4643_v5 = vsub.f32 %v12688_v3, %v11459_v43  ;;  %v11468_v29 = vand.u32 4294901760, %v12692_v33  ;;  %v11467_v25 = vand.u32 4294901760, %v12693_v14  ;;  %v4655_v15 = vsub.f32 %v12732_v23, %v11465_v20 }
 0x26c   :  { %6697 = vmatprep.subr.bf16.mxu1 %v6696_v47  ;;  %6315 = vmatpush1.bf16.msra.mxu0 %v6314_v45  ;;  %v3365_v18 = vsub.f32 %v12690_v44, %v11466_v41  ;;  %v3377_v34 = vsub.f32 %v12691_v32, %v11469_v52  ;;  %v6320_v43 = vpack.c.bf16 %v3348_v37, %v3336_v62  ;;  %v3360_v56 = vand.u32 4294901760, %v3359_v27  ;;  %v12758_v52 = vld [vmem:[#allocation148_spill] sm:$0xff] }
 0x26d   :  { %6317 = vmatprep.subr.bf16.mxu0 %v6316_v51  ;;  %v3372_v42 = vand.u32 4294901760, %v3371_v58  ;;  %v6702_v40 = vpack.c.bf16 %v4614_v63, %v4602_v48  ;;  %v6704_v59 = vpack.c.bf16 %v4632_v61, %v4620_v16  ;;  %v6322_v47 = vpack.c.bf16 %v3354_v50, %v3342_v35  ;;  %v12733_v35 = vld [vmem:[#allocation108_spill] sm:$0xff]  ;;  %v12734_v50 = vld [vmem:[#allocation109_spill] sm:$0xff] }
 0x26e   :  { %v4626_v45 = vand.u32 4294901760, %v4625_v4  ;;  %v4638_v8 = vand.u32 4294901760, %v4637_v11  ;;  %v4649_v20 = vsub.f32 %v12692_v33, %v11468_v29  ;;  %v4661_v41 = vsub.f32 %v12693_v14, %v11467_v25  ;;  %v12736_v11 = vld [vmem:[#allocation115_spill] sm:$0xff]  ;;  %v12757_v29 = vld [vmem:[#allocation144_spill] sm:$0xff] }
 0x26f   :  { %6699 = vmatpush1.bf16.msra.mxu1 %v6698_v24  ;;  %v4644_v51 = vand.u32 4294901760, %v4643_v5  ;;  %v4656_v37 = vand.u32 4294901760, %v4655_v15  ;;  %v3366_v62 = vand.u32 4294901760, %v3365_v18  ;;  %v3378_v27 = vand.u32 4294901760, %v3377_v34  ;;  %v12742_v5 = vld [vmem:[#allocation121_spill] sm:$0xff]  ;;  %v12743_v15 = vld [vmem:[#allocation123_spill] sm:$0xff] }
 0x270   :  { %6701 = vmatprep.subr.bf16.mxu1 %v6700_v21  ;;  %6319 = vmatpush1.bf16.msra.mxu0 %v6318_v6  ;;  %v6324_v48 = vpack.c.bf16 %v3372_v42, %v3360_v56  ;;  %v6706_v24 = vpack.c.bf16 %v4638_v8, %v4626_v45  ;;  %v4650_v63 = vand.u32 4294901760, %v4649_v20  ;;  %v4662_v16 = vand.u32 4294901760, %v4661_v41  ;;  %v12735_v6 = vld [vmem:[#allocation114_spill] sm:$0xff]  ;;  %v12737_v42 = vld [vmem:[#allocation116_spill] sm:$0xff]  ;;  %v12741_v20 = vld [vmem:[#allocation199_spill] sm:$0xff] }
 0x271   :  { %6321 = vmatprep.subr.bf16.mxu0 %v6320_v43  ;;  %v6708_v58 = vpack.c.bf16 %v4656_v37, %v4644_v51  ;;  %v6326_v61 = vpack.c.bf16 %v3378_v27, %v3366_v62  ;;  %v6328_v4 = vpack.c.bf16 %v12734_v50, %v12733_v35  ;;  %v6712_v43 = vpack.c.bf16 %v12736_v11, %v12735_v6  ;;  %v12739_v41 = vld [vmem:[#allocation126_spill] sm:$0xff]  ;;  %v12744_v34 = vld [vmem:[#allocation136_spill] sm:$0xff] }
 0x272   :  { %v6710_v21 = vpack.c.bf16 %v4662_v16, %v4650_v63  ;;  %v6714_v18 = vpack.c.bf16 %v12743_v15, %v12742_v5  ;;  %v12746_v51 = vld [vmem:[#allocation152_spill] sm:$0xff]  ;;  %v12747_v37 = vld [vmem:[#allocation154_spill] sm:$0xff]  ;;  %v6340_v1 = vpack.c.bf16 %v12758_v52, %v12757_v29 }
 0x273   :  { %6703 = vmatpush1.bf16.msra.mxu1 %v6702_v40  ;;  %v12738_v40 = vld [vmem:[#allocation118_spill] sm:$0xff]  ;;  %v6334_v62 = vpack.c.bf16 %v12747_v37, %v12746_v51 }
 0x274   :  { %6705 = vmatprep.subr.bf16.mxu1 %v6704_v59  ;;  %6323 = vmatpush1.bf16.msra.mxu0 %v6322_v47  ;;  %v6330_v8 = vpack.c.bf16 %v12738_v40, %v12737_v42  ;;  %v12740_v59 = vld [vmem:[#allocation128_spill] sm:$0xff]  ;;  %v12745_v47 = vld [vmem:[#allocation138_spill] sm:$0xff] }
 0x275   :  { %6325 = vmatprep.subr.bf16.mxu0 %v6324_v48  ;;  %v6332_v56 = vpack.c.bf16 %v12740_v59, %v12739_v41  ;;  %v6716_v45 = vpack.c.bf16 %v12745_v47, %v12744_v34  ;;  %v12748_v27 = vld [vmem:[#allocation94_spill] sm:$0xff]  ;;  %v12749_v48 = vld [vmem:[#allocation96_spill] sm:$0xff] }
 0x276   :  { %v12750_v63 = vld [vmem:[#allocation198_spill] sm:$0xff] }
 0x277   :  { %6707 = vmatpush1.bf16.msra.mxu1 %v6706_v24  ;;  %v6336_v24 = vpack.c.bf16 %v12749_v48, %v12748_v27  ;;  %v12751_v16 = vld [vmem:[#allocation90_spill] sm:$0xff] }
 0x278   :  { %6709 = vmatprep.subr.bf16.mxu1 %v6708_v58  ;;  %6327 = vmatpush1.bf16.msra.mxu0 %v6326_v61  ;;  %v12752_v58 = vld [vmem:[#allocation87_spill] sm:$0xff] }
 0x279   :  { %6329 = vmatprep.subr.bf16.mxu0 %v6328_v4  ;;  %v6718_v61 = vpack.c.bf16 %v12752_v58, %v12751_v16  ;;  %v12753_v4 = vld [vmem:[#allocation102_spill] sm:$0xff]  ;;  %v12761_v58 = vld [vmem:[#allocation159_spill] sm:$0xff] }
 0x27a   :  { %v12764_v16 = vld [vmem:[#allocation10_spill] sm:$0xff] }
 0x27b   :  { %6711 = vmatpush1.bf16.msra.mxu1 %v6710_v21  ;;  %3383 = vmatmul.mubr.f32.vlgmr.msra.gmra.mrb[2].mxu0 %v12741_v20  ;;  %v12754_v21 = vld [vmem:[#allocation103_spill] sm:$0xff] }
 0x27c   :  { %6713 = vmatprep.subr.bf16.mxu1 %v6712_v43  ;;  %6331 = vmatpush1.bf16.msra.mxu0 %v6330_v8  ;;  %v6720_v43 = vpack.c.bf16 %v12754_v21, %v12753_v4  ;;  %v12755_v8 = vld [vmem:[#allocation100_spill] sm:$0xff]  ;;  %v12765_v21 = vld [vmem:[#allocation15_spill] sm:$0xff] }
 0x27d   :  { %6333 = vmatprep.subr.bf16.mxu0 %v6332_v56  ;;  %3583 = vmatprep.mubr.f32.mxu0 %v12750_v63  ;;  %v12756_v56 = vld [vmem:[#allocation104_spill] sm:$0xff] }
 0x27e   :  { %4667 = vmatmul.mubr.f32.vlgmr.msra.gmra.mrb[2].mxu1 %v12741_v20  ;;  %v6338_v25 = vpack.c.bf16 %v12756_v56, %v12755_v8  ;;  %v12759_v20 = vld [vmem:[#allocation106_spill] sm:$0xff]  ;;  %v12766_v4 = vld [vmem:[#allocation16_spill] sm:$0xff]  ;;  %v12768_v8 = vld [vmem:[#allocation17_spill] sm:$0xff] }
 0x27f   :  { %6715 = vmatpush1.bf16.msra.mxu1 %v6714_v18  ;;  %4867 = vmatprep.mubr.f32.mxu1 %v12750_v63  ;;  %v12760_v18 = vld [vmem:[#allocation142_spill] sm:$0xff]  ;;  %v6344_v56 = vpack.c.bf16 %v12766_v4, %v12765_v21 }
 0x280   :  { %6717 = vmatprep.subr.bf16.mxu1 %v6716_v45  ;;  %6335 = vmatpush1.bf16.msra.mxu0 %v6334_v62  ;;  %v6722_v48 = vpack.c.bf16 %v12760_v18, %v12759_v20  ;;  %v12762_v63 = vld [vmem:[#allocation6_spill] sm:$0xff]  ;;  %v12763_v62 = vld [vmem:[#allocation8_spill] sm:$0xff]  ;;  %v12770_v18 = vld [vmem:[#allocation23_spill] sm:$0xff] }
 0x281   :  { %6337 = vmatprep.subr.bf16.mxu0 %v6336_v24  ;;  %v6724_v45 = vpack.c.bf16 %v12762_v63, %v12761_v58  ;;  %v6342_v27 = vpack.c.bf16 %v12764_v16, %v12763_v62  ;;  %v12767_v24 = vld [vmem:[#allocation13_spill] sm:$0xff]  ;;  %v12772_v20 = vld [vmem:[#allocation31_spill] sm:$0xff]  ;;  %v12773_v63 = vld [vmem:[#allocation36_spill] sm:$0xff] }
 0x282   :  { %v6726_v52 = vpack.c.bf16 %v12768_v8, %v12767_v24  ;;  %v12774_v58 = vld [vmem:[#allocation37_spill] sm:$0xff]  ;;  %v12778_v8 = vld [vmem:[#allocation39_spill] sm:$0xff]  ;;  %v12780_v24 = vld [vmem:[#allocation46_spill] sm:$0xff] }
 0x283   :  { %6719 = vmatpush1.bf16.msra.mxu1 %v6718_v61  ;;  %v12769_v61 = vld [vmem:[#allocation22_spill] sm:$0xff]  ;;  %v6348_v16 = vpack.c.bf16 %v12774_v58, %v12773_v63  ;;  %v12776_v62 = vld [vmem:[#allocation33_spill] sm:$0xff] }
 0x284   :  { %6721 = vmatprep.subr.bf16.mxu1 %v6720_v43  ;;  %6339 = vmatpush1.bf16.msra.mxu0 %v6338_v25  ;;  %v6728_v43 = vpack.c.bf16 %v12770_v18, %v12769_v61  ;;  %v12771_v25 = vld [vmem:[#allocation30_spill] sm:$0xff]  ;;  %v12781_v18 = vld [vmem:[#allocation51_spill] sm:$0xff]  ;;  %v12782_v61 = vld [vmem:[#allocation52_spill] sm:$0xff] }
 0x285   :  { %6341 = vmatprep.subr.bf16.mxu0 %v6340_v1  ;;  %v6346_v29 = vpack.c.bf16 %v12772_v20, %v12771_v25  ;;  %v12775_v1 = vld [vmem:[#allocation28_spill] sm:$0xff]  ;;  %v6352_v20 = vpack.c.bf16 %v12782_v61, %v12781_v18  ;;  %v12784_v25 = vld [vmem:[#allocation54_spill] sm:$0xff] }
 0x286   :  { %v6730_v4 = vpack.c.bf16 %v12776_v62, %v12775_v1  ;;  %v12786_v62 = vld [vmem:[#allocation60_spill] sm:$0xff]  ;;  %v12788_v1 = vld [vmem:[#allocation67_spill] sm:$0xff] }
 0x287   :  { %6723 = vmatpush1.bf16.msra.mxu1 %v6722_v48  ;;  %v12777_v48 = vld [vmem:[#allocation43_spill] sm:$0xff] }
 0x288   :  { %6725 = vmatprep.subr.bf16.mxu1 %v6724_v45  ;;  %6343 = vmatpush1.bf16.msra.mxu0 %v6342_v27  ;;  %v6732_v45 = vpack.c.bf16 %v12778_v8, %v12777_v48  ;;  %v12779_v27 = vld [vmem:[#allocation45_spill] sm:$0xff]  ;;  %v12789_v8 = vld [vmem:[#allocation70_spill] sm:$0xff] }
 0x289   :  { %6345 = vmatprep.subr.bf16.mxu0 %v6344_v56  ;;  %v6350_v21 = vpack.c.bf16 %v12780_v24, %v12779_v27  ;;  %v12783_v56 = vld [vmem:[#allocation49_spill] sm:$0xff]  ;;  %v12792_v27 = vld [vmem:[#allocation68_spill] sm:$0xff] }
 0x28a   :  { %v6734_v58 = vpack.c.bf16 %v12784_v25, %v12783_v56  ;;  %v12790_v48 = vld [vmem:[#allocation73_spill] sm:$0xff]  ;;  %v12794_v25 = vld [vmem:[#allocation75_spill] sm:$0xff]  ;;  %v12796_v56 = vld [vmem:[#allocation82_spill] sm:$0xff] }
 0x28b   :  { %6727 = vmatpush1.bf16.msra.mxu1 %v6726_v52  ;;  %v12785_v52 = vld [vmem:[#allocation58_spill] sm:$0xff]  ;;  %v6356_v24 = vpack.c.bf16 %v12790_v48, %v12789_v8 }
 0x28c   :  { %6729 = vmatprep.subr.bf16.mxu1 %v6728_v43  ;;  %6347 = vmatpush1.bf16.msra.mxu0 %v6346_v29  ;;  %v6736_v43 = vpack.c.bf16 %v12786_v62, %v12785_v52  ;;  %v12787_v29 = vld [vmem:[#allocation66_spill] sm:$0xff]  ;;  %v12797_v62 = vld [vmem:[#allocation88_spill] sm:$0xff] }
 0x28d   :  { %6349 = vmatprep.subr.bf16.mxu0 %v6348_v16  ;;  %v6354_v63 = vpack.c.bf16 %v12788_v1, %v12787_v29  ;;  %v12791_v16 = vld [vmem:[#allocation64_spill] sm:$0xff]  ;;  %v12798_v52 = vld [vmem:[#allocation130_spill] sm:$0xff]  ;;  %v12800_v29 = vld [vmem:[#allocation91_spill] sm:$0xff] }
 0x28e   :  { %v6738_v61 = vpack.c.bf16 %v12792_v27, %v12791_v16  ;;  %v6360_v1 = vpack.c.bf16 %v12798_v52, %v12797_v62  ;;  %v12802_v27 = vld [vmem:[#allocation145_spill] sm:$0xff]  ;;  %v12804_v16 = vld [vmem:[#allocation162_spill] sm:$0xff]  ;;  %v12809_v52 = vld [vmem:[#allocation164_spill] sm:$0xff] }
 0x28f   :  { %6731 = vmatpush1.bf16.msra.mxu1 %v6730_v4  ;;  %v12793_v4 = vld [vmem:[#allocation79_spill] sm:$0xff] }
 0x290   :  { %6733 = vmatprep.subr.bf16.mxu1 %v6732_v45  ;;  %6351 = vmatpush1.bf16.msra.mxu0 %v6350_v21  ;;  %v6740_v45 = vpack.c.bf16 %v12794_v25, %v12793_v4  ;;  %v12795_v21 = vld [vmem:[#allocation80_spill] sm:$0xff] }
 0x291   :  { %6353 = vmatprep.subr.bf16.mxu0 %v6352_v20  ;;  %v6358_v18 = vpack.c.bf16 %v12796_v56, %v12795_v21  ;;  %v12799_v20 = vld [vmem:[#allocation85_spill] sm:$0xff] }
 0x292   :  { %v6742_v48 = vpack.c.bf16 %v12800_v29, %v12799_v20  ;;  %v12806_v56 = vld [vmem:[#allocation169_spill] sm:$0xff] }
 0x293   :  { %6735 = vmatpush1.bf16.msra.mxu1 %v6734_v58  ;;  %v12801_v58 = vld [vmem:[#allocation139_spill] sm:$0xff] }
 0x294   :  { %6737 = vmatprep.subr.bf16.mxu1 %v6736_v43  ;;  %6355 = vmatpush1.bf16.msra.mxu0 %v6354_v63  ;;  %v6744_v43 = vpack.c.bf16 %v12802_v27, %v12801_v58  ;;  %v12803_v63 = vld [vmem:[#allocation160_spill] sm:$0xff]  ;;  %v12815_v58 = vld [vmem:[#allocation178_spill] sm:$0xff] }
 0x295   :  { %6357 = vmatprep.subr.bf16.mxu0 %v6356_v24  ;;  %v6362_v8 = vpack.c.bf16 %v12804_v16, %v12803_v63  ;;  %v12805_v24 = vld [vmem:[#allocation171_spill] sm:$0xff]  ;;  %v12814_v27 = vld [vmem:[#allocation180_spill] sm:$0xff] }
 0x296   :  { %v12807_v21 = vpack.c.bf16 %v12805_v24, %v12806_v56  ;;  %v12816_v20 = vpack.c.bf16 %v12814_v27, %v12815_v58  ;;  %v12821_v16 = vld [vmem:[#allocation183_spill] sm:$0xff]  ;;  %v12824_v56 = vld [vmem:[#allocation193_spill] sm:$0xff] }
 0x297   :  { %6739 = vmatpush1.bf16.msra.mxu1 %v6738_v61  ;;  %v12808_v61 = vld [vmem:[#allocation166_spill] sm:$0xff]  ;;  %v12833_v58 = vld [vmem:[#allocation11_spill] sm:$0xff] }
 0x298   :  { %6741 = vmatprep.subr.bf16.mxu1 %v6740_v45  ;;  %6359 = vmatpush1.bf16.msra.mxu0 %v6358_v18  ;;  %v12810_v62 = vpack.c.bf16 %v12808_v61, %v12809_v52  ;;  %v12811_v45 = vld [vmem:[#allocation175_spill] sm:$0xff]  ;;  %v12812_v18 = vld [vmem:[#allocation174_spill] sm:$0xff]  ;;  %v12827_v52 = vld [vmem:[#allocation197_spill] sm:$0xff] }
 0x299   :  { %6361 = vmatprep.subr.bf16.mxu0 %v6360_v1  ;;  %v12813_v29 = vpack.c.bf16 %v12811_v45, %v12812_v18  ;;  %v12817_v1 = vld [vmem:[#allocation188_spill] sm:$0xff] }
 0x29a   :  { %v12830_v18 = vld [vmem:[#allocation20_spill] sm:$0xff] }
 0x29b   :  { %6743 = vmatpush1.bf16.msra.mxu1 %v6742_v48  ;;  %v12818_v48 = vld [vmem:[#allocation187_spill] sm:$0xff] }
 0x29c   :  { %6745 = vmatprep.subr.bf16.mxu1 %v6744_v43  ;;  %6363 = vmatpush1.bf16.msra.mxu0 %v6362_v8  ;;  %v12819_v43 = vpack.c.bf16 %v12817_v1, %v12818_v48  ;;  %v12820_v8 = vld [vmem:[#allocation184_spill] sm:$0xff] }
 0x29d   :  { %6365 = vmatprep.subr.bf16.mxu0 %v12807_v21  ;;  %v12822_v24 = vpack.c.bf16 %v12820_v8, %v12821_v16  ;;  %v12823_v21 = vld [vmem:[#allocation194_spill] sm:$0xff] }
 0x29e   :  { %v12825_v61 = vpack.c.bf16 %v12823_v21, %v12824_v56 }
 0x29f   :  { %6747 = vmatpush1.bf16.msra.mxu1 %v12810_v62  ;;  %v12826_v62 = vld [vmem:[#allocation5_spill] sm:$0xff] }
 0x2a0   :  { %6749 = vmatprep.subr.bf16.mxu1 %v12813_v29  ;;  %6367 = vmatpush1.bf16.msra.mxu0 %v12816_v20  ;;  %v12828_v45 = vpack.c.bf16 %v12826_v62, %v12827_v52  ;;  %v12829_v29 = vld [vmem:[#allocation24_spill] sm:$0xff]  ;;  %v12832_v20 = vld [vmem:[#allocation18_spill] sm:$0xff] }
 0x2a1   :  { %6369 = vmatprep.subr.bf16.mxu0 %v12819_v43  ;;  %v12831_v27 = vpack.c.bf16 %v12829_v29, %v12830_v18  ;;  %v12834_v1 = vpack.c.bf16 %v12832_v20, %v12833_v58  ;;  %v12835_v43 = vpack.c.bf16 %v12654_v19, %v12653_v46  ;;  %v12843_v19 = vld [vmem:[#allocation93_spill] sm:$0xff] }
 0x2a3   :  { %6751 = vmatpush1.bf16.msra.mxu1 %v12822_v24  ;;  %v12836_v24 = vld [vmem:[#allocation35_spill] sm:$0xff] }
 0x2a4   :  { %6753 = vmatprep.subr.bf16.mxu1 %v12825_v61  ;;  %6371 = vmatpush1.bf16.msra.mxu0 %v12828_v45  ;;  %v12837_v21 = vpack.c.bf16 %v12657_v26, %v12836_v24  ;;  %v12838_v61 = vpack.c.bf16 %v12661_v22, %v12660_v7  ;;  %v12839_v45 = vpack.c.bf16 %v12659_v38, %v12658_v28  ;;  %v12846_v24 = vld [vmem:[#allocation83_spill] sm:$0xff] }
 0x2a5   :  { %6373 = vmatprep.subr.bf16.mxu0 %v12831_v27  ;;  %v12840_v27 = vpack.c.bf16 %v12664_v10, %v12663_v53 }
 0x2a7   :  { %6755 = vmatpush1.bf16.msra.mxu1 %v12834_v1  ;;  %v12841_v1 = vpack.c.bf16 %v12666_v36, %v12665_v54 }
 0x2a8   :  { %6757 = vmatprep.subr.bf16.mxu1 %v12835_v43  ;;  %6375 = vmatpush1.bf16.msra.mxu0 %v12837_v21  ;;  %v12842_v43 = vld [vmem:[#allocation95_spill] sm:$0xff]  ;;  %v12845_v21 = vld [vmem:[#allocation89_spill] sm:$0xff] }
 0x2a9   :  { %6377 = vmatprep.subr.bf16.mxu0 %v12838_v61  ;;  %v12844_v26 = vpack.c.bf16 %v12842_v43, %v12843_v19  ;;  %v12847_v22 = vpack.c.bf16 %v12845_v21, %v12846_v24  ;;  %v12848_v61 = vld [vmem:[#allocation98_spill] sm:$0xff] }
 0x2aa   :  { %v12849_v38 = vpack.c.bf16 %v12714_v31, %v12848_v61 }
 0x2ab   :  { %6759 = vmatpush1.bf16.msra.mxu1 %v12839_v45  ;;  %v12850_v45 = vld [vmem:[#allocation113_spill] sm:$0xff] }
 0x2ac   :  { %6761 = vmatprep.subr.bf16.mxu1 %v12840_v27  ;;  %6379 = vmatpush1.bf16.msra.mxu0 %v12841_v1  ;;  %v12851_v10 = vpack.c.bf16 %v12674_v57, %v12850_v45  ;;  %v12852_v27 = vpack.c.bf16 %v12726_v39, %v12725_v2  ;;  %v12853_v1 = vld [vmem:[#allocation119_spill] sm:$0xff] }
 0x2ad   :  { %6381 = vmatprep.subr.bf16.mxu0 %v12844_v26  ;;  %v12854_v43 = vpack.c.bf16 %v12676_v12, %v12853_v1  ;;  %v12855_v26 = vpack.c.bf16 %v12728_v13, %v12727_v0 }
 0x2af   :  { %6763 = vmatpush1.bf16.msra.mxu1 %v12847_v22  ;;  %v12856_v22 = vpack.c.bf16 %v12729_v49, %v12682_v30 }
 0x2b0   :  { %6765 = vmatprep.subr.bf16.mxu1 %v12849_v38  ;;  %6383 = vmatpush1.bf16.msra.mxu0 %v12851_v10  ;;  %v12857_v38 = vpack.c.bf16 %v12687_v55, %v12686_v60  ;;  %v12858_v10 = vpack.c.bf16 %v12685_v17, %v12684_v9  ;;  %v12863_v55 = vld [vmem:[#allocation201_spill] sm:$0xff]  ;;  %v12865_v17 = vld [vmem:[#allocation112_spill] sm:$0xff] }
 0x2b1   :  { %6385 = vmatprep.subr.bf16.mxu0 %v12852_v27  ;;  %v12859_v27 = vpack.c.bf16 %v12732_v23, %v12688_v3  ;;  %v12867_v23 = vld [vmem:[#allocation200_spill] sm:$0xff] }
 0x2b3   :  { %6767 = vmatpush1.bf16.msra.mxu1 %v12854_v43  ;;  %v12860_v43 = vpack.c.bf16 %v12691_v32, %v12690_v44 }
 0x2b4   :  { %6769 = vmatprep.subr.bf16.mxu1 %v12855_v26  ;;  %6387 = vmatpush1.bf16.msra.mxu0 %v12856_v22  ;;  %v12861_v26 = vld [vmem:[#allocation157_spill] sm:$0xff]  ;;  %v12862_v22 = vpack.c.bf16 %v12693_v14, %v12692_v33  ;;  %v12872_v14 = vld [vmem:[#allocation156_spill] sm:$0xff]  ;;  %v12876_v33 = vld [vmem:[#allocation135_spill] sm:$0xff] }
 0x2b5   :  { %6389 = vmatprep.subr.bf16.mxu0 %v12857_v38  ;;  %v12864_v38 = vld [vmem:[#allocation111_spill] sm:$0xff] }
 0x2b7   :  { %6771 = vmatpush1.bf16.msra.mxu1 %v12858_v10  ;;  %v12866_v10 = vld [vmem:[#allocation127_spill] sm:$0xff] }
 0x2b8   :  { %6773 = vmatprep.subr.bf16.mxu1 %v12859_v27  ;;  %6391 = vmatpush1.bf16.msra.mxu0 %v12860_v43  ;;  %v12868_v27 = vld [vmem:[#allocation120_spill] sm:$0xff] }
 0x2b9   :  { %6393 = vmatprep.subr.bf16.mxu0 %v12861_v26  ;;  %v12869_v43 = vld [vmem:[#allocation132_spill] sm:$0xff]  ;;  %v12870_v26 = vld [vmem:[#allocation150_spill] sm:$0xff] }
 0x2bb   :  { %6775 = vmatpush1.bf16.msra.mxu1 %v12862_v22  ;;  %3586 = vmatmul.mubr.f32.vlgmr.msra.gmra.mrb[2].mxu0 %v12863_v55  ;;  %v12871_v22 = vld [vmem:[#allocation92_spill] sm:$0xff] }
 0x2bc   :  { %6777 = vmatprep.subr.bf16.mxu1 %v12864_v38  ;;  %6395 = vmatpush1.bf16.msra.mxu0 %v12865_v17  ;;  %v12873_v38 = vld [vmem:[#allocation97_spill] sm:$0xff]  ;;  %v12874_v17 = vld [vmem:[#allocation99_spill] sm:$0xff] }
 0x2bd   :  { %6397 = vmatprep.subr.bf16.mxu0 %v12866_v10  ;;  %3723 = vmatprep.mubr.f32.mxu0 %v12867_v23  ;;  %v12875_v10 = vld [vmem:[#allocation140_spill] sm:$0xff] }
 0x2be   :  { %4870 = vmatmul.mubr.f32.vlgmr.msra.gmra.mrb[2].mxu1 %v12863_v55  ;;  %v12877_v55 = vld [vmem:[#allocation147_spill] sm:$0xff] }
 0x2bf   :  { %6779 = vmatpush1.bf16.msra.mxu1 %v12868_v27  ;;  %5007 = vmatprep.mubr.f32.mxu1 %v12867_v23  ;;  %v12878_v27 = vld [vmem:[#allocation7_spill] sm:$0xff] }
 0x2c0   :  { %6781 = vmatprep.subr.bf16.mxu1 %v12869_v43  ;;  %6399 = vmatpush1.bf16.msra.mxu0 %v12870_v26  ;;  %v12879_v23 = vld [vmem:[#allocation19_spill] sm:$0xff]  ;;  %v12880_v43 = vld [vmem:[#allocation12_spill] sm:$0xff]  ;;  %v12881_v26 = vld [vmem:[#allocation21_spill] sm:$0xff] }
 0x2c1   :  { %6401 = vmatprep.subr.bf16.mxu0 %v12871_v22  ;;  %v12882_v22 = vld [vmem:[#allocation25_spill] sm:$0xff] }
 0x2c3   :  { %6783 = vmatpush1.bf16.msra.mxu1 %v12872_v14  ;;  %v12883_v14 = vld [vmem:[#allocation34_spill] sm:$0xff] }
 0x2c4   :  { %6785 = vmatprep.subr.bf16.mxu1 %v12873_v38  ;;  %6403 = vmatpush1.bf16.msra.mxu0 %v12874_v17  ;;  %v12884_v17 = vld [vmem:[#allocation26_spill] sm:$0xff] }
 0x2c5   :  { %6405 = vmatprep.subr.bf16.mxu0 %v12875_v10  ;;  %v12897_v10 = vld [vmem:[#allocation133_spill] sm:$0xff] }
 0x2c7   :  { %6787 = vmatpush1.bf16.msra.mxu1 %v12876_v33  ;;  %v12896_v33 = vld [vmem:[#allocation84_spill] sm:$0xff] }
 0x2c8   :  { %6789 = vmatprep.subr.bf16.mxu1 %v12877_v55  ;;  %6407 = vmatpush1.bf16.msra.mxu0 %v12878_v27  ;;  %v12894_v27 = vld [vmem:[#allocation76_spill] sm:$0xff] }
 0x2c9   :  { %6409 = vmatprep.subr.bf16.mxu0 %v12879_v23  ;;  %v12885_v23 = vld [vmem:[#allocation42_spill] sm:$0xff] }
 0x2cb   :  { %6791 = vmatpush1.bf16.msra.mxu1 %v12880_v43  ;;  %v12886_v43 = vld [vmem:[#allocation40_spill] sm:$0xff] }
 0x2cc   :  { %6793 = vmatprep.subr.bf16.mxu1 %v12881_v26  ;;  %6411 = vmatpush1.bf16.msra.mxu0 %v12882_v22  ;;  %v12887_v22 = vld [vmem:[#allocation55_spill] sm:$0xff] }
 0x2cd   :  { %6413 = vmatprep.subr.bf16.mxu0 %v12883_v14  ;;  %v12889_v14 = vld [vmem:[#allocation56_spill] sm:$0xff] }
 0x2ce   :  { %v1562_v38 = vpop.f32.mrb[0].mxu0 }
 0x2cf   :  { %6795 = vmatpush1.bf16.msra.mxu1 %v12884_v17  ;;  %5419 = vst [vmem:[%s10604_s2] sm:$0xff] %v1562_v38  ;;  %v1564_v55 = vpop.f32.mrb[1].mxu0  ;;  %v12888_v38 = vld [vmem:[#allocation47_spill] sm:$0xff] }
 0x2d0   :  { %5420 = vst [vmem:[%s10604_s2 + $0x8] sm:$0xff] %v1564_v55  ;;  %6797 = vmatprep.subr.bf16.mxu1 %v12885_v23  ;;  %6415 = vmatpush1.bf16.msra.mxu0 %v12886_v43  ;;  %v2846_v26 = vpop.f32.mrb[0].mxu1  ;;  %v12890_v55 = vld [vmem:[#allocation61_spill] sm:$0xff]  ;;  %v12891_v23 = vld [vmem:[#allocation72_spill] sm:$0xff]  ;;  %v12892_v43 = vld [vmem:[#allocation63_spill] sm:$0xff] }
 0x2d1   :  { %6417 = vmatprep.subr.bf16.mxu0 %v12887_v22  ;;  %5421 = vst [vmem:[%s10604_s2 + $0x10] sm:$0xff] %v2846_v26  ;;  %v2848_v17 = vpop.f32.mrb[1].mxu1  ;;  %v12893_v22 = vld [vmem:[#allocation78_spill] sm:$0xff]  ;;  %v12895_v26 = vld [vmem:[#allocation124_spill] sm:$0xff] }
 0x2d2   :  { %5422 = vst [vmem:[%s10604_s2 + $0x18] sm:$0xff] %v2848_v17  ;;  %v12898_v17 = vld [vmem:[#allocation151_spill] sm:$0xff] }
 0x2d3   :  { %6799 = vmatpush1.bf16.msra.mxu1 %v12888_v38  ;;  %v12899_v38 = vld [vmem:[#allocation168_spill] sm:$0xff] }
 0x2d4   :  { %6801 = vmatprep.subr.bf16.mxu1 %v12889_v14  ;;  %6419 = vmatpush1.bf16.msra.mxu0 %v12890_v55  ;;  %v12900_v14 = vld [vmem:[#allocation163_spill] sm:$0xff]  ;;  %v12901_v55 = vld [vmem:[#allocation172_spill] sm:$0xff] }
 0x2d5   :  { %6421 = vmatprep.subr.bf16.mxu0 %v12891_v23  ;;  %v12902_v23 = vld [vmem:[#allocation176_spill] sm:$0xff] }
 0x2d7   :  { %6803 = vmatpush1.bf16.msra.mxu1 %v12892_v43  ;;  %v12903_v43 = vld [vmem:[#allocation186_spill] sm:$0xff] }
 0x2d8   :  { %6805 = vmatprep.subr.bf16.mxu1 %v12893_v22  ;;  %6423 = vmatpush1.bf16.msra.mxu0 %v12894_v27  ;;  %v12904_v22 = vld [vmem:[#allocation181_spill] sm:$0xff]  ;;  %v12905_v27 = vld [vmem:[#allocation191_spill] sm:$0xff] }
 0x2d9   :  { %6425 = vmatprep.subr.bf16.mxu0 %v12895_v26  ;;  %v12906_v26 = vld [vmem:[#allocation196_spill] sm:$0xff] }
 0x2db   :  { %6807 = vmatpush1.bf16.msra.mxu1 %v12896_v33  ;;  %v12907_v33 = vld [vmem:[#allocation14_spill] sm:$0xff] }
 0x2dc   :  { %6809 = vmatprep.subr.bf16.mxu1 %v12897_v10  ;;  %6427 = vmatpush1.bf16.msra.mxu0 %v12898_v17  ;;  %v12908_v10 = vld [vmem:[#allocation9_spill] sm:$0xff] }
 0x2dd   :  { %6429 = vmatprep.subr.bf16.mxu0 %v12899_v38  ;;  %v12909_v17 = vld [vmem:[#allocation29_spill] sm:$0xff] }
 0x2de   :  { %v12910_v38 = vld [vmem:[#allocation41_spill] sm:$0xff] }
 0x2df   :  { %6811 = vmatpush1.bf16.msra.mxu1 %v12900_v14  ;;  %v12911_v14 = vld [vmem:[#allocation50_spill] sm:$0xff] }
 0x2e0   :  { %6813 = vmatprep.subr.bf16.mxu1 %v12901_v55  ;;  %6431 = vmatpush1.bf16.msra.mxu0 %v12902_v23  ;;  %v12912_v55 = vld [vmem:[#allocation44_spill] sm:$0xff]  ;;  %v12913_v23 = vld [vmem:[#allocation65_spill] sm:$0xff] }
 0x2e1   :  { %6433 = vmatprep.subr.bf16.mxu0 %v12903_v43  ;;  %v12914_v43 = vld [vmem:[#allocation71_spill] sm:$0xff] }
 0x2e3   :  { %6815 = vmatpush1.bf16.msra.mxu1 %v12904_v22  ;;  %v12915_v22 = vld [vmem:[#allocation86_spill] sm:$0xff] }
 0x2e4   :  { %6817 = vmatprep.subr.bf16.mxu1 %v12905_v27  ;;  %6435 = vmatpush1.bf16.msra.mxu0 %v12906_v26  ;;  %v12916_v27 = vld [vmem:[#allocation81_spill] sm:$0xff] }
 0x2e5   :  { %6437 = vmatprep.subr.bf16.mxu0 %v12907_v33  ;;  %v12917_v26 = vld [vmem:[#allocation101_spill] sm:$0xff]  ;;  %v12918_v33 = vld [vmem:[#allocation107_spill] sm:$0xff] }
 0x2e7   :  { %6819 = vmatpush1.bf16.msra.mxu1 %v12908_v10  ;;  %v12919_v10 = vld [vmem:[#allocation122_spill] sm:$0xff] }
 0x2e8   :  { %6821 = vmatprep.subr.bf16.mxu1 %v12909_v17  ;;  %6439 = vmatpush1.bf16.msra.mxu0 %v12910_v38  ;;  %v12920_v17 = vld [vmem:[#allocation117_spill] sm:$0xff] }
 0x2e9   :  { %6441 = vmatprep.subr.bf16.mxu0 %v12911_v14  ;;  %v12921_v38 = vld [vmem:[#allocation137_spill] sm:$0xff]  ;;  %v12922_v14 = vld [vmem:[#allocation143_spill] sm:$0xff] }
 0x2eb   :  { %6823 = vmatpush1.bf16.msra.mxu1 %v12912_v55  ;;  %v12923_v55 = vld [vmem:[#allocation165_spill] sm:$0xff] }
 0x2ec   :  { %6825 = vmatprep.subr.bf16.mxu1 %v12913_v23  ;;  %6443 = vmatpush1.bf16.msra.mxu0 %v12914_v43  ;;  %v12924_v43 = vand.u32 4294901760, %v12733_v35  ;;  %v12933_v35 = vand.u32 4294901760, %v12739_v41  ;;  %v12941_v41 = vand.u32 4294901760, %v12746_v51  ;;  %v12952_v51 = vld [vmem:[#allocation102_spill] sm:$0xff] }
 0x2ed   :  { %6445 = vmatprep.subr.bf16.mxu0 %v12915_v22  ;;  %v12925_v22 = vand.u32 4294901760, %v12734_v50  ;;  %v12934_v50 = vand.u32 4294901760, %v12740_v59  ;;  %v12942_v59 = vand.u32 4294901760, %v12747_v37  ;;  %v12953_v37 = vand.u32 4294901760, %v12952_v51  ;;  %v12968_v51 = vld [vmem:[#allocation159_spill] sm:$0xff] }
 0x2ef   :  { %6827 = vmatpush1.bf16.msra.mxu1 %v12916_v27  ;;  %v6456_v23 = vpack.c.bf16 %v12925_v22, %v12924_v43  ;;  %v12926_v27 = vld [vmem:[#allocation153_spill] sm:$0xff]  ;;  %v6460_v43 = vpack.c.bf16 %v12934_v50, %v12933_v35  ;;  %v12935_v22 = vld [vmem:[#allocation190_spill] sm:$0xff]  ;;  %v12945_v35 = vld [vmem:[#allocation96_spill] sm:$0xff] }
 0x2f0   :  { %6829 = vmatprep.subr.bf16.mxu1 %v12917_v26  ;;  %6447 = vmatpush1.bf16.msra.mxu0 %v12918_v33  ;;  %v12927_v26 = vld [vmem:[#allocation173_spill] sm:$0xff]  ;;  %v12928_v33 = vld [vmem:[#allocation179_spill] sm:$0xff] }
 0x2f1   :  { %6449 = vmatprep.subr.bf16.mxu0 %v12919_v10  ;;  %v12929_v10 = vand.u32 4294901760, %v12735_v6  ;;  %v12937_v6 = vand.u32 4294901760, %v12742_v5  ;;  %v12946_v5 = vand.u32 4294901760, %v12945_v35  ;;  %v12962_v35 = vld [vmem:[#allocation148_spill] sm:$0xff] }
 0x2f3   :  { %6831 = vmatpush1.bf16.msra.mxu1 %v12920_v17  ;;  %v12930_v17 = vand.u32 4294901760, %v12736_v11  ;;  %v12938_v11 = vand.u32 4294901760, %v12743_v15  ;;  %v12947_v15 = vld [vmem:[#allocation189_spill] sm:$0xff] }
 0x2f4   :  { %6833 = vmatprep.subr.bf16.mxu1 %v12921_v38  ;;  %6451 = vmatpush1.bf16.msra.mxu0 %v12922_v14  ;;  %v12931_v14 = vand.u32 4294901760, %v12737_v42  ;;  %v12939_v42 = vand.u32 4294901760, %v12744_v34 }
 0x2f5   :  { %6453 = vmatprep.subr.bf16.mxu0 %v12923_v55  ;;  %v6840_v38 = vpack.c.bf16 %v12930_v17, %v12929_v10  ;;  %v12932_v55 = vand.u32 4294901760, %v12738_v40  ;;  %v6842_v10 = vpack.c.bf16 %v12938_v11, %v12937_v6 }
 0x2f7   :  { %6835 = vmatpush1.bf16.msra.mxu1 %v12926_v27  ;;  %v6458_v32 = vpack.c.bf16 %v12932_v55, %v12931_v14  ;;  %v12940_v14 = vand.u32 4294901760, %v12745_v47  ;;  %v12943_v55 = vld [vmem:[#allocation94_spill] sm:$0xff]  ;;  %v12950_v47 = vld [vmem:[#allocation87_spill] sm:$0xff] }
 0x2f8   :  { %6837 = vmatprep.subr.bf16.mxu1 %v12927_v26  ;;  %6455 = vmatpush1.bf16.msra.mxu0 %v12928_v33  ;;  %v12936_v26 = vld [vmem:[#allocation202_spill] sm:$0xff]  ;;  %v12944_v17 = vand.u32 4294901760, %v12943_v55 }
 0x2f9   :  { %6457 = vmatprep.subr.bf16.mxu0 %v6456_v23  ;;  %v6844_v40 = vpack.c.bf16 %v12940_v14, %v12939_v42  ;;  %v6462_v23 = vpack.c.bf16 %v12942_v59, %v12941_v41  ;;  %v12956_v14 = vld [vmem:[#allocation100_spill] sm:$0xff] }
 0x2fa   :  { %v6464_v50 = vpack.c.bf16 %v12946_v5, %v12944_v17  ;;  %v12957_v41 = vand.u32 4294901760, %v12956_v14  ;;  %v12958_v59 = vld [vmem:[#allocation104_spill] sm:$0xff]  ;;  %v12963_v5 = vand.u32 4294901760, %v12962_v35 }
 0x2fb   :  { %6839 = vmatpush1.bf16.msra.mxu1 %v12935_v22  ;;  %3727 = vmatmul.mubr.f32.vlgmr.msra.gmra.mrb[2].mxu0 %v12936_v26  ;;  %v12959_v55 = vand.u32 4294901760, %v12958_v59  ;;  %v12974_v59 = vld [vmem:[#allocation10_spill] sm:$0xff]  ;;  %v12978_v35 = vld [vmem:[#allocation16_spill] sm:$0xff] }
 0x2fc   :  { %6841 = vmatprep.subr.bf16.mxu1 %v6840_v38  ;;  %6459 = vmatpush1.bf16.msra.mxu0 %v6458_v32  ;;  %v12948_v32 = vld [vmem:[#allocation90_spill] sm:$0xff]  ;;  %v12951_v38 = vand.u32 4294901760, %v12950_v47 }
 0x2fd   :  { %6461 = vmatprep.subr.bf16.mxu0 %v6460_v43  ;;  %3990 = vmatprep.mubr.f32.mxu0 %v12947_v15  ;;  %v12949_v34 = vand.u32 4294901760, %v12948_v32  ;;  %v12954_v43 = vld [vmem:[#allocation103_spill] sm:$0xff] }
 0x2fe   :  { %5011 = vmatmul.mubr.f32.vlgmr.msra.gmra.mrb[2].mxu1 %v12936_v26  ;;  %v12955_v11 = vand.u32 4294901760, %v12954_v43  ;;  %v6466_v26 = vpack.c.bf16 %v12959_v55, %v12957_v41  ;;  %v12970_v43 = vld [vmem:[#allocation6_spill] sm:$0xff]  ;;  %v12972_v41 = vld [vmem:[#allocation8_spill] sm:$0xff]  ;;  %v12975_v55 = vand.u32 4294901760, %v12974_v59  ;;  %v12990_v59 = vld [vmem:[#allocation31_spill] sm:$0xff] }
 0x2ff   :  { %6843 = vmatpush1.bf16.msra.mxu1 %v6842_v10  ;;  %v6846_v6 = vpack.c.bf16 %v12951_v38, %v12949_v34  ;;  %5274 = vmatprep.mubr.f32.mxu1 %v12947_v15  ;;  %v12960_v10 = vld [vmem:[#allocation144_spill] sm:$0xff]  ;;  %v12964_v34 = vld [vmem:[#allocation106_spill] sm:$0xff] }
 0x300   :  { %6845 = vmatprep.subr.bf16.mxu1 %v6844_v40  ;;  %6463 = vmatpush1.bf16.msra.mxu0 %v6462_v23  ;;  %v6848_v42 = vpack.c.bf16 %v12955_v11, %v12953_v37  ;;  %v12961_v17 = vand.u32 4294901760, %v12960_v10  ;;  %v12965_v40 = vand.u32 4294901760, %v12964_v34  ;;  %v12966_v23 = vld [vmem:[#allocation142_spill] sm:$0xff]  ;;  %v12969_v37 = vand.u32 4294901760, %v12968_v51 }
 0x301   :  { %6465 = vmatprep.subr.bf16.mxu0 %v6464_v50  ;;  %v12967_v47 = vand.u32 4294901760, %v12966_v23  ;;  %v12971_v11 = vand.u32 4294901760, %v12970_v43  ;;  %v12973_v50 = vand.u32 4294901760, %v12972_v41  ;;  %v12984_v51 = vld [vmem:[#allocation22_spill] sm:$0xff]  ;;  %v12986_v43 = vld [vmem:[#allocation23_spill] sm:$0xff] }
 0x302   :  { %v6468_v32 = vpack.c.bf16 %v12963_v5, %v12961_v17  ;;  %v12976_v17 = vld [vmem:[#allocation15_spill] sm:$0xff]  ;;  %v12979_v5 = vand.u32 4294901760, %v12978_v35  ;;  %v12994_v35 = vld [vmem:[#allocation37_spill] sm:$0xff] }
 0x303   :  { %6847 = vmatpush1.bf16.msra.mxu1 %v6846_v6  ;;  %v6850_v38 = vpack.c.bf16 %v12967_v47, %v12965_v40  ;;  %v6852_v14 = vpack.c.bf16 %v12971_v11, %v12969_v37  ;;  %v6470_v10 = vpack.c.bf16 %v12975_v55, %v12973_v50  ;;  %v12977_v6 = vand.u32 4294901760, %v12976_v17  ;;  %v12980_v40 = vld [vmem:[#allocation13_spill] sm:$0xff]  ;;  %v12988_v50 = vld [vmem:[#allocation30_spill] sm:$0xff] }
 0x304   :  { %6849 = vmatprep.subr.bf16.mxu1 %v6848_v42  ;;  %6467 = vmatpush1.bf16.msra.mxu0 %v6466_v26  ;;  %v12981_v42 = vand.u32 4294901760, %v12980_v40  ;;  %v12982_v26 = vld [vmem:[#allocation17_spill] sm:$0xff]  ;;  %v12985_v37 = vand.u32 4294901760, %v12984_v51  ;;  %v12987_v11 = vand.u32 4294901760, %v12986_v43  ;;  %v12991_v55 = vand.u32 4294901760, %v12990_v59  ;;  %v13000_v51 = vld [vmem:[#allocation43_spill] sm:$0xff] }
 0x305   :  { %6469 = vmatprep.subr.bf16.mxu0 %v6468_v32  ;;  %v6472_v34 = vpack.c.bf16 %v12979_v5, %v12977_v6  ;;  %v12983_v23 = vand.u32 4294901760, %v12982_v26  ;;  %v12989_v32 = vand.u32 4294901760, %v12988_v50  ;;  %v12992_v6 = vld [vmem:[#allocation36_spill] sm:$0xff]  ;;  %v12995_v5 = vand.u32 4294901760, %v12994_v35  ;;  %v13002_v43 = vld [vmem:[#allocation39_spill] sm:$0xff]  ;;  %v13006_v59 = vld [vmem:[#allocation46_spill] sm:$0xff] }
 0x306   :  { %v6856_v41 = vpack.c.bf16 %v12987_v11, %v12985_v37  ;;  %v13001_v37 = vand.u32 4294901760, %v13000_v51  ;;  %v13003_v11 = vand.u32 4294901760, %v13002_v43  ;;  %v13010_v35 = vld [vmem:[#allocation52_spill] sm:$0xff]  ;;  %v13016_v51 = vld [vmem:[#allocation58_spill] sm:$0xff] }
 0x307   :  { %6851 = vmatpush1.bf16.msra.mxu1 %v6850_v38  ;;  %v6854_v47 = vpack.c.bf16 %v12983_v23, %v12981_v42  ;;  %v6474_v17 = vpack.c.bf16 %v12991_v55, %v12989_v32  ;;  %v12993_v38 = vand.u32 4294901760, %v12992_v6  ;;  %v12996_v42 = vld [vmem:[#allocation28_spill] sm:$0xff]  ;;  %v13004_v32 = vld [vmem:[#allocation45_spill] sm:$0xff]  ;;  %v13007_v55 = vand.u32 4294901760, %v13006_v59  ;;  %v13022_v59 = vld [vmem:[#allocation67_spill] sm:$0xff] }
 0x308   :  { %6853 = vmatprep.subr.bf16.mxu1 %v6852_v14  ;;  %6471 = vmatpush1.bf16.msra.mxu0 %v6470_v10  ;;  %v12997_v14 = vand.u32 4294901760, %v12996_v42  ;;  %v12998_v10 = vld [vmem:[#allocation33_spill] sm:$0xff]  ;;  %v6860_v50 = vpack.c.bf16 %v13003_v11, %v13001_v37  ;;  %v13017_v37 = vand.u32 4294901760, %v13016_v51  ;;  %v13018_v43 = vld [vmem:[#allocation60_spill] sm:$0xff]  ;;  %v13032_v51 = vand.u32 4294901760, %v12793_v4 }
 0x309   :  { %6473 = vmatprep.subr.bf16.mxu0 %v6472_v34  ;;  %v6476_v40 = vpack.c.bf16 %v12995_v5, %v12993_v38  ;;  %v12999_v26 = vand.u32 4294901760, %v12998_v10  ;;  %v13005_v34 = vand.u32 4294901760, %v13004_v32  ;;  %v13008_v38 = vld [vmem:[#allocation51_spill] sm:$0xff]  ;;  %v13011_v5 = vand.u32 4294901760, %v13010_v35  ;;  %v13026_v35 = vld [vmem:[#allocation73_spill] sm:$0xff] }
 0x30a   :  { %v13019_v11 = vand.u32 4294901760, %v13018_v43 }
 0x30b   :  { %6855 = vmatpush1.bf16.msra.mxu1 %v6854_v47  ;;  %v6858_v23 = vpack.c.bf16 %v12999_v26, %v12997_v14  ;;  %v6478_v6 = vpack.c.bf16 %v13007_v55, %v13005_v34  ;;  %v13009_v47 = vand.u32 4294901760, %v13008_v38  ;;  %v13012_v14 = vld [vmem:[#allocation49_spill] sm:$0xff]  ;;  %v13020_v34 = vld [vmem:[#allocation66_spill] sm:$0xff]  ;;  %v13023_v55 = vand.u32 4294901760, %v13022_v59 }
 0x30c   :  { %6857 = vmatprep.subr.bf16.mxu1 %v6856_v41  ;;  %6475 = vmatpush1.bf16.msra.mxu0 %v6474_v17  ;;  %v13013_v41 = vand.u32 4294901760, %v13012_v14  ;;  %v13014_v17 = vld [vmem:[#allocation54_spill] sm:$0xff]  ;;  %v6864_v32 = vpack.c.bf16 %v13019_v11, %v13017_v37  ;;  %v13033_v37 = vand.u32 4294901760, %v12794_v25  ;;  %v13034_v11 = vld [vmem:[#allocation80_spill] sm:$0xff]  ;;  %v13046_v25 = vld [vmem:[#allocation139_spill] sm:$0xff] }
 0x30d   :  { %6477 = vmatprep.subr.bf16.mxu0 %v6476_v40  ;;  %v6480_v42 = vpack.c.bf16 %v13011_v5, %v13009_v47  ;;  %v13015_v10 = vand.u32 4294901760, %v13014_v17  ;;  %v13021_v40 = vand.u32 4294901760, %v13020_v34  ;;  %v13024_v47 = vld [vmem:[#allocation70_spill] sm:$0xff]  ;;  %v13027_v5 = vand.u32 4294901760, %v13026_v35 }
 0x30e   :  { %v6868_v43 = vpack.c.bf16 %v13033_v37, %v13032_v51  ;;  %v13036_v34 = vld [vmem:[#allocation82_spill] sm:$0xff] }
 0x30f   :  { %6859 = vmatpush1.bf16.msra.mxu1 %v6858_v23  ;;  %v6862_v26 = vpack.c.bf16 %v13015_v10, %v13013_v41  ;;  %v6482_v38 = vpack.c.bf16 %v13023_v55, %v13021_v40  ;;  %v13025_v23 = vand.u32 4294901760, %v13024_v47  ;;  %v13028_v41 = vld [vmem:[#allocation64_spill] sm:$0xff]  ;;  %v13037_v40 = vand.u32 4294901760, %v13036_v34  ;;  %v13040_v47 = vld [vmem:[#allocation130_spill] sm:$0xff]  ;;  %v13053_v34 = vld [vmem:[#allocation169_spill] sm:$0xff] }
 0x310   :  { %6861 = vmatprep.subr.bf16.mxu1 %v6860_v50  ;;  %6479 = vmatpush1.bf16.msra.mxu0 %v6478_v6  ;;  %v13029_v50 = vand.u32 4294901760, %v13028_v41  ;;  %v13030_v6 = vld [vmem:[#allocation68_spill] sm:$0xff]  ;;  %v13051_v37 = vld [vmem:[#allocation162_spill] sm:$0xff] }
 0x311   :  { %6481 = vmatprep.subr.bf16.mxu0 %v6480_v42  ;;  %v6484_v14 = vpack.c.bf16 %v13027_v5, %v13025_v23  ;;  %v13031_v17 = vand.u32 4294901760, %v13030_v6  ;;  %v13035_v42 = vand.u32 4294901760, %v13034_v11  ;;  %v13038_v55 = vld [vmem:[#allocation88_spill] sm:$0xff]  ;;  %v13041_v23 = vand.u32 4294901760, %v13040_v47  ;;  %v13042_v5 = vld [vmem:[#allocation85_spill] sm:$0xff] }
 0x312   :  { %v13048_v6 = vld [vmem:[#allocation145_spill] sm:$0xff]  ;;  %v13052_v11 = vand.u32 4294901760, %v13051_v37  ;;  %v13057_v47 = vld [vmem:[#allocation164_spill] sm:$0xff] }
 0x313   :  { %6863 = vmatpush1.bf16.msra.mxu1 %v6862_v26  ;;  %v6866_v10 = vpack.c.bf16 %v13031_v17, %v13029_v50  ;;  %v6486_v59 = vpack.c.bf16 %v13037_v40, %v13035_v42  ;;  %v13039_v26 = vand.u32 4294901760, %v13038_v55  ;;  %v13047_v50 = vand.u32 4294901760, %v13046_v25  ;;  %v13055_v40 = vld [vmem:[#allocation171_spill] sm:$0xff]  ;;  %v13070_v37 = vld [vmem:[#allocation188_spill] sm:$0xff] }
 0x314   :  { %6865 = vmatprep.subr.bf16.mxu1 %v6864_v32  ;;  %6483 = vmatpush1.bf16.msra.mxu0 %v6482_v38  ;;  %v13043_v32 = vand.u32 4294901760, %v13042_v5  ;;  %v13044_v38 = vld [vmem:[#allocation91_spill] sm:$0xff]  ;;  %v13049_v17 = vand.u32 4294901760, %v13048_v6  ;;  %v13056_v55 = vand.u32 4294901760, %v13055_v40  ;;  %v13067_v6 = vld [vmem:[#allocation180_spill] sm:$0xff]  ;;  %v13074_v40 = vand.u32 4294901760, %v12824_v56 }
 0x315   :  { %6485 = vmatprep.subr.bf16.mxu0 %v6484_v14  ;;  %v6488_v35 = vpack.c.bf16 %v13041_v23, %v13039_v26  ;;  %v13045_v41 = vand.u32 4294901760, %v13044_v38  ;;  %v13050_v14 = vand.u32 4294901760, %v12803_v63  ;;  %v13063_v63 = vld [vmem:[#allocation175_spill] sm:$0xff] }
 0x316   :  { %v6872_v51 = vpack.c.bf16 %v13049_v17, %v13047_v50  ;;  %v13065_v50 = vld [vmem:[#allocation178_spill] sm:$0xff]  ;;  %v13068_v17 = vand.u32 4294901760, %v13067_v6  ;;  %v13091_v6 = vld [vmem:[#allocation59_spill] sm:$0xff] }
 0x317   :  { %6867 = vmatpush1.bf16.msra.mxu1 %v6866_v10  ;;  %v6870_v4 = vpack.c.bf16 %v13045_v41, %v13043_v32  ;;  %v6490_v42 = vpack.c.bf16 %v13052_v11, %v13050_v14  ;;  %v13054_v10 = vand.u32 4294901760, %v13053_v34  ;;  %v13061_v32 = vld [vmem:[#allocation174_spill] sm:$0xff]  ;;  %v13064_v41 = vand.u32 4294901760, %v13063_v63 }
 0x318   :  { %6869 = vmatprep.subr.bf16.mxu1 %v6868_v43  ;;  %6487 = vmatpush1.bf16.msra.mxu0 %v6486_v59  ;;  %v13058_v43 = vand.u32 4294901760, %v13057_v47  ;;  %v13059_v59 = vld [vmem:[#allocation166_spill] sm:$0xff]  ;;  %v13062_v38 = vand.u32 4294901760, %v13061_v32  ;;  %v13071_v11 = vand.u32 4294901760, %v13070_v37  ;;  %v13082_v32 = vand.u32 4294901760, %v12832_v20 }
 0x319   :  { %6489 = vmatprep.subr.bf16.mxu0 %v6488_v35  ;;  %v6492_v26 = vpack.c.bf16 %v13056_v55, %v13054_v10  ;;  %v13060_v23 = vand.u32 4294901760, %v13059_v59  ;;  %v13066_v35 = vand.u32 4294901760, %v13065_v50  ;;  %v13075_v55 = vld [vmem:[#allocation194_spill] sm:$0xff]  ;;  %v13093_v20 = vand.u32 4294901760, %v12658_v28 }
 0x31a   :  { %v6876_v25 = vpack.c.bf16 %v13064_v41, %v13062_v38  ;;  %v13076_v47 = vand.u32 4294901760, %v13075_v55  ;;  %v13083_v38 = vand.u32 4294901760, %v12653_v46  ;;  %v13086_v41 = vld [vmem:[#allocation35_spill] sm:$0xff]  ;;  %v13088_v50 = vld [vmem:[#allocation38_spill] sm:$0xff]  ;;  %v13096_v37 = vand.u32 4294901760, %v12663_v53 }
 0x31b   :  { %6871 = vmatpush1.bf16.msra.mxu1 %v6870_v4  ;;  %v6874_v5 = vpack.c.bf16 %v13060_v23, %v13058_v43  ;;  %v6494_v14 = vpack.c.bf16 %v13068_v17, %v13066_v35  ;;  %v13069_v4 = vand.u32 4294901760, %v12818_v48  ;;  %v13078_v48 = vand.u32 4294901760, %v12826_v62  ;;  %v13102_v55 = vld [vmem:[#allocation95_spill] sm:$0xff] }
 0x31c   :  { %6873 = vmatprep.subr.bf16.mxu1 %v6872_v51  ;;  %6491 = vmatpush1.bf16.msra.mxu0 %v6490_v42  ;;  %v13072_v51 = vand.u32 4294901760, %v12821_v16  ;;  %v13073_v42 = vand.u32 4294901760, %v12820_v8  ;;  %v6880_v43 = vpack.c.bf16 %v13076_v47, %v13074_v40  ;;  %v13079_v23 = vand.u32 4294901760, %v12830_v18 }
 0x31d   :  { %6493 = vmatprep.subr.bf16.mxu0 %v6492_v26  ;;  %v6496_v34 = vpack.c.bf16 %v13071_v11, %v13069_v4  ;;  %v13077_v26 = vand.u32 4294901760, %v12827_v52  ;;  %v13080_v16 = vand.u32 4294901760, %v12829_v29  ;;  %v13081_v8 = vand.u32 4294901760, %v12833_v58  ;;  %v13084_v52 = vld [vmem:[#allocation32_spill] sm:$0xff]  ;;  %v13097_v11 = vld [vmem:[#allocation69_spill] sm:$0xff] }
 0x31e   :  { %v6878_v10 = vpack.c.bf16 %v13073_v42, %v13072_v51  ;;  %v13085_v63 = vand.u32 4294901760, %v13084_v52  ;;  %v13089_v18 = vand.u32 4294901760, %v13088_v50  ;;  %v13090_v29 = vand.u32 4294901760, %v12660_v7  ;;  %v13128_v50 = vld [vmem:[#allocation182_spill] sm:$0xff] }
 0x31f   :  { %6875 = vmatpush1.bf16.msra.mxu1 %v6874_v5  ;;  %v6498_v59 = vpack.c.bf16 %v13078_v48, %v13077_v26  ;;  %v6500_v5 = vpack.c.bf16 %v13080_v16, %v13079_v23  ;;  %v6882_v56 = vpack.c.bf16 %v13082_v32, %v13081_v8  ;;  %v13092_v58 = vand.u32 4294901760, %v13091_v6 }
 0x320   :  { %6877 = vmatprep.subr.bf16.mxu1 %v6876_v25  ;;  %6495 = vmatpush1.bf16.msra.mxu0 %v6494_v14  ;;  %v6884_v62 = vpack.c.bf16 %v13085_v63, %v13083_v38  ;;  %v13087_v25 = vand.u32 4294901760, %v13086_v41  ;;  %v13094_v14 = vld [vmem:[#allocation53_spill] sm:$0xff]  ;;  %v13099_v42 = vand.u32 4294901760, %v12665_v54  ;;  %v13100_v7 = vand.u32 4294901760, %v12666_v36  ;;  %v13119_v38 = vld [vmem:[#allocation167_spill] sm:$0xff] }
 0x321   :  { %6497 = vmatprep.subr.bf16.mxu0 %v6496_v34  ;;  %v6504_v17 = vpack.c.bf16 %v13092_v58, %v13090_v29  ;;  %v13095_v4 = vand.u32 4294901760, %v13094_v14  ;;  %v13098_v34 = vand.u32 4294901760, %v13097_v11  ;;  %v13101_v40 = vand.u32 4294901760, %v12843_v19  ;;  %v13122_v63 = vld [vmem:[#allocation161_spill] sm:$0xff]  ;;  %v13138_v14 = vld [vmem:[#allocation127_spill] sm:$0xff]  ;;  %v13142_v11 = vld [vmem:[#allocation92_spill] sm:$0xff] }
 0x322   :  { %v6502_v35 = vpack.c.bf16 %v13089_v18, %v13087_v25  ;;  %v13103_v28 = vand.u32 4294901760, %v13102_v55  ;;  %v13105_v26 = vand.u32 4294901760, %v12845_v21  ;;  %v13106_v48 = vand.u32 4294901760, %v12848_v61  ;;  %v13149_v55 = vld [vmem:[#allocation7_spill] sm:$0xff] }
 0x323   :  { %6879 = vmatpush1.bf16.msra.mxu1 %v6878_v10  ;;  %v6886_v46 = vpack.c.bf16 %v13095_v4, %v13093_v20  ;;  %v6888_v51 = vpack.c.bf16 %v13098_v34, %v13096_v37  ;;  %v6506_v10 = vpack.c.bf16 %v13100_v7, %v13099_v42  ;;  %v13107_v54 = vand.u32 4294901760, %v12714_v31  ;;  %v13136_v20 = vld [vmem:[#allocation111_spill] sm:$0xff]  ;;  %v13139_v4 = vld [vmem:[#allocation120_spill] sm:$0xff]  ;;  %v13141_v37 = vld [vmem:[#allocation150_spill] sm:$0xff] }
 0x324   :  { %6881 = vmatprep.subr.bf16.mxu1 %v6880_v43  ;;  %6499 = vmatpush1.bf16.msra.mxu0 %v6498_v59  ;;  %v6508_v47 = vpack.c.bf16 %v13103_v28, %v13101_v40  ;;  %v13104_v43 = vand.u32 4294901760, %v12846_v24  ;;  %v13108_v59 = vand.u32 4294901760, %v12850_v45  ;;  %v13109_v19 = vand.u32 4294901760, %v12674_v57  ;;  %v13143_v34 = vld [vmem:[#allocation156_spill] sm:$0xff]  ;;  %v13145_v42 = vld [vmem:[#allocation99_spill] sm:$0xff] }
 0x325   :  { %6501 = vmatprep.subr.bf16.mxu0 %v6500_v5  ;;  %v6892_v36 = vpack.c.bf16 %v13107_v54, %v13106_v48  ;;  %v13110_v16 = vand.u32 4294901760, %v12725_v2  ;;  %v13111_v24 = vand.u32 4294901760, %v12726_v39  ;;  %v13112_v21 = vand.u32 4294901760, %v12853_v1  ;;  %v13146_v7 = vld [vmem:[#allocation140_spill] sm:$0xff]  ;;  %v13148_v40 = vld [vmem:[#allocation147_spill] sm:$0xff]  ;;  %v13156_v48 = vld [vmem:[#allocation42_spill] sm:$0xff] }
 0x326   :  { %v6890_v53 = vpack.c.bf16 %v13105_v26, %v13104_v43  ;;  %v6510_v23 = vpack.c.bf16 %v13109_v19, %v13108_v59  ;;  %v13113_v8 = vand.u32 4294901760, %v12676_v12  ;;  %v13114_v31 = vand.u32 4294901760, %v12727_v0  ;;  %v13151_v28 = vld [vmem:[#allocation12_spill] sm:$0xff]  ;;  %v13153_v43 = vld [vmem:[#allocation25_spill] sm:$0xff]  ;;  %v13154_v26 = vld [vmem:[#allocation34_spill] sm:$0xff] }
 0x327   :  { %6883 = vmatpush1.bf16.msra.mxu1 %v6882_v56  ;;  %v6512_v5 = vpack.c.bf16 %v13111_v24, %v13110_v16  ;;  %v13115_v45 = vand.u32 4294901760, %v12728_v13  ;;  %v13116_v32 = vand.u32 4294901760, %v12682_v30  ;;  %v13117_v2 = vand.u32 4294901760, %v12729_v49  ;;  %v13125_v30 = vld [vmem:[#allocation177_spill] sm:$0xff]  ;;  %v13157_v54 = vld [vmem:[#allocation40_spill] sm:$0xff]  ;;  %v13159_v59 = vld [vmem:[#allocation47_spill] sm:$0xff] }
 0x328   :  { %6885 = vmatprep.subr.bf16.mxu1 %v6884_v62  ;;  %6503 = vmatpush1.bf16.msra.mxu0 %v6502_v35  ;;  %v6894_v61 = vpack.c.bf16 %v13113_v8, %v13112_v21  ;;  %v13118_v39 = vand.u32 4294901760, %v12686_v60  ;;  %v13120_v1 = vand.u32 4294901760, %v13119_v38  ;;  %v13121_v12 = vand.u32 4294901760, %v12684_v9  ;;  %v13130_v35 = vld [vmem:[#allocation192_spill] sm:$0xff]  ;;  %v13132_v9 = vld [vmem:[#allocation195_spill] sm:$0xff]  ;;  %v13175_v38 = vld [vmem:[#allocation181_spill] sm:$0xff] }
 0x329   :  { %6505 = vmatprep.subr.bf16.mxu0 %v6504_v17  ;;  %v6896_v57 = vpack.c.bf16 %v13115_v45, %v13114_v31  ;;  %v6514_v56 = vpack.c.bf16 %v13117_v2, %v13116_v32  ;;  %v13123_v62 = vand.u32 4294901760, %v13122_v63  ;;  %v13124_v13 = vand.u32 4294901760, %v12688_v3  ;;  %v13134_v17 = vld [vmem:[#allocation157_spill] sm:$0xff]  ;;  %v13135_v3 = vld [vmem:[#allocation199_spill] sm:$0xff]  ;;  %v13160_v19 = vld [vmem:[#allocation56_spill] sm:$0xff] }
 0x32a   :  { %v6516_v52 = vpack.c.bf16 %v13120_v1, %v13118_v39  ;;  %v13126_v41 = vand.u32 4294901760, %v13125_v30  ;;  %v13127_v25 = vand.u32 4294901760, %v12690_v44  ;;  %v13129_v60 = vand.u32 4294901760, %v13128_v50  ;;  %v13137_v44 = vld [vmem:[#allocation112_spill] sm:$0xff]  ;;  %v13163_v24 = vld [vmem:[#allocation63_spill] sm:$0xff]  ;;  %v13168_v31 = vld [vmem:[#allocation133_spill] sm:$0xff] }
 0x32b   :  { %6887 = vmatpush1.bf16.msra.mxu1 %v6886_v46  ;;  %v6898_v0 = vpack.c.bf16 %v13123_v62, %v13121_v12  ;;  %v13131_v29 = vand.u32 4294901760, %v13130_v35  ;;  %v13133_v6 = vand.u32 4294901760, %v13132_v9  ;;  %v13140_v46 = vld [vmem:[#allocation132_spill] sm:$0xff]  ;;  %v13169_v45 = vld [vmem:[#allocation151_spill] sm:$0xff]  ;;  %v13174_v39 = vld [vmem:[#allocation186_spill] sm:$0xff] }
 0x32c   :  { %6889 = vmatprep.subr.bf16.mxu1 %v6888_v51  ;;  %6507 = vmatpush1.bf16.msra.mxu0 %v6506_v10  ;;  %v6900_v49 = vpack.c.bf16 %v13126_v41, %v13124_v13  ;;  %v6518_v18 = vpack.c.bf16 %v13129_v60, %v13127_v25  ;;  %v13144_v51 = vld [vmem:[#allocation97_spill] sm:$0xff]  ;;  %v13147_v10 = vld [vmem:[#allocation135_spill] sm:$0xff]  ;;  %v13162_v16 = vld [vmem:[#allocation72_spill] sm:$0xff] }
 0x32d   :  { %6509 = vmatprep.subr.bf16.mxu0 %v6508_v47  ;;  %v6902_v58 = vpack.c.bf16 %v13133_v6, %v13131_v29  ;;  %v13152_v47 = vld [vmem:[#allocation21_spill] sm:$0xff]  ;;  %v13165_v21 = vld [vmem:[#allocation76_spill] sm:$0xff]  ;;  %v13171_v32 = vld [vmem:[#allocation163_spill] sm:$0xff] }
 0x32e   :  { %v13166_v8 = vld [vmem:[#allocation124_spill] sm:$0xff]  ;;  %v13176_v1 = vld [vmem:[#allocation191_spill] sm:$0xff]  ;;  %v13178_v12 = vld [vmem:[#allocation14_spill] sm:$0xff] }
 0x32f   :  { %6891 = vmatpush1.bf16.msra.mxu1 %v6890_v53  ;;  %v13155_v53 = vld [vmem:[#allocation26_spill] sm:$0xff]  ;;  %v13172_v2 = vld [vmem:[#allocation172_spill] sm:$0xff]  ;;  %v13179_v63 = vld [vmem:[#allocation9_spill] sm:$0xff] }
 0x330   :  { %6893 = vmatprep.subr.bf16.mxu1 %v6892_v36  ;;  %6511 = vmatpush1.bf16.msra.mxu0 %v6510_v23  ;;  %v13158_v36 = vld [vmem:[#allocation55_spill] sm:$0xff]  ;;  %v13161_v23 = vld [vmem:[#allocation61_spill] sm:$0xff]  ;;  %v13182_v13 = vld [vmem:[#allocation50_spill] sm:$0xff] }
 0x331   :  { %6513 = vmatprep.subr.bf16.mxu0 %v6512_v5  ;;  %v13164_v5 = vld [vmem:[#allocation78_spill] sm:$0xff]  ;;  %v13180_v62 = vld [vmem:[#allocation29_spill] sm:$0xff]  ;;  %v13183_v30 = vld [vmem:[#allocation44_spill] sm:$0xff] }
 0x332   :  { %v13184_v41 = vld [vmem:[#allocation65_spill] sm:$0xff]  ;;  %v13186_v25 = vld [vmem:[#allocation86_spill] sm:$0xff]  ;;  %v13193_v6 = vld [vmem:[#allocation143_spill] sm:$0xff] }
 0x333   :  { %6895 = vmatpush1.bf16.msra.mxu1 %v6894_v61  ;;  %v13167_v61 = vld [vmem:[#allocation84_spill] sm:$0xff]  ;;  %v13187_v50 = vld [vmem:[#allocation81_spill] sm:$0xff]  ;;  %v13190_v35 = vld [vmem:[#allocation122_spill] sm:$0xff] }
 0x334   :  { %6897 = vmatprep.subr.bf16.mxu1 %v6896_v57  ;;  %6515 = vmatpush1.bf16.msra.mxu0 %v6514_v56  ;;  %v13170_v57 = vld [vmem:[#allocation168_spill] sm:$0xff]  ;;  %v13188_v60 = vld [vmem:[#allocation101_spill] sm:$0xff] }
 0x335   :  { %6517 = vmatprep.subr.bf16.mxu0 %v6516_v52  ;;  %v13173_v56 = vld [vmem:[#allocation176_spill] sm:$0xff]  ;;  %v13191_v29 = vld [vmem:[#allocation117_spill] sm:$0xff] }
 0x336   :  { %v13177_v52 = vld [vmem:[#allocation196_spill] sm:$0xff]  ;;  %v13192_v9 = vld [vmem:[#allocation137_spill] sm:$0xff] }
 0x337   :  { %6899 = vmatpush1.bf16.msra.mxu1 %v6898_v0  ;;  %v13181_v0 = vld [vmem:[#allocation41_spill] sm:$0xff] }
 0x338   :  { %6901 = vmatprep.subr.bf16.mxu1 %v6900_v49  ;;  %6519 = vmatpush1.bf16.msra.mxu0 %v6518_v18  ;;  %v13185_v49 = vld [vmem:[#allocation71_spill] sm:$0xff] }
 0x339   :  { %6521 = vmatprep.subr.bf16.mxu0 %v13134_v17  ;;  %v13189_v18 = vld [vmem:[#allocation107_spill] sm:$0xff]  ;;  %v13195_v17 = vld [vmem:[#allocation173_spill] sm:$0xff] }
 0x33b   :  { %6903 = vmatpush1.bf16.msra.mxu1 %v6902_v58  ;;  %3992 = vmatmul.mubr.f32.vlgmr.msra.gmra.mrb[2].mxu0 %v13135_v3  ;;  %v13194_v58 = vld [vmem:[#allocation165_spill] sm:$0xff] }
 0x33c   :  { %6905 = vmatprep.subr.bf16.mxu1 %v13136_v20  ;;  %6523 = vmatpush1.bf16.msra.mxu0 %v13137_v44 }
 0x33d   :  { %6525 = vmatprep.subr.bf16.mxu0 %v13138_v14  ;;  %4127 = vmatprep.mubr.f32.mxu0 %v12947_v15 }
 0x33e   :  { %5276 = vmatmul.mubr.f32.vlgmr.msra.gmra.mrb[2].mxu1 %v13135_v3 }
 0x33f   :  { %6907 = vmatpush1.bf16.msra.mxu1 %v13139_v4  ;;  %5411 = vmatprep.mubr.f32.mxu1 %v12947_v15  ;;  %v13150_v15 = vld [vmem:[#allocation19_spill] sm:$0xff] }
 0x340   :  { %6909 = vmatprep.subr.bf16.mxu1 %v13140_v46  ;;  %6527 = vmatpush1.bf16.msra.mxu0 %v13141_v37 }
 0x341   :  { %6529 = vmatprep.subr.bf16.mxu0 %v13142_v11 }
 0x343   :  { %6911 = vmatpush1.bf16.msra.mxu1 %v13143_v34 }
 0x344   :  { %6913 = vmatprep.subr.bf16.mxu1 %v13144_v51  ;;  %6531 = vmatpush1.bf16.msra.mxu0 %v13145_v42 }
 0x345   :  { %6533 = vmatprep.subr.bf16.mxu0 %v13146_v7 }
 0x347   :  { %6915 = vmatpush1.bf16.msra.mxu1 %v13147_v10 }
 0x348   :  { %6917 = vmatprep.subr.bf16.mxu1 %v13148_v40  ;;  %6535 = vmatpush1.bf16.msra.mxu0 %v13149_v55 }
 0x349   :  { %6537 = vmatprep.subr.bf16.mxu0 %v13150_v15 }
 0x34b   :  { %6919 = vmatpush1.bf16.msra.mxu1 %v13151_v28 }
 0x34c   :  { %6921 = vmatprep.subr.bf16.mxu1 %v13152_v47  ;;  %6539 = vmatpush1.bf16.msra.mxu0 %v13153_v43 }
 0x34d   :  { %6541 = vmatprep.subr.bf16.mxu0 %v13154_v26 }
 0x34f   :  { %6923 = vmatpush1.bf16.msra.mxu1 %v13155_v53 }
 0x350   :  { %6925 = vmatprep.subr.bf16.mxu1 %v13156_v48  ;;  %6543 = vmatpush1.bf16.msra.mxu0 %v13157_v54 }
 0x351   :  { %6545 = vmatprep.subr.bf16.mxu0 %v13158_v36 }
 0x353   :  { %6927 = vmatpush1.bf16.msra.mxu1 %v13159_v59 }
 0x354   :  { %6929 = vmatprep.subr.bf16.mxu1 %v13160_v19  ;;  %6547 = vmatpush1.bf16.msra.mxu0 %v13161_v23 }
 0x355   :  { %6549 = vmatprep.subr.bf16.mxu0 %v13162_v16 }
 0x357   :  { %6931 = vmatpush1.bf16.msra.mxu1 %v13163_v24 }
 0x358   :  { %6933 = vmatprep.subr.bf16.mxu1 %v13164_v5  ;;  %6551 = vmatpush1.bf16.msra.mxu0 %v13165_v21 }
 0x359   :  { %6553 = vmatprep.subr.bf16.mxu0 %v13166_v8 }
 0x35b   :  { %6935 = vmatpush1.bf16.msra.mxu1 %v13167_v61 }
 0x35c   :  { %6937 = vmatprep.subr.bf16.mxu1 %v13168_v31  ;;  %6555 = vmatpush1.bf16.msra.mxu0 %v13169_v45 }
 0x35d   :  { %6557 = vmatprep.subr.bf16.mxu0 %v13170_v57 }
 0x35f   :  { %6939 = vmatpush1.bf16.msra.mxu1 %v13171_v32 }
 0x360   :  { %6941 = vmatprep.subr.bf16.mxu1 %v13172_v2  ;;  %6559 = vmatpush1.bf16.msra.mxu0 %v13173_v56 }
 0x361   :  { %6561 = vmatprep.subr.bf16.mxu0 %v13174_v39 }
 0x363   :  { %6943 = vmatpush1.bf16.msra.mxu1 %v13175_v38 }
 0x364   :  { %6945 = vmatprep.subr.bf16.mxu1 %v13176_v1  ;;  %6563 = vmatpush1.bf16.msra.mxu0 %v13177_v52 }
 0x365   :  { %6565 = vmatprep.subr.bf16.mxu0 %v13178_v12 }
 0x367   :  { %6947 = vmatpush1.bf16.msra.mxu1 %v13179_v63 }
 0x368   :  { %6949 = vmatprep.subr.bf16.mxu1 %v13180_v62  ;;  %6567 = vmatpush1.bf16.msra.mxu0 %v13181_v0 }
 0x369   :  { %6569 = vmatprep.subr.bf16.mxu0 %v13182_v13 }
 0x36b   :  { %6951 = vmatpush1.bf16.msra.mxu1 %v13183_v30 }
 0x36c   :  { %6953 = vmatprep.subr.bf16.mxu1 %v13184_v41  ;;  %6571 = vmatpush1.bf16.msra.mxu0 %v13185_v49 }
 0x36d   :  { %6573 = vmatprep.subr.bf16.mxu0 %v13186_v25 }
 0x36f   :  { %6955 = vmatpush1.bf16.msra.mxu1 %v13187_v50 }
 0x370   :  { %6957 = vmatprep.subr.bf16.mxu1 %v13188_v60  ;;  %6575 = vmatpush1.bf16.msra.mxu0 %v13189_v18 }
 0x371   :  { %6577 = vmatprep.subr.bf16.mxu0 %v13190_v35 }
 0x373   :  { %6959 = vmatpush1.bf16.msra.mxu1 %v13191_v29 }
 0x374   :  { %6961 = vmatprep.subr.bf16.mxu1 %v13192_v9  ;;  %6579 = vmatpush1.bf16.msra.mxu0 %v13193_v6 }
 0x375   :  { %6581 = vmatprep.subr.bf16.mxu0 %v13194_v58 }
 0x377   :  { %6963 = vmatpush1.bf16.msra.mxu1 %v12926_v27 }
 0x378   :  { %6965 = vmatprep.subr.bf16.mxu1 %v13195_v17  ;;  %6583 = vmatpush1.bf16.msra.mxu0 %v12928_v33 }
 0x37b   :  { %6967 = vmatpush1.bf16.msra.mxu1 %v12935_v22  ;;  %4129 = vmatmul.mubr.f32.vlgmr.msra.gmra.mrb[2].mxu0 %v13135_v3 }
 0x37e   :  { %5413 = vmatmul.mubr.f32.vlgmr.msra.gmra.mrb[2].mxu1 %v13135_v3 }
 0x44e   :  { %v4130_v20 = vpop.f32.mrb[2].mxu0 }
 0x44f   :  { %5423 = vst [vmem:[%s10604_s2 + $0x20] sm:$0xff] %v4130_v20  ;;  %v4132_v44 = vpop.f32.mrb[3].mxu0 }
 0x450   :  { %5424 = vst [vmem:[%s10604_s2 + $0x28] sm:$0xff] %v4132_v44 }
 0x451   :  { %v5414_v27 = vpop.f32.mrb[2].mxu1 }
 0x452   :  { %5425 = vst [vmem:[%s10604_s2 + $0x30] sm:$0xff] %v5414_v27  ;;  %v5416_v33 = vpop.f32.mrb[3].mxu1 }
 0x453   :  { %5426 = vst [vmem:[%s10604_s2 + $0x38] sm:$0xff] %v5416_v33 }
 0x454   :  { %5431 = vsyncpa [#allocation3], 1 }

</bundles_post_ra>
